<compile_context>
chip_gen: v7x
topology: tpu7x:2x2x1
jax: 0.10.0
libtpu: 0.0.40
codegen_flags: <defaults>
</compile_context>

<pallas_src>
import functools

import jax
import jax.numpy as jnp
from jax.experimental import pallas as pl
from jax.experimental.pallas import tpu as pltpu


# ---------------------------------------------------------------------------
# helpers
# ---------------------------------------------------------------------------

def _round_up(x, m):
    return (x + m - 1) // m * m


def _pad_c(c):
    # lane-dense channel count (multiple of 128)
    return _round_up(c, 128)


def _live_taps(h, w, kh, kw, stride, pad):
    """Taps (di, dj) of a (kh, kw) window that touch at least one real (non
    zero-padding) input position for some output position.  Dropping the dead
    taps is exact: their im2col columns are identically zero."""
    ho = (h + 2 * pad - kh) // stride + 1
    wo = (w + 2 * pad - kw) // stride + 1
    rows = [di for di in range(kh)
            if any(pad <= di + stride * o < h + pad for o in range(ho))]
    cols = [dj for dj in range(kw)
            if any(pad <= dj + stride * o < w + pad for o in range(wo))]
    return [(di, dj) for di in rows for dj in cols]


# ---------------------------------------------------------------------------
# Pallas kernels
# ---------------------------------------------------------------------------

def _gemm_bn_kernel(*refs, relu, has_residual):
    """Single-step GEMM with fused BatchNorm(+residual)(+ReLU) epilogue."""
    if has_residual:
        a_ref, b_ref, s_ref, t_ref, r_ref, o_ref = refs
    else:
        a_ref, b_ref, s_ref, t_ref, o_ref = refs
        r_ref = None
    y = jnp.dot(a_ref[...], b_ref[...], preferred_element_type=jnp.float32)
    y = y * s_ref[...] + t_ref[...]
    if has_residual:
        y = y + r_ref[...].astype(jnp.float32)
    if relu:
        y = jnp.maximum(y, 0.0)
    o_ref[...] = y.astype(o_ref.dtype)


def _block1x1_kernel(*refs, has_down):
    """Whole BasicBlock fused into one kernel (valid when conv1's output map
    is 1x1, so conv2's 3x3 reduces to its centre tap == a plain GEMM)."""
    if has_down:
        (p1_ref, w1_ref, s1_ref, t1_ref,
         w2_ref, s2_ref, t2_ref,
         xd_ref, wd_ref, sd_ref, td_ref, o_ref) = refs
    else:
        (p1_ref, w1_ref, s1_ref, t1_ref,
         w2_ref, s2_ref, t2_ref,
         res_ref, o_ref) = refs

    y1 = jnp.dot(p1_ref[...], w1_ref[...], preferred_element_type=jnp.float32)
    y1 = jnp.maximum(y1 * s1_ref[...] + t1_ref[...], 0.0)
    y2 = jnp.dot(y1.astype(w2_ref.dtype), w2_ref[...],
                 preferred_element_type=jnp.float32)
    y2 = y2 * s2_ref[...] + t2_ref[...]
    if has_down:
        idn = jnp.dot(xd_ref[...], wd_ref[...],
                      preferred_element_type=jnp.float32)
        idn = idn * sd_ref[...] + td_ref[...]
    else:
        idn = res_ref[...].astype(jnp.float32)
    o_ref[...] = jnp.maximum(y2 + idn, 0.0).astype(o_ref.dtype)


def _pool_fc_kernel(x_ref, w_ref, b_ref, o_ref):
    # Fused global average pool (over H*W) + final Linear.
    x = x_ref[...].astype(jnp.float32)                     # (N, H*W, C)
    pooled = jnp.sum(x, axis=1) * (1.0 / x_ref.shape[1])   # (N, C)
    o_ref[...] = jnp.dot(pooled, w_ref[...],
                         preferred_element_type=jnp.float32) + b_ref[...]


# ---------------------------------------------------------------------------
# fused GEMM wrapper (single K step, bf16 MXU inputs, f32 epilogue)
# ---------------------------------------------------------------------------

def fused_gemm_bn_act(a, b, scale, shift, residual=None, relu=False,
                      out_dtype=jnp.bfloat16):
    """(M, K) @ (K, N) with a fused BN / residual / ReLU epilogue.

    a:        (M, K) bf16 activations / im2col patches
    b:        (K, N) bf16 folded weights (K already a multiple of 128)
    scale:    (1, N) f32 folded BatchNorm scale
    shift:    (1, N) f32 folded BatchNorm shift
    residual: optional (M, N) tensor added before the ReLU
    """
    m, k = a.shape
    kb, n = b.shape
    assert k == kb, (k, kb)

    # Single K step (no reduction axis, no scratch); tile M/N only if large.
    if m <= 256:
        tm, m_pad = m, m
    else:
        tm = 128
        m_pad = _round_up(m, tm)
    tn = 256 if (n > 256 and n % 256 == 0) else n
    gm, gn = m_pad // tm, n // tn

    a_p = a.astype(jnp.bfloat16)
    if m_pad != m:
        a_p = jnp.pad(a_p, ((0, m_pad - m), (0, 0)))

    args = [a_p, b, scale, shift]
    in_specs = [
        pl.BlockSpec((tm, k), lambda i, j: (i, 0)),
        pl.BlockSpec((k, tn), lambda i, j: (0, j)),
        pl.BlockSpec((1, tn), lambda i, j: (0, j)),
        pl.BlockSpec((1, tn), lambda i, j: (0, j)),
    ]
    if residual is not None:
        r = residual
        if m_pad != m:
            r = jnp.pad(r, ((0, m_pad - m), (0, 0)))
        args.append(r)
        in_specs.append(pl.BlockSpec((tm, tn), lambda i, j: (i, j)))

    out = pl.pallas_call(
        functools.partial(_gemm_bn_kernel, relu=relu,
                          has_residual=residual is not None),
        out_shape=jax.ShapeDtypeStruct((m_pad, n), out_dtype),
        grid=(gm, gn),
        in_specs=in_specs,
        out_specs=pl.BlockSpec((tm, tn), lambda i, j: (i, j)),
        compiler_params=pltpu.CompilerParams(
            dimension_semantics=("parallel", "parallel")),
    )(*args)
    return out[:m] if m_pad != m else out


# ---------------------------------------------------------------------------
# layer helpers (im2col / reshapes are plain-JAX glue)
# ---------------------------------------------------------------------------

def _im2col(x, kh, kw, stride, pad, taps, k_pad):
    """Builds (M, len(taps)*C) patches for the live taps only."""
    n, h, w, c = x.shape
    ho = (h + 2 * pad - kh) // stride + 1
    wo = (w + 2 * pad - kw) // stride + 1
    xp = jnp.pad(x, ((0, 0), (pad, pad), (pad, pad), (0, 0))) if pad else x
    if len(taps) == 1:
        di, dj = taps[0]
        patches = xp[:, di:di + stride * ho:stride,
                     dj:dj + stride * wo:stride, :].reshape(n * ho * wo, c)
    else:
        views = [xp[:, di:di + stride * ho:stride,
                    dj:dj + stride * wo:stride, :] for (di, dj) in taps]
        patches = jnp.stack(views, axis=3).reshape(n * ho * wo, len(taps) * c)
    if k_pad > patches.shape[1]:   # only the stem (49*4=196 -> 256) needs this
        patches = jnp.pad(patches, ((0, 0), (0, k_pad - patches.shape[1])))
    return patches, ho, wo


def conv_bn_act(x, cb, kh, kw, stride, pad, relu, residual=None):
    n, h, w, c = x.shape
    taps = _live_taps(h, w, kh, kw, stride, pad)
    assert cb["w"].shape[0] == _round_up(len(taps) * c, 128), \
        "params were prepared for a different input spatial size"
    patches, ho, wo = _im2col(x, kh, kw, stride, pad, taps, cb["w"].shape[0])
    res = residual.reshape(n * ho * wo, -1) if residual is not None else None
    out = fused_gemm_bn_act(patches, cb["w"], cb["scale"], cb["shift"],
                            residual=res, relu=relu)
    return out.reshape(n, ho, wo, -1)


def maxpool_3x3_s2_p1(x):
    # Plain-XLA incremental max over the 9 taps: no 9x-expanded HBM tensor,
    # no extra kernel launch; XLA fuses this into one op.
    n, h, w, c = x.shape
    ho = (h + 2 - 3) // 2 + 1
    wo = (w + 2 - 3) // 2 + 1
    xp = jnp.pad(x, ((0, 0), (1, 1), (1, 1), (0, 0)),
                 constant_values=-jnp.inf)
    out = None
    for di in range(3):
        for dj in range(3):
            v = xp[:, di:di + 2 * ho:2, dj:dj + 2 * wo:2, :]
            out = v if out is None else jnp.maximum(out, v)
    return out


def _basic_block_1x1(x, blk, stride):
    """Whole BasicBlock in one pallas_call (conv1 output map is 1x1)."""
    n, h, w, c = x.shape
    taps1 = _live_taps(h, w, 3, 3, stride, 1)
    assert blk["cb1"]["w"].shape[0] == _round_up(len(taps1) * c, 128)
    assert blk["cb2"]["w"].shape[0] == blk["cb1"]["w"].shape[1]
    p1, ho, wo = _im2col(x, 3, 3, stride, 1, taps1, blk["cb1"]["w"].shape[0])
    m = n * ho * wo
    n_out = blk["cb2"]["w"].shape[1]
    has_down = "down" in blk

    args = [p1, blk["cb1"]["w"], blk["cb1"]["scale"], blk["cb1"]["shift"],
            blk["cb2"]["w"], blk["cb2"]["scale"], blk["cb2"]["shift"]]
    if has_down:
        xd = x[:, ::stride, ::stride, :].reshape(m, c)
        args += [xd, blk["down"]["w"], blk["down"]["scale"],
                 blk["down"]["shift"]]
    else:
        args += [x.reshape(m, c)]

    out = pl.pallas_call(
        functools.partial(_block1x1_kernel, has_down=has_down),
        out_shape=jax.ShapeDtypeStruct((m, n_out), jnp.bfloat16),
    )(*args)
    return out.reshape(n, ho, wo, n_out)


def basic_block(x, blk, stride):
    n, h, w, c = x.shape
    ho = (h + 2 - 3) // stride + 1
    wo = (w + 2 - 3) // stride + 1
    if ho == 1 and wo == 1:
        return _basic_block_1x1(x, blk, stride)
    # General path (spatial map > 1x1): two/three fused conv GEMMs.
    # TODO(synk): these could also be fused per-block with an in-kernel
    # padded-shift scratch for conv2's taps; kept as separate calls for
    # robustness at the small layer1/layer2 sizes.
    out = conv_bn_act(x, blk["cb1"], 3, 3, stride, 1, relu=True)
    if "down" in blk:
        identity = conv_bn_act(x, blk["down"], 1, 1, stride, 0, relu=False)
    else:
        identity = x
    return conv_bn_act(out, blk["cb2"], 3, 3, 1, 1, relu=True,
                       residual=identity)


def pool_fc(x, fc_w, fc_b):
    n, h, w, c = x.shape
    hw = h * w
    # Whole tensor lives in a single VMEM block; guard against blowup if the
    # spatial size / batch grows.
    assert n * hw * c * jnp.dtype(x.dtype).itemsize < 8 * 1024 * 1024, \
        "pool_fc kernel needs a gridded reduction for this input size"
    return pl.pallas_call(
        _pool_fc_kernel,
        out_shape=jax.ShapeDtypeStruct((n, fc_b.shape[1]), jnp.float32),
    )(x.reshape(n, hw, c), fc_w, fc_b)


# ---------------------------------------------------------------------------
# full forward (ResNet-18, in_channels-modified conv1, num_classes fc)
# ---------------------------------------------------------------------------

def torchvision_resnet18_forward(params, x_nchw):
    x = jnp.transpose(x_nchw, (0, 2, 3, 1)).astype(jnp.bfloat16)  # NCHW->NHWC
    x = conv_bn_act(x, params["stem"], 7, 7, stride=2, pad=3, relu=True)
    x = maxpool_3x3_s2_p1(x)
    for layer, layer_stride in zip(params["layers"], (1, 2, 2, 2)):
        for bi, blk in enumerate(layer):
            x = basic_block(x, blk, stride=layer_stride if bi == 0 else 1)
    return pool_fc(x, params["fc_w"], params["fc_b"])


# ---------------------------------------------------------------------------
# parameter init (raw, torch-like) + one-time kernel-layout preparation
# ---------------------------------------------------------------------------

def init_resnet18_raw_params(key, in_channels, num_classes):
    keys = iter(jax.random.split(key, 256))

    def nk():
        return next(keys)

    def conv_w(o, i, kh, kw):
        fan_in = i * kh * kw
        return jax.random.normal(nk(), (o, i, kh, kw), jnp.float32) * \
            jnp.sqrt(2.0 / fan_in)

    def bn_p(c):
        return dict(
            gamma=1.0 + 0.1 * jax.random.normal(nk(), (c,), jnp.float32),
            beta=0.1 * jax.random.normal(nk(), (c,), jnp.float32),
            mean=0.1 * jax.random.normal(nk(), (c,), jnp.float32),
            var=1.0 + 0.1 * jax.random.uniform(nk(), (c,), jnp.float32),
        )

    params = dict(conv1_w=conv_w(64, in_channels, 7, 7), bn1=bn_p(64))
    layers = []
    in_c = 64
    for c, stride in zip((64, 128, 256, 512), (1, 2, 2, 2)):
        blocks = []
        for b in range(2):
            s = stride if b == 0 else 1
            blk = dict(conv1_w=conv_w(c, in_c, 3, 3), bn1=bn_p(c),
                       conv2_w=conv_w(c, c, 3, 3), bn2=bn_p(c))
            if s != 1 or in_c != c:
                blk["down_w"] = conv_w(c, in_c, 1, 1)
                blk["down_bn"] = bn_p(c)
            blocks.append(blk)
            in_c = c
        layers.append(blocks)
    params["layers"] = layers
    params["fc_w"] = 0.05 * jax.random.normal(nk(), (512, num_classes),
                                              jnp.float32)
    params["fc_b"] = 0.01 * jax.random.normal(nk(), (num_classes,),
                                              jnp.float32)
    return params


def _fold_conv_bn(w_oihw, bn, taps, in_pad, out_pad, eps=1e-5):
    """OIHW conv weight + BN -> (K, N) bf16 GEMM weight and f32 scale/shift.

    Only the `taps` window positions are kept (dead taps dropped), input
    channels are zero-padded to `in_pad` (the producer's padded channel
    count), output channels to `out_pad` (lane-dense), K to a multiple of
    128."""
    o, i, kh, kw = w_oihw.shape
    w_t = jnp.stack([w_oihw[:, :, di, dj] for (di, dj) in taps], axis=0)
    w_t = jnp.transpose(w_t, (0, 2, 1))                        # (T, I, O)
    w_t = jnp.pad(w_t, ((0, 0), (0, in_pad - i), (0, out_pad - o)))
    kdim = len(taps) * in_pad
    k_pad = _round_up(kdim, 128)
    wm = w_t.reshape(kdim, out_pad)
    if k_pad != kdim:
        wm = jnp.pad(wm, ((0, k_pad - kdim), (0, 0)))
    wm = wm.astype(jnp.bfloat16)

    scale = (bn["gamma"] / jnp.sqrt(bn["var"] + eps)).astype(jnp.float32)
    shift = (bn["beta"] - bn["mean"] * scale).astype(jnp.float32)
    if out_pad != o:
        scale = jnp.pad(scale, (0, out_pad - o))
        shift = jnp.pad(shift, (0, out_pad - o))
    return dict(w=wm, scale=scale.reshape(1, -1), shift=shift.reshape(1, -1))


def prepare_resnet18_params(raw, spatial):
    """One-time layout prep; `spatial` must match the forward's input H=W."""
    h = w = spatial
    c_in = raw["conv1_w"].shape[1]

    prepared = {}
    taps = _live_taps(h, w, 7, 7, 2, 3)
    prepared["stem"] = _fold_conv_bn(raw["conv1_w"], raw["bn1"], taps,
                                     in_pad=c_in, out_pad=_pad_c(64))
    h = (h + 6 - 7) // 2 + 1
    w = (w + 6 - 7) // 2 + 1
    h = (h + 2 - 3) // 2 + 1      # maxpool 3x3 s2 p1
    w = (w + 2 - 3) // 2 + 1
    cur_c = _pad_c(64)

    layers = []
    for layer_raw, layer_stride in zip(raw["layers"], (1, 2, 2, 2)):
        blocks = []
        for bi, blk in enumerate(layer_raw):
            s = layer_stride if bi == 0 else 1
            oc = blk["conv1_w"].shape[0]
            out_pad = _pad_c(oc)
            ho = (h + 2 - 3) // s + 1
            wo = (w + 2 - 3) // s + 1
            taps1 = _live_taps(h, w, 3, 3, s, 1)
            taps2 = _live_taps(ho, wo, 3, 3, 1, 1)
            p = dict(cb1=_fold_conv_bn(blk["conv1_w"], blk["bn1"], taps1,
                                       cur_c, out_pad),
                     cb2=_fold_conv_bn(blk["conv2_w"], blk["bn2"], taps2,
                                       out_pad, out_pad))
            if "down_w" in blk:
                p["down"] = _fold_conv_bn(blk["down_w"], blk["down_bn"],
                                          [(0, 0)], cur_c, out_pad)
            blocks.append(p)
            h, w, cur_c = ho, wo, out_pad
        layers.append(blocks)
    prepared["layers"] = layers

    fc_w = raw["fc_w"].astype(jnp.float32)
    if cur_c > fc_w.shape[0]:
        fc_w = jnp.pad(fc_w, ((0, cur_c - fc_w.shape[0]), (0, 0)))
    prepared["fc_w"] = fc_w
    prepared["fc_b"] = raw["fc_b"].reshape(1, -1).astype(jnp.float32)
    return prepared


if __name__ == "__main__":
    IN_CHANNELS = 4
    NUM_CLASSES = 10
    BATCH = 2
    SPATIAL = 16

    root = jax.random.PRNGKey(0)
    k_params, k_x = jax.random.split(root)
    raw = init_resnet18_raw_params(k_params, IN_CHANNELS, NUM_CLASSES)
    params = prepare_resnet18_params(raw, spatial=SPATIAL)
    x = jax.random.normal(k_x, (BATCH, IN_CHANNELS, SPATIAL, SPATIAL),
                          jnp.float32)  # NCHW, like PyTorch

    fwd = jax.jit(torchvision_resnet18_forward)
    logits = jax.block_until_ready(fwd(params, x))
    assert logits.shape == (BATCH, NUM_CLASSES)
    assert logits.dtype == jnp.float32
    assert bool(jnp.all(jnp.isfinite(logits)))
    print("KERNEL_OK")
</pallas_src>

<mosaic_0001>
module attributes {stable_mosaic.version = 11 : i64} {
  func.func @_gemm_bn_kernel(%arg0: i32, %arg1: i32, %arg2: memref<128x256xbf16, #tpu.memory_space<vmem>>, %arg3: memref<256x128xbf16, #tpu.memory_space<vmem>>, %arg4: memref<1x128xf32, #tpu.memory_space<vmem>>, %arg5: memref<1x128xf32, #tpu.memory_space<vmem>>, %arg6: memref<128x128xbf16, #tpu.memory_space<vmem>>) attributes {dimension_semantics = [#tpu.dimension_semantics<parallel>, #tpu.dimension_semantics<parallel>], iteration_bounds = array<i64: 1, 1>, scalar_prefetch = 0 : i64, scratch_operands = 0 : i64, tpu.core_type = #tpu.core_type<tc>, window_params = [{transform_indices = @transform_0, window_bounds = array<i64: 128, 256>}, {transform_indices = @transform_1, window_bounds = array<i64: 256, 128>}, {transform_indices = @transform_2, window_bounds = array<i64: 1, 128>}, {transform_indices = @transform_3, window_bounds = array<i64: 1, 128>}, {transform_indices = @transform_4, window_bounds = array<i64: 128, 128>}]} {
    %c0 = arith.constant 0 : index
    %c0_0 = arith.constant 0 : index
    %0 = vector.load %arg2[%c0, %c0_0] : memref<128x256xbf16, #tpu.memory_space<vmem>>, vector<128x256xbf16>
    %c0_1 = arith.constant 0 : index
    %c0_2 = arith.constant 0 : index
    %1 = vector.load %arg3[%c0_1, %c0_2] : memref<256x128xbf16, #tpu.memory_space<vmem>>, vector<256x128xbf16>
    %cst = arith.constant dense<0.000000e+00> : vector<128x128xf32>
    %2 = tpu.matmul %0, %1, %cst {dimension_numbers = #tpu.dot_dimension_numbers<[1], [0], [0], [1], [0, 0, 1, 1], [], []>} : vector<128x256xbf16>, vector<256x128xbf16>, vector<128x128xf32> -> vector<128x128xf32>
    %c0_3 = arith.constant 0 : index
    %c0_4 = arith.constant 0 : index
    %3 = vector.load %arg4[%c0_3, %c0_4] : memref<1x128xf32, #tpu.memory_space<vmem>>, vector<1x128xf32>
    %4 = vector.broadcast %3 : vector<1x128xf32> to vector<128x128xf32>
    %5 = arith.mulf %2, %4 : vector<128x128xf32>
    %c0_5 = arith.constant 0 : index
    %c0_6 = arith.constant 0 : index
    %6 = vector.load %arg5[%c0_5, %c0_6] : memref<1x128xf32, #tpu.memory_space<vmem>>, vector<1x128xf32>
    %7 = vector.broadcast %6 : vector<1x128xf32> to vector<128x128xf32>
    %8 = arith.addf %5, %7 : vector<128x128xf32>
    %cst_7 = arith.constant 0.000000e+00 : f32
    %9 = vector.broadcast %cst_7 : f32 to vector<128x128xf32>
    %10 = arith.maximumf %8, %9 : vector<128x128xf32>
    %11 = arith.truncf %10 : vector<128x128xf32> to vector<128x128xbf16>
    %c0_8 = arith.constant 0 : index
    %c0_9 = arith.constant 0 : index
    %12 = vector.load %arg6[%c0_8, %c0_9] : memref<128x128xbf16, #tpu.memory_space<vmem>>, vector<128x128xbf16>
    tpu.vector_store %arg6[%c0_8, %c0_9], %11 {strides = array<i32>} : memref<128x128xbf16, #tpu.memory_space<vmem>>, vector<128x128xbf16>,
    return
  }
  func.func @transform_0(%arg0: i32, %arg1: i32) -> (i32, i32) {
    %c0_i32 = arith.constant 0 : i32
    %c0_i32_0 = arith.constant 0 : i32
    return %arg0, %c0_i32 : i32, i32
  }
  func.func @transform_1(%arg0: i32, %arg1: i32) -> (i32, i32) {
    %c0_i32 = arith.constant 0 : i32
    %c0_i32_0 = arith.constant 0 : i32
    return %c0_i32, %arg1 : i32, i32
  }
  func.func @transform_2(%arg0: i32, %arg1: i32) -> (i32, i32) {
    %c0_i32 = arith.constant 0 : i32
    %c0_i32_0 = arith.constant 0 : i32
    return %c0_i32, %arg1 : i32, i32
  }
  func.func @transform_3(%arg0: i32, %arg1: i32) -> (i32, i32) {
    %c0_i32 = arith.constant 0 : i32
    %c0_i32_0 = arith.constant 0 : i32
    return %c0_i32, %arg1 : i32, i32
  }
  func.func @transform_4(%arg0: i32, %arg1: i32) -> (i32, i32) {
    %c0_i32 = arith.constant 0 : i32
    return %arg0, %arg1 : i32, i32
  }
}

module attributes {stable_mosaic.version = 11 : i64} {
  func.func @_gemm_bn_kernel(%arg0: i32, %arg1: i32, %arg2: memref<32x1152xbf16, #tpu.memory_space<vmem>>, %arg3: memref<1152x128xbf16, #tpu.memory_space<vmem>>, %arg4: memref<1x128xf32, #tpu.memory_space<vmem>>, %arg5: memref<1x128xf32, #tpu.memory_space<vmem>>, %arg6: memref<32x128xbf16, #tpu.memory_space<vmem>>) attributes {dimension_semantics = [#tpu.dimension_semantics<parallel>, #tpu.dimension_semantics<parallel>], iteration_bounds = array<i64: 1, 1>, scalar_prefetch = 0 : i64, scratch_operands = 0 : i64, tpu.core_type = #tpu.core_type<tc>, window_params = [{transform_indices = @transform_0, window_bounds = array<i64: 32, 1152>}, {transform_indices = @transform_1, window_bounds = array<i64: 1152, 128>}, {transform_indices = @transform_2, window_bounds = array<i64: 1, 128>}, {transform_indices = @transform_3, window_bounds = array<i64: 1, 128>}, {transform_indices = @transform_4, window_bounds = array<i64: 32, 128>}]} {
    %c0 = arith.constant 0 : index
    %c0_0 = arith.constant 0 : index
    %0 = vector.load %arg2[%c0, %c0_0] : memref<32x1152xbf16, #tpu.memory_space<vmem>>, vector<32x1152xbf16>
    %c0_1 = arith.constant 0 : index
    %c0_2 = arith.constant 0 : index
    %1 = vector.load %arg3[%c0_1, %c0_2] : memref<1152x128xbf16, #tpu.memory_space<vmem>>, vector<1152x128xbf16>
    %cst = arith.constant dense<0.000000e+00> : vector<32x128xf32>
    %2 = tpu.matmul %0, %1, %cst {dimension_numbers = #tpu.dot_dimension_numbers<[1], [0], [0], [1], [0, 0, 1, 1], [], []>} : vector<32x1152xbf16>, vector<1152x128xbf16>, vector<32x128xf32> -> vector<32x128xf32>
    %c0_3 = arith.constant 0 : index
    %c0_4 = arith.constant 0 : index
    %3 = vector.load %arg4[%c0_3, %c0_4] : memref<1x128xf32, #tpu.memory_space<vmem>>, vector<1x128xf32>
    %4 = vector.broadcast %3 : vector<1x128xf32> to vector<32x128xf32>
    %5 = arith.mulf %2, %4 : vector<32x128xf32>
    %c0_5 = arith.constant 0 : index
    %c0_6 = arith.constant 0 : index
    %6 = vector.load %arg5[%c0_5, %c0_6] : memref<1x128xf32, #tpu.memory_space<vmem>>, vector<1x128xf32>
    %7 = vector.broadcast %6 : vector<1x128xf32> to vector<32x128xf32>
    %8 = arith.addf %5, %7 : vector<32x128xf32>
    %cst_7 = arith.constant 0.000000e+00 : f32
    %9 = vector.broadcast %cst_7 : f32 to vector<32x128xf32>
    %10 = arith.maximumf %8, %9 : vector<32x128xf32>
    %11 = arith.truncf %10 : vector<32x128xf32> to vector<32x128xbf16>
    %c0_8 = arith.constant 0 : index
    %c0_9 = arith.constant 0 : index
    %12 = vector.load %arg6[%c0_8, %c0_9] : memref<32x128xbf16, #tpu.memory_space<vmem>>, vector<32x128xbf16>
    tpu.vector_store %arg6[%c0_8, %c0_9], %11 {strides = array<i32>} : memref<32x128xbf16, #tpu.memory_space<vmem>>, vector<32x128xbf16>,
    return
  }
  func.func @transform_0(%arg0: i32, %arg1: i32) -> (i32, i32) {
    %c0_i32 = arith.constant 0 : i32
    %c0_i32_0 = arith.constant 0 : i32
    return %arg0, %c0_i32 : i32, i32
  }
  func.func @transform_1(%arg0: i32, %arg1: i32) -> (i32, i32) {
    %c0_i32 = arith.constant 0 : i32
    %c0_i32_0 = arith.constant 0 : i32
    return %c0_i32, %arg1 : i32, i32
  }
  func.func @transform_2(%arg0: i32, %arg1: i32) -> (i32, i32) {
    %c0_i32 = arith.constant 0 : i32
    %c0_i32_0 = arith.constant 0 : i32
    return %c0_i32, %arg1 : i32, i32
  }
  func.func @transform_3(%arg0: i32, %arg1: i32) -> (i32, i32) {
    %c0_i32 = arith.constant 0 : i32
    %c0_i32_0 = arith.constant 0 : i32
    return %c0_i32, %arg1 : i32, i32
  }
  func.func @transform_4(%arg0: i32, %arg1: i32) -> (i32, i32) {
    %c0_i32 = arith.constant 0 : i32
    return %arg0, %arg1 : i32, i32
  }
}

module attributes {stable_mosaic.version = 11 : i64} {
  func.func @_gemm_bn_kernel(%arg0: i32, %arg1: i32, %arg2: memref<32x1152xbf16, #tpu.memory_space<vmem>>, %arg3: memref<1152x128xbf16, #tpu.memory_space<vmem>>, %arg4: memref<1x128xf32, #tpu.memory_space<vmem>>, %arg5: memref<1x128xf32, #tpu.memory_space<vmem>>, %arg6: memref<32x128xbf16, #tpu.memory_space<vmem>>, %arg7: memref<32x128xbf16, #tpu.memory_space<vmem>>) attributes {dimension_semantics = [#tpu.dimension_semantics<parallel>, #tpu.dimension_semantics<parallel>], iteration_bounds = array<i64: 1, 1>, scalar_prefetch = 0 : i64, scratch_operands = 0 : i64, tpu.core_type = #tpu.core_type<tc>, window_params = [{transform_indices = @transform_0, window_bounds = array<i64: 32, 1152>}, {transform_indices = @transform_1, window_bounds = array<i64: 1152, 128>}, {transform_indices = @transform_2, window_bounds = array<i64: 1, 128>}, {transform_indices = @transform_3, window_bounds = array<i64: 1, 128>}, {transform_indices = @transform_4, window_bounds = array<i64: 32, 128>}, {transform_indices = @transform_5, window_bounds = array<i64: 32, 128>}]} {
    %c0 = arith.constant 0 : index
    %c0_0 = arith.constant 0 : index
    %0 = vector.load %arg2[%c0, %c0_0] : memref<32x1152xbf16, #tpu.memory_space<vmem>>, vector<32x1152xbf16>
    %c0_1 = arith.constant 0 : index
    %c0_2 = arith.constant 0 : index
    %1 = vector.load %arg3[%c0_1, %c0_2] : memref<1152x128xbf16, #tpu.memory_space<vmem>>, vector<1152x128xbf16>
    %cst = arith.constant dense<0.000000e+00> : vector<32x128xf32>
    %2 = tpu.matmul %0, %1, %cst {dimension_numbers = #tpu.dot_dimension_numbers<[1], [0], [0], [1], [0, 0, 1, 1], [], []>} : vector<32x1152xbf16>, vector<1152x128xbf16>, vector<32x128xf32> -> vector<32x128xf32>
    %c0_3 = arith.constant 0 : index
    %c0_4 = arith.constant 0 : index
    %3 = vector.load %arg4[%c0_3, %c0_4] : memref<1x128xf32, #tpu.memory_space<vmem>>, vector<1x128xf32>
    %4 = vector.broadcast %3 : vector<1x128xf32> to vector<32x128xf32>
    %5 = arith.mulf %2, %4 : vector<32x128xf32>
    %c0_5 = arith.constant 0 : index
    %c0_6 = arith.constant 0 : index
    %6 = vector.load %arg5[%c0_5, %c0_6] : memref<1x128xf32, #tpu.memory_space<vmem>>, vector<1x128xf32>
    %7 = vector.broadcast %6 : vector<1x128xf32> to vector<32x128xf32>
    %8 = arith.addf %5, %7 : vector<32x128xf32>
    %c0_7 = arith.constant 0 : index
    %c0_8 = arith.constant 0 : index
    %9 = vector.load %arg6[%c0_7, %c0_8] : memref<32x128xbf16, #tpu.memory_space<vmem>>, vector<32x128xbf16>
    %10 = arith.extf %9 : vector<32x128xbf16> to vector<32x128xf32>
    %11 = arith.addf %8, %10 : vector<32x128xf32>
    %cst_9 = arith.constant 0.000000e+00 : f32
    %12 = vector.broadcast %cst_9 : f32 to vector<32x128xf32>
    %13 = arith.maximumf %11, %12 : vector<32x128xf32>
    %14 = arith.truncf %13 : vector<32x128xf32> to vector<32x128xbf16>
    %c0_10 = arith.constant 0 : index
    %c0_11 = arith.constant 0 : index
    %15 = vector.load %arg7[%c0_10, %c0_11] : memref<32x128xbf16, #tpu.memory_space<vmem>>, vector<32x128xbf16>
    tpu.vector_store %arg7[%c0_10, %c0_11], %14 {strides = array<i32>} : memref<32x128xbf16, #tpu.memory_space<vmem>>, vector<32x128xbf16>,
    return
  }
  func.func @transform_0(%arg0: i32, %arg1: i32) -> (i32, i32) {
    %c0_i32 = arith.constant 0 : i32
    %c0_i32_0 = arith.constant 0 : i32
    return %arg0, %c0_i32 : i32, i32
  }
  func.func @transform_1(%arg0: i32, %arg1: i32) -> (i32, i32) {
    %c0_i32 = arith.constant 0 : i32
    %c0_i32_0 = arith.constant 0 : i32
    return %c0_i32, %arg1 : i32, i32
  }
  func.func @transform_2(%arg0: i32, %arg1: i32) -> (i32, i32) {
    %c0_i32 = arith.constant 0 : i32
    %c0_i32_0 = arith.constant 0 : i32
    return %c0_i32, %arg1 : i32, i32
  }
  func.func @transform_3(%arg0: i32, %arg1: i32) -> (i32, i32) {
    %c0_i32 = arith.constant 0 : i32
    %c0_i32_0 = arith.constant 0 : i32
    return %c0_i32, %arg1 : i32, i32
  }
  func.func @transform_4(%arg0: i32, %arg1: i32) -> (i32, i32) {
    %c0_i32 = arith.constant 0 : i32
    return %arg0, %arg1 : i32, i32
  }
  func.func @transform_5(%arg0: i32, %arg1: i32) -> (i32, i32) {
    %c0_i32 = arith.constant 0 : i32
    return %arg0, %arg1 : i32, i32
  }
}

module attributes {stable_mosaic.version = 11 : i64} {
  func.func @_gemm_bn_kernel(%arg0: i32, %arg1: i32, %arg2: memref<8x1152xbf16, #tpu.memory_space<vmem>>, %arg3: memref<1152x128xbf16, #tpu.memory_space<vmem>>, %arg4: memref<1x128xf32, #tpu.memory_space<vmem>>, %arg5: memref<1x128xf32, #tpu.memory_space<vmem>>, %arg6: memref<8x128xbf16, #tpu.memory_space<vmem>>, %arg7: memref<8x128xbf16, #tpu.memory_space<vmem>>) attributes {dimension_semantics = [#tpu.dimension_semantics<parallel>, #tpu.dimension_semantics<parallel>], iteration_bounds = array<i64: 1, 1>, scalar_prefetch = 0 : i64, scratch_operands = 0 : i64, tpu.core_type = #tpu.core_type<tc>, window_params = [{transform_indices = @transform_0, window_bounds = array<i64: 8, 1152>}, {transform_indices = @transform_1, window_bounds = array<i64: 1152, 128>}, {transform_indices = @transform_2, window_bounds = array<i64: 1, 128>}, {transform_indices = @transform_3, window_bounds = array<i64: 1, 128>}, {transform_indices = @transform_4, window_bounds = array<i64: 8, 128>}, {transform_indices = @transform_5, window_bounds = array<i64: 8, 128>}]} {
    %c0 = arith.constant 0 : index
    %c0_0 = arith.constant 0 : index
    %0 = vector.load %arg2[%c0, %c0_0] : memref<8x1152xbf16, #tpu.memory_space<vmem>>, vector<8x1152xbf16>
    %c0_1 = arith.constant 0 : index
    %c0_2 = arith.constant 0 : index
    %1 = vector.load %arg3[%c0_1, %c0_2] : memref<1152x128xbf16, #tpu.memory_space<vmem>>, vector<1152x128xbf16>
    %cst = arith.constant dense<0.000000e+00> : vector<8x128xf32>
    %2 = tpu.matmul %0, %1, %cst {dimension_numbers = #tpu.dot_dimension_numbers<[1], [0], [0], [1], [0, 0, 1, 1], [], []>} : vector<8x1152xbf16>, vector<1152x128xbf16>, vector<8x128xf32> -> vector<8x128xf32>
    %c0_3 = arith.constant 0 : index
    %c0_4 = arith.constant 0 : index
    %3 = vector.load %arg4[%c0_3, %c0_4] : memref<1x128xf32, #tpu.memory_space<vmem>>, vector<1x128xf32>
    %4 = vector.broadcast %3 : vector<1x128xf32> to vector<8x128xf32>
    %5 = arith.mulf %2, %4 : vector<8x128xf32>
    %c0_5 = arith.constant 0 : index
    %c0_6 = arith.constant 0 : index
    %6 = vector.load %arg5[%c0_5, %c0_6] : memref<1x128xf32, #tpu.memory_space<vmem>>, vector<1x128xf32>
    %7 = vector.broadcast %6 : vector<1x128xf32> to vector<8x128xf32>
    %8 = arith.addf %5, %7 : vector<8x128xf32>
    %c0_7 = arith.constant 0 : index
    %c0_8 = arith.constant 0 : index
    %9 = vector.load %arg6[%c0_7, %c0_8] : memref<8x128xbf16, #tpu.memory_space<vmem>>, vector<8x128xbf16>
    %10 = arith.extf %9 : vector<8x128xbf16> to vector<8x128xf32>
    %11 = arith.addf %8, %10 : vector<8x128xf32>
    %cst_9 = arith.constant 0.000000e+00 : f32
    %12 = vector.broadcast %cst_9 : f32 to vector<8x128xf32>
    %13 = arith.maximumf %11, %12 : vector<8x128xf32>
    %14 = arith.truncf %13 : vector<8x128xf32> to vector<8x128xbf16>
    %c0_10 = arith.constant 0 : index
    %c0_11 = arith.constant 0 : index
    %15 = vector.load %arg7[%c0_10, %c0_11] : memref<8x128xbf16, #tpu.memory_space<vmem>>, vector<8x128xbf16>
    tpu.vector_store %arg7[%c0_10, %c0_11], %14 {strides = array<i32>} : memref<8x128xbf16, #tpu.memory_space<vmem>>, vector<8x128xbf16>,
    return
  }
  func.func @transform_0(%arg0: i32, %arg1: i32) -> (i32, i32) {
    %c0_i32 = arith.constant 0 : i32
    %c0_i32_0 = arith.constant 0 : i32
    return %arg0, %c0_i32 : i32, i32
  }
  func.func @transform_1(%arg0: i32, %arg1: i32) -> (i32, i32) {
    %c0_i32 = arith.constant 0 : i32
    %c0_i32_0 = arith.constant 0 : i32
    return %c0_i32, %arg1 : i32, i32
  }
  func.func @transform_2(%arg0: i32, %arg1: i32) -> (i32, i32) {
    %c0_i32 = arith.constant 0 : i32
    %c0_i32_0 = arith.constant 0 : i32
    return %c0_i32, %arg1 : i32, i32
  }
  func.func @transform_3(%arg0: i32, %arg1: i32) -> (i32, i32) {
    %c0_i32 = arith.constant 0 : i32
    %c0_i32_0 = arith.constant 0 : i32
    return %c0_i32, %arg1 : i32, i32
  }
  func.func @transform_4(%arg0: i32, %arg1: i32) -> (i32, i32) {
    %c0_i32 = arith.constant 0 : i32
    return %arg0, %arg1 : i32, i32
  }
  func.func @transform_5(%arg0: i32, %arg1: i32) -> (i32, i32) {
    %c0_i32 = arith.constant 0 : i32
    return %arg0, %arg1 : i32, i32
  }
}

module attributes {stable_mosaic.version = 11 : i64} {
  func.func @_gemm_bn_kernel(%arg0: i32, %arg1: i32, %arg2: memref<8x1152xbf16, #tpu.memory_space<vmem>>, %arg3: memref<1152x128xbf16, #tpu.memory_space<vmem>>, %arg4: memref<1x128xf32, #tpu.memory_space<vmem>>, %arg5: memref<1x128xf32, #tpu.memory_space<vmem>>, %arg6: memref<8x128xbf16, #tpu.memory_space<vmem>>) attributes {dimension_semantics = [#tpu.dimension_semantics<parallel>, #tpu.dimension_semantics<parallel>], iteration_bounds = array<i64: 1, 1>, scalar_prefetch = 0 : i64, scratch_operands = 0 : i64, tpu.core_type = #tpu.core_type<tc>, window_params = [{transform_indices = @transform_0, window_bounds = array<i64: 8, 1152>}, {transform_indices = @transform_1, window_bounds = array<i64: 1152, 128>}, {transform_indices = @transform_2, window_bounds = array<i64: 1, 128>}, {transform_indices = @transform_3, window_bounds = array<i64: 1, 128>}, {transform_indices = @transform_4, window_bounds = array<i64: 8, 128>}]} {
    %c0 = arith.constant 0 : index
    %c0_0 = arith.constant 0 : index
    %0 = vector.load %arg2[%c0, %c0_0] : memref<8x1152xbf16, #tpu.memory_space<vmem>>, vector<8x1152xbf16>
    %c0_1 = arith.constant 0 : index
    %c0_2 = arith.constant 0 : index
    %1 = vector.load %arg3[%c0_1, %c0_2] : memref<1152x128xbf16, #tpu.memory_space<vmem>>, vector<1152x128xbf16>
    %cst = arith.constant dense<0.000000e+00> : vector<8x128xf32>
    %2 = tpu.matmul %0, %1, %cst {dimension_numbers = #tpu.dot_dimension_numbers<[1], [0], [0], [1], [0, 0, 1, 1], [], []>} : vector<8x1152xbf16>, vector<1152x128xbf16>, vector<8x128xf32> -> vector<8x128xf32>
    %c0_3 = arith.constant 0 : index
    %c0_4 = arith.constant 0 : index
    %3 = vector.load %arg4[%c0_3, %c0_4] : memref<1x128xf32, #tpu.memory_space<vmem>>, vector<1x128xf32>
    %4 = vector.broadcast %3 : vector<1x128xf32> to vector<8x128xf32>
    %5 = arith.mulf %2, %4 : vector<8x128xf32>
    %c0_5 = arith.constant 0 : index
    %c0_6 = arith.constant 0 : index
    %6 = vector.load %arg5[%c0_5, %c0_6] : memref<1x128xf32, #tpu.memory_space<vmem>>, vector<1x128xf32>
    %7 = vector.broadcast %6 : vector<1x128xf32> to vector<8x128xf32>
    %8 = arith.addf %5, %7 : vector<8x128xf32>
    %cst_7 = arith.constant 0.000000e+00 : f32
    %9 = vector.broadcast %cst_7 : f32 to vector<8x128xf32>
    %10 = arith.maximumf %8, %9 : vector<8x128xf32>
    %11 = arith.truncf %10 : vector<8x128xf32> to vector<8x128xbf16>
    %c0_8 = arith.constant 0 : index
    %c0_9 = arith.constant 0 : index
    %12 = vector.load %arg6[%c0_8, %c0_9] : memref<8x128xbf16, #tpu.memory_space<vmem>>, vector<8x128xbf16>
    tpu.vector_store %arg6[%c0_8, %c0_9], %11 {strides = array<i32>} : memref<8x128xbf16, #tpu.memory_space<vmem>>, vector<8x128xbf16>,
    return
  }
  func.func @transform_0(%arg0: i32, %arg1: i32) -> (i32, i32) {
    %c0_i32 = arith.constant 0 : i32
    %c0_i32_0 = arith.constant 0 : i32
    return %arg0, %c0_i32 : i32, i32
  }
  func.func @transform_1(%arg0: i32, %arg1: i32) -> (i32, i32) {
    %c0_i32 = arith.constant 0 : i32
    %c0_i32_0 = arith.constant 0 : i32
    return %c0_i32, %arg1 : i32, i32
  }
  func.func @transform_2(%arg0: i32, %arg1: i32) -> (i32, i32) {
    %c0_i32 = arith.constant 0 : i32
    %c0_i32_0 = arith.constant 0 : i32
    return %c0_i32, %arg1 : i32, i32
  }
  func.func @transform_3(%arg0: i32, %arg1: i32) -> (i32, i32) {
    %c0_i32 = arith.constant 0 : i32
    %c0_i32_0 = arith.constant 0 : i32
    return %c0_i32, %arg1 : i32, i32
  }
  func.func @transform_4(%arg0: i32, %arg1: i32) -> (i32, i32) {
    %c0_i32 = arith.constant 0 : i32
    return %arg0, %arg1 : i32, i32
  }
}

module attributes {stable_mosaic.version = 11 : i64} {
  func.func @_gemm_bn_kernel(%arg0: i32, %arg1: i32, %arg2: memref<8x128xbf16, #tpu.memory_space<vmem>>, %arg3: memref<128x128xbf16, #tpu.memory_space<vmem>>, %arg4: memref<1x128xf32, #tpu.memory_space<vmem>>, %arg5: memref<1x128xf32, #tpu.memory_space<vmem>>, %arg6: memref<8x128xbf16, #tpu.memory_space<vmem>>) attributes {dimension_semantics = [#tpu.dimension_semantics<parallel>, #tpu.dimension_semantics<parallel>], iteration_bounds = array<i64: 1, 1>, scalar_prefetch = 0 : i64, scratch_operands = 0 : i64, tpu.core_type = #tpu.core_type<tc>, window_params = [{transform_indices = @transform_0, window_bounds = array<i64: 8, 128>}, {transform_indices = @transform_1, window_bounds = array<i64: 128, 128>}, {transform_indices = @transform_2, window_bounds = array<i64: 1, 128>}, {transform_indices = @transform_3, window_bounds = array<i64: 1, 128>}, {transform_indices = @transform_4, window_bounds = array<i64: 8, 128>}]} {
    %c0 = arith.constant 0 : index
    %c0_0 = arith.constant 0 : index
    %0 = vector.load %arg2[%c0, %c0_0] : memref<8x128xbf16, #tpu.memory_space<vmem>>, vector<8x128xbf16>
    %c0_1 = arith.constant 0 : index
    %c0_2 = arith.constant 0 : index
    %1 = vector.load %arg3[%c0_1, %c0_2] : memref<128x128xbf16, #tpu.memory_space<vmem>>, vector<128x128xbf16>
    %cst = arith.constant dense<0.000000e+00> : vector<8x128xf32>
    %2 = tpu.matmul %0, %1, %cst {dimension_numbers = #tpu.dot_dimension_numbers<[1], [0], [0], [1], [0, 0, 1, 1], [], []>} : vector<8x128xbf16>, vector<128x128xbf16>, vector<8x128xf32> -> vector<8x128xf32>
    %c0_3 = arith.constant 0 : index
    %c0_4 = arith.constant 0 : index
    %3 = vector.load %arg4[%c0_3, %c0_4] : memref<1x128xf32, #tpu.memory_space<vmem>>, vector<1x128xf32>
    %4 = vector.broadcast %3 : vector<1x128xf32> to vector<8x128xf32>
    %5 = arith.mulf %2, %4 : vector<8x128xf32>
    %c0_5 = arith.constant 0 : index
    %c0_6 = arith.constant 0 : index
    %6 = vector.load %arg5[%c0_5, %c0_6] : memref<1x128xf32, #tpu.memory_space<vmem>>, vector<1x128xf32>
    %7 = vector.broadcast %6 : vector<1x128xf32> to vector<8x128xf32>
    %8 = arith.addf %5, %7 : vector<8x128xf32>
    %9 = arith.truncf %8 : vector<8x128xf32> to vector<8x128xbf16>
    %c0_7 = arith.constant 0 : index
    %c0_8 = arith.constant 0 : index
    %10 = vector.load %arg6[%c0_7, %c0_8] : memref<8x128xbf16, #tpu.memory_space<vmem>>, vector<8x128xbf16>
    tpu.vector_store %arg6[%c0_7, %c0_8], %9 {strides = array<i32>} : memref<8x128xbf16, #tpu.memory_space<vmem>>, vector<8x128xbf16>,
    return
  }
  func.func @transform_0(%arg0: i32, %arg1: i32) -> (i32, i32) {
    %c0_i32 = arith.constant 0 : i32
    %c0_i32_0 = arith.constant 0 : i32
    return %arg0, %c0_i32 : i32, i32
  }
  func.func @transform_1(%arg0: i32, %arg1: i32) -> (i32, i32) {
    %c0_i32 = arith.constant 0 : i32
    %c0_i32_0 = arith.constant 0 : i32
    return %c0_i32, %arg1 : i32, i32
  }
  func.func @transform_2(%arg0: i32, %arg1: i32) -> (i32, i32) {
    %c0_i32 = arith.constant 0 : i32
    %c0_i32_0 = arith.constant 0 : i32
    return %c0_i32, %arg1 : i32, i32
  }
  func.func @transform_3(%arg0: i32, %arg1: i32) -> (i32, i32) {
    %c0_i32 = arith.constant 0 : i32
    %c0_i32_0 = arith.constant 0 : i32
    return %c0_i32, %arg1 : i32, i32
  }
  func.func @transform_4(%arg0: i32, %arg1: i32) -> (i32, i32) {
    %c0_i32 = arith.constant 0 : i32
    return %arg0, %arg1 : i32, i32
  }
}

module attributes {stable_mosaic.version = 11 : i64} {
  func.func @_gemm_bn_kernel(%arg0: i32, %arg1: i32, %arg2: memref<8x1152xbf16, #tpu.memory_space<vmem>>, %arg3: memref<1152x128xbf16, #tpu.memory_space<vmem>>, %arg4: memref<1x128xf32, #tpu.memory_space<vmem>>, %arg5: memref<1x128xf32, #tpu.memory_space<vmem>>, %arg6: memref<8x128xbf16, #tpu.memory_space<vmem>>, %arg7: memref<8x128xbf16, #tpu.memory_space<vmem>>) attributes {dimension_semantics = [#tpu.dimension_semantics<parallel>, #tpu.dimension_semantics<parallel>], iteration_bounds = array<i64: 1, 1>, scalar_prefetch = 0 : i64, scratch_operands = 0 : i64, tpu.core_type = #tpu.core_type<tc>, window_params = [{transform_indices = @transform_0, window_bounds = array<i64: 8, 1152>}, {transform_indices = @transform_1, window_bounds = array<i64: 1152, 128>}, {transform_indices = @transform_2, window_bounds = array<i64: 1, 128>}, {transform_indices = @transform_3, window_bounds = array<i64: 1, 128>}, {transform_indices = @transform_4, window_bounds = array<i64: 8, 128>}, {transform_indices = @transform_5, window_bounds = array<i64: 8, 128>}]} {
    %c0 = arith.constant 0 : index
    %c0_0 = arith.constant 0 : index
    %0 = vector.load %arg2[%c0, %c0_0] : memref<8x1152xbf16, #tpu.memory_space<vmem>>, vector<8x1152xbf16>
    %c0_1 = arith.constant 0 : index
    %c0_2 = arith.constant 0 : index
    %1 = vector.load %arg3[%c0_1, %c0_2] : memref<1152x128xbf16, #tpu.memory_space<vmem>>, vector<1152x128xbf16>
    %cst = arith.constant dense<0.000000e+00> : vector<8x128xf32>
    %2 = tpu.matmul %0, %1, %cst {dimension_numbers = #tpu.dot_dimension_numbers<[1], [0], [0], [1], [0, 0, 1, 1], [], []>} : vector<8x1152xbf16>, vector<1152x128xbf16>, vector<8x128xf32> -> vector<8x128xf32>
    %c0_3 = arith.constant 0 : index
    %c0_4 = arith.constant 0 : index
    %3 = vector.load %arg4[%c0_3, %c0_4] : memref<1x128xf32, #tpu.memory_space<vmem>>, vector<1x128xf32>
    %4 = vector.broadcast %3 : vector<1x128xf32> to vector<8x128xf32>
    %5 = arith.mulf %2, %4 : vector<8x128xf32>
    %c0_5 = arith.constant 0 : index
    %c0_6 = arith.constant 0 : index
    %6 = vector.load %arg5[%c0_5, %c0_6] : memref<1x128xf32, #tpu.memory_space<vmem>>, vector<1x128xf32>
    %7 = vector.broadcast %6 : vector<1x128xf32> to vector<8x128xf32>
    %8 = arith.addf %5, %7 : vector<8x128xf32>
    %c0_7 = arith.constant 0 : index
    %c0_8 = arith.constant 0 : index
    %9 = vector.load %arg6[%c0_7, %c0_8] : memref<8x128xbf16, #tpu.memory_space<vmem>>, vector<8x128xbf16>
    %10 = arith.extf %9 : vector<8x128xbf16> to vector<8x128xf32>
    %11 = arith.addf %8, %10 : vector<8x128xf32>
    %cst_9 = arith.constant 0.000000e+00 : f32
    %12 = vector.broadcast %cst_9 : f32 to vector<8x128xf32>
    %13 = arith.maximumf %11, %12 : vector<8x128xf32>
    %14 = arith.truncf %13 : vector<8x128xf32> to vector<8x128xbf16>
    %c0_10 = arith.constant 0 : index
    %c0_11 = arith.constant 0 : index
    %15 = vector.load %arg7[%c0_10, %c0_11] : memref<8x128xbf16, #tpu.memory_space<vmem>>, vector<8x128xbf16>
    tpu.vector_store %arg7[%c0_10, %c0_11], %14 {strides = array<i32>} : memref<8x128xbf16, #tpu.memory_space<vmem>>, vector<8x128xbf16>,
    return
  }
  func.func @transform_0(%arg0: i32, %arg1: i32) -> (i32, i32) {
    %c0_i32 = arith.constant 0 : i32
    %c0_i32_0 = arith.constant 0 : i32
    return %arg0, %c0_i32 : i32, i32
  }
  func.func @transform_1(%arg0: i32, %arg1: i32) -> (i32, i32) {
    %c0_i32 = arith.constant 0 : i32
    %c0_i32_0 = arith.constant 0 : i32
    return %c0_i32, %arg1 : i32, i32
  }
  func.func @transform_2(%arg0: i32, %arg1: i32) -> (i32, i32) {
    %c0_i32 = arith.constant 0 : i32
    %c0_i32_0 = arith.constant 0 : i32
    return %c0_i32, %arg1 : i32, i32
  }
  func.func @transform_3(%arg0: i32, %arg1: i32) -> (i32, i32) {
    %c0_i32 = arith.constant 0 : i32
    %c0_i32_0 = arith.constant 0 : i32
    return %c0_i32, %arg1 : i32, i32
  }
  func.func @transform_4(%arg0: i32, %arg1: i32) -> (i32, i32) {
    %c0_i32 = arith.constant 0 : i32
    return %arg0, %arg1 : i32, i32
  }
  func.func @transform_5(%arg0: i32, %arg1: i32) -> (i32, i32) {
    %c0_i32 = arith.constant 0 : i32
    return %arg0, %arg1 : i32, i32
  }
}

module attributes {stable_mosaic.version = 11 : i64} {
  func.func @_block1x1_kernel(%arg0: memref<2x512xbf16, #tpu.memory_space<vmem>>, %arg1: memref<512x256xbf16, #tpu.memory_space<vmem>>, %arg2: memref<1x256xf32, #tpu.memory_space<vmem>>, %arg3: memref<1x256xf32, #tpu.memory_space<vmem>>, %arg4: memref<256x256xbf16, #tpu.memory_space<vmem>>, %arg5: memref<1x256xf32, #tpu.memory_space<vmem>>, %arg6: memref<1x256xf32, #tpu.memory_space<vmem>>, %arg7: memref<2x128xbf16, #tpu.memory_space<vmem>>, %arg8: memref<128x256xbf16, #tpu.memory_space<vmem>>, %arg9: memref<1x256xf32, #tpu.memory_space<vmem>>, %arg10: memref<1x256xf32, #tpu.memory_space<vmem>>, %arg11: memref<2x256xbf16, #tpu.memory_space<vmem>>) attributes {dimension_semantics = [], scalar_prefetch = 0 : i64, scratch_operands = 0 : i64, tpu.core_type = #tpu.core_type<tc>} {
    %c0 = arith.constant 0 : index
    %c0_0 = arith.constant 0 : index
    %0 = vector.load %arg0[%c0, %c0_0] : memref<2x512xbf16, #tpu.memory_space<vmem>>, vector<2x512xbf16>
    %c0_1 = arith.constant 0 : index
    %c0_2 = arith.constant 0 : index
    %1 = vector.load %arg1[%c0_1, %c0_2] : memref<512x256xbf16, #tpu.memory_space<vmem>>, vector<512x256xbf16>
    %cst = arith.constant dense<0.000000e+00> : vector<2x256xf32>
    %2 = tpu.matmul %0, %1, %cst {dimension_numbers = #tpu.dot_dimension_numbers<[1], [0], [0], [1], [0, 0, 1, 1], [], []>} : vector<2x512xbf16>, vector<512x256xbf16>, vector<2x256xf32> -> vector<2x256xf32>
    %c0_3 = arith.constant 0 : index
    %c0_4 = arith.constant 0 : index
    %3 = vector.load %arg2[%c0_3, %c0_4] : memref<1x256xf32, #tpu.memory_space<vmem>>, vector<1x256xf32>
    %4 = vector.broadcast %3 : vector<1x256xf32> to vector<2x256xf32>
    %5 = arith.mulf %2, %4 : vector<2x256xf32>
    %c0_5 = arith.constant 0 : index
    %c0_6 = arith.constant 0 : index
    %6 = vector.load %arg3[%c0_5, %c0_6] : memref<1x256xf32, #tpu.memory_space<vmem>>, vector<1x256xf32>
    %7 = vector.broadcast %6 : vector<1x256xf32> to vector<2x256xf32>
    %8 = arith.addf %5, %7 : vector<2x256xf32>
    %cst_7 = arith.constant 0.000000e+00 : f32
    %9 = vector.broadcast %cst_7 : f32 to vector<2x256xf32>
    %10 = arith.maximumf %8, %9 : vector<2x256xf32>
    %11 = arith.truncf %10 : vector<2x256xf32> to vector<2x256xbf16>
    %c0_8 = arith.constant 0 : index
    %c0_9 = arith.constant 0 : index
    %12 = vector.load %arg4[%c0_8, %c0_9] : memref<256x256xbf16, #tpu.memory_space<vmem>>, vector<256x256xbf16>
    %cst_10 = arith.constant dense<0.000000e+00> : vector<2x256xf32>
    %13 = tpu.matmul %11, %12, %cst_10 {dimension_numbers = #tpu.dot_dimension_numbers<[1], [0], [0], [1], [0, 0, 1, 1], [], []>} : vector<2x256xbf16>, vector<256x256xbf16>, vector<2x256xf32> -> vector<2x256xf32>
    %c0_11 = arith.constant 0 : index
    %c0_12 = arith.constant 0 : index
    %14 = vector.load %arg5[%c0_11, %c0_12] : memref<1x256xf32, #tpu.memory_space<vmem>>, vector<1x256xf32>
    %15 = vector.broadcast %14 : vector<1x256xf32> to vector<2x256xf32>
    %16 = arith.mulf %13, %15 : vector<2x256xf32>
    %c0_13 = arith.constant 0 : index
    %c0_14 = arith.constant 0 : index
    %17 = vector.load %arg6[%c0_13, %c0_14] : memref<1x256xf32, #tpu.memory_space<vmem>>, vector<1x256xf32>
    %18 = vector.broadcast %17 : vector<1x256xf32> to vector<2x256xf32>
    %19 = arith.addf %16, %18 : vector<2x256xf32>
    %c0_15 = arith.constant 0 : index
    %c0_16 = arith.constant 0 : index
    %20 = vector.load %arg7[%c0_15, %c0_16] : memref<2x128xbf16, #tpu.memory_space<vmem>>, vector<2x128xbf16>
    %c0_17 = arith.constant 0 : index
    %c0_18 = arith.constant 0 : index
    %21 = vector.load %arg8[%c0_17, %c0_18] : memref<128x256xbf16, #tpu.memory_space<vmem>>, vector<128x256xbf16>
    %cst_19 = arith.constant dense<0.000000e+00> : vector<2x256xf32>
    %22 = tpu.matmul %20, %21, %cst_19 {dimension_numbers = #tpu.dot_dimension_numbers<[1], [0], [0], [1], [0, 0, 1, 1], [], []>} : vector<2x128xbf16>, vector<128x256xbf16>, vector<2x256xf32> -> vector<2x256xf32>
    %c0_20 = arith.constant 0 : index
    %c0_21 = arith.constant 0 : index
    %23 = vector.load %arg9[%c0_20, %c0_21] : memref<1x256xf32, #tpu.memory_space<vmem>>, vector<1x256xf32>
    %24 = vector.broadcast %23 : vector<1x256xf32> to vector<2x256xf32>
    %25 = arith.mulf %22, %24 : vector<2x256xf32>
    %c0_22 = arith.constant 0 : index
    %c0_23 = arith.constant 0 : index
    %26 = vector.load %arg10[%c0_22, %c0_23] : memref<1x256xf32, #tpu.memory_space<vmem>>, vector<1x256xf32>
    %27 = vector.broadcast %26 : vector<1x256xf32> to vector<2x256xf32>
    %28 = arith.addf %25, %27 : vector<2x256xf32>
    %29 = arith.addf %19, %28 : vector<2x256xf32>
    %cst_24 = arith.constant 0.000000e+00 : f32
    %30 = vector.broadcast %cst_24 : f32 to vector<2x256xf32>
    %31 = arith.maximumf %29, %30 : vector<2x256xf32>
    %32 = arith.truncf %31 : vector<2x256xf32> to vector<2x256xbf16>
    %c0_25 = arith.constant 0 : index
    %c0_26 = arith.constant 0 : index
    %33 = vector.load %arg11[%c0_25, %c0_26] : memref<2x256xbf16, #tpu.memory_space<vmem>>, vector<2x256xbf16>
    tpu.vector_store %arg11[%c0_25, %c0_26], %32 {strides = array<i32>} : memref<2x256xbf16, #tpu.memory_space<vmem>>, vector<2x256xbf16>,
    return
  }
}

module attributes {stable_mosaic.version = 11 : i64} {
  func.func @_block1x1_kernel(%arg0: memref<2x256xbf16, #tpu.memory_space<vmem>>, %arg1: memref<256x256xbf16, #tpu.memory_space<vmem>>, %arg2: memref<1x256xf32, #tpu.memory_space<vmem>>, %arg3: memref<1x256xf32, #tpu.memory_space<vmem>>, %arg4: memref<256x256xbf16, #tpu.memory_space<vmem>>, %arg5: memref<1x256xf32, #tpu.memory_space<vmem>>, %arg6: memref<1x256xf32, #tpu.memory_space<vmem>>, %arg7: memref<2x256xbf16, #tpu.memory_space<vmem>>, %arg8: memref<2x256xbf16, #tpu.memory_space<vmem>>) attributes {dimension_semantics = [], scalar_prefetch = 0 : i64, scratch_operands = 0 : i64, tpu.core_type = #tpu.core_type<tc>} {
    %c0 = arith.constant 0 : index
    %c0_0 = arith.constant 0 : index
    %0 = vector.load %arg0[%c0, %c0_0] : memref<2x256xbf16, #tpu.memory_space<vmem>>, vector<2x256xbf16>
    %c0_1 = arith.constant 0 : index
    %c0_2 = arith.constant 0 : index
    %1 = vector.load %arg1[%c0_1, %c0_2] : memref<256x256xbf16, #tpu.memory_space<vmem>>, vector<256x256xbf16>
    %cst = arith.constant dense<0.000000e+00> : vector<2x256xf32>
    %2 = tpu.matmul %0, %1, %cst {dimension_numbers = #tpu.dot_dimension_numbers<[1], [0], [0], [1], [0, 0, 1, 1], [], []>} : vector<2x256xbf16>, vector<256x256xbf16>, vector<2x256xf32> -> vector<2x256xf32>
    %c0_3 = arith.constant 0 : index
    %c0_4 = arith.constant 0 : index
    %3 = vector.load %arg2[%c0_3, %c0_4] : memref<1x256xf32, #tpu.memory_space<vmem>>, vector<1x256xf32>
    %4 = vector.broadcast %3 : vector<1x256xf32> to vector<2x256xf32>
    %5 = arith.mulf %2, %4 : vector<2x256xf32>
    %c0_5 = arith.constant 0 : index
    %c0_6 = arith.constant 0 : index
    %6 = vector.load %arg3[%c0_5, %c0_6] : memref<1x256xf32, #tpu.memory_space<vmem>>, vector<1x256xf32>
    %7 = vector.broadcast %6 : vector<1x256xf32> to vector<2x256xf32>
    %8 = arith.addf %5, %7 : vector<2x256xf32>
    %cst_7 = arith.constant 0.000000e+00 : f32
    %9 = vector.broadcast %cst_7 : f32 to vector<2x256xf32>
    %10 = arith.maximumf %8, %9 : vector<2x256xf32>
    %11 = arith.truncf %10 : vector<2x256xf32> to vector<2x256xbf16>
    %c0_8 = arith.constant 0 : index
    %c0_9 = arith.constant 0 : index
    %12 = vector.load %arg4[%c0_8, %c0_9] : memref<256x256xbf16, #tpu.memory_space<vmem>>, vector<256x256xbf16>
    %cst_10 = arith.constant dense<0.000000e+00> : vector<2x256xf32>
    %13 = tpu.matmul %11, %12, %cst_10 {dimension_numbers = #tpu.dot_dimension_numbers<[1], [0], [0], [1], [0, 0, 1, 1], [], []>} : vector<2x256xbf16>, vector<256x256xbf16>, vector<2x256xf32> -> vector<2x256xf32>
    %c0_11 = arith.constant 0 : index
    %c0_12 = arith.constant 0 : index
    %14 = vector.load %arg5[%c0_11, %c0_12] : memref<1x256xf32, #tpu.memory_space<vmem>>, vector<1x256xf32>
    %15 = vector.broadcast %14 : vector<1x256xf32> to vector<2x256xf32>
    %16 = arith.mulf %13, %15 : vector<2x256xf32>
    %c0_13 = arith.constant 0 : index
    %c0_14 = arith.constant 0 : index
    %17 = vector.load %arg6[%c0_13, %c0_14] : memref<1x256xf32, #tpu.memory_space<vmem>>, vector<1x256xf32>
    %18 = vector.broadcast %17 : vector<1x256xf32> to vector<2x256xf32>
    %19 = arith.addf %16, %18 : vector<2x256xf32>
    %c0_15 = arith.constant 0 : index
    %c0_16 = arith.constant 0 : index
    %20 = vector.load %arg7[%c0_15, %c0_16] : memref<2x256xbf16, #tpu.memory_space<vmem>>, vector<2x256xbf16>
    %21 = arith.extf %20 : vector<2x256xbf16> to vector<2x256xf32>
    %22 = arith.addf %19, %21 : vector<2x256xf32>
    %cst_17 = arith.constant 0.000000e+00 : f32
    %23 = vector.broadcast %cst_17 : f32 to vector<2x256xf32>
    %24 = arith.maximumf %22, %23 : vector<2x256xf32>
    %25 = arith.truncf %24 : vector<2x256xf32> to vector<2x256xbf16>
    %c0_18 = arith.constant 0 : index
    %c0_19 = arith.constant 0 : index
    %26 = vector.load %arg8[%c0_18, %c0_19] : memref<2x256xbf16, #tpu.memory_space<vmem>>, vector<2x256xbf16>
    tpu.vector_store %arg8[%c0_18, %c0_19], %25 {strides = array<i32>} : memref<2x256xbf16, #tpu.memory_space<vmem>>, vector<2x256xbf16>,
    return
  }
}

module attributes {stable_mosaic.version = 11 : i64} {
  func.func @_block1x1_kernel(%arg0: memref<2x256xbf16, #tpu.memory_space<vmem>>, %arg1: memref<256x512xbf16, #tpu.memory_space<vmem>>, %arg2: memref<1x512xf32, #tpu.memory_space<vmem>>, %arg3: memref<1x512xf32, #tpu.memory_space<vmem>>, %arg4: memref<512x512xbf16, #tpu.memory_space<vmem>>, %arg5: memref<1x512xf32, #tpu.memory_space<vmem>>, %arg6: memref<1x512xf32, #tpu.memory_space<vmem>>, %arg7: memref<2x256xbf16, #tpu.memory_space<vmem>>, %arg8: memref<256x512xbf16, #tpu.memory_space<vmem>>, %arg9: memref<1x512xf32, #tpu.memory_space<vmem>>, %arg10: memref<1x512xf32, #tpu.memory_space<vmem>>, %arg11: memref<2x512xbf16, #tpu.memory_space<vmem>>) attributes {dimension_semantics = [], scalar_prefetch = 0 : i64, scratch_operands = 0 : i64, tpu.core_type = #tpu.core_type<tc>} {
    %c0 = arith.constant 0 : index
    %c0_0 = arith.constant 0 : index
    %0 = vector.load %arg0[%c0, %c0_0] : memref<2x256xbf16, #tpu.memory_space<vmem>>, vector<2x256xbf16>
    %c0_1 = arith.constant 0 : index
    %c0_2 = arith.constant 0 : index
    %1 = vector.load %arg1[%c0_1, %c0_2] : memref<256x512xbf16, #tpu.memory_space<vmem>>, vector<256x512xbf16>
    %cst = arith.constant dense<0.000000e+00> : vector<2x512xf32>
    %2 = tpu.matmul %0, %1, %cst {dimension_numbers = #tpu.dot_dimension_numbers<[1], [0], [0], [1], [0, 0, 1, 1], [], []>} : vector<2x256xbf16>, vector<256x512xbf16>, vector<2x512xf32> -> vector<2x512xf32>
    %c0_3 = arith.constant 0 : index
    %c0_4 = arith.constant 0 : index
    %3 = vector.load %arg2[%c0_3, %c0_4] : memref<1x512xf32, #tpu.memory_space<vmem>>, vector<1x512xf32>
    %4 = vector.broadcast %3 : vector<1x512xf32> to vector<2x512xf32>
    %5 = arith.mulf %2, %4 : vector<2x512xf32>
    %c0_5 = arith.constant 0 : index
    %c0_6 = arith.constant 0 : index
    %6 = vector.load %arg3[%c0_5, %c0_6] : memref<1x512xf32, #tpu.memory_space<vmem>>, vector<1x512xf32>
    %7 = vector.broadcast %6 : vector<1x512xf32> to vector<2x512xf32>
    %8 = arith.addf %5, %7 : vector<2x512xf32>
    %cst_7 = arith.constant 0.000000e+00 : f32
    %9 = vector.broadcast %cst_7 : f32 to vector<2x512xf32>
    %10 = arith.maximumf %8, %9 : vector<2x512xf32>
    %11 = arith.truncf %10 : vector<2x512xf32> to vector<2x512xbf16>
    %c0_8 = arith.constant 0 : index
    %c0_9 = arith.constant 0 : index
    %12 = vector.load %arg4[%c0_8, %c0_9] : memref<512x512xbf16, #tpu.memory_space<vmem>>, vector<512x512xbf16>
    %cst_10 = arith.constant dense<0.000000e+00> : vector<2x512xf32>
    %13 = tpu.matmul %11, %12, %cst_10 {dimension_numbers = #tpu.dot_dimension_numbers<[1], [0], [0], [1], [0, 0, 1, 1], [], []>} : vector<2x512xbf16>, vector<512x512xbf16>, vector<2x512xf32> -> vector<2x512xf32>
    %c0_11 = arith.constant 0 : index
    %c0_12 = arith.constant 0 : index
    %14 = vector.load %arg5[%c0_11, %c0_12] : memref<1x512xf32, #tpu.memory_space<vmem>>, vector<1x512xf32>
    %15 = vector.broadcast %14 : vector<1x512xf32> to vector<2x512xf32>
    %16 = arith.mulf %13, %15 : vector<2x512xf32>
    %c0_13 = arith.constant 0 : index
    %c0_14 = arith.constant 0 : index
    %17 = vector.load %arg6[%c0_13, %c0_14] : memref<1x512xf32, #tpu.memory_space<vmem>>, vector<1x512xf32>
    %18 = vector.broadcast %17 : vector<1x512xf32> to vector<2x512xf32>
    %19 = arith.addf %16, %18 : vector<2x512xf32>
    %c0_15 = arith.constant 0 : index
    %c0_16 = arith.constant 0 : index
    %20 = vector.load %arg7[%c0_15, %c0_16] : memref<2x256xbf16, #tpu.memory_space<vmem>>, vector<2x256xbf16>
    %c0_17 = arith.constant 0 : index
    %c0_18 = arith.constant 0 : index
    %21 = vector.load %arg8[%c0_17, %c0_18] : memref<256x512xbf16, #tpu.memory_space<vmem>>, vector<256x512xbf16>
    %cst_19 = arith.constant dense<0.000000e+00> : vector<2x512xf32>
    %22 = tpu.matmul %20, %21, %cst_19 {dimension_numbers = #tpu.dot_dimension_numbers<[1], [0], [0], [1], [0, 0, 1, 1], [], []>} : vector<2x256xbf16>, vector<256x512xbf16>, vector<2x512xf32> -> vector<2x512xf32>
    %c0_20 = arith.constant 0 : index
    %c0_21 = arith.constant 0 : index
    %23 = vector.load %arg9[%c0_20, %c0_21] : memref<1x512xf32, #tpu.memory_space<vmem>>, vector<1x512xf32>
    %24 = vector.broadcast %23 : vector<1x512xf32> to vector<2x512xf32>
    %25 = arith.mulf %22, %24 : vector<2x512xf32>
    %c0_22 = arith.constant 0 : index
    %c0_23 = arith.constant 0 : index
    %26 = vector.load %arg10[%c0_22, %c0_23] : memref<1x512xf32, #tpu.memory_space<vmem>>, vector<1x512xf32>
    %27 = vector.broadcast %26 : vector<1x512xf32> to vector<2x512xf32>
    %28 = arith.addf %25, %27 : vector<2x512xf32>
    %29 = arith.addf %19, %28 : vector<2x512xf32>
    %cst_24 = arith.constant 0.000000e+00 : f32
    %30 = vector.broadcast %cst_24 : f32 to vector<2x512xf32>
    %31 = arith.maximumf %29, %30 : vector<2x512xf32>
    %32 = arith.truncf %31 : vector<2x512xf32> to vector<2x512xbf16>
    %c0_25 = arith.constant 0 : index
    %c0_26 = arith.constant 0 : index
    %33 = vector.load %arg11[%c0_25, %c0_26] : memref<2x512xbf16, #tpu.memory_space<vmem>>, vector<2x512xbf16>
    tpu.vector_store %arg11[%c0_25, %c0_26], %32 {strides = array<i32>} : memref<2x512xbf16, #tpu.memory_space<vmem>>, vector<2x512xbf16>,
    return
  }
}

module attributes {stable_mosaic.version = 11 : i64} {
  func.func @_block1x1_kernel(%arg0: memref<2x512xbf16, #tpu.memory_space<vmem>>, %arg1: memref<512x512xbf16, #tpu.memory_space<vmem>>, %arg2: memref<1x512xf32, #tpu.memory_space<vmem>>, %arg3: memref<1x512xf32, #tpu.memory_space<vmem>>, %arg4: memref<512x512xbf16, #tpu.memory_space<vmem>>, %arg5: memref<1x512xf32, #tpu.memory_space<vmem>>, %arg6: memref<1x512xf32, #tpu.memory_space<vmem>>, %arg7: memref<2x512xbf16, #tpu.memory_space<vmem>>, %arg8: memref<2x512xbf16, #tpu.memory_space<vmem>>) attributes {dimension_semantics = [], scalar_prefetch = 0 : i64, scratch_operands = 0 : i64, tpu.core_type = #tpu.core_type<tc>} {
    %c0 = arith.constant 0 : index
    %c0_0 = arith.constant 0 : index
    %0 = vector.load %arg0[%c0, %c0_0] : memref<2x512xbf16, #tpu.memory_space<vmem>>, vector<2x512xbf16>
    %c0_1 = arith.constant 0 : index
    %c0_2 = arith.constant 0 : index
    %1 = vector.load %arg1[%c0_1, %c0_2] : memref<512x512xbf16, #tpu.memory_space<vmem>>, vector<512x512xbf16>
    %cst = arith.constant dense<0.000000e+00> : vector<2x512xf32>
    %2 = tpu.matmul %0, %1, %cst {dimension_numbers = #tpu.dot_dimension_numbers<[1], [0], [0], [1], [0, 0, 1, 1], [], []>} : vector<2x512xbf16>, vector<512x512xbf16>, vector<2x512xf32> -> vector<2x512xf32>
    %c0_3 = arith.constant 0 : index
    %c0_4 = arith.constant 0 : index
    %3 = vector.load %arg2[%c0_3, %c0_4] : memref<1x512xf32, #tpu.memory_space<vmem>>, vector<1x512xf32>
    %4 = vector.broadcast %3 : vector<1x512xf32> to vector<2x512xf32>
    %5 = arith.mulf %2, %4 : vector<2x512xf32>
    %c0_5 = arith.constant 0 : index
    %c0_6 = arith.constant 0 : index
    %6 = vector.load %arg3[%c0_5, %c0_6] : memref<1x512xf32, #tpu.memory_space<vmem>>, vector<1x512xf32>
    %7 = vector.broadcast %6 : vector<1x512xf32> to vector<2x512xf32>
    %8 = arith.addf %5, %7 : vector<2x512xf32>
    %cst_7 = arith.constant 0.000000e+00 : f32
    %9 = vector.broadcast %cst_7 : f32 to vector<2x512xf32>
    %10 = arith.maximumf %8, %9 : vector<2x512xf32>
    %11 = arith.truncf %10 : vector<2x512xf32> to vector<2x512xbf16>
    %c0_8 = arith.constant 0 : index
    %c0_9 = arith.constant 0 : index
    %12 = vector.load %arg4[%c0_8, %c0_9] : memref<512x512xbf16, #tpu.memory_space<vmem>>, vector<512x512xbf16>
    %cst_10 = arith.constant dense<0.000000e+00> : vector<2x512xf32>
    %13 = tpu.matmul %11, %12, %cst_10 {dimension_numbers = #tpu.dot_dimension_numbers<[1], [0], [0], [1], [0, 0, 1, 1], [], []>} : vector<2x512xbf16>, vector<512x512xbf16>, vector<2x512xf32> -> vector<2x512xf32>
    %c0_11 = arith.constant 0 : index
    %c0_12 = arith.constant 0 : index
    %14 = vector.load %arg5[%c0_11, %c0_12] : memref<1x512xf32, #tpu.memory_space<vmem>>, vector<1x512xf32>
    %15 = vector.broadcast %14 : vector<1x512xf32> to vector<2x512xf32>
    %16 = arith.mulf %13, %15 : vector<2x512xf32>
    %c0_13 = arith.constant 0 : index
    %c0_14 = arith.constant 0 : index
    %17 = vector.load %arg6[%c0_13, %c0_14] : memref<1x512xf32, #tpu.memory_space<vmem>>, vector<1x512xf32>
    %18 = vector.broadcast %17 : vector<1x512xf32> to vector<2x512xf32>
    %19 = arith.addf %16, %18 : vector<2x512xf32>
    %c0_15 = arith.constant 0 : index
    %c0_16 = arith.constant 0 : index
    %20 = vector.load %arg7[%c0_15, %c0_16] : memref<2x512xbf16, #tpu.memory_space<vmem>>, vector<2x512xbf16>
    %21 = arith.extf %20 : vector<2x512xbf16> to vector<2x512xf32>
    %22 = arith.addf %19, %21 : vector<2x512xf32>
    %cst_17 = arith.constant 0.000000e+00 : f32
    %23 = vector.broadcast %cst_17 : f32 to vector<2x512xf32>
    %24 = arith.maximumf %22, %23 : vector<2x512xf32>
    %25 = arith.truncf %24 : vector<2x512xf32> to vector<2x512xbf16>
    %c0_18 = arith.constant 0 : index
    %c0_19 = arith.constant 0 : index
    %26 = vector.load %arg8[%c0_18, %c0_19] : memref<2x512xbf16, #tpu.memory_space<vmem>>, vector<2x512xbf16>
    tpu.vector_store %arg8[%c0_18, %c0_19], %25 {strides = array<i32>} : memref<2x512xbf16, #tpu.memory_space<vmem>>, vector<2x512xbf16>,
    return
  }
}

module attributes {stable_mosaic.version = 11 : i64} {
  func.func @_pool_fc_kernel(%arg0: memref<2x1x512xbf16, #tpu.memory_space<vmem>>, %arg1: memref<512x10xf32, #tpu.memory_space<vmem>>, %arg2: memref<1x10xf32, #tpu.memory_space<vmem>>, %arg3: memref<2x10xf32, #tpu.memory_space<vmem>>) attributes {dimension_semantics = [], scalar_prefetch = 0 : i64, scratch_operands = 0 : i64, tpu.core_type = #tpu.core_type<tc>} {
    %c0 = arith.constant 0 : index
    %c0_0 = arith.constant 0 : index
    %c0_1 = arith.constant 0 : index
    %0 = vector.load %arg0[%c0, %c0_0, %c0_1] : memref<2x1x512xbf16, #tpu.memory_space<vmem>>, vector<2x1x512xbf16>
    %1 = arith.extf %0 : vector<2x1x512xbf16> to vector<2x1x512xf32>
    %cst = arith.constant dense<0.000000e+00> : vector<2x512xf32>
    %2 = vector.multi_reduction <add>, %1, %cst [1] : vector<2x1x512xf32> to vector<2x512xf32>
    %cst_2 = arith.constant 1.000000e+00 : f32
    %3 = vector.broadcast %cst_2 : f32 to vector<2x512xf32>
    %4 = arith.mulf %2, %3 : vector<2x512xf32>
    %c0_3 = arith.constant 0 : index
    %c0_4 = arith.constant 0 : index
    %5 = vector.load %arg1[%c0_3, %c0_4] : memref<512x10xf32, #tpu.memory_space<vmem>>, vector<512x10xf32>
    %cst_5 = arith.constant dense<0.000000e+00> : vector<2x10xf32>
    %6 = tpu.matmul %4, %5, %cst_5 {dimension_numbers = #tpu.dot_dimension_numbers<[1], [0], [0], [1], [0, 0, 1, 1], [], []>} : vector<2x512xf32>, vector<512x10xf32>, vector<2x10xf32> -> vector<2x10xf32>
    %c0_6 = arith.constant 0 : index
    %c0_7 = arith.constant 0 : index
    %7 = vector.load %arg2[%c0_6, %c0_7] : memref<1x10xf32, #tpu.memory_space<vmem>>, vector<1x10xf32>
    %8 = vector.broadcast %7 : vector<1x10xf32> to vector<2x10xf32>
    %9 = arith.addf %6, %8 : vector<2x10xf32>
    %c0_8 = arith.constant 0 : index
    %c0_9 = arith.constant 0 : index
    %10 = vector.load %arg3[%c0_8, %c0_9] : memref<2x10xf32, #tpu.memory_space<vmem>>, vector<2x10xf32>
    tpu.vector_store %arg3[%c0_8, %c0_9], %9 {strides = array<i32>} : memref<2x10xf32, #tpu.memory_space<vmem>>, vector<2x10xf32>,
    return
  }
}

</mosaic_0001>

<bundles_post_ra>
// kernel: torchvision_resnet18_forward.15
= control target key start
LH: loop header
LB: loop body
LE: loop exit
PB: predicated region body
PF: predicated region fallthrough
CT: control target
= control target key end

     0   :  { %s905_s1 = inlined_call_operand.vmem [shape: bf16[256,128], index: 1, kind: input, shape index: {}]   ;;  %s906_s0 = inlined_call_operand.vmem [shape: bf16[128,256], index: 0, kind: input, shape index: {}]   ;;  %s907_s2 = inlined_call_operand.vmem [shape: f32[1,128], index: 2, kind: input, shape index: {}]   ;;  %s908_s3 = inlined_call_operand.vmem [shape: f32[1,128], index: 3, kind: input, shape index: {}]   ;;  %s909_s4 = inlined_call_operand.vmem [shape: bf16[128,128], index: 4, kind: output, shape index: {}]  }
   0x1   :  { %v678_v0 = vld [vmem:[%s905_s1 + $0x40] sm:$0xff]   ;;  %v680_v2 = vld [vmem:[%s905_s1 + $0x48] sm:$0xff]   ;;  %v682_v4 = vld [vmem:[%s905_s1 + $0x50] sm:$0xff]  }
   0x2   :  { %v679_v1 = vld [vmem:[%s905_s1] sm:$0xff]   ;;  %598 = vmatprep.subr.bf16.mxu0 %v678_v0  ;;  %662 = vmatprep.subr.bf16.mxu1 %v678_v0  ;;  %v681_v3 = vld [vmem:[%s905_s1 + $0x8] sm:$0xff]   ;;  %v683_v5 = vld [vmem:[%s905_s1 + $0x10] sm:$0xff]  }
   0x3   :  { %599 = vmatpush3.bf16.msra.mxu0 %v679_v1  ;;  %670 = vmatpush3.bf16.msra.mxu1 %v679_v1  ;;  %v684_v6 = vld [vmem:[%s905_s1 + $0x58] sm:$0xff]   ;;  %v686_v8 = vld [vmem:[%s905_s1 + $0x60] sm:$0xff]   ;;  %v688_v10 = vld [vmem:[%s905_s1 + $0x68] sm:$0xff]  }
   0x4   :  { %600 = vmatprep.subr.bf16.mxu0 %v680_v2  ;;  %663 = vmatprep.subr.bf16.mxu1 %v680_v2  ;;  %v685_v7 = vld [vmem:[%s905_s1 + $0x18] sm:$0xff]   ;;  %v687_v9 = vld [vmem:[%s905_s1 + $0x20] sm:$0xff]   ;;  %v689_v13 = vld [vmem:[%s905_s1 + $0x28] sm:$0xff]  }
   0x5   :  { %v696_v11 = vld [vmem:[%s906_s0 + $0x4] ss:$8 sps:$4 sm:$0xff]   ;;  %v690_v14 = vld [vmem:[%s905_s1 + $0x70] sm:$0xff]   ;;  %v692_v16 = vld [vmem:[%s905_s1 + $0x78] sm:$0xff]  }
   0x6   :  { %v699_v12 = vld [vmem:[%s906_s0 + $0x44] ss:$8 sps:$4 sm:$0xff]   ;;  %274 = vmatprep.mubr.bf16.mxu0 %v696_v11  ;;  %v691_v15 = vld [vmem:[%s905_s1 + $0x30] sm:$0xff]   ;;  %v693_v17 = vld [vmem:[%s905_s1 + $0x38] sm:$0xff]  }
   0x7   :  { %601 = vmatpush3.bf16.msra.mxu0 %v681_v3  ;;  %671 = vmatpush3.bf16.msra.mxu1 %v681_v3  ;;  %v694_v18 = vld [vmem:[%s906_s0] ss:$8 sps:$4 sm:$0xff]   ;;  %v700_v20 = vld [vmem:[%s906_s0 + $0x14] ss:$8 sps:$4 sm:$0xff]   ;;  %v704_v22 = vld [vmem:[%s906_s0 + $0x10] ss:$8 sps:$4 sm:$0xff]  }
   0x8   :  { %602 = vmatprep.subr.bf16.mxu0 %v682_v4  ;;  %664 = vmatprep.subr.bf16.mxu1 %v682_v4  ;;  %v697_v19 = vld [vmem:[%s906_s0 + $0x40] ss:$8 sps:$4 sm:$0xff]   ;;  %v702_v21 = vld [vmem:[%s906_s0 + $0x54] ss:$8 sps:$4 sm:$0xff]   ;;  %v705_v23 = vld [vmem:[%s906_s0 + $0x50] ss:$8 sps:$4 sm:$0xff]  }
   0x9   :  { %306 = vmatprep.mubr.bf16.mxu1 %v699_v12  ;;  %v706_v24 = vld [vmem:[%s906_s0 + $0x24] ss:$8 sps:$4 sm:$0xff]   ;;  %v710_v26 = vld [vmem:[%s906_s0 + $0x20] ss:$8 sps:$4 sm:$0xff]   ;;  %v712_v28 = vld [vmem:[%s906_s0 + $0x34] ss:$8 sps:$4 sm:$0xff]  }
   0xa   :  { %v708_v25 = vld [vmem:[%s906_s0 + $0x64] ss:$8 sps:$4 sm:$0xff]   ;;  %v711_v27 = vld [vmem:[%s906_s0 + $0x60] ss:$8 sps:$4 sm:$0xff]   ;;  %v714_v29 = vld [vmem:[%s906_s0 + $0x74] ss:$8 sps:$4 sm:$0xff]  }
   0xb   :  { %603 = vmatpush3.bf16.msra.mxu0 %v683_v5  ;;  %672 = vmatpush3.bf16.msra.mxu1 %v683_v5  ;;  %v716_v30 = vld [vmem:[%s906_s0 + $0x30] ss:$8 sps:$4 sm:$0xff]   ;;  %v842_v35 = vld [vmem:[%s907_s2] ss:$0 sm:$0xff] }
   0xc   :  { %604 = vmatprep.subr.bf16.mxu0 %v684_v6  ;;  %665 = vmatprep.subr.bf16.mxu1 %v684_v6  ;;  %v717_v31 = vld [vmem:[%s906_s0 + $0x70] ss:$8 sps:$4 sm:$0xff]   ;;  %v847_v41 = vld [vmem:[%s908_s3] ss:$0 sm:$0xff] }
   0xf   :  { %605 = vmatpush3.bf16.msra.mxu0 %v685_v7  ;;  %673 = vmatpush3.bf16.msra.mxu1 %v685_v7 }
  0x10   :  { %606 = vmatprep.subr.bf16.mxu0 %v686_v8  ;;  %666 = vmatprep.subr.bf16.mxu1 %v686_v8 }
  0x13   :  { %607 = vmatpush3.bf16.msra.mxu0 %v687_v9  ;;  %674 = vmatpush3.bf16.msra.mxu1 %v687_v9 }
  0x14   :  { %608 = vmatprep.subr.bf16.mxu0 %v688_v10  ;;  %667 = vmatprep.subr.bf16.mxu1 %v688_v10 }
  0x17   :  { %609 = vmatpush3.bf16.msra.mxu0 %v689_v13  ;;  %675 = vmatpush3.bf16.msra.mxu1 %v689_v13 }
  0x18   :  { %610 = vmatprep.subr.bf16.mxu0 %v690_v14  ;;  %668 = vmatprep.subr.bf16.mxu1 %v690_v14 }
  0x1b   :  { %611 = vmatpush3.bf16.msra.mxu0 %v691_v15  ;;  %676 = vmatpush3.bf16.msra.mxu1 %v691_v15 }
  0x1c   :  { %612 = vmatprep.subr.bf16.mxu0 %v692_v16  ;;  %669 = vmatprep.subr.bf16.mxu1 %v692_v16 }
  0x1f   :  { %613 = vmatpush3.bf16.msra.mxu0 %v693_v17  ;;  %677 = vmatpush3.bf16.msra.mxu1 %v693_v17 }
  0x22   :  { %275 = vmatmul.mubr.bf16.vlgmr.msra.gmra.mrb[0].mxu0 %v694_v18  ;;  %307 = vmatmul.mubr.bf16.vlgmr.msra.gmra.mrb[0].mxu1 %v697_v19 }
  0x23   :  { %282 = vmatprep.mubr.bf16.mxu0 %v700_v20  ;;  %314 = vmatprep.mubr.bf16.mxu1 %v702_v21 }
  0x2a   :  { %283 = vmatmul.mubr.bf16.gmra.mrb[4].mxu0 %v704_v22  ;;  %315 = vmatmul.mubr.bf16.gmra.mrb[4].mxu1 %v705_v23 }
  0x2b   :  { %290 = vmatprep.mubr.bf16.mxu0 %v706_v24  ;;  %322 = vmatprep.mubr.bf16.mxu1 %v708_v25 }
  0x32   :  { %291 = vmatmul.mubr.bf16.gmra.mrb[8].mxu0 %v710_v26  ;;  %323 = vmatmul.mubr.bf16.gmra.mrb[8].mxu1 %v711_v27 }
  0x33   :  { %298 = vmatprep.mubr.bf16.mxu0 %v712_v28  ;;  %330 = vmatprep.mubr.bf16.mxu1 %v714_v29 }
  0x3a   :  { %299 = vmatmul.mubr.bf16.gmra.mrb[12].mxu0 %v716_v30  ;;  %331 = vmatmul.mubr.bf16.gmra.mrb[12].mxu1 %v717_v31 }
  0xf5   :  { %v614_v32 = vpop.f32.mrb[0].mxu0  ;;  %v638_v33 = vpop.f32.mrb[0].mxu1 }
  0xf6   :  { %v615_v34 = vpop.f32.mrb[1].mxu0  ;;  %v639_v36 = vpop.f32.mrb[1].mxu1 }
  0xf7   :  { %v616_v37 = vadd.f32 %v615_v34, %v614_v32  ;;  %v640_v38 = vadd.f32 %v639_v36, %v638_v33  ;;  %v617_v39 = vpop.f32.mrb[2].mxu0  ;;  %v641_v40 = vpop.f32.mrb[2].mxu1 }
  0xf8   :  { %v618_v42 = vpop.f32.mrb[3].mxu0  ;;  %v642_v43 = vpop.f32.mrb[3].mxu1 }
  0xf9   :  { %v346_v44 = vmul.f32 %v616_v37, %v842_v35  ;;  %v354_v45 = vmul.f32 %v640_v38, %v842_v35  ;;  %v619_v46 = vadd.f32 %v618_v42, %v617_v39  ;;  %v643_v47 = vadd.f32 %v642_v43, %v641_v40 }
  0xfb   :  { %v369_v48 = vadd.f32 %v847_v41, %v346_v44  ;;  %v377_v49 = vadd.f32 %v847_v41, %v354_v45  ;;  %v347_v50 = vmul.f32 %v619_v46, %v842_v35  ;;  %v355_v51 = vmul.f32 %v643_v47, %v842_v35 }
  0xfd   :  { %v370_v52 = vadd.f32 %v847_v41, %v347_v50  ;;  %v378_v53 = vadd.f32 %v847_v41, %v355_v51  ;;  %v620_v54 = vpop.f32.mrb[4].mxu0  ;;  %v644_v55 = vpop.f32.mrb[4].mxu1  ;;  %v385_v56 = vmax.f32 %v369_v48, 0.0  ;;  %v393_v57 = vmax.f32 %v377_v49, 0.0 }
  0xfe   :  { %v621_v58 = vpop.f32.mrb[5].mxu0  ;;  %v645_v59 = vpop.f32.mrb[5].mxu1 }
  0xff   :  { %v386_v60 = vmax.f32 %v370_v52, 0.0  ;;  %v394_v61 = vmax.f32 %v378_v53, 0.0  ;;  %v622_v62 = vadd.f32 %v621_v58, %v620_v54  ;;  %v646_v63 = vadd.f32 %v645_v59, %v644_v55  ;;  %v623_v0 = vpop.f32.mrb[6].mxu0  ;;  %v647_v1 = vpop.f32.mrb[6].mxu1 }
 0x100   :  { %v624_v2 = vpop.f32.mrb[7].mxu0  ;;  %v648_v3 = vpop.f32.mrb[7].mxu1 }
 0x101   :  { %v554_v4 = vpack.c.bf16 %v386_v60, %v385_v56  ;;  %v574_v5 = vpack.c.bf16 %v394_v61, %v393_v57  ;;  %v348_v6 = vmul.f32 %v622_v62, %v842_v35  ;;  %v356_v7 = vmul.f32 %v646_v63, %v842_v35 }
 0x102   :  { %v625_v8 = vadd.f32 %v624_v2, %v623_v0  ;;  %v649_v9 = vadd.f32 %v648_v3, %v647_v1 }
 0x103   :  { %555 = vst [vmem:[%s909_s4] sm:$0xff] %v554_v4   ;;  %594 = vst [vmem:[%s909_s4 + $0x20] sm:$0xff] %v574_v5   ;;  %v371_v10 = vadd.f32 %v847_v41, %v348_v6  ;;  %v379_v11 = vadd.f32 %v847_v41, %v356_v7 }
 0x104   :  { %v349_v12 = vmul.f32 %v625_v8, %v842_v35  ;;  %v357_v13 = vmul.f32 %v649_v9, %v842_v35 }
 0x105   :  { %v626_v14 = vpop.f32.mrb[8].mxu0  ;;  %v650_v15 = vpop.f32.mrb[8].mxu1  ;;  %v387_v24 = vmax.f32 %v371_v10, 0.0  ;;  %v395_v25 = vmax.f32 %v379_v11, 0.0 }
 0x106   :  { %v372_v16 = vadd.f32 %v847_v41, %v349_v12  ;;  %v380_v17 = vadd.f32 %v847_v41, %v357_v13  ;;  %v627_v18 = vpop.f32.mrb[9].mxu0  ;;  %v651_v19 = vpop.f32.mrb[9].mxu1 }
 0x107   :  { %v628_v20 = vadd.f32 %v627_v18, %v626_v14  ;;  %v652_v21 = vadd.f32 %v651_v19, %v650_v15  ;;  %v629_v22 = vpop.f32.mrb[10].mxu0  ;;  %v653_v23 = vpop.f32.mrb[10].mxu1 }
 0x108   :  { %v388_v26 = vmax.f32 %v372_v16, 0.0  ;;  %v396_v27 = vmax.f32 %v380_v17, 0.0  ;;  %v630_v28 = vpop.f32.mrb[11].mxu0  ;;  %v654_v29 = vpop.f32.mrb[11].mxu1 }
 0x109   :  { %v350_v30 = vmul.f32 %v628_v20, %v842_v35  ;;  %v358_v31 = vmul.f32 %v652_v21, %v842_v35  ;;  %v631_v32 = vadd.f32 %v630_v28, %v629_v22  ;;  %v655_v33 = vadd.f32 %v654_v29, %v653_v23 }
 0x10a   :  { %v559_v34 = vpack.c.bf16 %v388_v26, %v387_v24  ;;  %v579_v36 = vpack.c.bf16 %v396_v27, %v395_v25 }
 0x10b   :  { %v373_v37 = vadd.f32 %v847_v41, %v350_v30  ;;  %v381_v38 = vadd.f32 %v847_v41, %v358_v31  ;;  %v351_v39 = vmul.f32 %v631_v32, %v842_v35  ;;  %v359_v40 = vmul.f32 %v655_v33, %v842_v35 }
 0x10c   :  { %591 = vst [vmem:[%s909_s4 + $0x8] sm:$0xff] %v559_v34   ;;  %595 = vst [vmem:[%s909_s4 + $0x28] sm:$0xff] %v579_v36  }
 0x10d   :  { %v374_v42 = vadd.f32 %v847_v41, %v351_v39  ;;  %v382_v43 = vadd.f32 %v847_v41, %v359_v40  ;;  %v632_v44 = vpop.f32.mrb[12].mxu0  ;;  %v656_v45 = vpop.f32.mrb[12].mxu1  ;;  %v389_v46 = vmax.f32 %v373_v37, 0.0  ;;  %v397_v47 = vmax.f32 %v381_v38, 0.0 }
 0x10e   :  { %v633_v48 = vpop.f32.mrb[13].mxu0  ;;  %v657_v49 = vpop.f32.mrb[13].mxu1 }
 0x10f   :  { %v390_v50 = vmax.f32 %v374_v42, 0.0  ;;  %v398_v51 = vmax.f32 %v382_v43, 0.0  ;;  %v634_v52 = vadd.f32 %v633_v48, %v632_v44  ;;  %v658_v53 = vadd.f32 %v657_v49, %v656_v45  ;;  %v635_v54 = vpop.f32.mrb[14].mxu0  ;;  %v659_v55 = vpop.f32.mrb[14].mxu1 }
 0x110   :  { %v636_v56 = vpop.f32.mrb[15].mxu0  ;;  %v660_v57 = vpop.f32.mrb[15].mxu1 }
 0x111   :  { %v564_v58 = vpack.c.bf16 %v390_v50, %v389_v46  ;;  %v584_v59 = vpack.c.bf16 %v398_v51, %v397_v47  ;;  %v352_v60 = vmul.f32 %v634_v52, %v842_v35  ;;  %v360_v61 = vmul.f32 %v658_v53, %v842_v35 }
 0x112   :  { %v637_v62 = vadd.f32 %v636_v56, %v635_v54  ;;  %v661_v63 = vadd.f32 %v660_v57, %v659_v55 }
 0x113   :  { %592 = vst [vmem:[%s909_s4 + $0x10] sm:$0xff] %v564_v58   ;;  %596 = vst [vmem:[%s909_s4 + $0x30] sm:$0xff] %v584_v59   ;;  %v375_v0 = vadd.f32 %v847_v41, %v352_v60  ;;  %v383_v1 = vadd.f32 %v847_v41, %v360_v61 }
 0x114   :  { %v353_v2 = vmul.f32 %v637_v62, %v842_v35  ;;  %v361_v3 = vmul.f32 %v661_v63, %v842_v35 }
 0x115   :  { %v391_v6 = vmax.f32 %v375_v0, 0.0  ;;  %v399_v7 = vmax.f32 %v383_v1, 0.0 }
 0x116   :  { %v376_v4 = vadd.f32 %v847_v41, %v353_v2  ;;  %v384_v5 = vadd.f32 %v847_v41, %v361_v3 }
 0x118   :  { %v392_v8 = vmax.f32 %v376_v4, 0.0  ;;  %v400_v9 = vmax.f32 %v384_v5, 0.0 }
 0x11a   :  { %v569_v10 = vpack.c.bf16 %v392_v8, %v391_v6  ;;  %v589_v11 = vpack.c.bf16 %v400_v9, %v399_v7 }
 0x11c   :  { %593 = vst [vmem:[%s909_s4 + $0x18] sm:$0xff] %v569_v10   ;;  %597 = vst [vmem:[%s909_s4 + $0x38] sm:$0xff] %v589_v11  }

// kernel: torchvision_resnet18_forward.16
= control target key start
LH: loop header
LB: loop body
LE: loop exit
PB: predicated region body
PF: predicated region fallthrough
CT: control target
= control target key end

     0   :  { %s1659_s1 = inlined_call_operand.vmem [shape: bf16[1152,128], index: 1, kind: input, shape index: {}]   ;;  %s1660_s0 = inlined_call_operand.vmem [shape: bf16[32,1152], index: 0, kind: input, shape index: {}]   ;;  %s1661_s2 = inlined_call_operand.vmem [shape: f32[1,128], index: 2, kind: input, shape index: {}]   ;;  %s1662_s3 = inlined_call_operand.vmem [shape: f32[1,128], index: 3, kind: input, shape index: {}]   ;;  %s1663_s4 = inlined_call_operand.vmem [shape: bf16[32,128], index: 4, kind: output, shape index: {}]  }
   0x1   :  { %v1254_v0 = vld [vmem:[%s1659_s1 + $0x40] sm:$0xff]   ;;  %v1258_v4 = vld [vmem:[%s1659_s1 + $0x48] sm:$0xff]   ;;  %v1262_v8 = vld [vmem:[%s1659_s1 + $0x50] sm:$0xff]  }
   0x2   :  { %v1255_v1 = vld [vmem:[%s1659_s1 + $0xc0] sm:$0xff]   ;;  %1112 = vmatprep.subr.bf16.mxu0 %v1254_v0  ;;  %v1259_v5 = vld [vmem:[%s1659_s1 + $0xc8] sm:$0xff]   ;;  %v1263_v9 = vld [vmem:[%s1659_s1 + $0xd0] sm:$0xff]  }
   0x3   :  { %v1256_v2 = vld [vmem:[%s1659_s1] sm:$0xff]   ;;  %1140 = vmatprep.subr.bf16.mxu1 %v1255_v1  ;;  %v1260_v6 = vld [vmem:[%s1659_s1 + $0x8] sm:$0xff]   ;;  %v1264_v10 = vld [vmem:[%s1659_s1 + $0x10] sm:$0xff]  }
   0x4   :  { %v1257_v3 = vld [vmem:[%s1659_s1 + $0x80] sm:$0xff]   ;;  %1113 = vmatpush3.bf16.msra.mxu0 %v1256_v2  ;;  %v1261_v7 = vld [vmem:[%s1659_s1 + $0x88] sm:$0xff]   ;;  %v1265_v11 = vld [vmem:[%s1659_s1 + $0x90] sm:$0xff]  }
   0x5   :  { %1141 = vmatpush3.bf16.msra.mxu1 %v1257_v3  ;;  %1114 = vmatprep.subr.bf16.mxu0 %v1258_v4  ;;  %v1266_v12 = vld [vmem:[%s1659_s1 + $0x58] sm:$0xff]   ;;  %v1270_v16 = vld [vmem:[%s1659_s1 + $0x60] sm:$0xff]   ;;  %v1274_v20 = vld [vmem:[%s1659_s1 + $0x68] sm:$0xff]  }
   0x6   :  { %1142 = vmatprep.subr.bf16.mxu1 %v1259_v5  ;;  %v1267_v13 = vld [vmem:[%s1659_s1 + $0xd8] sm:$0xff]   ;;  %v1271_v17 = vld [vmem:[%s1659_s1 + $0xe0] sm:$0xff]   ;;  %v1275_v21 = vld [vmem:[%s1659_s1 + $0xe8] sm:$0xff]  }
   0x7   :  { %v1268_v14 = vld [vmem:[%s1659_s1 + $0x18] sm:$0xff]   ;;  %v1272_v18 = vld [vmem:[%s1659_s1 + $0x20] sm:$0xff]   ;;  %v1276_v22 = vld [vmem:[%s1659_s1 + $0x28] sm:$0xff]  }
   0x8   :  { %1115 = vmatpush3.bf16.msra.mxu0 %v1260_v6  ;;  %v1269_v15 = vld [vmem:[%s1659_s1 + $0x98] sm:$0xff]   ;;  %v1273_v19 = vld [vmem:[%s1659_s1 + $0xa0] sm:$0xff]   ;;  %v1277_v23 = vld [vmem:[%s1659_s1 + $0xa8] sm:$0xff]  }
   0x9   :  { %1143 = vmatpush3.bf16.msra.mxu1 %v1261_v7  ;;  %1116 = vmatprep.subr.bf16.mxu0 %v1262_v8  ;;  %v1278_v24 = vld [vmem:[%s1659_s1 + $0x70] sm:$0xff]   ;;  %v1282_v28 = vld [vmem:[%s1659_s1 + $0x78] sm:$0xff]   ;;  %v1286_v32 = vld [vmem:[%s1660_s0] ss:$36 sps:$4 sm:$0xff]  }
   0xa   :  { %1144 = vmatprep.subr.bf16.mxu1 %v1263_v9  ;;  %v1279_v25 = vld [vmem:[%s1659_s1 + $0xf0] sm:$0xff]   ;;  %v1283_v29 = vld [vmem:[%s1659_s1 + $0xf8] sm:$0xff]   ;;  %v1288_v33 = vld [vmem:[%s1660_s0 + $0x4] ss:$36 sps:$4 sm:$0xff]  }
   0xb   :  { %v1280_v26 = vld [vmem:[%s1659_s1 + $0x30] sm:$0xff]   ;;  %v1284_v30 = vld [vmem:[%s1659_s1 + $0x38] sm:$0xff]   ;;  %v1289_v34 = vld [vmem:[%s1660_s0 + $0x8] ss:$36 sps:$4 sm:$0xff]   ;;  %738 = vmatprep.mubr.bf16.mxu0 %v1288_v33 }
   0xc   :  { %1117 = vmatpush3.bf16.msra.mxu0 %v1264_v10  ;;  %v1281_v27 = vld [vmem:[%s1659_s1 + $0xb0] sm:$0xff]   ;;  %v1285_v31 = vld [vmem:[%s1659_s1 + $0xb8] sm:$0xff]   ;;  %v1292_v36 = vld [vmem:[%s1659_s1 + $0x140] sm:$0xff]  }
   0xd   :  { %1145 = vmatpush3.bf16.msra.mxu1 %v1265_v11  ;;  %1118 = vmatprep.subr.bf16.mxu0 %v1266_v12  ;;  %v1291_v35 = vld [vmem:[%s1660_s0 + $0xc] ss:$36 sps:$4 sm:$0xff]   ;;  %v1293_v37 = vld [vmem:[%s1659_s1 + $0x100] sm:$0xff]   ;;  %v1304_v48 = vld [vmem:[%s1659_s1 + $0x158] sm:$0xff]  }
   0xe   :  { %1146 = vmatprep.subr.bf16.mxu1 %v1267_v13  ;;  %787 = vmatprep.mubr.bf16.mxu1 %v1291_v35  ;;  %v1294_v38 = vld [vmem:[%s1659_s1 + $0x1c0] sm:$0xff]   ;;  %v1296_v40 = vld [vmem:[%s1659_s1 + $0x148] sm:$0xff]   ;;  %v1300_v44 = vld [vmem:[%s1659_s1 + $0x150] sm:$0xff]  }
   0xf   :  { %v1295_v39 = vld [vmem:[%s1659_s1 + $0x180] sm:$0xff]   ;;  %v1297_v41 = vld [vmem:[%s1659_s1 + $0x108] sm:$0xff]   ;;  %v1301_v45 = vld [vmem:[%s1659_s1 + $0x110] sm:$0xff]  }
  0x10   :  { %1119 = vmatpush3.bf16.msra.mxu0 %v1268_v14  ;;  %v1298_v42 = vld [vmem:[%s1659_s1 + $0x1c8] sm:$0xff]   ;;  %v1302_v46 = vld [vmem:[%s1659_s1 + $0x1d0] sm:$0xff]   ;;  %v1305_v49 = vld [vmem:[%s1659_s1 + $0x118] sm:$0xff]  }
  0x11   :  { %1147 = vmatpush3.bf16.msra.mxu1 %v1269_v15  ;;  %1120 = vmatprep.subr.bf16.mxu0 %v1270_v16  ;;  %v1299_v43 = vld [vmem:[%s1659_s1 + $0x188] sm:$0xff]   ;;  %v1303_v47 = vld [vmem:[%s1659_s1 + $0x190] sm:$0xff]   ;;  %v1306_v50 = vld [vmem:[%s1659_s1 + $0x1d8] sm:$0xff]  }
  0x12   :  { %1148 = vmatprep.subr.bf16.mxu1 %v1271_v17  ;;  %v1307_v51 = vld [vmem:[%s1659_s1 + $0x198] sm:$0xff]   ;;  %v1308_v52 = vld [vmem:[%s1659_s1 + $0x160] sm:$0xff]   ;;  %v1312_v56 = vld [vmem:[%s1659_s1 + $0x168] sm:$0xff]  }
  0x13   :  { %v1309_v53 = vld [vmem:[%s1659_s1 + $0x120] sm:$0xff]   ;;  %v1313_v57 = vld [vmem:[%s1660_s0 + $0x4c] ss:$36 sps:$4 sm:$0xff]   ;;  %v1315_v58 = vld [vmem:[%s1660_s0 + $0x54] ss:$36 sps:$4 sm:$0xff]  }
  0x14   :  { %1121 = vmatpush3.bf16.msra.mxu0 %v1272_v18  ;;  %v1310_v54 = vld [vmem:[%s1659_s1 + $0x1e0] sm:$0xff]   ;;  %v1317_v59 = vld [vmem:[%s1659_s1 + $0x128] sm:$0xff]   ;;  %v1319_v61 = vld [vmem:[%s1660_s0 + $0x50] ss:$36 sps:$4 sm:$0xff]  }
  0x15   :  { %1149 = vmatpush3.bf16.msra.mxu1 %v1273_v19  ;;  %1122 = vmatprep.subr.bf16.mxu0 %v1274_v20  ;;  %v1311_v55 = vld [vmem:[%s1659_s1 + $0x1a0] sm:$0xff]   ;;  %v1318_v60 = vld [vmem:[%s1660_s0 + $0x48] ss:$36 sps:$4 sm:$0xff]   ;;  %v1322_v0 = vld [vmem:[%s1659_s1 + $0x170] sm:$0xff]  }
  0x16   :  { %1150 = vmatprep.subr.bf16.mxu1 %v1275_v21  ;;  %v1320_v62 = vld [vmem:[%s1659_s1 + $0x1e8] sm:$0xff]   ;;  %v1323_v1 = vld [vmem:[%s1659_s1 + $0x130] sm:$0xff]   ;;  %v1326_v4 = vld [vmem:[%s1659_s1 + $0x178] sm:$0xff]  }
  0x17   :  { %v1321_v63 = vld [vmem:[%s1659_s1 + $0x1a8] sm:$0xff]   ;;  %v1324_v2 = vld [vmem:[%s1659_s1 + $0x1f0] sm:$0xff]   ;;  %v1327_v5 = vld [vmem:[%s1659_s1 + $0x138] sm:$0xff]  }
  0x18   :  { %1123 = vmatpush3.bf16.msra.mxu0 %v1276_v22  ;;  %v1325_v3 = vld [vmem:[%s1659_s1 + $0x1b0] sm:$0xff]   ;;  %v1328_v6 = vld [vmem:[%s1659_s1 + $0x1f8] sm:$0xff]   ;;  %v1333_v10 = vld [vmem:[%s1659_s1 + $0x200] sm:$0xff]  }
  0x19   :  { %1151 = vmatpush3.bf16.msra.mxu1 %v1277_v23  ;;  %1124 = vmatprep.subr.bf16.mxu0 %v1278_v24  ;;  %v1329_v7 = vld [vmem:[%s1660_s0 + $0x10] ss:$36 sps:$4 sm:$0xff]   ;;  %v1332_v9 = vld [vmem:[%s1659_s1 + $0x1b8] sm:$0xff]   ;;  %v1337_v13 = vld [vmem:[%s1659_s1 + $0x208] sm:$0xff]  }
  0x1a   :  { %1152 = vmatprep.subr.bf16.mxu1 %v1279_v25  ;;  %v1331_v8 = vld [vmem:[%s1660_s0 + $0x14] ss:$36 sps:$4 sm:$0xff]   ;;  %v1336_v12 = vld [vmem:[%s1660_s0 + $0x1c] ss:$36 sps:$4 sm:$0xff]   ;;  %v1342_v17 = vld [vmem:[%s1660_s0 + $0x64] ss:$36 sps:$4 sm:$0xff]  }
  0x1b   :  { %v1334_v11 = vld [vmem:[%s1660_s0 + $0x18] ss:$36 sps:$4 sm:$0xff]   ;;  %v1341_v16 = vld [vmem:[%s1659_s1 + $0x210] sm:$0xff]   ;;  %v1344_v18 = vld [vmem:[%s1660_s0 + $0x60] ss:$36 sps:$4 sm:$0xff]  }
  0x1c   :  { %1125 = vmatpush3.bf16.msra.mxu0 %v1280_v26  ;;  %v1338_v14 = vld [vmem:[%s1660_s0 + $0x5c] ss:$36 sps:$4 sm:$0xff]   ;;  %v1347_v22 = vld [vmem:[%s1659_s1 + $0x228] sm:$0xff]   ;;  %v1348_v23 = vld [vmem:[%s1659_s1 + $0x230] sm:$0xff]  }
  0x1d   :  { %1153 = vmatpush3.bf16.msra.mxu1 %v1281_v27  ;;  %1126 = vmatprep.subr.bf16.mxu0 %v1282_v28  ;;  %v1340_v15 = vld [vmem:[%s1660_s0 + $0x58] ss:$36 sps:$4 sm:$0xff]   ;;  %v1346_v20 = vld [vmem:[%s1659_s1 + $0x220] sm:$0xff]   ;;  %v1351_v25 = vld [vmem:[%s1660_s0 + $0x68] ss:$36 sps:$4 sm:$0xff]  }
  0x1e   :  { %1154 = vmatprep.subr.bf16.mxu1 %v1283_v29  ;;  %v1345_v19 = vld [vmem:[%s1659_s1 + $0x218] sm:$0xff]   ;;  %v1350_v21 = vld [vmem:[%s1660_s0 + $0x20] ss:$36 sps:$4 sm:$0xff]  }
  0x1f   :  { %v1349_v24 = vld [vmem:[%s1659_s1 + $0x238] sm:$0xff]  }
  0x20   :  { %1127 = vmatpush3.bf16.msra.mxu0 %v1284_v30 }
  0x21   :  { %1155 = vmatpush3.bf16.msra.mxu1 %v1285_v31  ;;  %1168 = vmatprep.subr.bf16.mxu0 %v1292_v36 }
  0x22   :  { %1196 = vmatprep.subr.bf16.mxu1 %v1294_v38 }
  0x23   :  { %739 = vmatmul.mubr.bf16.vlgmr.msra.gmra.mrb[0].mxu0 %v1286_v32 }
  0x24   :  { %788 = vmatmul.mubr.bf16.vlgmr.msra.gmra.mrb[0].mxu1 %v1289_v34  ;;  %1169 = vmatpush3.bf16.msra.mxu0 %v1293_v37 }
  0x25   :  { %1197 = vmatpush3.bf16.msra.mxu1 %v1295_v39  ;;  %1170 = vmatprep.subr.bf16.mxu0 %v1296_v40 }
  0x26   :  { %1198 = vmatprep.subr.bf16.mxu1 %v1298_v42  ;;  %746 = vmatprep.mubr.bf16.mxu0 %v1313_v57 }
  0x27   :  { %795 = vmatprep.mubr.bf16.mxu1 %v1315_v58 }
  0x28   :  { %1171 = vmatpush3.bf16.msra.mxu0 %v1297_v41 }
  0x29   :  { %1199 = vmatpush3.bf16.msra.mxu1 %v1299_v43  ;;  %1172 = vmatprep.subr.bf16.mxu0 %v1300_v44 }
  0x2a   :  { %1200 = vmatprep.subr.bf16.mxu1 %v1302_v46 }
  0x2b   :  { %747 = vmatmul.mubr.bf16.gmra.mrb[4].mxu0 %v1318_v60 }
  0x2c   :  { %1173 = vmatpush3.bf16.msra.mxu0 %v1301_v45  ;;  %796 = vmatmul.mubr.bf16.gmra.mrb[4].mxu1 %v1319_v61 }
  0x2d   :  { %1201 = vmatpush3.bf16.msra.mxu1 %v1303_v47  ;;  %1174 = vmatprep.subr.bf16.mxu0 %v1304_v48 }
  0x2e   :  { %1202 = vmatprep.subr.bf16.mxu1 %v1306_v50  ;;  %836 = vmatprep.mubr.bf16.mxu0 %v1331_v8 }
  0x2f   :  { %885 = vmatprep.mubr.bf16.mxu1 %v1336_v12 }
  0x30   :  { %1175 = vmatpush3.bf16.msra.mxu0 %v1305_v49 }
  0x31   :  { %1203 = vmatpush3.bf16.msra.mxu1 %v1307_v51  ;;  %1176 = vmatprep.subr.bf16.mxu0 %v1308_v52 }
  0x32   :  { %1204 = vmatprep.subr.bf16.mxu1 %v1310_v54 }
  0x34   :  { %1177 = vmatpush3.bf16.msra.mxu0 %v1309_v53 }
  0x35   :  { %1205 = vmatpush3.bf16.msra.mxu1 %v1311_v55  ;;  %1178 = vmatprep.subr.bf16.mxu0 %v1312_v56 }
  0x36   :  { %1206 = vmatprep.subr.bf16.mxu1 %v1320_v62 }
  0x38   :  { %1179 = vmatpush3.bf16.msra.mxu0 %v1317_v59 }
  0x39   :  { %1207 = vmatpush3.bf16.msra.mxu1 %v1321_v63  ;;  %1180 = vmatprep.subr.bf16.mxu0 %v1322_v0 }
  0x3a   :  { %1208 = vmatprep.subr.bf16.mxu1 %v1324_v2 }
  0x3c   :  { %1181 = vmatpush3.bf16.msra.mxu0 %v1323_v1 }
  0x3d   :  { %1209 = vmatpush3.bf16.msra.mxu1 %v1325_v3  ;;  %1182 = vmatprep.subr.bf16.mxu0 %v1326_v4 }
  0x3e   :  { %1210 = vmatprep.subr.bf16.mxu1 %v1328_v6 }
  0x40   :  { %1183 = vmatpush3.bf16.msra.mxu0 %v1327_v5 }
  0x41   :  { %1211 = vmatpush3.bf16.msra.mxu1 %v1332_v9  ;;  %1234 = vmatprep.subr.bf16.mxu0 %v1333_v10 }
  0x43   :  { %837 = vmatmul.mubr.bf16.vlgmr.msra.gmra.mrb[8].mxu0 %v1329_v7 }
  0x44   :  { %1235 = vmatpush3.bf16.msra.mxu0 %v1333_v10  ;;  %886 = vmatmul.mubr.bf16.vlgmr.msra.gmra.mrb[8].mxu1 %v1334_v11 }
  0x45   :  { %1236 = vmatprep.subr.bf16.mxu0 %v1337_v13  ;;  %844 = vmatprep.mubr.bf16.mxu0 %v1338_v14 }
  0x46   :  { %893 = vmatprep.mubr.bf16.mxu1 %v1342_v17 }
  0x48   :  { %1237 = vmatpush3.bf16.msra.mxu0 %v1337_v13 }
  0x49   :  { %1238 = vmatprep.subr.bf16.mxu0 %v1341_v16 }
  0x4b   :  { %845 = vmatmul.mubr.bf16.gmra.mrb[12].mxu0 %v1340_v15 }
  0x4c   :  { %1239 = vmatpush3.bf16.msra.mxu0 %v1341_v16  ;;  %894 = vmatmul.mubr.bf16.gmra.mrb[12].mxu1 %v1344_v18 }
  0x4d   :  { %1240 = vmatprep.subr.bf16.mxu0 %v1345_v19  ;;  %1250 = vmatprep.mubr.bf16.mxu0 %v1350_v21 }
  0x50   :  { %1241 = vmatpush3.bf16.msra.mxu0 %v1345_v19 }
  0x51   :  { %1242 = vmatprep.subr.bf16.mxu0 %v1346_v20 }
  0x54   :  { %1243 = vmatpush3.bf16.msra.mxu0 %v1346_v20 }
  0x55   :  { %1244 = vmatprep.subr.bf16.mxu0 %v1347_v22 }
  0x58   :  { %1245 = vmatpush3.bf16.msra.mxu0 %v1347_v22 }
  0x59   :  { %1246 = vmatprep.subr.bf16.mxu0 %v1348_v23 }
  0x5c   :  { %1247 = vmatpush3.bf16.msra.mxu0 %v1348_v23  ;;  %v1091_v23 = vld [vmem:[%s1661_s2] ss:$0 sm:$0xff] }
  0x5d   :  { %1248 = vmatprep.subr.bf16.mxu0 %v1349_v24 }
  0x60   :  { %1249 = vmatpush3.bf16.msra.mxu0 %v1349_v24 }
  0x63   :  { %1251 = vmatmul.mubr.bf16.vlgmr.msra.gmra.mrb[16].mxu0 %v1351_v25 }
  0xf6   :  { %v1128_v26 = vpop.f32.mrb[0].mxu0 }
  0xf7   :  { %v1156_v27 = vpop.f32.mrb[0].mxu1  ;;  %v1129_v28 = vpop.f32.mrb[1].mxu0 }
  0xf8   :  { %v1130_v29 = vadd.f32 %v1129_v28, %v1128_v26  ;;  %v1157_v30 = vpop.f32.mrb[1].mxu1  ;;  %v1131_v31 = vpop.f32.mrb[2].mxu0  ;;  %v1092_v26 = vld [vmem:[%s1662_s3] ss:$0 sm:$0xff] }
  0xf9   :  { %v1158_v32 = vadd.f32 %v1157_v30, %v1156_v27  ;;  %v1159_v33 = vpop.f32.mrb[2].mxu1  ;;  %v1132_v34 = vpop.f32.mrb[3].mxu0 }
  0xfa   :  { %v1133_v35 = vadd.f32 %v1132_v34, %v1131_v31  ;;  %v1160_v36 = vpop.f32.mrb[3].mxu1 }
  0xfb   :  { %v790_v37 = vadd.f32 %v1158_v32, %v1130_v29  ;;  %v1161_v38 = vadd.f32 %v1160_v36, %v1159_v33 }
  0xfd   :  { %v793_v39 = vadd.f32 %v1161_v38, %v1133_v35 }
  0xfe   :  { %v1134_v40 = vpop.f32.mrb[4].mxu0 }
  0xff   :  { %v1162_v41 = vpop.f32.mrb[4].mxu1  ;;  %v1135_v42 = vpop.f32.mrb[5].mxu0 }
 0x100   :  { %v1163_v43 = vpop.f32.mrb[5].mxu1  ;;  %v1136_v44 = vadd.f32 %v1135_v42, %v1134_v40  ;;  %v1137_v46 = vpop.f32.mrb[6].mxu0 }
 0x101   :  { %v1164_v45 = vadd.f32 %v1163_v43, %v1162_v41  ;;  %v1165_v47 = vpop.f32.mrb[6].mxu1  ;;  %v1138_v48 = vpop.f32.mrb[7].mxu0 }
 0x102   :  { %v1166_v49 = vpop.f32.mrb[7].mxu1  ;;  %v1139_v51 = vadd.f32 %v1138_v48, %v1137_v46 }
 0x103   :  { %v798_v50 = vadd.f32 %v1164_v45, %v1136_v44  ;;  %v1167_v52 = vadd.f32 %v1166_v49, %v1165_v47 }
 0x105   :  { %v801_v53 = vadd.f32 %v1167_v52, %v1139_v51 }
 0x116   :  { %v1184_v54 = vpop.f32.mrb[8].mxu0 }
 0x117   :  { %v1185_v55 = vpop.f32.mrb[9].mxu0  ;;  %v1212_v58 = vpop.f32.mrb[8].mxu1 }
 0x118   :  { %v1186_v56 = vadd.f32 %v1185_v55, %v1184_v54  ;;  %v1187_v57 = vpop.f32.mrb[10].mxu0  ;;  %v1213_v62 = vpop.f32.mrb[9].mxu1 }
 0x119   :  { %v1188_v59 = vpop.f32.mrb[11].mxu0  ;;  %v1214_v63 = vadd.f32 %v1213_v62, %v1212_v58  ;;  %v1215_v0 = vpop.f32.mrb[10].mxu1 }
 0x11a   :  { %v839_v60 = vadd.f32 %v1186_v56, %v790_v37  ;;  %v1189_v61 = vadd.f32 %v1188_v59, %v1187_v57  ;;  %v1216_v2 = vpop.f32.mrb[11].mxu1 }
 0x11b   :  { %v1217_v3 = vadd.f32 %v1216_v2, %v1215_v0 }
 0x11c   :  { %v842_v1 = vadd.f32 %v1189_v61, %v793_v39  ;;  %v888_v4 = vadd.f32 %v1214_v63, %v839_v60 }
 0x11e   :  { %v1190_v5 = vpop.f32.mrb[12].mxu0  ;;  %v891_v7 = vadd.f32 %v1217_v3, %v842_v1 }
 0x11f   :  { %v1191_v6 = vpop.f32.mrb[13].mxu0  ;;  %v1218_v10 = vpop.f32.mrb[12].mxu1 }
 0x120   :  { %v1192_v8 = vadd.f32 %v1191_v6, %v1190_v5  ;;  %v1193_v9 = vpop.f32.mrb[14].mxu0  ;;  %v1219_v14 = vpop.f32.mrb[13].mxu1 }
 0x121   :  { %v1194_v11 = vpop.f32.mrb[15].mxu0  ;;  %v1220_v15 = vadd.f32 %v1219_v14, %v1218_v10  ;;  %v1221_v16 = vpop.f32.mrb[14].mxu1 }
 0x122   :  { %v847_v12 = vadd.f32 %v1192_v8, %v798_v50  ;;  %v1195_v13 = vadd.f32 %v1194_v11, %v1193_v9  ;;  %v1222_v18 = vpop.f32.mrb[15].mxu1 }
 0x123   :  { %v1223_v19 = vadd.f32 %v1222_v18, %v1221_v16 }
 0x124   :  { %v850_v17 = vadd.f32 %v1195_v13, %v801_v53  ;;  %v896_v20 = vadd.f32 %v1220_v15, %v847_v12 }
 0x126   :  { %v899_v21 = vadd.f32 %v1223_v19, %v850_v17 }
 0x136   :  { %v1252_v22 = vpop.f32.mrb[16].mxu0 }
 0x137   :  { %v945_v24 = vadd.f32 %v1252_v22, %v896_v20  ;;  %v936_v25 = vpop.f32.mrb[17].mxu0 }
 0x138   :  { %v937_v27 = vadd.f32 %v936_v25, %v888_v4  ;;  %v1253_v28 = vpop.f32.mrb[18].mxu0 }
 0x139   :  { %v960_v29 = vmul.f32 %v1091_v23, %v945_v24  ;;  %v948_v30 = vadd.f32 %v1253_v28, %v899_v21  ;;  %v939_v31 = vpop.f32.mrb[19].mxu0 }
 0x13a   :  { %v958_v32 = vmul.f32 %v1091_v23, %v937_v27  ;;  %v940_v33 = vadd.f32 %v939_v31, %v891_v7 }
 0x13b   :  { %v971_v34 = vadd.f32 %v1092_v26, %v960_v29  ;;  %v961_v35 = vmul.f32 %v1091_v23, %v948_v30 }
 0x13c   :  { %v969_v36 = vadd.f32 %v1092_v26, %v958_v32  ;;  %v959_v37 = vmul.f32 %v1091_v23, %v940_v33 }
 0x13d   :  { %v972_v38 = vadd.f32 %v1092_v26, %v961_v35  ;;  %v975_v40 = vmax.f32 %v971_v34, 0.0 }
 0x13e   :  { %v970_v39 = vadd.f32 %v1092_v26, %v959_v37  ;;  %v973_v42 = vmax.f32 %v969_v36, 0.0 }
 0x13f   :  { %v976_v41 = vmax.f32 %v972_v38, 0.0 }
 0x140   :  { %v974_v43 = vmax.f32 %v970_v39, 0.0 }
 0x141   :  { %v1109_v44 = vpack.c.bf16 %v976_v41, %v975_v40 }
 0x142   :  { %v1104_v45 = vpack.c.bf16 %v974_v43, %v973_v42 }
 0x143   :  { %1111 = vst [vmem:[%s1663_s4 + $0x8] sm:$0xff] %v1109_v44  }
 0x144   :  { %1105 = vst [vmem:[%s1663_s4] sm:$0xff] %v1104_v45  }

// kernel: torchvision_resnet18_forward.17
= control target key start
LH: loop header
LB: loop body
LE: loop exit
PB: predicated region body
PF: predicated region fallthrough
CT: control target
= control target key end

     0   :  { %s1694_s1 = inlined_call_operand.vmem [shape: bf16[1152,128], index: 1, kind: input, shape index: {}]   ;;  %s1695_s0 = inlined_call_operand.vmem [shape: bf16[32,1152], index: 0, kind: input, shape index: {}]   ;;  %s1696_s2 = inlined_call_operand.vmem [shape: f32[1,128], index: 2, kind: input, shape index: {}]   ;;  %s1697_s4 = inlined_call_operand.vmem [shape: bf16[32,128], index: 4, kind: input, shape index: {}]   ;;  %s1698_s3 = inlined_call_operand.vmem [shape: f32[1,128], index: 3, kind: input, shape index: {}]   ;;  %s1699_s5 = inlined_call_operand.vmem [shape: bf16[32,128], index: 5, kind: output, shape index: {}]  }
   0x1   :  { %v1278_v0 = vld [vmem:[%s1694_s1 + $0x40] sm:$0xff]   ;;  %v1282_v4 = vld [vmem:[%s1694_s1 + $0x48] sm:$0xff]   ;;  %v1286_v8 = vld [vmem:[%s1694_s1 + $0x50] sm:$0xff]  }
   0x2   :  { %v1279_v1 = vld [vmem:[%s1694_s1 + $0xc0] sm:$0xff]   ;;  %1136 = vmatprep.subr.bf16.mxu0 %v1278_v0  ;;  %v1283_v5 = vld [vmem:[%s1694_s1 + $0xc8] sm:$0xff]   ;;  %v1287_v9 = vld [vmem:[%s1694_s1 + $0xd0] sm:$0xff]  }
   0x3   :  { %v1280_v2 = vld [vmem:[%s1694_s1] sm:$0xff]   ;;  %1164 = vmatprep.subr.bf16.mxu1 %v1279_v1  ;;  %v1284_v6 = vld [vmem:[%s1694_s1 + $0x8] sm:$0xff]   ;;  %v1288_v10 = vld [vmem:[%s1694_s1 + $0x10] sm:$0xff]  }
   0x4   :  { %v1281_v3 = vld [vmem:[%s1694_s1 + $0x80] sm:$0xff]   ;;  %1137 = vmatpush3.bf16.msra.mxu0 %v1280_v2  ;;  %v1285_v7 = vld [vmem:[%s1694_s1 + $0x88] sm:$0xff]   ;;  %v1289_v11 = vld [vmem:[%s1694_s1 + $0x90] sm:$0xff]  }
   0x5   :  { %1165 = vmatpush3.bf16.msra.mxu1 %v1281_v3  ;;  %1138 = vmatprep.subr.bf16.mxu0 %v1282_v4  ;;  %v1290_v12 = vld [vmem:[%s1694_s1 + $0x58] sm:$0xff]   ;;  %v1294_v16 = vld [vmem:[%s1694_s1 + $0x60] sm:$0xff]   ;;  %v1298_v20 = vld [vmem:[%s1694_s1 + $0x68] sm:$0xff]  }
   0x6   :  { %1166 = vmatprep.subr.bf16.mxu1 %v1283_v5  ;;  %v1291_v13 = vld [vmem:[%s1694_s1 + $0xd8] sm:$0xff]   ;;  %v1295_v17 = vld [vmem:[%s1694_s1 + $0xe0] sm:$0xff]   ;;  %v1299_v21 = vld [vmem:[%s1694_s1 + $0xe8] sm:$0xff]  }
   0x7   :  { %v1292_v14 = vld [vmem:[%s1694_s1 + $0x18] sm:$0xff]   ;;  %v1296_v18 = vld [vmem:[%s1694_s1 + $0x20] sm:$0xff]   ;;  %v1300_v22 = vld [vmem:[%s1694_s1 + $0x28] sm:$0xff]  }
   0x8   :  { %1139 = vmatpush3.bf16.msra.mxu0 %v1284_v6  ;;  %v1293_v15 = vld [vmem:[%s1694_s1 + $0x98] sm:$0xff]   ;;  %v1297_v19 = vld [vmem:[%s1694_s1 + $0xa0] sm:$0xff]   ;;  %v1301_v23 = vld [vmem:[%s1694_s1 + $0xa8] sm:$0xff]  }
   0x9   :  { %1167 = vmatpush3.bf16.msra.mxu1 %v1285_v7  ;;  %1140 = vmatprep.subr.bf16.mxu0 %v1286_v8  ;;  %v1302_v24 = vld [vmem:[%s1694_s1 + $0x70] sm:$0xff]   ;;  %v1306_v28 = vld [vmem:[%s1694_s1 + $0x78] sm:$0xff]   ;;  %v1310_v32 = vld [vmem:[%s1695_s0] ss:$36 sps:$4 sm:$0xff]  }
   0xa   :  { %1168 = vmatprep.subr.bf16.mxu1 %v1287_v9  ;;  %v1303_v25 = vld [vmem:[%s1694_s1 + $0xf0] sm:$0xff]   ;;  %v1307_v29 = vld [vmem:[%s1694_s1 + $0xf8] sm:$0xff]   ;;  %v1312_v33 = vld [vmem:[%s1695_s0 + $0x4] ss:$36 sps:$4 sm:$0xff]  }
   0xb   :  { %v1304_v26 = vld [vmem:[%s1694_s1 + $0x30] sm:$0xff]   ;;  %v1308_v30 = vld [vmem:[%s1694_s1 + $0x38] sm:$0xff]   ;;  %v1313_v34 = vld [vmem:[%s1695_s0 + $0x8] ss:$36 sps:$4 sm:$0xff]   ;;  %741 = vmatprep.mubr.bf16.mxu0 %v1312_v33 }
   0xc   :  { %1141 = vmatpush3.bf16.msra.mxu0 %v1288_v10  ;;  %v1305_v27 = vld [vmem:[%s1694_s1 + $0xb0] sm:$0xff]   ;;  %v1309_v31 = vld [vmem:[%s1694_s1 + $0xb8] sm:$0xff]   ;;  %v1316_v36 = vld [vmem:[%s1694_s1 + $0x140] sm:$0xff]  }
   0xd   :  { %1169 = vmatpush3.bf16.msra.mxu1 %v1289_v11  ;;  %1142 = vmatprep.subr.bf16.mxu0 %v1290_v12  ;;  %v1315_v35 = vld [vmem:[%s1695_s0 + $0xc] ss:$36 sps:$4 sm:$0xff]   ;;  %v1317_v37 = vld [vmem:[%s1694_s1 + $0x100] sm:$0xff]   ;;  %v1328_v48 = vld [vmem:[%s1694_s1 + $0x158] sm:$0xff]  }
   0xe   :  { %1170 = vmatprep.subr.bf16.mxu1 %v1291_v13  ;;  %790 = vmatprep.mubr.bf16.mxu1 %v1315_v35  ;;  %v1318_v38 = vld [vmem:[%s1694_s1 + $0x1c0] sm:$0xff]   ;;  %v1320_v40 = vld [vmem:[%s1694_s1 + $0x148] sm:$0xff]   ;;  %v1324_v44 = vld [vmem:[%s1694_s1 + $0x150] sm:$0xff]  }
   0xf   :  { %v1319_v39 = vld [vmem:[%s1694_s1 + $0x180] sm:$0xff]   ;;  %v1321_v41 = vld [vmem:[%s1694_s1 + $0x108] sm:$0xff]   ;;  %v1325_v45 = vld [vmem:[%s1694_s1 + $0x110] sm:$0xff]  }
  0x10   :  { %1143 = vmatpush3.bf16.msra.mxu0 %v1292_v14  ;;  %v1322_v42 = vld [vmem:[%s1694_s1 + $0x1c8] sm:$0xff]   ;;  %v1326_v46 = vld [vmem:[%s1694_s1 + $0x1d0] sm:$0xff]   ;;  %v1329_v49 = vld [vmem:[%s1694_s1 + $0x118] sm:$0xff]  }
  0x11   :  { %1171 = vmatpush3.bf16.msra.mxu1 %v1293_v15  ;;  %1144 = vmatprep.subr.bf16.mxu0 %v1294_v16  ;;  %v1323_v43 = vld [vmem:[%s1694_s1 + $0x188] sm:$0xff]   ;;  %v1327_v47 = vld [vmem:[%s1694_s1 + $0x190] sm:$0xff]   ;;  %v1330_v50 = vld [vmem:[%s1694_s1 + $0x1d8] sm:$0xff]  }
  0x12   :  { %1172 = vmatprep.subr.bf16.mxu1 %v1295_v17  ;;  %v1331_v51 = vld [vmem:[%s1694_s1 + $0x198] sm:$0xff]   ;;  %v1332_v52 = vld [vmem:[%s1694_s1 + $0x160] sm:$0xff]   ;;  %v1336_v56 = vld [vmem:[%s1694_s1 + $0x168] sm:$0xff]  }
  0x13   :  { %v1333_v53 = vld [vmem:[%s1694_s1 + $0x120] sm:$0xff]   ;;  %v1337_v57 = vld [vmem:[%s1695_s0 + $0x4c] ss:$36 sps:$4 sm:$0xff]   ;;  %v1339_v58 = vld [vmem:[%s1695_s0 + $0x54] ss:$36 sps:$4 sm:$0xff]  }
  0x14   :  { %1145 = vmatpush3.bf16.msra.mxu0 %v1296_v18  ;;  %v1334_v54 = vld [vmem:[%s1694_s1 + $0x1e0] sm:$0xff]   ;;  %v1341_v59 = vld [vmem:[%s1694_s1 + $0x128] sm:$0xff]   ;;  %v1343_v61 = vld [vmem:[%s1695_s0 + $0x50] ss:$36 sps:$4 sm:$0xff]  }
  0x15   :  { %1173 = vmatpush3.bf16.msra.mxu1 %v1297_v19  ;;  %1146 = vmatprep.subr.bf16.mxu0 %v1298_v20  ;;  %v1335_v55 = vld [vmem:[%s1694_s1 + $0x1a0] sm:$0xff]   ;;  %v1342_v60 = vld [vmem:[%s1695_s0 + $0x48] ss:$36 sps:$4 sm:$0xff]   ;;  %v1346_v0 = vld [vmem:[%s1694_s1 + $0x170] sm:$0xff]  }
  0x16   :  { %1174 = vmatprep.subr.bf16.mxu1 %v1299_v21  ;;  %v1344_v62 = vld [vmem:[%s1694_s1 + $0x1e8] sm:$0xff]   ;;  %v1347_v1 = vld [vmem:[%s1694_s1 + $0x130] sm:$0xff]   ;;  %v1350_v4 = vld [vmem:[%s1694_s1 + $0x178] sm:$0xff]  }
  0x17   :  { %v1345_v63 = vld [vmem:[%s1694_s1 + $0x1a8] sm:$0xff]   ;;  %v1348_v2 = vld [vmem:[%s1694_s1 + $0x1f0] sm:$0xff]   ;;  %v1351_v5 = vld [vmem:[%s1694_s1 + $0x138] sm:$0xff]  }
  0x18   :  { %1147 = vmatpush3.bf16.msra.mxu0 %v1300_v22  ;;  %v1349_v3 = vld [vmem:[%s1694_s1 + $0x1b0] sm:$0xff]   ;;  %v1352_v6 = vld [vmem:[%s1694_s1 + $0x1f8] sm:$0xff]   ;;  %v1357_v10 = vld [vmem:[%s1694_s1 + $0x200] sm:$0xff]  }
  0x19   :  { %1175 = vmatpush3.bf16.msra.mxu1 %v1301_v23  ;;  %1148 = vmatprep.subr.bf16.mxu0 %v1302_v24  ;;  %v1353_v7 = vld [vmem:[%s1695_s0 + $0x10] ss:$36 sps:$4 sm:$0xff]   ;;  %v1356_v9 = vld [vmem:[%s1694_s1 + $0x1b8] sm:$0xff]   ;;  %v1361_v13 = vld [vmem:[%s1694_s1 + $0x208] sm:$0xff]  }
  0x1a   :  { %1176 = vmatprep.subr.bf16.mxu1 %v1303_v25  ;;  %v1355_v8 = vld [vmem:[%s1695_s0 + $0x14] ss:$36 sps:$4 sm:$0xff]   ;;  %v1360_v12 = vld [vmem:[%s1695_s0 + $0x1c] ss:$36 sps:$4 sm:$0xff]   ;;  %v1366_v17 = vld [vmem:[%s1695_s0 + $0x64] ss:$36 sps:$4 sm:$0xff]  }
  0x1b   :  { %v1358_v11 = vld [vmem:[%s1695_s0 + $0x18] ss:$36 sps:$4 sm:$0xff]   ;;  %v1365_v16 = vld [vmem:[%s1694_s1 + $0x210] sm:$0xff]   ;;  %v1368_v18 = vld [vmem:[%s1695_s0 + $0x60] ss:$36 sps:$4 sm:$0xff]  }
  0x1c   :  { %1149 = vmatpush3.bf16.msra.mxu0 %v1304_v26  ;;  %v1362_v14 = vld [vmem:[%s1695_s0 + $0x5c] ss:$36 sps:$4 sm:$0xff]   ;;  %v1371_v22 = vld [vmem:[%s1694_s1 + $0x228] sm:$0xff]   ;;  %v1372_v23 = vld [vmem:[%s1694_s1 + $0x230] sm:$0xff]  }
  0x1d   :  { %1177 = vmatpush3.bf16.msra.mxu1 %v1305_v27  ;;  %1150 = vmatprep.subr.bf16.mxu0 %v1306_v28  ;;  %v1364_v15 = vld [vmem:[%s1695_s0 + $0x58] ss:$36 sps:$4 sm:$0xff]   ;;  %v1370_v20 = vld [vmem:[%s1694_s1 + $0x220] sm:$0xff]   ;;  %v1375_v25 = vld [vmem:[%s1695_s0 + $0x68] ss:$36 sps:$4 sm:$0xff]  }
  0x1e   :  { %1178 = vmatprep.subr.bf16.mxu1 %v1307_v29  ;;  %v1369_v19 = vld [vmem:[%s1694_s1 + $0x218] sm:$0xff]   ;;  %v1374_v21 = vld [vmem:[%s1695_s0 + $0x20] ss:$36 sps:$4 sm:$0xff]  }
  0x1f   :  { %v1373_v24 = vld [vmem:[%s1694_s1 + $0x238] sm:$0xff]  }
  0x20   :  { %1151 = vmatpush3.bf16.msra.mxu0 %v1308_v30 }
  0x21   :  { %1179 = vmatpush3.bf16.msra.mxu1 %v1309_v31  ;;  %1192 = vmatprep.subr.bf16.mxu0 %v1316_v36 }
  0x22   :  { %1220 = vmatprep.subr.bf16.mxu1 %v1318_v38 }
  0x23   :  { %742 = vmatmul.mubr.bf16.vlgmr.msra.gmra.mrb[0].mxu0 %v1310_v32 }
  0x24   :  { %791 = vmatmul.mubr.bf16.vlgmr.msra.gmra.mrb[0].mxu1 %v1313_v34  ;;  %1193 = vmatpush3.bf16.msra.mxu0 %v1317_v37 }
  0x25   :  { %1221 = vmatpush3.bf16.msra.mxu1 %v1319_v39  ;;  %1194 = vmatprep.subr.bf16.mxu0 %v1320_v40 }
  0x26   :  { %1222 = vmatprep.subr.bf16.mxu1 %v1322_v42  ;;  %749 = vmatprep.mubr.bf16.mxu0 %v1337_v57 }
  0x27   :  { %798 = vmatprep.mubr.bf16.mxu1 %v1339_v58 }
  0x28   :  { %1195 = vmatpush3.bf16.msra.mxu0 %v1321_v41 }
  0x29   :  { %1223 = vmatpush3.bf16.msra.mxu1 %v1323_v43  ;;  %1196 = vmatprep.subr.bf16.mxu0 %v1324_v44 }
  0x2a   :  { %1224 = vmatprep.subr.bf16.mxu1 %v1326_v46 }
  0x2b   :  { %750 = vmatmul.mubr.bf16.gmra.mrb[4].mxu0 %v1342_v60 }
  0x2c   :  { %1197 = vmatpush3.bf16.msra.mxu0 %v1325_v45  ;;  %799 = vmatmul.mubr.bf16.gmra.mrb[4].mxu1 %v1343_v61 }
  0x2d   :  { %1225 = vmatpush3.bf16.msra.mxu1 %v1327_v47  ;;  %1198 = vmatprep.subr.bf16.mxu0 %v1328_v48 }
  0x2e   :  { %1226 = vmatprep.subr.bf16.mxu1 %v1330_v50  ;;  %839 = vmatprep.mubr.bf16.mxu0 %v1355_v8 }
  0x2f   :  { %888 = vmatprep.mubr.bf16.mxu1 %v1360_v12 }
  0x30   :  { %1199 = vmatpush3.bf16.msra.mxu0 %v1329_v49 }
  0x31   :  { %1227 = vmatpush3.bf16.msra.mxu1 %v1331_v51  ;;  %1200 = vmatprep.subr.bf16.mxu0 %v1332_v52 }
  0x32   :  { %1228 = vmatprep.subr.bf16.mxu1 %v1334_v54 }
  0x34   :  { %1201 = vmatpush3.bf16.msra.mxu0 %v1333_v53 }
  0x35   :  { %1229 = vmatpush3.bf16.msra.mxu1 %v1335_v55  ;;  %1202 = vmatprep.subr.bf16.mxu0 %v1336_v56 }
  0x36   :  { %1230 = vmatprep.subr.bf16.mxu1 %v1344_v62 }
  0x38   :  { %1203 = vmatpush3.bf16.msra.mxu0 %v1341_v59 }
  0x39   :  { %1231 = vmatpush3.bf16.msra.mxu1 %v1345_v63  ;;  %1204 = vmatprep.subr.bf16.mxu0 %v1346_v0 }
  0x3a   :  { %1232 = vmatprep.subr.bf16.mxu1 %v1348_v2 }
  0x3c   :  { %1205 = vmatpush3.bf16.msra.mxu0 %v1347_v1 }
  0x3d   :  { %1233 = vmatpush3.bf16.msra.mxu1 %v1349_v3  ;;  %1206 = vmatprep.subr.bf16.mxu0 %v1350_v4 }
  0x3e   :  { %1234 = vmatprep.subr.bf16.mxu1 %v1352_v6 }
  0x40   :  { %1207 = vmatpush3.bf16.msra.mxu0 %v1351_v5 }
  0x41   :  { %1235 = vmatpush3.bf16.msra.mxu1 %v1356_v9  ;;  %1258 = vmatprep.subr.bf16.mxu0 %v1357_v10 }
  0x43   :  { %840 = vmatmul.mubr.bf16.vlgmr.msra.gmra.mrb[8].mxu0 %v1353_v7 }
  0x44   :  { %1259 = vmatpush3.bf16.msra.mxu0 %v1357_v10  ;;  %889 = vmatmul.mubr.bf16.vlgmr.msra.gmra.mrb[8].mxu1 %v1358_v11 }
  0x45   :  { %1260 = vmatprep.subr.bf16.mxu0 %v1361_v13  ;;  %847 = vmatprep.mubr.bf16.mxu0 %v1362_v14 }
  0x46   :  { %896 = vmatprep.mubr.bf16.mxu1 %v1366_v17 }
  0x48   :  { %1261 = vmatpush3.bf16.msra.mxu0 %v1361_v13 }
  0x49   :  { %1262 = vmatprep.subr.bf16.mxu0 %v1365_v16 }
  0x4b   :  { %848 = vmatmul.mubr.bf16.gmra.mrb[12].mxu0 %v1364_v15 }
  0x4c   :  { %1263 = vmatpush3.bf16.msra.mxu0 %v1365_v16  ;;  %897 = vmatmul.mubr.bf16.gmra.mrb[12].mxu1 %v1368_v18 }
  0x4d   :  { %1264 = vmatprep.subr.bf16.mxu0 %v1369_v19  ;;  %1274 = vmatprep.mubr.bf16.mxu0 %v1374_v21 }
  0x50   :  { %1265 = vmatpush3.bf16.msra.mxu0 %v1369_v19 }
  0x51   :  { %1266 = vmatprep.subr.bf16.mxu0 %v1370_v20 }
  0x54   :  { %1267 = vmatpush3.bf16.msra.mxu0 %v1370_v20 }
  0x55   :  { %1268 = vmatprep.subr.bf16.mxu0 %v1371_v22 }
  0x58   :  { %1269 = vmatpush3.bf16.msra.mxu0 %v1371_v22 }
  0x59   :  { %1270 = vmatprep.subr.bf16.mxu0 %v1372_v23 }
  0x5c   :  { %1271 = vmatpush3.bf16.msra.mxu0 %v1372_v23  ;;  %v1106_v23 = vld [vmem:[%s1696_s2] ss:$0 sm:$0xff] }
  0x5d   :  { %1272 = vmatprep.subr.bf16.mxu0 %v1373_v24 }
  0x60   :  { %1273 = vmatpush3.bf16.msra.mxu0 %v1373_v24  ;;  %v1134_v24 = vld [vmem:[%s1697_s4 + $0x8] sm:$0xff]  }
  0x63   :  { %1275 = vmatmul.mubr.bf16.vlgmr.msra.gmra.mrb[16].mxu0 %v1375_v25 }
  0xf6   :  { %v1152_v26 = vpop.f32.mrb[0].mxu0 }
  0xf7   :  { %v1180_v27 = vpop.f32.mrb[0].mxu1  ;;  %v1153_v28 = vpop.f32.mrb[1].mxu0 }
  0xf8   :  { %v1154_v29 = vadd.f32 %v1153_v28, %v1152_v26  ;;  %v1181_v30 = vpop.f32.mrb[1].mxu1  ;;  %v1155_v31 = vpop.f32.mrb[2].mxu0  ;;  %v1107_v28 = vld [vmem:[%s1698_s3] ss:$0 sm:$0xff] }
  0xf9   :  { %v1182_v32 = vadd.f32 %v1181_v30, %v1180_v27  ;;  %v1183_v33 = vpop.f32.mrb[2].mxu1  ;;  %v1156_v34 = vpop.f32.mrb[3].mxu0  ;;  %v1117_v27 = vld [vmem:[%s1697_s4] sm:$0xff]  }
  0xfa   :  { %v1157_v35 = vadd.f32 %v1156_v34, %v1155_v31  ;;  %v1184_v36 = vpop.f32.mrb[3].mxu1 }
  0xfb   :  { %v793_v37 = vadd.f32 %v1182_v32, %v1154_v29  ;;  %v1185_v38 = vadd.f32 %v1184_v36, %v1183_v33  ;;  %v1122_v32 = vunpack.c.l.bf16 %v1134_v24  ;;  %v1118_v36 = vunpack.c.l.bf16 %v1117_v27 }
  0xfd   :  { %v796_v39 = vadd.f32 %v1185_v38, %v1157_v35 }
  0xfe   :  { %v1158_v40 = vpop.f32.mrb[4].mxu0 }
  0xff   :  { %v1186_v41 = vpop.f32.mrb[4].mxu1  ;;  %v1159_v42 = vpop.f32.mrb[5].mxu0 }
 0x100   :  { %v1187_v43 = vpop.f32.mrb[5].mxu1  ;;  %v1160_v44 = vadd.f32 %v1159_v42, %v1158_v40  ;;  %v1161_v46 = vpop.f32.mrb[6].mxu0  ;;  %v1123_v40 = vunpack.c.h.bf16 %v1134_v24 }
 0x101   :  { %v1188_v45 = vadd.f32 %v1187_v43, %v1186_v41  ;;  %v1189_v47 = vpop.f32.mrb[6].mxu1  ;;  %v1162_v48 = vpop.f32.mrb[7].mxu0  ;;  %v1119_v43 = vunpack.c.h.bf16 %v1117_v27 }
 0x102   :  { %v1190_v49 = vpop.f32.mrb[7].mxu1  ;;  %v1163_v51 = vadd.f32 %v1162_v48, %v1161_v46 }
 0x103   :  { %v801_v50 = vadd.f32 %v1188_v45, %v1160_v44  ;;  %v1191_v52 = vadd.f32 %v1190_v49, %v1189_v47 }
 0x105   :  { %v804_v53 = vadd.f32 %v1191_v52, %v1163_v51 }
 0x116   :  { %v1208_v54 = vpop.f32.mrb[8].mxu0 }
 0x117   :  { %v1209_v55 = vpop.f32.mrb[9].mxu0  ;;  %v1236_v58 = vpop.f32.mrb[8].mxu1 }
 0x118   :  { %v1210_v56 = vadd.f32 %v1209_v55, %v1208_v54  ;;  %v1211_v57 = vpop.f32.mrb[10].mxu0  ;;  %v1237_v62 = vpop.f32.mrb[9].mxu1 }
 0x119   :  { %v1212_v59 = vpop.f32.mrb[11].mxu0  ;;  %v1238_v63 = vadd.f32 %v1237_v62, %v1236_v58  ;;  %v1239_v0 = vpop.f32.mrb[10].mxu1 }
 0x11a   :  { %v842_v60 = vadd.f32 %v1210_v56, %v793_v37  ;;  %v1213_v61 = vadd.f32 %v1212_v59, %v1211_v57  ;;  %v1240_v2 = vpop.f32.mrb[11].mxu1 }
 0x11b   :  { %v1241_v3 = vadd.f32 %v1240_v2, %v1239_v0 }
 0x11c   :  { %v845_v1 = vadd.f32 %v1213_v61, %v796_v39  ;;  %v891_v4 = vadd.f32 %v1238_v63, %v842_v60 }
 0x11e   :  { %v1214_v5 = vpop.f32.mrb[12].mxu0  ;;  %v894_v7 = vadd.f32 %v1241_v3, %v845_v1 }
 0x11f   :  { %v1215_v6 = vpop.f32.mrb[13].mxu0  ;;  %v1242_v10 = vpop.f32.mrb[12].mxu1 }
 0x120   :  { %v1216_v8 = vadd.f32 %v1215_v6, %v1214_v5  ;;  %v1217_v9 = vpop.f32.mrb[14].mxu0  ;;  %v1243_v14 = vpop.f32.mrb[13].mxu1 }
 0x121   :  { %v1218_v11 = vpop.f32.mrb[15].mxu0  ;;  %v1244_v15 = vadd.f32 %v1243_v14, %v1242_v10  ;;  %v1245_v16 = vpop.f32.mrb[14].mxu1 }
 0x122   :  { %v850_v12 = vadd.f32 %v1216_v8, %v801_v50  ;;  %v1219_v13 = vadd.f32 %v1218_v11, %v1217_v9  ;;  %v1246_v18 = vpop.f32.mrb[15].mxu1 }
 0x123   :  { %v1247_v19 = vadd.f32 %v1246_v18, %v1245_v16 }
 0x124   :  { %v853_v17 = vadd.f32 %v1219_v13, %v804_v53  ;;  %v899_v20 = vadd.f32 %v1244_v15, %v850_v12 }
 0x126   :  { %v902_v21 = vadd.f32 %v1247_v19, %v853_v17 }
 0x136   :  { %v1276_v22 = vpop.f32.mrb[16].mxu0 }
 0x137   :  { %v948_v25 = vadd.f32 %v1276_v22, %v899_v20  ;;  %v939_v26 = vpop.f32.mrb[17].mxu0 }
 0x138   :  { %v940_v29 = vadd.f32 %v939_v26, %v891_v4  ;;  %v1277_v30 = vpop.f32.mrb[18].mxu0 }
 0x139   :  { %v963_v31 = vmul.f32 %v1106_v23, %v948_v25  ;;  %v951_v33 = vadd.f32 %v1277_v30, %v902_v21  ;;  %v942_v34 = vpop.f32.mrb[19].mxu0 }
 0x13a   :  { %v961_v35 = vmul.f32 %v1106_v23, %v940_v29  ;;  %v943_v37 = vadd.f32 %v942_v34, %v894_v7 }
 0x13b   :  { %v974_v38 = vadd.f32 %v1107_v28, %v963_v31  ;;  %v964_v39 = vmul.f32 %v1106_v23, %v951_v33 }
 0x13c   :  { %v972_v41 = vadd.f32 %v1107_v28, %v961_v35  ;;  %v962_v42 = vmul.f32 %v1106_v23, %v943_v37 }
 0x13d   :  { %v986_v44 = vadd.f32 %v1122_v32, %v974_v38  ;;  %v975_v45 = vadd.f32 %v1107_v28, %v964_v39 }
 0x13e   :  { %v984_v46 = vadd.f32 %v1118_v36, %v972_v41  ;;  %v973_v47 = vadd.f32 %v1107_v28, %v962_v42 }
 0x13f   :  { %v987_v48 = vadd.f32 %v1123_v40, %v975_v45  ;;  %v990_v50 = vmax.f32 %v986_v44, 0.0 }
 0x140   :  { %v985_v49 = vadd.f32 %v1119_v43, %v973_v47  ;;  %v988_v52 = vmax.f32 %v984_v46, 0.0 }
 0x141   :  { %v991_v51 = vmax.f32 %v987_v48, 0.0 }
 0x142   :  { %v989_v53 = vmax.f32 %v985_v49, 0.0 }
 0x143   :  { %v1132_v54 = vpack.c.bf16 %v991_v51, %v990_v50 }
 0x144   :  { %v1127_v55 = vpack.c.bf16 %v989_v53, %v988_v52 }
 0x145   :  { %1135 = vst [vmem:[%s1699_s5 + $0x8] sm:$0xff] %v1132_v54  }
 0x146   :  { %1128 = vst [vmem:[%s1699_s5] sm:$0xff] %v1127_v55  }

// kernel: torchvision_resnet18_forward.21
= control target key start
LH: loop header
LB: loop body
LE: loop exit
PB: predicated region body
PF: predicated region fallthrough
CT: control target
= control target key end

     0   :  { %v194_v0 = vmov 0.0   ;;  %vm195_vm0 = vmmov 0   ;;  %s257_s1 = inlined_call_operand.vmem [shape: bf16[128,128], index: 1, kind: input, shape index: {}]   ;;  %s258_s0 = inlined_call_operand.vmem [shape: bf16[8,128], index: 0, kind: input, shape index: {}]   ;;  %s259_s2 = inlined_call_operand.vmem [shape: f32[1,128], index: 2, kind: input, shape index: {}]   ;;  %s260_s3 = inlined_call_operand.vmem [shape: f32[1,128], index: 3, kind: input, shape index: {}]   ;;  %s261_s4 = inlined_call_operand.vmem [shape: bf16[8,128], index: 4, kind: output, shape index: {}]  }
   0x1   :  { %164 = vmatprep.subr.bf16.mxu0 %v194_v0  ;;  %v186_v1 = vld [vmem:[%s257_s1] sm:$0xff]   ;;  %180 = vmatprep.mubr.msk.bf16.mxu0 %vm195_vm0, %v194_v0  ;;  %v187_v2 = vld [vmem:[%s257_s1 + $0x8] sm:$0xff]   ;;  %v188_v3 = vld [vmem:[%s257_s1 + $0x10] sm:$0xff]  }
   0x2   :  { %165 = vmatpush3.bf16.msra.mxu0 %v186_v1  ;;  %v189_v4 = vld [vmem:[%s257_s1 + $0x18] sm:$0xff]   ;;  %v190_v5 = vld [vmem:[%s257_s1 + $0x20] sm:$0xff]   ;;  %v191_v6 = vld [vmem:[%s257_s1 + $0x28] sm:$0xff]  }
   0x3   :  { %166 = vmatprep.subr.bf16.mxu0 %v194_v0  ;;  %v192_v7 = vld [vmem:[%s257_s1 + $0x30] sm:$0xff]   ;;  %v193_v8 = vld [vmem:[%s257_s1 + $0x38] sm:$0xff]   ;;  %v18_v9 = vld [vmem:[%s258_s0] sm:$0xf] }
   0x4   :  { %v153_v10 = vld [vmem:[%s259_s2] ss:$0 sm:$0xff] }
   0x5   :  { %v154_v12 = vld [vmem:[%s260_s3] ss:$0 sm:$0xff] }
   0x6   :  { %167 = vmatpush3.bf16.msra.mxu0 %v187_v2 }
   0x7   :  { %168 = vmatprep.subr.bf16.mxu0 %v194_v0 }
   0xa   :  { %169 = vmatpush3.bf16.msra.mxu0 %v188_v3 }
   0xb   :  { %170 = vmatprep.subr.bf16.mxu0 %v194_v0 }
   0xe   :  { %171 = vmatpush3.bf16.msra.mxu0 %v189_v4 }
   0xf   :  { %172 = vmatprep.subr.bf16.mxu0 %v194_v0 }
  0x12   :  { %173 = vmatpush3.bf16.msra.mxu0 %v190_v5 }
  0x13   :  { %174 = vmatprep.subr.bf16.mxu0 %v194_v0 }
  0x16   :  { %175 = vmatpush3.bf16.msra.mxu0 %v191_v6 }
  0x17   :  { %176 = vmatprep.subr.bf16.mxu0 %v194_v0 }
  0x1a   :  { %177 = vmatpush3.bf16.msra.mxu0 %v192_v7 }
  0x1b   :  { %178 = vmatprep.subr.bf16.mxu0 %v194_v0 }
  0x1e   :  { %179 = vmatpush3.bf16.msra.mxu0 %v193_v8 }
  0x21   :  { %181 = vmatmul.mubr.bf16.vlgmr.msra.gmra.mrb[0].mxu0 %v18_v9 }
  0xf4   :  { %v117_v11 = vpop.f32.mrb[0].mxu0 }
  0xf5   :  { %v130_v13 = vmul.f32 %v153_v10, %v117_v11  ;;  %v182_v14 = vpop.f32.mrb[1].mxu0 }
  0xf6   :  { %v120_v15 = vpop.f32.mrb[2].mxu0 }
  0xf7   :  { %v138_v16 = vadd.f32 %v154_v12, %v130_v13  ;;  %v183_v17 = vpop.f32.mrb[3].mxu0 }
  0xf9   :  { %v139_v18 = vpack.c.bf16 %v138_v16, %v138_v16 }
  0xfb   :  { %140 = vst [vmem:[%s261_s4] sm:$0xf] %v139_v18 }

// kernel: torchvision_resnet18_forward.22
= control target key start
LH: loop header
LB: loop body
LE: loop exit
PB: predicated region body
PF: predicated region fallthrough
CT: control target
= control target key end

     0   :  { %vm1144_vm0 = vmmov 0   ;;  %s1418_s1 = inlined_call_operand.vmem [shape: bf16[1152,128], index: 1, kind: input, shape index: {}]   ;;  %s1419_s0 = inlined_call_operand.vmem [shape: bf16[8,1152], index: 0, kind: input, shape index: {}]   ;;  %s1420_s2 = inlined_call_operand.vmem [shape: f32[1,128], index: 2, kind: input, shape index: {}]   ;;  %s1421_s4 = inlined_call_operand.vmem [shape: bf16[8,128], index: 4, kind: input, shape index: {}]   ;;  %s1422_s3 = inlined_call_operand.vmem [shape: f32[1,128], index: 3, kind: input, shape index: {}]   ;;  %s1423_s5 = inlined_call_operand.vmem [shape: bf16[8,128], index: 5, kind: output, shape index: {}]  }
   0x1   :  { %v1062_v0 = vld [vmem:[%s1418_s1 + $0x40] sm:$0xff]   ;;  %v1066_v4 = vld [vmem:[%s1418_s1 + $0x48] sm:$0xff]   ;;  %v1070_v8 = vld [vmem:[%s1418_s1 + $0x50] sm:$0xff]  }
   0x2   :  { %v1063_v1 = vld [vmem:[%s1418_s1 + $0xc0] sm:$0xff]   ;;  %943 = vmatprep.subr.bf16.mxu0 %v1062_v0  ;;  %v1067_v5 = vld [vmem:[%s1418_s1 + $0xc8] sm:$0xff]   ;;  %v1071_v9 = vld [vmem:[%s1418_s1 + $0xd0] sm:$0xff]  }
   0x3   :  { %v1064_v2 = vld [vmem:[%s1418_s1] sm:$0xff]   ;;  %965 = vmatprep.subr.bf16.mxu1 %v1063_v1  ;;  %v1068_v6 = vld [vmem:[%s1418_s1 + $0x8] sm:$0xff]   ;;  %v1072_v10 = vld [vmem:[%s1418_s1 + $0x10] sm:$0xff]  }
   0x4   :  { %v1065_v3 = vld [vmem:[%s1418_s1 + $0x80] sm:$0xff]   ;;  %944 = vmatpush3.bf16.msra.mxu0 %v1064_v2  ;;  %v1069_v7 = vld [vmem:[%s1418_s1 + $0x88] sm:$0xff]   ;;  %v1073_v11 = vld [vmem:[%s1418_s1 + $0x90] sm:$0xff]  }
   0x5   :  { %966 = vmatpush3.bf16.msra.mxu1 %v1065_v3  ;;  %945 = vmatprep.subr.bf16.mxu0 %v1066_v4  ;;  %v1074_v12 = vld [vmem:[%s1418_s1 + $0x58] sm:$0xff]   ;;  %v1078_v16 = vld [vmem:[%s1418_s1 + $0x60] sm:$0xff]   ;;  %v1082_v20 = vld [vmem:[%s1418_s1 + $0x68] sm:$0xff]  }
   0x6   :  { %967 = vmatprep.subr.bf16.mxu1 %v1067_v5  ;;  %v1075_v13 = vld [vmem:[%s1418_s1 + $0xd8] sm:$0xff]   ;;  %v1079_v17 = vld [vmem:[%s1418_s1 + $0xe0] sm:$0xff]   ;;  %v1083_v21 = vld [vmem:[%s1418_s1 + $0xe8] sm:$0xff]  }
   0x7   :  { %v1076_v14 = vld [vmem:[%s1418_s1 + $0x18] sm:$0xff]   ;;  %v1080_v18 = vld [vmem:[%s1418_s1 + $0x20] sm:$0xff]   ;;  %v1084_v22 = vld [vmem:[%s1418_s1 + $0x28] sm:$0xff]  }
   0x8   :  { %946 = vmatpush3.bf16.msra.mxu0 %v1068_v6  ;;  %v1077_v15 = vld [vmem:[%s1418_s1 + $0x98] sm:$0xff]   ;;  %v1081_v19 = vld [vmem:[%s1418_s1 + $0xa0] sm:$0xff]   ;;  %v1085_v23 = vld [vmem:[%s1418_s1 + $0xa8] sm:$0xff]  }
   0x9   :  { %968 = vmatpush3.bf16.msra.mxu1 %v1069_v7  ;;  %947 = vmatprep.subr.bf16.mxu0 %v1070_v8  ;;  %v1086_v24 = vld [vmem:[%s1418_s1 + $0x70] sm:$0xff]   ;;  %v1090_v28 = vld [vmem:[%s1418_s1 + $0x78] sm:$0xff]   ;;  %v21_v32 = vld [vmem:[%s1419_s0] sm:$0xff] }
   0xa   :  { %969 = vmatprep.subr.bf16.mxu1 %v1071_v9  ;;  %v1087_v25 = vld [vmem:[%s1418_s1 + $0xf0] sm:$0xff]   ;;  %v1091_v29 = vld [vmem:[%s1418_s1 + $0xf8] sm:$0xff]   ;;  %v22_v33 = vld [vmem:[%s1419_s0 + $0x8] sm:$0xff]  ;;  %v860_v34 = vcombine.low %v21_v32, %v21_v32  ;;  %v861_v35 = vcombine.high %v21_v32, %v21_v32 }
   0xb   :  { %v1088_v26 = vld [vmem:[%s1418_s1 + $0x30] sm:$0xff]   ;;  %v1092_v30 = vld [vmem:[%s1418_s1 + $0x38] sm:$0xff]   ;;  %v862_v36 = vcombine.low %v22_v33, %v22_v33  ;;  %v863_v37 = vcombine.high %v22_v33, %v22_v33  ;;  %v1098_v38 = vld [vmem:[%s1418_s1 + $0x140] sm:$0xff]  }
   0xc   :  { %948 = vmatpush3.bf16.msra.mxu0 %v1072_v10  ;;  %v1089_v27 = vld [vmem:[%s1418_s1 + $0xb0] sm:$0xff]   ;;  %v1093_v31 = vld [vmem:[%s1418_s1 + $0xb8] sm:$0xff]   ;;  %v1099_v39 = vld [vmem:[%s1418_s1 + $0x100] sm:$0xff]   ;;  %666 = vmatprep.mubr.bf16.mxu0 %v861_v35 }
   0xd   :  { %970 = vmatpush3.bf16.msra.mxu1 %v1073_v11  ;;  %949 = vmatprep.subr.bf16.mxu0 %v1074_v12  ;;  %v1100_v40 = vld [vmem:[%s1418_s1 + $0x1c0] sm:$0xff]   ;;  %v1102_v42 = vld [vmem:[%s1418_s1 + $0x148] sm:$0xff]   ;;  %v1106_v46 = vld [vmem:[%s1418_s1 + $0x150] sm:$0xff]  }
   0xe   :  { %971 = vmatprep.subr.bf16.mxu1 %v1075_v13  ;;  %706 = vmatprep.mubr.bf16.mxu1 %v863_v37  ;;  %v1101_v41 = vld [vmem:[%s1418_s1 + $0x180] sm:$0xff]   ;;  %v1103_v43 = vld [vmem:[%s1418_s1 + $0x108] sm:$0xff]   ;;  %v1107_v47 = vld [vmem:[%s1418_s1 + $0x110] sm:$0xff]   ;;  %v1143_v13 = vmov 0.0  }
   0xf   :  { %v1104_v44 = vld [vmem:[%s1418_s1 + $0x1c8] sm:$0xff]   ;;  %v1108_v48 = vld [vmem:[%s1418_s1 + $0x1d0] sm:$0xff]   ;;  %v1110_v50 = vld [vmem:[%s1418_s1 + $0x158] sm:$0xff]  }
  0x10   :  { %950 = vmatpush3.bf16.msra.mxu0 %v1076_v14  ;;  %v1105_v45 = vld [vmem:[%s1418_s1 + $0x188] sm:$0xff]   ;;  %v1109_v49 = vld [vmem:[%s1418_s1 + $0x190] sm:$0xff]   ;;  %v1111_v51 = vld [vmem:[%s1418_s1 + $0x118] sm:$0xff]  }
  0x11   :  { %972 = vmatpush3.bf16.msra.mxu1 %v1077_v15  ;;  %951 = vmatprep.subr.bf16.mxu0 %v1078_v16  ;;  %v1112_v52 = vld [vmem:[%s1418_s1 + $0x1d8] sm:$0xff]   ;;  %v1114_v54 = vld [vmem:[%s1418_s1 + $0x160] sm:$0xff]   ;;  %v1118_v58 = vld [vmem:[%s1418_s1 + $0x168] sm:$0xff]  }
  0x12   :  { %973 = vmatprep.subr.bf16.mxu1 %v1079_v17  ;;  %v1113_v53 = vld [vmem:[%s1418_s1 + $0x198] sm:$0xff]   ;;  %v1115_v55 = vld [vmem:[%s1418_s1 + $0x120] sm:$0xff]   ;;  %v1119_v59 = vld [vmem:[%s1418_s1 + $0x128] sm:$0xff]  }
  0x13   :  { %v1116_v56 = vld [vmem:[%s1418_s1 + $0x1e0] sm:$0xff]   ;;  %v1120_v60 = vld [vmem:[%s1418_s1 + $0x1e8] sm:$0xff]   ;;  %v1122_v62 = vld [vmem:[%s1418_s1 + $0x170] sm:$0xff]  }
  0x14   :  { %952 = vmatpush3.bf16.msra.mxu0 %v1080_v18  ;;  %v1117_v57 = vld [vmem:[%s1418_s1 + $0x1a0] sm:$0xff]   ;;  %v1121_v61 = vld [vmem:[%s1418_s1 + $0x1a8] sm:$0xff]   ;;  %v1123_v63 = vld [vmem:[%s1418_s1 + $0x130] sm:$0xff]  }
  0x15   :  { %974 = vmatpush3.bf16.msra.mxu1 %v1081_v19  ;;  %953 = vmatprep.subr.bf16.mxu0 %v1082_v20  ;;  %v1124_v0 = vld [vmem:[%s1418_s1 + $0x1f0] sm:$0xff]   ;;  %v1126_v2 = vld [vmem:[%s1418_s1 + $0x178] sm:$0xff]   ;;  %v1134_v12 = vld [vmem:[%s1418_s1 + $0x200] sm:$0xff]  }
  0x16   :  { %975 = vmatprep.subr.bf16.mxu1 %v1083_v21  ;;  %v1125_v1 = vld [vmem:[%s1418_s1 + $0x1b0] sm:$0xff]   ;;  %v1127_v3 = vld [vmem:[%s1418_s1 + $0x138] sm:$0xff]   ;;  %v1135_v14 = vld [vmem:[%s1418_s1 + $0x208] sm:$0xff]  }
  0x17   :  { %v1128_v4 = vld [vmem:[%s1418_s1 + $0x1f8] sm:$0xff]   ;;  %v23_v5 = vld [vmem:[%s1419_s0 + $0x10] sm:$0xff]  ;;  %v1138_v17 = vld [vmem:[%s1418_s1 + $0x220] sm:$0xff]  }
  0x18   :  { %954 = vmatpush3.bf16.msra.mxu0 %v1084_v22  ;;  %v865_v6 = vcombine.high %v23_v5, %v23_v5  ;;  %v1131_v7 = vld [vmem:[%s1418_s1 + $0x1b8] sm:$0xff]   ;;  %v864_v8 = vcombine.low %v23_v5, %v23_v5  ;;  %v1136_v15 = vld [vmem:[%s1418_s1 + $0x210] sm:$0xff]   ;;  %v1139_v18 = vld [vmem:[%s1418_s1 + $0x228] sm:$0xff]  }
  0x19   :  { %976 = vmatpush3.bf16.msra.mxu1 %v1085_v23  ;;  %955 = vmatprep.subr.bf16.mxu0 %v1086_v24  ;;  %v24_v9 = vld [vmem:[%s1419_s0 + $0x18] sm:$0xff]  ;;  %v1140_v19 = vld [vmem:[%s1418_s1 + $0x230] sm:$0xff]   ;;  %v1142_v21 = vld [vmem:[%s1419_s0 + $0x20] ss:$0 sps:$4 sm:$0xff]  }
  0x1a   :  { %977 = vmatprep.subr.bf16.mxu1 %v1087_v25  ;;  %v866_v10 = vcombine.low %v24_v9, %v24_v9  ;;  %v867_v11 = vcombine.high %v24_v9, %v24_v9  ;;  %v1137_v16 = vld [vmem:[%s1418_s1 + $0x218] sm:$0xff]  }
  0x1b   :  { %v1141_v20 = vld [vmem:[%s1418_s1 + $0x238] sm:$0xff]  }
  0x1c   :  { %956 = vmatpush3.bf16.msra.mxu0 %v1088_v26 }
  0x1d   :  { %978 = vmatpush3.bf16.msra.mxu1 %v1089_v27  ;;  %957 = vmatprep.subr.bf16.mxu0 %v1090_v28 }
  0x1e   :  { %979 = vmatprep.subr.bf16.mxu1 %v1091_v29 }
  0x20   :  { %958 = vmatpush3.bf16.msra.mxu0 %v1092_v30 }
  0x21   :  { %980 = vmatpush3.bf16.msra.mxu1 %v1093_v31  ;;  %987 = vmatprep.subr.bf16.mxu0 %v1098_v38 }
  0x22   :  { %1009 = vmatprep.subr.bf16.mxu1 %v1100_v40 }
  0x23   :  { %667 = vmatmul.mubr.bf16.vlgmr.msra.gmra.mrb[0].mxu0 %v860_v34 }
  0x24   :  { %707 = vmatmul.mubr.bf16.vlgmr.msra.gmra.mrb[0].mxu1 %v862_v36  ;;  %988 = vmatpush3.bf16.msra.mxu0 %v1099_v39 }
  0x25   :  { %1010 = vmatpush3.bf16.msra.mxu1 %v1101_v41  ;;  %989 = vmatprep.subr.bf16.mxu0 %v1102_v42 }
  0x26   :  { %1011 = vmatprep.subr.bf16.mxu1 %v1104_v44  ;;  %746 = vmatprep.mubr.bf16.mxu0 %v865_v6 }
  0x27   :  { %786 = vmatprep.mubr.bf16.mxu1 %v867_v11 }
  0x28   :  { %990 = vmatpush3.bf16.msra.mxu0 %v1103_v43 }
  0x29   :  { %1012 = vmatpush3.bf16.msra.mxu1 %v1105_v45  ;;  %991 = vmatprep.subr.bf16.mxu0 %v1106_v46  ;;  %v941_v46 = vld [vmem:[%s1420_s2] ss:$0 sm:$0xff] }
  0x2a   :  { %1013 = vmatprep.subr.bf16.mxu1 %v1108_v48 }
  0x2c   :  { %992 = vmatpush3.bf16.msra.mxu0 %v1107_v47  ;;  %v850_v47 = vld [vmem:[%s1421_s4] sm:$0xf] }
  0x2d   :  { %1014 = vmatpush3.bf16.msra.mxu1 %v1109_v49  ;;  %993 = vmatprep.subr.bf16.mxu0 %v1110_v50  ;;  %v942_v50 = vld [vmem:[%s1422_s3] ss:$0 sm:$0xff] }
  0x2e   :  { %1015 = vmatprep.subr.bf16.mxu1 %v1112_v52 }
  0x30   :  { %994 = vmatpush3.bf16.msra.mxu0 %v1111_v51 }
  0x31   :  { %1016 = vmatpush3.bf16.msra.mxu1 %v1113_v53  ;;  %995 = vmatprep.subr.bf16.mxu0 %v1114_v54  ;;  %v851_v53 = vunpack.c.l.bf16 %v850_v47 }
  0x32   :  { %1017 = vmatprep.subr.bf16.mxu1 %v1116_v56 }
  0x34   :  { %996 = vmatpush3.bf16.msra.mxu0 %v1115_v55 }
  0x35   :  { %1018 = vmatpush3.bf16.msra.mxu1 %v1117_v57  ;;  %997 = vmatprep.subr.bf16.mxu0 %v1118_v58 }
  0x36   :  { %1019 = vmatprep.subr.bf16.mxu1 %v1120_v60 }
  0x38   :  { %998 = vmatpush3.bf16.msra.mxu0 %v1119_v59 }
  0x39   :  { %1020 = vmatpush3.bf16.msra.mxu1 %v1121_v61  ;;  %999 = vmatprep.subr.bf16.mxu0 %v1122_v62 }
  0x3a   :  { %1021 = vmatprep.subr.bf16.mxu1 %v1124_v0 }
  0x3c   :  { %1000 = vmatpush3.bf16.msra.mxu0 %v1123_v63 }
  0x3d   :  { %1022 = vmatpush3.bf16.msra.mxu1 %v1125_v1  ;;  %1001 = vmatprep.subr.bf16.mxu0 %v1126_v2 }
  0x3e   :  { %1023 = vmatprep.subr.bf16.mxu1 %v1128_v4 }
  0x40   :  { %1002 = vmatpush3.bf16.msra.mxu0 %v1127_v3 }
  0x41   :  { %1024 = vmatpush3.bf16.msra.mxu1 %v1131_v7  ;;  %1040 = vmatprep.subr.bf16.mxu0 %v1143_v13 }
  0x43   :  { %747 = vmatmul.mubr.bf16.vlgmr.msra.gmra.mrb[4].mxu0 %v864_v8 }
  0x44   :  { %1041 = vmatpush3.bf16.msra.mxu0 %v1134_v12  ;;  %787 = vmatmul.mubr.bf16.vlgmr.msra.gmra.mrb[4].mxu1 %v866_v10 }
  0x45   :  { %1042 = vmatprep.subr.bf16.mxu0 %v1143_v13  ;;  %1056 = vmatprep.mubr.msk.bf16.mxu0 %vm1144_vm0, %v1143_v13 }
  0x48   :  { %1043 = vmatpush3.bf16.msra.mxu0 %v1135_v14 }
  0x49   :  { %1044 = vmatprep.subr.bf16.mxu0 %v1143_v13 }
  0x4c   :  { %1045 = vmatpush3.bf16.msra.mxu0 %v1136_v15 }
  0x4d   :  { %1046 = vmatprep.subr.bf16.mxu0 %v1143_v13 }
  0x50   :  { %1047 = vmatpush3.bf16.msra.mxu0 %v1137_v16 }
  0x51   :  { %1048 = vmatprep.subr.bf16.mxu0 %v1143_v13 }
  0x54   :  { %1049 = vmatpush3.bf16.msra.mxu0 %v1138_v17 }
  0x55   :  { %1050 = vmatprep.subr.bf16.mxu0 %v1143_v13 }
  0x58   :  { %1051 = vmatpush3.bf16.msra.mxu0 %v1139_v18 }
  0x59   :  { %1052 = vmatprep.subr.bf16.mxu0 %v1143_v13 }
  0x5c   :  { %1053 = vmatpush3.bf16.msra.mxu0 %v1140_v19 }
  0x5d   :  { %1054 = vmatprep.subr.bf16.mxu0 %v1143_v13 }
  0x60   :  { %1055 = vmatpush3.bf16.msra.mxu0 %v1141_v20 }
  0x63   :  { %1057 = vmatmul.mubr.bf16.vlgmr.msra.gmra.mrb[8].mxu0 %v1142_v21 }
  0xf6   :  { %v959_v22 = vpop.f32.mrb[0].mxu0 }
  0xf7   :  { %v981_v23 = vpop.f32.mrb[0].mxu1  ;;  %v960_v24 = vpop.f32.mrb[1].mxu0 }
  0xf8   :  { %v982_v25 = vpop.f32.mrb[1].mxu1  ;;  %v961_v26 = vadd.f32 %v960_v24, %v959_v22  ;;  %v962_v28 = vpop.f32.mrb[2].mxu0 }
  0xf9   :  { %v983_v27 = vadd.f32 %v982_v25, %v981_v23  ;;  %v984_v29 = vpop.f32.mrb[2].mxu1  ;;  %v963_v30 = vpop.f32.mrb[3].mxu0 }
  0xfa   :  { %v985_v31 = vpop.f32.mrb[3].mxu1 }
  0xfb   :  { %v709_v32 = vadd.f32 %v983_v27, %v961_v26 }
 0x116   :  { %v1003_v33 = vpop.f32.mrb[4].mxu0 }
 0x117   :  { %v1004_v34 = vpop.f32.mrb[5].mxu0  ;;  %v1025_v35 = vpop.f32.mrb[4].mxu1 }
 0x118   :  { %v1005_v36 = vadd.f32 %v1004_v34, %v1003_v33  ;;  %v1006_v37 = vpop.f32.mrb[6].mxu0  ;;  %v1026_v38 = vpop.f32.mrb[5].mxu1 }
 0x119   :  { %v1007_v39 = vpop.f32.mrb[7].mxu0  ;;  %v1027_v40 = vadd.f32 %v1026_v38, %v1025_v35  ;;  %v1028_v41 = vpop.f32.mrb[6].mxu1 }
 0x11a   :  { %v749_v42 = vadd.f32 %v1005_v36, %v709_v32  ;;  %v1029_v43 = vpop.f32.mrb[7].mxu1 }
 0x11c   :  { %v789_v44 = vadd.f32 %v1027_v40, %v749_v42 }
 0x136   :  { %v828_v45 = vpop.f32.mrb[8].mxu0 }
 0x137   :  { %v829_v48 = vadd.f32 %v828_v45, %v789_v44  ;;  %v1058_v49 = vpop.f32.mrb[9].mxu0 }
 0x138   :  { %v831_v51 = vpop.f32.mrb[10].mxu0 }
 0x139   :  { %v841_v52 = vmul.f32 %v941_v46, %v829_v48  ;;  %v1059_v54 = vpop.f32.mrb[11].mxu0 }
 0x13b   :  { %v849_v55 = vadd.f32 %v942_v50, %v841_v52 }
 0x13d   :  { %v852_v56 = vadd.f32 %v851_v53, %v849_v55 }
 0x13f   :  { %v853_v57 = vmax.f32 %v852_v56, 0.0 }
 0x141   :  { %v854_v58 = vpack.c.bf16 %v853_v57, %v853_v57 }
 0x143   :  { %855 = vst [vmem:[%s1423_s5] sm:$0xf] %v854_v58 }

// kernel: torchvision_resnet18_forward.20
= control target key start
LH: loop header
LB: loop body
LE: loop exit
PB: predicated region body
PF: predicated region fallthrough
CT: control target
= control target key end

     0   :  { %vm1138_vm0 = vmmov 0   ;;  %s1404_s1 = inlined_call_operand.vmem [shape: bf16[1152,128], index: 1, kind: input, shape index: {}]   ;;  %s1405_s0 = inlined_call_operand.vmem [shape: bf16[8,1152], index: 0, kind: input, shape index: {}]   ;;  %s1406_s2 = inlined_call_operand.vmem [shape: f32[1,128], index: 2, kind: input, shape index: {}]   ;;  %s1407_s3 = inlined_call_operand.vmem [shape: f32[1,128], index: 3, kind: input, shape index: {}]   ;;  %s1408_s4 = inlined_call_operand.vmem [shape: bf16[8,128], index: 4, kind: output, shape index: {}]  }
   0x1   :  { %v1056_v0 = vld [vmem:[%s1404_s1 + $0x40] sm:$0xff]   ;;  %v1060_v4 = vld [vmem:[%s1404_s1 + $0x48] sm:$0xff]   ;;  %v1064_v8 = vld [vmem:[%s1404_s1 + $0x50] sm:$0xff]  }
   0x2   :  { %v1057_v1 = vld [vmem:[%s1404_s1 + $0xc0] sm:$0xff]   ;;  %937 = vmatprep.subr.bf16.mxu0 %v1056_v0  ;;  %v1061_v5 = vld [vmem:[%s1404_s1 + $0xc8] sm:$0xff]   ;;  %v1065_v9 = vld [vmem:[%s1404_s1 + $0xd0] sm:$0xff]  }
   0x3   :  { %v1058_v2 = vld [vmem:[%s1404_s1] sm:$0xff]   ;;  %959 = vmatprep.subr.bf16.mxu1 %v1057_v1  ;;  %v1062_v6 = vld [vmem:[%s1404_s1 + $0x8] sm:$0xff]   ;;  %v1066_v10 = vld [vmem:[%s1404_s1 + $0x10] sm:$0xff]  }
   0x4   :  { %v1059_v3 = vld [vmem:[%s1404_s1 + $0x80] sm:$0xff]   ;;  %938 = vmatpush3.bf16.msra.mxu0 %v1058_v2  ;;  %v1063_v7 = vld [vmem:[%s1404_s1 + $0x88] sm:$0xff]   ;;  %v1067_v11 = vld [vmem:[%s1404_s1 + $0x90] sm:$0xff]  }
   0x5   :  { %960 = vmatpush3.bf16.msra.mxu1 %v1059_v3  ;;  %939 = vmatprep.subr.bf16.mxu0 %v1060_v4  ;;  %v1068_v12 = vld [vmem:[%s1404_s1 + $0x58] sm:$0xff]   ;;  %v1072_v16 = vld [vmem:[%s1404_s1 + $0x60] sm:$0xff]   ;;  %v1076_v20 = vld [vmem:[%s1404_s1 + $0x68] sm:$0xff]  }
   0x6   :  { %961 = vmatprep.subr.bf16.mxu1 %v1061_v5  ;;  %v1069_v13 = vld [vmem:[%s1404_s1 + $0xd8] sm:$0xff]   ;;  %v1073_v17 = vld [vmem:[%s1404_s1 + $0xe0] sm:$0xff]   ;;  %v1077_v21 = vld [vmem:[%s1404_s1 + $0xe8] sm:$0xff]  }
   0x7   :  { %v1070_v14 = vld [vmem:[%s1404_s1 + $0x18] sm:$0xff]   ;;  %v1074_v18 = vld [vmem:[%s1404_s1 + $0x20] sm:$0xff]   ;;  %v1078_v22 = vld [vmem:[%s1404_s1 + $0x28] sm:$0xff]  }
   0x8   :  { %940 = vmatpush3.bf16.msra.mxu0 %v1062_v6  ;;  %v1071_v15 = vld [vmem:[%s1404_s1 + $0x98] sm:$0xff]   ;;  %v1075_v19 = vld [vmem:[%s1404_s1 + $0xa0] sm:$0xff]   ;;  %v1079_v23 = vld [vmem:[%s1404_s1 + $0xa8] sm:$0xff]  }
   0x9   :  { %962 = vmatpush3.bf16.msra.mxu1 %v1063_v7  ;;  %941 = vmatprep.subr.bf16.mxu0 %v1064_v8  ;;  %v1080_v24 = vld [vmem:[%s1404_s1 + $0x70] sm:$0xff]   ;;  %v1084_v28 = vld [vmem:[%s1404_s1 + $0x78] sm:$0xff]   ;;  %v18_v32 = vld [vmem:[%s1405_s0] sm:$0xff] }
   0xa   :  { %963 = vmatprep.subr.bf16.mxu1 %v1065_v9  ;;  %v1081_v25 = vld [vmem:[%s1404_s1 + $0xf0] sm:$0xff]   ;;  %v1085_v29 = vld [vmem:[%s1404_s1 + $0xf8] sm:$0xff]   ;;  %v19_v33 = vld [vmem:[%s1405_s0 + $0x8] sm:$0xff]  ;;  %v854_v34 = vcombine.low %v18_v32, %v18_v32  ;;  %v855_v35 = vcombine.high %v18_v32, %v18_v32 }
   0xb   :  { %v1082_v26 = vld [vmem:[%s1404_s1 + $0x30] sm:$0xff]   ;;  %v1086_v30 = vld [vmem:[%s1404_s1 + $0x38] sm:$0xff]   ;;  %v856_v36 = vcombine.low %v19_v33, %v19_v33  ;;  %v857_v37 = vcombine.high %v19_v33, %v19_v33  ;;  %v1092_v38 = vld [vmem:[%s1404_s1 + $0x140] sm:$0xff]  }
   0xc   :  { %942 = vmatpush3.bf16.msra.mxu0 %v1066_v10  ;;  %v1083_v27 = vld [vmem:[%s1404_s1 + $0xb0] sm:$0xff]   ;;  %v1087_v31 = vld [vmem:[%s1404_s1 + $0xb8] sm:$0xff]   ;;  %v1093_v39 = vld [vmem:[%s1404_s1 + $0x100] sm:$0xff]   ;;  %663 = vmatprep.mubr.bf16.mxu0 %v855_v35 }
   0xd   :  { %964 = vmatpush3.bf16.msra.mxu1 %v1067_v11  ;;  %943 = vmatprep.subr.bf16.mxu0 %v1068_v12  ;;  %v1094_v40 = vld [vmem:[%s1404_s1 + $0x1c0] sm:$0xff]   ;;  %v1096_v42 = vld [vmem:[%s1404_s1 + $0x148] sm:$0xff]   ;;  %v1100_v46 = vld [vmem:[%s1404_s1 + $0x150] sm:$0xff]  }
   0xe   :  { %965 = vmatprep.subr.bf16.mxu1 %v1069_v13  ;;  %703 = vmatprep.mubr.bf16.mxu1 %v857_v37  ;;  %v1095_v41 = vld [vmem:[%s1404_s1 + $0x180] sm:$0xff]   ;;  %v1097_v43 = vld [vmem:[%s1404_s1 + $0x108] sm:$0xff]   ;;  %v1101_v47 = vld [vmem:[%s1404_s1 + $0x110] sm:$0xff]   ;;  %v1137_v13 = vmov 0.0  }
   0xf   :  { %v1098_v44 = vld [vmem:[%s1404_s1 + $0x1c8] sm:$0xff]   ;;  %v1102_v48 = vld [vmem:[%s1404_s1 + $0x1d0] sm:$0xff]   ;;  %v1104_v50 = vld [vmem:[%s1404_s1 + $0x158] sm:$0xff]  }
  0x10   :  { %944 = vmatpush3.bf16.msra.mxu0 %v1070_v14  ;;  %v1099_v45 = vld [vmem:[%s1404_s1 + $0x188] sm:$0xff]   ;;  %v1103_v49 = vld [vmem:[%s1404_s1 + $0x190] sm:$0xff]   ;;  %v1105_v51 = vld [vmem:[%s1404_s1 + $0x118] sm:$0xff]  }
  0x11   :  { %966 = vmatpush3.bf16.msra.mxu1 %v1071_v15  ;;  %945 = vmatprep.subr.bf16.mxu0 %v1072_v16  ;;  %v1106_v52 = vld [vmem:[%s1404_s1 + $0x1d8] sm:$0xff]   ;;  %v1108_v54 = vld [vmem:[%s1404_s1 + $0x160] sm:$0xff]   ;;  %v1112_v58 = vld [vmem:[%s1404_s1 + $0x168] sm:$0xff]  }
  0x12   :  { %967 = vmatprep.subr.bf16.mxu1 %v1073_v17  ;;  %v1107_v53 = vld [vmem:[%s1404_s1 + $0x198] sm:$0xff]   ;;  %v1109_v55 = vld [vmem:[%s1404_s1 + $0x120] sm:$0xff]   ;;  %v1113_v59 = vld [vmem:[%s1404_s1 + $0x128] sm:$0xff]  }
  0x13   :  { %v1110_v56 = vld [vmem:[%s1404_s1 + $0x1e0] sm:$0xff]   ;;  %v1114_v60 = vld [vmem:[%s1404_s1 + $0x1e8] sm:$0xff]   ;;  %v1116_v62 = vld [vmem:[%s1404_s1 + $0x170] sm:$0xff]  }
  0x14   :  { %946 = vmatpush3.bf16.msra.mxu0 %v1074_v18  ;;  %v1111_v57 = vld [vmem:[%s1404_s1 + $0x1a0] sm:$0xff]   ;;  %v1115_v61 = vld [vmem:[%s1404_s1 + $0x1a8] sm:$0xff]   ;;  %v1117_v63 = vld [vmem:[%s1404_s1 + $0x130] sm:$0xff]  }
  0x15   :  { %968 = vmatpush3.bf16.msra.mxu1 %v1075_v19  ;;  %947 = vmatprep.subr.bf16.mxu0 %v1076_v20  ;;  %v1118_v0 = vld [vmem:[%s1404_s1 + $0x1f0] sm:$0xff]   ;;  %v1120_v2 = vld [vmem:[%s1404_s1 + $0x178] sm:$0xff]   ;;  %v1128_v12 = vld [vmem:[%s1404_s1 + $0x200] sm:$0xff]  }
  0x16   :  { %969 = vmatprep.subr.bf16.mxu1 %v1077_v21  ;;  %v1119_v1 = vld [vmem:[%s1404_s1 + $0x1b0] sm:$0xff]   ;;  %v1121_v3 = vld [vmem:[%s1404_s1 + $0x138] sm:$0xff]   ;;  %v1129_v14 = vld [vmem:[%s1404_s1 + $0x208] sm:$0xff]  }
  0x17   :  { %v1122_v4 = vld [vmem:[%s1404_s1 + $0x1f8] sm:$0xff]   ;;  %v20_v5 = vld [vmem:[%s1405_s0 + $0x10] sm:$0xff]  ;;  %v1132_v17 = vld [vmem:[%s1404_s1 + $0x220] sm:$0xff]  }
  0x18   :  { %948 = vmatpush3.bf16.msra.mxu0 %v1078_v22  ;;  %v859_v6 = vcombine.high %v20_v5, %v20_v5  ;;  %v1125_v7 = vld [vmem:[%s1404_s1 + $0x1b8] sm:$0xff]   ;;  %v858_v8 = vcombine.low %v20_v5, %v20_v5  ;;  %v1130_v15 = vld [vmem:[%s1404_s1 + $0x210] sm:$0xff]   ;;  %v1133_v18 = vld [vmem:[%s1404_s1 + $0x228] sm:$0xff]  }
  0x19   :  { %970 = vmatpush3.bf16.msra.mxu1 %v1079_v23  ;;  %949 = vmatprep.subr.bf16.mxu0 %v1080_v24  ;;  %v21_v9 = vld [vmem:[%s1405_s0 + $0x18] sm:$0xff]  ;;  %v1134_v19 = vld [vmem:[%s1404_s1 + $0x230] sm:$0xff]   ;;  %v1136_v21 = vld [vmem:[%s1405_s0 + $0x20] ss:$0 sps:$4 sm:$0xff]  }
  0x1a   :  { %971 = vmatprep.subr.bf16.mxu1 %v1081_v25  ;;  %v860_v10 = vcombine.low %v21_v9, %v21_v9  ;;  %v861_v11 = vcombine.high %v21_v9, %v21_v9  ;;  %v1131_v16 = vld [vmem:[%s1404_s1 + $0x218] sm:$0xff]  }
  0x1b   :  { %v1135_v20 = vld [vmem:[%s1404_s1 + $0x238] sm:$0xff]  }
  0x1c   :  { %950 = vmatpush3.bf16.msra.mxu0 %v1082_v26 }
  0x1d   :  { %972 = vmatpush3.bf16.msra.mxu1 %v1083_v27  ;;  %951 = vmatprep.subr.bf16.mxu0 %v1084_v28 }
  0x1e   :  { %973 = vmatprep.subr.bf16.mxu1 %v1085_v29 }
  0x20   :  { %952 = vmatpush3.bf16.msra.mxu0 %v1086_v30 }
  0x21   :  { %974 = vmatpush3.bf16.msra.mxu1 %v1087_v31  ;;  %981 = vmatprep.subr.bf16.mxu0 %v1092_v38 }
  0x22   :  { %1003 = vmatprep.subr.bf16.mxu1 %v1094_v40 }
  0x23   :  { %664 = vmatmul.mubr.bf16.vlgmr.msra.gmra.mrb[0].mxu0 %v854_v34 }
  0x24   :  { %704 = vmatmul.mubr.bf16.vlgmr.msra.gmra.mrb[0].mxu1 %v856_v36  ;;  %982 = vmatpush3.bf16.msra.mxu0 %v1093_v39 }
  0x25   :  { %1004 = vmatpush3.bf16.msra.mxu1 %v1095_v41  ;;  %983 = vmatprep.subr.bf16.mxu0 %v1096_v42 }
  0x26   :  { %1005 = vmatprep.subr.bf16.mxu1 %v1098_v44  ;;  %743 = vmatprep.mubr.bf16.mxu0 %v859_v6 }
  0x27   :  { %783 = vmatprep.mubr.bf16.mxu1 %v861_v11 }
  0x28   :  { %984 = vmatpush3.bf16.msra.mxu0 %v1097_v43 }
  0x29   :  { %1006 = vmatpush3.bf16.msra.mxu1 %v1099_v45  ;;  %985 = vmatprep.subr.bf16.mxu0 %v1100_v46  ;;  %v935_v46 = vld [vmem:[%s1406_s2] ss:$0 sm:$0xff] }
  0x2a   :  { %1007 = vmatprep.subr.bf16.mxu1 %v1102_v48 }
  0x2c   :  { %986 = vmatpush3.bf16.msra.mxu0 %v1101_v47 }
  0x2d   :  { %1008 = vmatpush3.bf16.msra.mxu1 %v1103_v49  ;;  %987 = vmatprep.subr.bf16.mxu0 %v1104_v50  ;;  %v936_v49 = vld [vmem:[%s1407_s3] ss:$0 sm:$0xff] }
  0x2e   :  { %1009 = vmatprep.subr.bf16.mxu1 %v1106_v52 }
  0x30   :  { %988 = vmatpush3.bf16.msra.mxu0 %v1105_v51 }
  0x31   :  { %1010 = vmatpush3.bf16.msra.mxu1 %v1107_v53  ;;  %989 = vmatprep.subr.bf16.mxu0 %v1108_v54 }
  0x32   :  { %1011 = vmatprep.subr.bf16.mxu1 %v1110_v56 }
  0x34   :  { %990 = vmatpush3.bf16.msra.mxu0 %v1109_v55 }
  0x35   :  { %1012 = vmatpush3.bf16.msra.mxu1 %v1111_v57  ;;  %991 = vmatprep.subr.bf16.mxu0 %v1112_v58 }
  0x36   :  { %1013 = vmatprep.subr.bf16.mxu1 %v1114_v60 }
  0x38   :  { %992 = vmatpush3.bf16.msra.mxu0 %v1113_v59 }
  0x39   :  { %1014 = vmatpush3.bf16.msra.mxu1 %v1115_v61  ;;  %993 = vmatprep.subr.bf16.mxu0 %v1116_v62 }
  0x3a   :  { %1015 = vmatprep.subr.bf16.mxu1 %v1118_v0 }
  0x3c   :  { %994 = vmatpush3.bf16.msra.mxu0 %v1117_v63 }
  0x3d   :  { %1016 = vmatpush3.bf16.msra.mxu1 %v1119_v1  ;;  %995 = vmatprep.subr.bf16.mxu0 %v1120_v2 }
  0x3e   :  { %1017 = vmatprep.subr.bf16.mxu1 %v1122_v4 }
  0x40   :  { %996 = vmatpush3.bf16.msra.mxu0 %v1121_v3 }
  0x41   :  { %1018 = vmatpush3.bf16.msra.mxu1 %v1125_v7  ;;  %1034 = vmatprep.subr.bf16.mxu0 %v1137_v13 }
  0x43   :  { %744 = vmatmul.mubr.bf16.vlgmr.msra.gmra.mrb[4].mxu0 %v858_v8 }
  0x44   :  { %1035 = vmatpush3.bf16.msra.mxu0 %v1128_v12  ;;  %784 = vmatmul.mubr.bf16.vlgmr.msra.gmra.mrb[4].mxu1 %v860_v10 }
  0x45   :  { %1036 = vmatprep.subr.bf16.mxu0 %v1137_v13  ;;  %1050 = vmatprep.mubr.msk.bf16.mxu0 %vm1138_vm0, %v1137_v13 }
  0x48   :  { %1037 = vmatpush3.bf16.msra.mxu0 %v1129_v14 }
  0x49   :  { %1038 = vmatprep.subr.bf16.mxu0 %v1137_v13 }
  0x4c   :  { %1039 = vmatpush3.bf16.msra.mxu0 %v1130_v15 }
  0x4d   :  { %1040 = vmatprep.subr.bf16.mxu0 %v1137_v13 }
  0x50   :  { %1041 = vmatpush3.bf16.msra.mxu0 %v1131_v16 }
  0x51   :  { %1042 = vmatprep.subr.bf16.mxu0 %v1137_v13 }
  0x54   :  { %1043 = vmatpush3.bf16.msra.mxu0 %v1132_v17 }
  0x55   :  { %1044 = vmatprep.subr.bf16.mxu0 %v1137_v13 }
  0x58   :  { %1045 = vmatpush3.bf16.msra.mxu0 %v1133_v18 }
  0x59   :  { %1046 = vmatprep.subr.bf16.mxu0 %v1137_v13 }
  0x5c   :  { %1047 = vmatpush3.bf16.msra.mxu0 %v1134_v19 }
  0x5d   :  { %1048 = vmatprep.subr.bf16.mxu0 %v1137_v13 }
  0x60   :  { %1049 = vmatpush3.bf16.msra.mxu0 %v1135_v20 }
  0x63   :  { %1051 = vmatmul.mubr.bf16.vlgmr.msra.gmra.mrb[8].mxu0 %v1136_v21 }
  0xf6   :  { %v953_v22 = vpop.f32.mrb[0].mxu0 }
  0xf7   :  { %v975_v23 = vpop.f32.mrb[0].mxu1  ;;  %v954_v24 = vpop.f32.mrb[1].mxu0 }
  0xf8   :  { %v976_v25 = vpop.f32.mrb[1].mxu1  ;;  %v955_v26 = vadd.f32 %v954_v24, %v953_v22  ;;  %v956_v28 = vpop.f32.mrb[2].mxu0 }
  0xf9   :  { %v977_v27 = vadd.f32 %v976_v25, %v975_v23  ;;  %v978_v29 = vpop.f32.mrb[2].mxu1  ;;  %v957_v30 = vpop.f32.mrb[3].mxu0 }
  0xfa   :  { %v979_v31 = vpop.f32.mrb[3].mxu1 }
  0xfb   :  { %v706_v32 = vadd.f32 %v977_v27, %v955_v26 }
 0x116   :  { %v997_v33 = vpop.f32.mrb[4].mxu0 }
 0x117   :  { %v998_v34 = vpop.f32.mrb[5].mxu0  ;;  %v1019_v35 = vpop.f32.mrb[4].mxu1 }
 0x118   :  { %v999_v36 = vadd.f32 %v998_v34, %v997_v33  ;;  %v1000_v37 = vpop.f32.mrb[6].mxu0  ;;  %v1020_v38 = vpop.f32.mrb[5].mxu1 }
 0x119   :  { %v1001_v39 = vpop.f32.mrb[7].mxu0  ;;  %v1021_v40 = vadd.f32 %v1020_v38, %v1019_v35  ;;  %v1022_v41 = vpop.f32.mrb[6].mxu1 }
 0x11a   :  { %v746_v42 = vadd.f32 %v999_v36, %v706_v32  ;;  %v1023_v43 = vpop.f32.mrb[7].mxu1 }
 0x11c   :  { %v786_v44 = vadd.f32 %v1021_v40, %v746_v42 }
 0x136   :  { %v825_v45 = vpop.f32.mrb[8].mxu0 }
 0x137   :  { %v826_v47 = vadd.f32 %v825_v45, %v786_v44  ;;  %v1052_v48 = vpop.f32.mrb[9].mxu0 }
 0x138   :  { %v828_v50 = vpop.f32.mrb[10].mxu0 }
 0x139   :  { %v838_v51 = vmul.f32 %v935_v46, %v826_v47  ;;  %v1053_v52 = vpop.f32.mrb[11].mxu0 }
 0x13b   :  { %v846_v53 = vadd.f32 %v936_v49, %v838_v51 }
 0x13d   :  { %v847_v54 = vmax.f32 %v846_v53, 0.0 }
 0x13f   :  { %v848_v55 = vpack.c.bf16 %v847_v54, %v847_v54 }
 0x141   :  { %849 = vst [vmem:[%s1408_s4] sm:$0xf] %v848_v55 }

// kernel: torchvision_resnet18_forward.24
= control target key start
LH: loop header
LB: loop body
LE: loop exit
PB: predicated region body
PF: predicated region fallthrough
CT: control target
= control target key end

     0   :  { %10 = vsyncpa [#allocation3], 0  ;;  %s1181_s18 = smov [#allocation2]   ;;  %s1466_s0 = inlined_call_operand.vmem [shape: bf16[8,1152], index: 0, kind: input, shape index: {}]   ;;  %s1467_s1 = inlined_call_operand.vmem [shape: bf16[1152,128], index: 1, kind: input, shape index: {}]   ;;  %s1468_s2 = inlined_call_operand.vmem [shape: f32[1,128], index: 2, kind: input, shape index: {}]   ;;  %s1469_s3 = inlined_call_operand.hbm [shape: f32[1,128], index: 3, kind: input, shape index: {}]   ;;  %s1470_s4 = inlined_call_operand.vmem [shape: bf16[8,128], index: 4, kind: input, shape index: {}]   ;;  %s1471_s5 = inlined_call_operand.vmem [shape: bf16[8,128], index: 5, kind: output, shape index: {}]  }
   0x1   :  { %s23_s19 = sshll.u32 %s1181_s18, 4  ;;  %s1157_s22 = scalar_lea.hbm %s1469_s3, 16  ;;  %s24_s19 = int_to_ptr.vmem [resolvable:$true] %s23_s19 }
   0x2   :  { %p1158_p0 = scmp.ne.s32.totalorder %s1469_s3, %s1157_s22  ;;  %p1161_p1 = scmp.lt.u32.totalorder %s1157_s22, %s1469_s3 }
   0x4   :  { %p1163_p2 = pnand %p1161_p1, %p1158_p0 }
   0x6   :  { %1166 = shalt.err (!%p1163_p2)
}
   0x7   :  { %s1167_s27 = scalar_lea.vmem %s24_s19, 16  ;;  %s1171_s28 = scalar_lea.vmem %s24_s19, 32 }
   0x8   :  { %p1168_p3 = scmp.ne.s32.totalorder %s24_s19, %s1167_s27  ;;  %p1172_p4 = scmp.lt.s32.totalorder %s24_s19, %s24_s19 }
   0x9   :  { %p1173_p5 = scmp.lt.s32.totalorder %s1171_s28, %s1167_s27 }
   0xb   :  { %p1174_p6 = por %p1173_p5, %p1172_p4 }
   0xd   :  { %p1175_p7 = pnand %p1174_p6, %p1168_p3 }
   0xf   :  { %1178 = shalt.err (!%p1175_p7)
}
  0x10   :  { %26 = dma.hbm_to_vmem [thread:$0]  %s1469_s3, 16, %s24_s19, [#allocation3]  }
  0x11   :  { %1179 = dma.done.wait [#allocation3], 16  }
  0x12   :  { %1180 = vsyncadd [#allocation3], 4294967280  ;;  %v1076_v0 = vld [vmem:[%s1467_s1 + $0x40] sm:$0xff]   ;;  %v1080_v4 = vld [vmem:[%s1467_s1 + $0x48] sm:$0xff]   ;;  %vm1183_vm0 = vmmov 0  }
  0x13   :  { %v1077_v1 = vld [vmem:[%s1467_s1 + $0xc0] sm:$0xff]   ;;  %956 = vmatprep.subr.bf16.mxu0 %v1076_v0  ;;  %v1081_v5 = vld [vmem:[%s1467_s1 + $0xc8] sm:$0xff]   ;;  %v1084_v8 = vld [vmem:[%s1467_s1 + $0x50] sm:$0xff]  }
  0x14   :  { %v1078_v2 = vld [vmem:[%s1467_s1] sm:$0xff]   ;;  %978 = vmatprep.subr.bf16.mxu1 %v1077_v1  ;;  %v1082_v6 = vld [vmem:[%s1467_s1 + $0x8] sm:$0xff]   ;;  %v1085_v9 = vld [vmem:[%s1467_s1 + $0xd0] sm:$0xff]  }
  0x15   :  { %v1079_v3 = vld [vmem:[%s1467_s1 + $0x80] sm:$0xff]   ;;  %957 = vmatpush3.bf16.msra.mxu0 %v1078_v2  ;;  %v1083_v7 = vld [vmem:[%s1467_s1 + $0x88] sm:$0xff]   ;;  %v1086_v10 = vld [vmem:[%s1467_s1 + $0x10] sm:$0xff]  }
  0x16   :  { %979 = vmatpush3.bf16.msra.mxu1 %v1079_v3  ;;  %958 = vmatprep.subr.bf16.mxu0 %v1080_v4  ;;  %v1087_v11 = vld [vmem:[%s1467_s1 + $0x90] sm:$0xff]   ;;  %v1088_v12 = vld [vmem:[%s1467_s1 + $0x58] sm:$0xff]   ;;  %v1092_v16 = vld [vmem:[%s1467_s1 + $0x60] sm:$0xff]  }
  0x17   :  { %980 = vmatprep.subr.bf16.mxu1 %v1081_v5  ;;  %v1089_v13 = vld [vmem:[%s1467_s1 + $0xd8] sm:$0xff]   ;;  %v1093_v17 = vld [vmem:[%s1467_s1 + $0xe0] sm:$0xff]   ;;  %v1096_v20 = vld [vmem:[%s1467_s1 + $0x68] sm:$0xff]  }
  0x18   :  { %v1090_v14 = vld [vmem:[%s1467_s1 + $0x18] sm:$0xff]   ;;  %v1094_v18 = vld [vmem:[%s1467_s1 + $0x20] sm:$0xff]   ;;  %v1097_v21 = vld [vmem:[%s1467_s1 + $0xe8] sm:$0xff]  }
  0x19   :  { %959 = vmatpush3.bf16.msra.mxu0 %v1082_v6  ;;  %v1091_v15 = vld [vmem:[%s1467_s1 + $0x98] sm:$0xff]   ;;  %v1095_v19 = vld [vmem:[%s1467_s1 + $0xa0] sm:$0xff]   ;;  %v1098_v22 = vld [vmem:[%s1467_s1 + $0x28] sm:$0xff]  }
  0x1a   :  { %981 = vmatpush3.bf16.msra.mxu1 %v1083_v7  ;;  %960 = vmatprep.subr.bf16.mxu0 %v1084_v8  ;;  %v1099_v23 = vld [vmem:[%s1467_s1 + $0xa8] sm:$0xff]   ;;  %v1100_v24 = vld [vmem:[%s1467_s1 + $0x70] sm:$0xff]   ;;  %v1104_v28 = vld [vmem:[%s1467_s1 + $0x78] sm:$0xff]  }
  0x1b   :  { %982 = vmatprep.subr.bf16.mxu1 %v1085_v9  ;;  %v1101_v25 = vld [vmem:[%s1467_s1 + $0xf0] sm:$0xff]   ;;  %v1105_v29 = vld [vmem:[%s1467_s1 + $0xf8] sm:$0xff]   ;;  %v33_v32 = vld [vmem:[%s1466_s0] sm:$0xff] }
  0x1c   :  { %v1102_v26 = vld [vmem:[%s1467_s1 + $0x30] sm:$0xff]   ;;  %v1106_v30 = vld [vmem:[%s1467_s1 + $0x38] sm:$0xff]   ;;  %v34_v33 = vld [vmem:[%s1466_s0 + $0x8] sm:$0xff]  ;;  %v873_v34 = vcombine.low %v33_v32, %v33_v32  ;;  %v874_v35 = vcombine.high %v33_v32, %v33_v32 }
  0x1d   :  { %961 = vmatpush3.bf16.msra.mxu0 %v1086_v10  ;;  %v1103_v27 = vld [vmem:[%s1467_s1 + $0xb0] sm:$0xff]   ;;  %v1107_v31 = vld [vmem:[%s1467_s1 + $0xb8] sm:$0xff]   ;;  %v875_v36 = vcombine.low %v34_v33, %v34_v33  ;;  %v876_v37 = vcombine.high %v34_v33, %v34_v33  ;;  %v1112_v38 = vld [vmem:[%s1467_s1 + $0x140] sm:$0xff]  }
  0x1e   :  { %983 = vmatpush3.bf16.msra.mxu1 %v1087_v11  ;;  %962 = vmatprep.subr.bf16.mxu0 %v1088_v12  ;;  %v1113_v39 = vld [vmem:[%s1467_s1 + $0x100] sm:$0xff]   ;;  %v1116_v42 = vld [vmem:[%s1467_s1 + $0x148] sm:$0xff]   ;;  %v1120_v46 = vld [vmem:[%s1467_s1 + $0x150] sm:$0xff]  }
  0x1f   :  { %984 = vmatprep.subr.bf16.mxu1 %v1089_v13  ;;  %678 = vmatprep.mubr.bf16.mxu0 %v874_v35  ;;  %v1114_v40 = vld [vmem:[%s1467_s1 + $0x1c0] sm:$0xff]   ;;  %v1117_v43 = vld [vmem:[%s1467_s1 + $0x108] sm:$0xff]   ;;  %v1121_v47 = vld [vmem:[%s1467_s1 + $0x110] sm:$0xff]   ;;  %v1182_v13 = vmov 0.0  }
  0x20   :  { %718 = vmatprep.mubr.bf16.mxu1 %v876_v37  ;;  %v1115_v41 = vld [vmem:[%s1467_s1 + $0x180] sm:$0xff]   ;;  %v1118_v44 = vld [vmem:[%s1467_s1 + $0x1c8] sm:$0xff]   ;;  %v1122_v48 = vld [vmem:[%s1467_s1 + $0x1d0] sm:$0xff]  }
  0x21   :  { %963 = vmatpush3.bf16.msra.mxu0 %v1090_v14  ;;  %v1119_v45 = vld [vmem:[%s1467_s1 + $0x188] sm:$0xff]   ;;  %v1123_v49 = vld [vmem:[%s1467_s1 + $0x190] sm:$0xff]   ;;  %v1124_v50 = vld [vmem:[%s1467_s1 + $0x158] sm:$0xff]  }
  0x22   :  { %985 = vmatpush3.bf16.msra.mxu1 %v1091_v15  ;;  %964 = vmatprep.subr.bf16.mxu0 %v1092_v16  ;;  %v1125_v51 = vld [vmem:[%s1467_s1 + $0x118] sm:$0xff]   ;;  %v1128_v54 = vld [vmem:[%s1467_s1 + $0x160] sm:$0xff]   ;;  %v1132_v58 = vld [vmem:[%s1467_s1 + $0x168] sm:$0xff]  }
  0x23   :  { %986 = vmatprep.subr.bf16.mxu1 %v1093_v17  ;;  %v1126_v52 = vld [vmem:[%s1467_s1 + $0x1d8] sm:$0xff]   ;;  %v1129_v55 = vld [vmem:[%s1467_s1 + $0x120] sm:$0xff]   ;;  %v1133_v59 = vld [vmem:[%s1467_s1 + $0x128] sm:$0xff]  }
  0x24   :  { %v1127_v53 = vld [vmem:[%s1467_s1 + $0x198] sm:$0xff]   ;;  %v1130_v56 = vld [vmem:[%s1467_s1 + $0x1e0] sm:$0xff]   ;;  %v1134_v60 = vld [vmem:[%s1467_s1 + $0x1e8] sm:$0xff]  }
  0x25   :  { %965 = vmatpush3.bf16.msra.mxu0 %v1094_v18  ;;  %v1131_v57 = vld [vmem:[%s1467_s1 + $0x1a0] sm:$0xff]   ;;  %v1135_v61 = vld [vmem:[%s1467_s1 + $0x1a8] sm:$0xff]   ;;  %v1136_v62 = vld [vmem:[%s1467_s1 + $0x170] sm:$0xff]  }
  0x26   :  { %987 = vmatpush3.bf16.msra.mxu1 %v1095_v19  ;;  %966 = vmatprep.subr.bf16.mxu0 %v1096_v20  ;;  %v1137_v63 = vld [vmem:[%s1467_s1 + $0x130] sm:$0xff]   ;;  %v1140_v2 = vld [vmem:[%s1467_s1 + $0x178] sm:$0xff]   ;;  %v1148_v12 = vld [vmem:[%s1467_s1 + $0x200] sm:$0xff]  }
  0x27   :  { %988 = vmatprep.subr.bf16.mxu1 %v1097_v21  ;;  %v1138_v0 = vld [vmem:[%s1467_s1 + $0x1f0] sm:$0xff]   ;;  %v1141_v3 = vld [vmem:[%s1467_s1 + $0x138] sm:$0xff]   ;;  %v1149_v14 = vld [vmem:[%s1467_s1 + $0x208] sm:$0xff]  }
  0x28   :  { %v1139_v1 = vld [vmem:[%s1467_s1 + $0x1b0] sm:$0xff]   ;;  %v1142_v4 = vld [vmem:[%s1467_s1 + $0x1f8] sm:$0xff]   ;;  %v1152_v17 = vld [vmem:[%s1467_s1 + $0x220] sm:$0xff]  }
  0x29   :  { %967 = vmatpush3.bf16.msra.mxu0 %v1098_v22  ;;  %v35_v5 = vld [vmem:[%s1466_s0 + $0x10] sm:$0xff]  ;;  %v1145_v7 = vld [vmem:[%s1467_s1 + $0x1b8] sm:$0xff]   ;;  %v1153_v18 = vld [vmem:[%s1467_s1 + $0x228] sm:$0xff]  }
  0x2a   :  { %989 = vmatpush3.bf16.msra.mxu1 %v1099_v23  ;;  %968 = vmatprep.subr.bf16.mxu0 %v1100_v24  ;;  %v878_v6 = vcombine.high %v35_v5, %v35_v5  ;;  %v877_v8 = vcombine.low %v35_v5, %v35_v5  ;;  %v36_v9 = vld [vmem:[%s1466_s0 + $0x18] sm:$0xff]  ;;  %v1150_v15 = vld [vmem:[%s1467_s1 + $0x210] sm:$0xff]   ;;  %v1156_v21 = vld [vmem:[%s1466_s0 + $0x20] ss:$0 sps:$4 sm:$0xff]  }
  0x2b   :  { %990 = vmatprep.subr.bf16.mxu1 %v1101_v25  ;;  %v879_v10 = vcombine.low %v36_v9, %v36_v9  ;;  %v880_v11 = vcombine.high %v36_v9, %v36_v9  ;;  %v1151_v16 = vld [vmem:[%s1467_s1 + $0x218] sm:$0xff]   ;;  %v1154_v19 = vld [vmem:[%s1467_s1 + $0x230] sm:$0xff]  }
  0x2c   :  { %v1155_v20 = vld [vmem:[%s1467_s1 + $0x238] sm:$0xff]  }
  0x2d   :  { %969 = vmatpush3.bf16.msra.mxu0 %v1102_v26 }
  0x2e   :  { %991 = vmatpush3.bf16.msra.mxu1 %v1103_v27  ;;  %970 = vmatprep.subr.bf16.mxu0 %v1104_v28 }
  0x2f   :  { %992 = vmatprep.subr.bf16.mxu1 %v1105_v29 }
  0x31   :  { %971 = vmatpush3.bf16.msra.mxu0 %v1106_v30 }
  0x32   :  { %993 = vmatpush3.bf16.msra.mxu1 %v1107_v31  ;;  %1000 = vmatprep.subr.bf16.mxu0 %v1112_v38 }
  0x33   :  { %1022 = vmatprep.subr.bf16.mxu1 %v1114_v40 }
  0x34   :  { %679 = vmatmul.mubr.bf16.vlgmr.msra.gmra.mrb[0].mxu0 %v873_v34 }
  0x35   :  { %719 = vmatmul.mubr.bf16.vlgmr.msra.gmra.mrb[0].mxu1 %v875_v36  ;;  %1001 = vmatpush3.bf16.msra.mxu0 %v1113_v39 }
  0x36   :  { %1023 = vmatpush3.bf16.msra.mxu1 %v1115_v41  ;;  %1002 = vmatprep.subr.bf16.mxu0 %v1116_v42 }
  0x37   :  { %1024 = vmatprep.subr.bf16.mxu1 %v1118_v44  ;;  %758 = vmatprep.mubr.bf16.mxu0 %v878_v6 }
  0x38   :  { %798 = vmatprep.mubr.bf16.mxu1 %v880_v11 }
  0x39   :  { %1003 = vmatpush3.bf16.msra.mxu0 %v1117_v43 }
  0x3a   :  { %1025 = vmatpush3.bf16.msra.mxu1 %v1119_v45  ;;  %1004 = vmatprep.subr.bf16.mxu0 %v1120_v46  ;;  %v954_v46 = vld [vmem:[%s1468_s2] ss:$0 sm:$0xff] }
  0x3b   :  { %1026 = vmatprep.subr.bf16.mxu1 %v1122_v48 }
  0x3d   :  { %1005 = vmatpush3.bf16.msra.mxu0 %v1121_v47  ;;  %v862_v47 = vld [vmem:[%s1470_s4] sm:$0xf] }
  0x3e   :  { %1027 = vmatpush3.bf16.msra.mxu1 %v1123_v49  ;;  %1006 = vmatprep.subr.bf16.mxu0 %v1124_v50  ;;  %v955_v50 = vld [vmem:[#allocation2] ss:$0 sm:$0xff] }
  0x3f   :  { %1028 = vmatprep.subr.bf16.mxu1 %v1126_v52 }
  0x41   :  { %1007 = vmatpush3.bf16.msra.mxu0 %v1125_v51 }
  0x42   :  { %1029 = vmatpush3.bf16.msra.mxu1 %v1127_v53  ;;  %1008 = vmatprep.subr.bf16.mxu0 %v1128_v54  ;;  %v863_v53 = vunpack.c.l.bf16 %v862_v47 }
  0x43   :  { %1030 = vmatprep.subr.bf16.mxu1 %v1130_v56 }
  0x45   :  { %1009 = vmatpush3.bf16.msra.mxu0 %v1129_v55 }
  0x46   :  { %1031 = vmatpush3.bf16.msra.mxu1 %v1131_v57  ;;  %1010 = vmatprep.subr.bf16.mxu0 %v1132_v58 }
  0x47   :  { %1032 = vmatprep.subr.bf16.mxu1 %v1134_v60 }
  0x49   :  { %1011 = vmatpush3.bf16.msra.mxu0 %v1133_v59 }
  0x4a   :  { %1033 = vmatpush3.bf16.msra.mxu1 %v1135_v61  ;;  %1012 = vmatprep.subr.bf16.mxu0 %v1136_v62 }
  0x4b   :  { %1034 = vmatprep.subr.bf16.mxu1 %v1138_v0 }
  0x4d   :  { %1013 = vmatpush3.bf16.msra.mxu0 %v1137_v63 }
  0x4e   :  { %1035 = vmatpush3.bf16.msra.mxu1 %v1139_v1  ;;  %1014 = vmatprep.subr.bf16.mxu0 %v1140_v2 }
  0x4f   :  { %1036 = vmatprep.subr.bf16.mxu1 %v1142_v4 }
  0x51   :  { %1015 = vmatpush3.bf16.msra.mxu0 %v1141_v3 }
  0x52   :  { %1037 = vmatpush3.bf16.msra.mxu1 %v1145_v7  ;;  %1053 = vmatprep.subr.bf16.mxu0 %v1182_v13 }
  0x54   :  { %759 = vmatmul.mubr.bf16.vlgmr.msra.gmra.mrb[4].mxu0 %v877_v8 }
  0x55   :  { %1054 = vmatpush3.bf16.msra.mxu0 %v1148_v12  ;;  %799 = vmatmul.mubr.bf16.vlgmr.msra.gmra.mrb[4].mxu1 %v879_v10 }
  0x56   :  { %1055 = vmatprep.subr.bf16.mxu0 %v1182_v13  ;;  %1069 = vmatprep.mubr.msk.bf16.mxu0 %vm1183_vm0, %v1182_v13 }
  0x59   :  { %1056 = vmatpush3.bf16.msra.mxu0 %v1149_v14 }
  0x5a   :  { %1057 = vmatprep.subr.bf16.mxu0 %v1182_v13 }
  0x5d   :  { %1058 = vmatpush3.bf16.msra.mxu0 %v1150_v15 }
  0x5e   :  { %1059 = vmatprep.subr.bf16.mxu0 %v1182_v13 }
  0x61   :  { %1060 = vmatpush3.bf16.msra.mxu0 %v1151_v16 }
  0x62   :  { %1061 = vmatprep.subr.bf16.mxu0 %v1182_v13 }
  0x65   :  { %1062 = vmatpush3.bf16.msra.mxu0 %v1152_v17 }
  0x66   :  { %1063 = vmatprep.subr.bf16.mxu0 %v1182_v13 }
  0x69   :  { %1064 = vmatpush3.bf16.msra.mxu0 %v1153_v18 }
  0x6a   :  { %1065 = vmatprep.subr.bf16.mxu0 %v1182_v13 }
  0x6d   :  { %1066 = vmatpush3.bf16.msra.mxu0 %v1154_v19 }
  0x6e   :  { %1067 = vmatprep.subr.bf16.mxu0 %v1182_v13 }
  0x71   :  { %1068 = vmatpush3.bf16.msra.mxu0 %v1155_v20 }
  0x74   :  { %1070 = vmatmul.mubr.bf16.vlgmr.msra.gmra.mrb[8].mxu0 %v1156_v21 }
 0x107   :  { %v972_v22 = vpop.f32.mrb[0].mxu0 }
 0x108   :  { %v994_v23 = vpop.f32.mrb[0].mxu1  ;;  %v973_v24 = vpop.f32.mrb[1].mxu0 }
 0x109   :  { %v995_v25 = vpop.f32.mrb[1].mxu1  ;;  %v974_v26 = vadd.f32 %v973_v24, %v972_v22  ;;  %v975_v28 = vpop.f32.mrb[2].mxu0 }
 0x10a   :  { %v996_v27 = vadd.f32 %v995_v25, %v994_v23  ;;  %v997_v29 = vpop.f32.mrb[2].mxu1  ;;  %v976_v30 = vpop.f32.mrb[3].mxu0 }
 0x10b   :  { %v998_v31 = vpop.f32.mrb[3].mxu1 }
 0x10c   :  { %v721_v32 = vadd.f32 %v996_v27, %v974_v26 }
 0x127   :  { %v1016_v33 = vpop.f32.mrb[4].mxu0 }
 0x128   :  { %v1017_v34 = vpop.f32.mrb[5].mxu0  ;;  %v1038_v35 = vpop.f32.mrb[4].mxu1 }
 0x129   :  { %v1018_v36 = vadd.f32 %v1017_v34, %v1016_v33  ;;  %v1019_v37 = vpop.f32.mrb[6].mxu0  ;;  %v1039_v38 = vpop.f32.mrb[5].mxu1 }
 0x12a   :  { %v1020_v39 = vpop.f32.mrb[7].mxu0  ;;  %v1040_v40 = vadd.f32 %v1039_v38, %v1038_v35  ;;  %v1041_v41 = vpop.f32.mrb[6].mxu1 }
 0x12b   :  { %v761_v42 = vadd.f32 %v1018_v36, %v721_v32  ;;  %v1042_v43 = vpop.f32.mrb[7].mxu1 }
 0x12d   :  { %v801_v44 = vadd.f32 %v1040_v40, %v761_v42 }
 0x147   :  { %v840_v45 = vpop.f32.mrb[8].mxu0 }
 0x148   :  { %v841_v48 = vadd.f32 %v840_v45, %v801_v44  ;;  %v1071_v49 = vpop.f32.mrb[9].mxu0 }
 0x149   :  { %v843_v51 = vpop.f32.mrb[10].mxu0 }
 0x14a   :  { %v853_v52 = vmul.f32 %v954_v46, %v841_v48  ;;  %v1072_v54 = vpop.f32.mrb[11].mxu0 }
 0x14c   :  { %v861_v55 = vadd.f32 %v955_v50, %v853_v52 }
 0x14e   :  { %v864_v56 = vadd.f32 %v863_v53, %v861_v55 }
 0x150   :  { %v865_v57 = vmax.f32 %v864_v56, 0.0 }
 0x152   :  { %v866_v58 = vpack.c.bf16 %v865_v57, %v865_v57 }
 0x154   :  { %867 = vst [vmem:[%s1471_s5] sm:$0xf] %v866_v58 }
 0x155   :  { %872 = vsyncpa [#allocation3], 1 }

// kernel: torchvision_resnet18_forward.26
= control target key start
LH: loop header
LB: loop body
LE: loop exit
PB: predicated region body
PF: predicated region fallthrough
CT: control target
= control target key end

     0   :  { %v788_v9 = vmov 1966171168   ;;  %v74_v11 = vlaneseq  ;;  %s1064_s1 = inlined_call_operand.vmem [shape: bf16[256,256], index: 1, kind: input, shape index: {}]   ;;  %s1065_s0 = inlined_call_operand.vmem [shape: bf16[2,256], index: 0, kind: input, shape index: {}, may-alias: {0,7}]   ;;  %s1066_s4 = inlined_call_operand.vmem [shape: bf16[256,256], index: 4, kind: input, shape index: {}]   ;;  %s1067_s2 = inlined_call_operand.vmem [shape: f32[1,256], index: 2, kind: input, shape index: {}]   ;;  %s1068_s3 = inlined_call_operand.vmem [shape: f32[1,256], index: 3, kind: input, shape index: {}]   ;;  %s1069_s7 = inlined_call_operand.vmem [shape: bf16[2,256], index: 7, kind: input, shape index: {}, may-alias: {0,7}]   ;;  %s1070_s5 = inlined_call_operand.vmem [shape: f32[1,256], index: 5, kind: input, shape index: {}]   ;;  %s1071_s6 = inlined_call_operand.vmem [shape: f32[1,256], index: 6, kind: input, shape index: {}]   ;;  %s1072_s8 = inlined_call_operand.vmem [shape: bf16[2,256], index: 8, kind: output, shape index: {}]  }
   0x1   :  { %v692_v0 = vld [vmem:[%s1064_s1 + $0x4] ss:$8 sps:$4 sm:$0xff]   ;;  %v694_v1 = vld [vmem:[%s1064_s1] ss:$8 sps:$4 sm:$0xff]   ;;  %v695_v2 = vld [vmem:[%s1064_s1 + $0x14] ss:$8 sps:$4 sm:$0xff]   ;;  %v72_v10 = vunpack.c.l.s4 %v788_v9 }
   0x2   :  { %247 = vmatprep.subr.bf16.mxu0 %v692_v0  ;;  %v697_v3 = vld [vmem:[%s1064_s1 + $0x10] ss:$8 sps:$4 sm:$0xff]   ;;  %v698_v4 = vld [vmem:[%s1064_s1 + $0x24] ss:$8 sps:$4 sm:$0xff]   ;;  %v700_v5 = vld [vmem:[%s1064_s1 + $0x20] ss:$8 sps:$4 sm:$0xff]  }
   0x3   :  { %248 = vmatpush1.bf16.msra.mxu0 %v694_v1  ;;  %v701_v6 = vld [vmem:[%s1064_s1 + $0x34] ss:$8 sps:$4 sm:$0xff]   ;;  %v703_v7 = vld [vmem:[%s1064_s1 + $0x30] ss:$8 sps:$4 sm:$0xff]   ;;  %v704_v8 = vld [vmem:[%s1064_s1 + $0x44] ss:$8 sps:$4 sm:$0xff]   ;;  %v73_v14 = vunpack.c.0.s8 %v72_v10 }
   0x4   :  { %249 = vmatprep.subr.bf16.mxu0 %v695_v2  ;;  %v706_v12 = vld [vmem:[%s1064_s1 + $0x40] ss:$8 sps:$4 sm:$0xff]   ;;  %v707_v13 = vld [vmem:[%s1064_s1 + $0x54] ss:$8 sps:$4 sm:$0xff]   ;;  %v868_v15 = vshrl.u32 %v74_v11, 7 }
   0x5   :  { %v709_v16 = vld [vmem:[%s1064_s1 + $0x50] ss:$8 sps:$4 sm:$0xff]   ;;  %v710_v17 = vld [vmem:[%s1064_s1 + $0x64] ss:$8 sps:$4 sm:$0xff]   ;;  %v712_v19 = vld [vmem:[%s1064_s1 + $0x60] ss:$8 sps:$4 sm:$0xff]  }
   0x6   :  { %v877_v18 = vsub.s32 %v73_v14, %v868_v15  ;;  %v885_v20 = vld.sshfl [vmem:[%s1065_s0] sm:$0x11 pattern:$0x75316420]  ;;  %v740_v22 = vld [vmem:[%s1066_s4 + $0x4] ss:$8 sps:$4 sm:$0xff]  }
   0x7   :  { %250 = vmatpush1.bf16.msra.mxu0 %v697_v3  ;;  %v70_v21 = vcombine.high %v885_v20, %v885_v20  ;;  %v742_v23 = vld [vmem:[%s1066_s4] ss:$8 sps:$4 sm:$0xff]   ;;  %v713_v24 = vld [vmem:[%s1064_s1 + $0x74] ss:$8 sps:$4 sm:$0xff]   ;;  %512 = vmatprep.subr.bf16.mxu1 %v740_v22  ;;  %v745_v27 = vld [vmem:[%s1066_s4 + $0x10] ss:$8 sps:$4 sm:$0xff]  }
   0x8   :  { %251 = vmatprep.subr.bf16.mxu0 %v698_v4  ;;  %v743_v26 = vld [vmem:[%s1066_s4 + $0x14] ss:$8 sps:$4 sm:$0xff]   ;;  %513 = vmatpush1.bf16.msra.mxu1 %v742_v23  ;;  %v746_v28 = vld [vmem:[%s1066_s4 + $0x24] ss:$8 sps:$4 sm:$0xff]   ;;  %v715_v29 = vld [vmem:[%s1064_s1 + $0x70] ss:$8 sps:$4 sm:$0xff]   ;;  %v77_v63 = vrot.slane %v885_v20, %v877_v18 }
   0x9   :  { %v84_v25 = vrot.slane %v70_v21, %v877_v18  ;;  %514 = vmatprep.subr.bf16.mxu1 %v743_v26  ;;  %v716_v30 = vld [vmem:[%s1064_s1 + $0x84] ss:$8 sps:$4 sm:$0xff]   ;;  %v748_v31 = vld [vmem:[%s1066_s4 + $0x20] ss:$8 sps:$4 sm:$0xff]   ;;  %v749_v32 = vld [vmem:[%s1066_s4 + $0x34] ss:$8 sps:$4 sm:$0xff]  }
   0xa   :  { %v718_v33 = vld [vmem:[%s1064_s1 + $0x80] ss:$8 sps:$4 sm:$0xff]   ;;  %v719_v34 = vld [vmem:[%s1064_s1 + $0x94] ss:$8 sps:$4 sm:$0xff]   ;;  %v751_v35 = vld [vmem:[%s1066_s4 + $0x30] ss:$8 sps:$4 sm:$0xff]  }
   0xb   :  { %252 = vmatpush1.bf16.msra.mxu0 %v700_v5  ;;  %279 = vmatprep.mubr.bf16.mxu0 %v84_v25  ;;  %v752_v36 = vld [vmem:[%s1066_s4 + $0x44] ss:$8 sps:$4 sm:$0xff]   ;;  %v721_v37 = vld [vmem:[%s1064_s1 + $0x90] ss:$8 sps:$4 sm:$0xff]   ;;  %v754_v39 = vld [vmem:[%s1066_s4 + $0x40] ss:$8 sps:$4 sm:$0xff]  }
   0xc   :  { %253 = vmatprep.subr.bf16.mxu0 %v701_v6  ;;  %515 = vmatpush1.bf16.msra.mxu1 %v745_v27  ;;  %v722_v38 = vld [vmem:[%s1064_s1 + $0xa4] ss:$8 sps:$4 sm:$0xff]   ;;  %v755_v40 = vld [vmem:[%s1066_s4 + $0x54] ss:$8 sps:$4 sm:$0xff]   ;;  %v724_v41 = vld [vmem:[%s1064_s1 + $0xa0] ss:$8 sps:$4 sm:$0xff]  }
   0xd   :  { %516 = vmatprep.subr.bf16.mxu1 %v746_v28  ;;  %v725_v42 = vld [vmem:[%s1064_s1 + $0xb4] ss:$8 sps:$4 sm:$0xff]   ;;  %v757_v43 = vld [vmem:[%s1066_s4 + $0x50] ss:$8 sps:$4 sm:$0xff]   ;;  %v758_v44 = vld [vmem:[%s1066_s4 + $0x64] ss:$8 sps:$4 sm:$0xff]  }
   0xe   :  { %v727_v45 = vld [vmem:[%s1064_s1 + $0xb0] ss:$8 sps:$4 sm:$0xff]   ;;  %v728_v46 = vld [vmem:[%s1064_s1 + $0xc4] ss:$8 sps:$4 sm:$0xff]   ;;  %v760_v47 = vld [vmem:[%s1066_s4 + $0x60] ss:$8 sps:$4 sm:$0xff]  }
   0xf   :  { %254 = vmatpush1.bf16.msra.mxu0 %v703_v7  ;;  %v761_v48 = vld [vmem:[%s1066_s4 + $0x74] ss:$8 sps:$4 sm:$0xff]   ;;  %v730_v49 = vld [vmem:[%s1064_s1 + $0xc0] ss:$8 sps:$4 sm:$0xff]   ;;  %v763_v51 = vld [vmem:[%s1066_s4 + $0x70] ss:$8 sps:$4 sm:$0xff]  }
  0x10   :  { %255 = vmatprep.subr.bf16.mxu0 %v704_v8  ;;  %517 = vmatpush1.bf16.msra.mxu1 %v748_v31  ;;  %v731_v50 = vld [vmem:[%s1064_s1 + $0xd4] ss:$8 sps:$4 sm:$0xff]   ;;  %v764_v52 = vld [vmem:[%s1066_s4 + $0x84] ss:$8 sps:$4 sm:$0xff]   ;;  %v733_v53 = vld [vmem:[%s1064_s1 + $0xd0] ss:$8 sps:$4 sm:$0xff]  }
  0x11   :  { %518 = vmatprep.subr.bf16.mxu1 %v749_v32  ;;  %v734_v54 = vld [vmem:[%s1064_s1 + $0xe4] ss:$8 sps:$4 sm:$0xff]   ;;  %v766_v55 = vld [vmem:[%s1066_s4 + $0x80] ss:$8 sps:$4 sm:$0xff]   ;;  %v767_v56 = vld [vmem:[%s1066_s4 + $0x94] ss:$8 sps:$4 sm:$0xff]  }
  0x12   :  { %v736_v57 = vld [vmem:[%s1064_s1 + $0xe0] ss:$8 sps:$4 sm:$0xff]   ;;  %v737_v58 = vld [vmem:[%s1064_s1 + $0xf4] ss:$8 sps:$4 sm:$0xff]   ;;  %v769_v59 = vld [vmem:[%s1066_s4 + $0x90] ss:$8 sps:$4 sm:$0xff]  }
  0x13   :  { %256 = vmatpush1.bf16.msra.mxu0 %v706_v12  ;;  %v770_v60 = vld [vmem:[%s1066_s4 + $0xa4] ss:$8 sps:$4 sm:$0xff]   ;;  %v739_v61 = vld [vmem:[%s1064_s1 + $0xf0] ss:$8 sps:$4 sm:$0xff]   ;;  %v772_v62 = vld [vmem:[%s1066_s4 + $0xa0] ss:$8 sps:$4 sm:$0xff]  }
  0x14   :  { %257 = vmatprep.subr.bf16.mxu0 %v707_v13  ;;  %519 = vmatpush1.bf16.msra.mxu1 %v751_v35  ;;  %v773_v0 = vld [vmem:[%s1066_s4 + $0xb4] ss:$8 sps:$4 sm:$0xff]   ;;  %v775_v1 = vld [vmem:[%s1066_s4 + $0xb0] ss:$8 sps:$4 sm:$0xff]   ;;  %v776_v2 = vld [vmem:[%s1066_s4 + $0xc4] ss:$8 sps:$4 sm:$0xff]  }
  0x15   :  { %520 = vmatprep.subr.bf16.mxu1 %v752_v36  ;;  %v778_v3 = vld [vmem:[%s1066_s4 + $0xc0] ss:$8 sps:$4 sm:$0xff]   ;;  %v779_v4 = vld [vmem:[%s1066_s4 + $0xd4] ss:$8 sps:$4 sm:$0xff]   ;;  %v781_v5 = vld [vmem:[%s1066_s4 + $0xd0] ss:$8 sps:$4 sm:$0xff]  }
  0x16   :  { %v782_v6 = vld [vmem:[%s1066_s4 + $0xe4] ss:$8 sps:$4 sm:$0xff]   ;;  %v784_v7 = vld [vmem:[%s1066_s4 + $0xe0] ss:$8 sps:$4 sm:$0xff]   ;;  %v785_v8 = vld [vmem:[%s1066_s4 + $0xf4] ss:$8 sps:$4 sm:$0xff]  }
  0x17   :  { %258 = vmatpush1.bf16.msra.mxu0 %v709_v16  ;;  %v787_v9 = vld [vmem:[%s1066_s4 + $0xf0] ss:$8 sps:$4 sm:$0xff]   ;;  %v292_v10 = vsub.s32 0, %v868_v15  ;;  %v288_v11 = vld [vmem:[%s1067_s2] sm:$0x3]  ;;  %v296_v12 = vsub.s32 1, %v868_v15 }
  0x18   :  { %259 = vmatprep.subr.bf16.mxu0 %v710_v17  ;;  %521 = vmatpush1.bf16.msra.mxu1 %v754_v39  ;;  %v302_v13 = vld [vmem:[%s1068_s3] sm:$0x3]  ;;  %v789_v32 = vmov 1983009808  }
  0x19   :  { %522 = vmatprep.subr.bf16.mxu1 %v755_v40  ;;  %v293_v14 = vrot.slane %v288_v11, %v292_v10  ;;  %v297_v16 = vrot.slane %v288_v11, %v296_v12  ;;  %v307_v17 = vrot.slane %v302_v13, %v292_v10  ;;  %v311_v20 = vrot.slane %v302_v13, %v296_v12  ;;  %v581_v35 = vld [vmem:[%s1069_s7] sm:$0x3] }
  0x1a   :  { %v553_v36 = vld [vmem:[%s1070_s5] sm:$0x3] }
  0x1b   :  { %260 = vmatpush1.bf16.msra.mxu0 %v712_v19  ;;  %v567_v39 = vld [vmem:[%s1071_s6] sm:$0x3]  ;;  %v558_v40 = vrot.slane %v553_v36, %v292_v10 }
  0x1c   :  { %261 = vmatprep.subr.bf16.mxu0 %v713_v24  ;;  %523 = vmatpush1.bf16.msra.mxu1 %v757_v43  ;;  %v572_v43 = vrot.slane %v567_v39, %v292_v10 }
  0x1d   :  { %524 = vmatprep.subr.bf16.mxu1 %v758_v44 }
  0x1f   :  { %262 = vmatpush1.bf16.msra.mxu0 %v715_v29 }
  0x20   :  { %263 = vmatprep.subr.bf16.mxu0 %v716_v30  ;;  %525 = vmatpush1.bf16.msra.mxu1 %v760_v47 }
  0x21   :  { %526 = vmatprep.subr.bf16.mxu1 %v761_v48 }
  0x23   :  { %264 = vmatpush1.bf16.msra.mxu0 %v718_v33  ;;  %v585_v33 = vunpack.c.l.s4 %v789_v32 }
  0x24   :  { %265 = vmatprep.subr.bf16.mxu0 %v719_v34  ;;  %527 = vmatpush1.bf16.msra.mxu1 %v763_v51 }
  0x25   :  { %528 = vmatprep.subr.bf16.mxu1 %v764_v52  ;;  %v586_v34 = vunpack.c.0.s8 %v585_v33 }
  0x27   :  { %266 = vmatpush1.bf16.msra.mxu0 %v721_v37  ;;  %v582_v37 = vunpack.c.l.bf16 %v581_v35 }
  0x28   :  { %267 = vmatprep.subr.bf16.mxu0 %v722_v38  ;;  %529 = vmatpush1.bf16.msra.mxu1 %v766_v55  ;;  %v589_v38 = vsub.s32 %v586_v34, %v868_v15 }
  0x29   :  { %530 = vmatprep.subr.bf16.mxu1 %v767_v56 }
  0x2b   :  { %268 = vmatpush1.bf16.msra.mxu0 %v724_v41  ;;  %v590_v41 = vrot.slane %v582_v37, %v589_v38 }
  0x2c   :  { %269 = vmatprep.subr.bf16.mxu0 %v725_v42  ;;  %531 = vmatpush1.bf16.msra.mxu1 %v769_v59  ;;  %v562_v42 = vrot.slane %v553_v36, %v296_v12 }
  0x2d   :  { %532 = vmatprep.subr.bf16.mxu1 %v770_v60 }
  0x2f   :  { %270 = vmatpush1.bf16.msra.mxu0 %v727_v45  ;;  %v576_v45 = vrot.slane %v567_v39, %v296_v12 }
  0x30   :  { %271 = vmatprep.subr.bf16.mxu0 %v728_v46  ;;  %533 = vmatpush1.bf16.msra.mxu1 %v772_v62 }
  0x31   :  { %534 = vmatprep.subr.bf16.mxu1 %v773_v0 }
  0x33   :  { %272 = vmatpush1.bf16.msra.mxu0 %v730_v49  ;;  %v591_v49 = vcombine.high %v590_v41, %v590_v41 }
  0x34   :  { %273 = vmatprep.subr.bf16.mxu0 %v731_v50  ;;  %535 = vmatpush1.bf16.msra.mxu1 %v775_v1 }
  0x35   :  { %536 = vmatprep.subr.bf16.mxu1 %v776_v2 }
  0x37   :  { %274 = vmatpush1.bf16.msra.mxu0 %v733_v53 }
  0x38   :  { %275 = vmatprep.subr.bf16.mxu0 %v734_v54  ;;  %537 = vmatpush1.bf16.msra.mxu1 %v778_v3 }
  0x39   :  { %538 = vmatprep.subr.bf16.mxu1 %v779_v4 }
  0x3b   :  { %276 = vmatpush1.bf16.msra.mxu0 %v736_v57 }
  0x3c   :  { %277 = vmatprep.subr.bf16.mxu0 %v737_v58  ;;  %539 = vmatpush1.bf16.msra.mxu1 %v781_v5 }
  0x3d   :  { %540 = vmatprep.subr.bf16.mxu1 %v782_v6 }
  0x3f   :  { %278 = vmatpush1.bf16.msra.mxu0 %v739_v61 }
  0x40   :  { %541 = vmatpush1.bf16.msra.mxu1 %v784_v7 }
  0x41   :  { %542 = vmatprep.subr.bf16.mxu1 %v785_v8 }
  0x42   :  { %280 = vmatmul.mubr.bf16.vlgmr.msra.gmra.mrb[0].mxu0 %v77_v63 }
  0x44   :  { %543 = vmatpush1.bf16.msra.mxu1 %v787_v9 }
 0x115   :  { %v281_v19 = vpop.f32.mrb[0].mxu0 }
 0x116   :  { %v300_v21 = vmul.f32 %v293_v14, %v281_v19  ;;  %v283_v22 = vpop.f32.mrb[1].mxu0 }
 0x117   :  { %v301_v23 = vmul.f32 %v297_v16, %v283_v22  ;;  %v285_v24 = vpop.f32.mrb[2].mxu0 }
 0x118   :  { %v314_v25 = vadd.f32 %v307_v17, %v300_v21  ;;  %v286_v26 = vpop.f32.mrb[3].mxu0 }
 0x119   :  { %v315_v27 = vadd.f32 %v311_v20, %v301_v23 }
 0x11a   :  { %v316_v28 = vmax.f32 %v314_v25, 0.0 }
 0x11b   :  { %v317_v29 = vmax.f32 %v315_v27, 0.0 }
 0x11c   :  { %v318_v31 = vpack.c.bf16 %v316_v28, %v316_v28 }
 0x11d   :  { %v319_v30 = vpack.c.bf16 %v317_v29, %v317_v29 }
 0x11f   :  { %544 = vmatprep.mubr.bf16.mxu1 %v319_v30 }
 0x120   :  { %545 = vmatmul.mubr.bf16.vlgmr.msra.gmra.mrb[0].mxu1 %v318_v31 }
 0x1f3   :  { %v546_v44 = vpop.f32.mrb[0].mxu1 }
 0x1f4   :  { %v565_v46 = vmul.f32 %v558_v40, %v546_v44  ;;  %v548_v47 = vpop.f32.mrb[1].mxu1 }
 0x1f5   :  { %v566_v48 = vmul.f32 %v562_v42, %v548_v47  ;;  %v550_v50 = vpop.f32.mrb[2].mxu1 }
 0x1f6   :  { %v579_v51 = vadd.f32 %v572_v43, %v565_v46  ;;  %v551_v52 = vpop.f32.mrb[3].mxu1 }
 0x1f7   :  { %v580_v53 = vadd.f32 %v576_v45, %v566_v48 }
 0x1f8   :  { %v594_v54 = vadd.f32 %v590_v41, %v579_v51 }
 0x1f9   :  { %v595_v15 = vadd.f32 %v591_v49, %v580_v53 }
 0x1fa   :  { %v596_v55 = vmax.f32 %v594_v54, 0.0 }
 0x1fb   :  { %v597_v56 = vmax.f32 %v595_v15, 0.0 }
 0x1fd   :  { %v688_v57 = vpack.c.bf16 %v597_v56, %v596_v55 }
 0x1ff   :  { %v609_v58 = vrot.slane %v688_v57, %v877_v18 }
 0x201   :  { %689 = vst.sshfl [vmem:[%s1072_s8] sm:$0x5 pattern:$0x73625140] %v609_v58 }

// kernel: torchvision_resnet18_forward.25
= control target key start
LH: loop header
LB: loop body
LE: loop exit
PB: predicated region body
PF: predicated region fallthrough
CT: control target
= control target key end

     0   :  { %v1312_v9 = vmov 1966171168   ;;  %v116_v11 = vlaneseq  ;;  %s1778_s1 = inlined_call_operand.vmem [shape: bf16[512,256], index: 1, kind: input, shape index: {}]   ;;  %s1779_s0 = inlined_call_operand.vmem [shape: bf16[2,512], index: 0, kind: input, shape index: {}]   ;;  %s1780_s4 = inlined_call_operand.vmem [shape: bf16[256,256], index: 4, kind: input, shape index: {}]   ;;  %s1781_s8 = inlined_call_operand.vmem [shape: bf16[128,256], index: 8, kind: input, shape index: {}]   ;;  %s1782_s2 = inlined_call_operand.vmem [shape: f32[1,256], index: 2, kind: input, shape index: {}]   ;;  %s1783_s3 = inlined_call_operand.vmem [shape: f32[1,256], index: 3, kind: input, shape index: {}]   ;;  %s1784_s7 = inlined_call_operand.vmem [shape: bf16[2,128], index: 7, kind: input, shape index: {}]   ;;  %s1785_s5 = inlined_call_operand.vmem [shape: f32[1,256], index: 5, kind: input, shape index: {}]   ;;  %s1786_s9 = inlined_call_operand.vmem [shape: f32[1,256], index: 9, kind: input, shape index: {}]   ;;  %s1787_s6 = inlined_call_operand.vmem [shape: f32[1,256], index: 6, kind: input, shape index: {}]   ;;  %s1788_s10 = inlined_call_operand.vmem [shape: f32[1,256], index: 10, kind: input, shape index: {}]   ;;  %s1789_s11 = inlined_call_operand.vmem [shape: bf16[2,256], index: 11, kind: output, shape index: {}]  }
   0x1   :  { %v1144_v0 = vld [vmem:[%s1778_s1 + $0x4] ss:$8 sps:$4 sm:$0xff]   ;;  %v1146_v1 = vld [vmem:[%s1778_s1] ss:$8 sps:$4 sm:$0xff]   ;;  %v1147_v2 = vld [vmem:[%s1778_s1 + $0x14] ss:$8 sps:$4 sm:$0xff]   ;;  %v114_v10 = vunpack.c.l.s4 %v1312_v9 }
   0x2   :  { %453 = vmatprep.subr.bf16.mxu0 %v1144_v0  ;;  %v1149_v3 = vld [vmem:[%s1778_s1 + $0x10] ss:$8 sps:$4 sm:$0xff]   ;;  %v1150_v4 = vld [vmem:[%s1778_s1 + $0x24] ss:$8 sps:$4 sm:$0xff]   ;;  %v1152_v5 = vld [vmem:[%s1778_s1 + $0x20] ss:$8 sps:$4 sm:$0xff]  }
   0x3   :  { %454 = vmatpush1.bf16.msra.mxu0 %v1146_v1  ;;  %v1153_v6 = vld [vmem:[%s1778_s1 + $0x34] ss:$8 sps:$4 sm:$0xff]   ;;  %v1155_v7 = vld [vmem:[%s1778_s1 + $0x30] ss:$8 sps:$4 sm:$0xff]   ;;  %v1156_v8 = vld [vmem:[%s1778_s1 + $0x44] ss:$8 sps:$4 sm:$0xff]   ;;  %v115_v14 = vunpack.c.0.s8 %v114_v10 }
   0x4   :  { %455 = vmatprep.subr.bf16.mxu0 %v1147_v2  ;;  %v1158_v12 = vld [vmem:[%s1778_s1 + $0x40] ss:$8 sps:$4 sm:$0xff]   ;;  %v1159_v13 = vld [vmem:[%s1778_s1 + $0x54] ss:$8 sps:$4 sm:$0xff]   ;;  %v1407_v15 = vshrl.u32 %v116_v11, 7 }
   0x5   :  { %v1161_v16 = vld [vmem:[%s1778_s1 + $0x50] ss:$8 sps:$4 sm:$0xff]   ;;  %v1162_v17 = vld [vmem:[%s1778_s1 + $0x64] ss:$8 sps:$4 sm:$0xff]   ;;  %v1164_v21 = vld [vmem:[%s1778_s1 + $0x60] ss:$8 sps:$4 sm:$0xff]  }
   0x6   :  { %v1416_v18 = vsub.s32 %v115_v14, %v1407_v15  ;;  %v1421_v19 = vld.sshfl [vmem:[%s1779_s0] sm:$0x33 pattern:$0x75316420]  ;;  %v1165_v22 = vld [vmem:[%s1778_s1 + $0x74] ss:$8 sps:$4 sm:$0xff]  }
   0x7   :  { %456 = vmatpush1.bf16.msra.mxu0 %v1149_v3  ;;  %v112_v20 = vcombine.high %v1421_v19, %v1421_v19  ;;  %v1167_v24 = vld [vmem:[%s1778_s1 + $0x70] ss:$8 sps:$4 sm:$0xff]   ;;  %v1168_v25 = vld [vmem:[%s1778_s1 + $0x84] ss:$8 sps:$4 sm:$0xff]   ;;  %v1170_v26 = vld [vmem:[%s1778_s1 + $0x80] ss:$8 sps:$4 sm:$0xff]  }
   0x8   :  { %457 = vmatprep.subr.bf16.mxu0 %v1150_v4  ;;  %v1171_v27 = vld [vmem:[%s1778_s1 + $0x94] ss:$8 sps:$4 sm:$0xff]   ;;  %v1173_v28 = vld [vmem:[%s1778_s1 + $0x90] ss:$8 sps:$4 sm:$0xff]   ;;  %v1174_v29 = vld [vmem:[%s1778_s1 + $0xa4] ss:$8 sps:$4 sm:$0xff]   ;;  %v1524_v53 = vrot.slane %v1421_v19, %v1416_v18 }
   0x9   :  { %v1432_v23 = vrot.slane %v112_v20, %v1416_v18  ;;  %v1176_v30 = vld [vmem:[%s1778_s1 + $0xa0] ss:$8 sps:$4 sm:$0xff]   ;;  %v1177_v31 = vld [vmem:[%s1778_s1 + $0xb4] ss:$8 sps:$4 sm:$0xff]   ;;  %v1179_v32 = vld [vmem:[%s1778_s1 + $0xb0] ss:$8 sps:$4 sm:$0xff]  }
   0xa   :  { %v1180_v33 = vld [vmem:[%s1778_s1 + $0xc4] ss:$8 sps:$4 sm:$0xff]   ;;  %v1242_v35 = vld [vmem:[%s1780_s4] ss:$8 sps:$4 sm:$0xff]   ;;  %v1243_v36 = vld [vmem:[%s1780_s4 + $0x14] ss:$8 sps:$4 sm:$0xff]  }
   0xb   :  { %458 = vmatpush1.bf16.msra.mxu0 %v1152_v5  ;;  %485 = vmatprep.mubr.bf16.mxu0 %v1432_v23  ;;  %v1240_v34 = vld [vmem:[%s1780_s4 + $0x4] ss:$8 sps:$4 sm:$0xff]   ;;  %v1182_v37 = vld [vmem:[%s1778_s1 + $0xc0] ss:$8 sps:$4 sm:$0xff]   ;;  %v1245_v38 = vld [vmem:[%s1780_s4 + $0x10] ss:$8 sps:$4 sm:$0xff]   ;;  %v128_v54 = vcombine.high %v1432_v23, %v1432_v23 }
   0xc   :  { %459 = vmatprep.subr.bf16.mxu0 %v1153_v6  ;;  %759 = vmatprep.subr.bf16.mxu1 %v1240_v34  ;;  %v1183_v39 = vld [vmem:[%s1778_s1 + $0xd4] ss:$8 sps:$4 sm:$0xff]   ;;  %v1246_v40 = vld [vmem:[%s1780_s4 + $0x24] ss:$8 sps:$4 sm:$0xff]   ;;  %v1185_v41 = vld [vmem:[%s1778_s1 + $0xd0] ss:$8 sps:$4 sm:$0xff]  }
   0xd   :  { %760 = vmatpush1.bf16.msra.mxu1 %v1242_v35  ;;  %v1248_v42 = vld [vmem:[%s1780_s4 + $0x20] ss:$8 sps:$4 sm:$0xff]   ;;  %v1186_v43 = vld [vmem:[%s1778_s1 + $0xe4] ss:$8 sps:$4 sm:$0xff]   ;;  %v1249_v44 = vld [vmem:[%s1780_s4 + $0x34] ss:$8 sps:$4 sm:$0xff]  }
   0xe   :  { %761 = vmatprep.subr.bf16.mxu1 %v1243_v36  ;;  %v1188_v45 = vld [vmem:[%s1778_s1 + $0xe0] ss:$8 sps:$4 sm:$0xff]   ;;  %v1251_v46 = vld [vmem:[%s1780_s4 + $0x30] ss:$8 sps:$4 sm:$0xff]   ;;  %v1189_v47 = vld [vmem:[%s1778_s1 + $0xf4] ss:$8 sps:$4 sm:$0xff]  }
   0xf   :  { %460 = vmatpush1.bf16.msra.mxu0 %v1155_v7  ;;  %v1252_v48 = vld [vmem:[%s1780_s4 + $0x44] ss:$8 sps:$4 sm:$0xff]   ;;  %v1191_v49 = vld [vmem:[%s1778_s1 + $0xf0] ss:$8 sps:$4 sm:$0xff]   ;;  %v1254_v50 = vld [vmem:[%s1780_s4 + $0x40] ss:$8 sps:$4 sm:$0xff]  }
  0x10   :  { %461 = vmatprep.subr.bf16.mxu0 %v1156_v8  ;;  %v1194_v51 = vld [vmem:[%s1778_s1 + $0x104] ss:$8 sps:$4 sm:$0xff]   ;;  %v1255_v52 = vld [vmem:[%s1780_s4 + $0x54] ss:$8 sps:$4 sm:$0xff]   ;;  %v1192_v55 = vld [vmem:[%s1778_s1 + $0x100] ss:$8 sps:$4 sm:$0xff]  }
  0x11   :  { %762 = vmatpush1.bf16.msra.mxu1 %v1245_v38  ;;  %v1197_v56 = vld [vmem:[%s1778_s1 + $0x114] ss:$8 sps:$4 sm:$0xff]   ;;  %v1257_v57 = vld [vmem:[%s1780_s4 + $0x50] ss:$8 sps:$4 sm:$0xff]   ;;  %v1258_v58 = vld [vmem:[%s1780_s4 + $0x64] ss:$8 sps:$4 sm:$0xff]  }
  0x12   :  { %763 = vmatprep.subr.bf16.mxu1 %v1246_v40  ;;  %v1195_v59 = vld [vmem:[%s1778_s1 + $0x110] ss:$8 sps:$4 sm:$0xff]   ;;  %v1200_v60 = vld [vmem:[%s1778_s1 + $0x124] ss:$8 sps:$4 sm:$0xff]   ;;  %v1260_v61 = vld [vmem:[%s1780_s4 + $0x60] ss:$8 sps:$4 sm:$0xff]  }
  0x13   :  { %462 = vmatpush1.bf16.msra.mxu0 %v1158_v12  ;;  %v1261_v62 = vld [vmem:[%s1780_s4 + $0x74] ss:$8 sps:$4 sm:$0xff]   ;;  %v1198_v63 = vld [vmem:[%s1778_s1 + $0x120] ss:$8 sps:$4 sm:$0xff]   ;;  %v1263_v1 = vld [vmem:[%s1780_s4 + $0x70] ss:$8 sps:$4 sm:$0xff]  }
  0x14   :  { %463 = vmatprep.subr.bf16.mxu0 %v1159_v13  ;;  %v1203_v0 = vld [vmem:[%s1778_s1 + $0x134] ss:$8 sps:$4 sm:$0xff]   ;;  %v1264_v2 = vld [vmem:[%s1780_s4 + $0x84] ss:$8 sps:$4 sm:$0xff]   ;;  %v1201_v3 = vld [vmem:[%s1778_s1 + $0x130] ss:$8 sps:$4 sm:$0xff]  }
  0x15   :  { %764 = vmatpush1.bf16.msra.mxu1 %v1248_v42  ;;  %v1206_v4 = vld [vmem:[%s1778_s1 + $0x144] ss:$8 sps:$4 sm:$0xff]   ;;  %v1266_v5 = vld [vmem:[%s1780_s4 + $0x80] ss:$8 sps:$4 sm:$0xff]   ;;  %v1267_v6 = vld [vmem:[%s1780_s4 + $0x94] ss:$8 sps:$4 sm:$0xff]  }
  0x16   :  { %765 = vmatprep.subr.bf16.mxu1 %v1249_v44  ;;  %v1204_v7 = vld [vmem:[%s1778_s1 + $0x140] ss:$8 sps:$4 sm:$0xff]   ;;  %v1209_v8 = vld [vmem:[%s1778_s1 + $0x154] ss:$8 sps:$4 sm:$0xff]   ;;  %v1269_v9 = vld [vmem:[%s1780_s4 + $0x90] ss:$8 sps:$4 sm:$0xff]  }
  0x17   :  { %464 = vmatpush1.bf16.msra.mxu0 %v1161_v16  ;;  %v1270_v10 = vld [vmem:[%s1780_s4 + $0xa4] ss:$8 sps:$4 sm:$0xff]   ;;  %v1207_v11 = vld [vmem:[%s1778_s1 + $0x150] ss:$8 sps:$4 sm:$0xff]   ;;  %v1272_v13 = vld [vmem:[%s1780_s4 + $0xa0] ss:$8 sps:$4 sm:$0xff]  }
  0x18   :  { %465 = vmatprep.subr.bf16.mxu0 %v1162_v17  ;;  %v1212_v12 = vld [vmem:[%s1778_s1 + $0x164] ss:$8 sps:$4 sm:$0xff]   ;;  %v1273_v14 = vld [vmem:[%s1780_s4 + $0xb4] ss:$8 sps:$4 sm:$0xff]   ;;  %v1210_v16 = vld [vmem:[%s1778_s1 + $0x160] ss:$8 sps:$4 sm:$0xff]  }
  0x19   :  { %766 = vmatpush1.bf16.msra.mxu1 %v1251_v46  ;;  %v1215_v17 = vld [vmem:[%s1778_s1 + $0x174] ss:$8 sps:$4 sm:$0xff]   ;;  %v1275_v19 = vld [vmem:[%s1780_s4 + $0xb0] ss:$8 sps:$4 sm:$0xff]   ;;  %v1276_v20 = vld [vmem:[%s1780_s4 + $0xc4] ss:$8 sps:$4 sm:$0xff]  }
  0x1a   :  { %767 = vmatprep.subr.bf16.mxu1 %v1252_v48  ;;  %v1278_v23 = vld [vmem:[%s1780_s4 + $0xc0] ss:$8 sps:$4 sm:$0xff]   ;;  %v1233_v35 = vld [vmem:[%s1778_s1 + $0x1d4] ss:$8 sps:$4 sm:$0xff]   ;;  %v1231_v36 = vld [vmem:[%s1778_s1 + $0x1d0] ss:$8 sps:$4 sm:$0xff]  }
  0x1b   :  { %466 = vmatpush1.bf16.msra.mxu0 %v1164_v21  ;;  %v1213_v21 = vld [vmem:[%s1778_s1 + $0x170] ss:$8 sps:$4 sm:$0xff]   ;;  %v1228_v34 = vld [vmem:[%s1778_s1 + $0x1c0] ss:$8 sps:$4 sm:$0xff]   ;;  %v1282_v42 = vld [vmem:[%s1780_s4 + $0xe4] ss:$8 sps:$4 sm:$0xff]  }
  0x1c   :  { %467 = vmatprep.subr.bf16.mxu0 %v1165_v22  ;;  %v1218_v22 = vld [vmem:[%s1778_s1 + $0x184] ss:$8 sps:$4 sm:$0xff]   ;;  %v1234_v38 = vld [vmem:[%s1778_s1 + $0x1e0] ss:$8 sps:$4 sm:$0xff]   ;;  %v1237_v40 = vld [vmem:[%s1778_s1 + $0x1f0] ss:$8 sps:$4 sm:$0xff]  }
  0x1d   :  { %768 = vmatpush1.bf16.msra.mxu1 %v1254_v50  ;;  %v1285_v44 = vld [vmem:[%s1780_s4 + $0xf4] ss:$8 sps:$4 sm:$0xff]   ;;  %v1290_v46 = vld [vmem:[%s1781_s8 + $0x4] ss:$8 sps:$4 sm:$0xff]   ;;  %v1694_v48 = vsub.s32 1, %v1407_v15 }
  0x1e   :  { %769 = vmatprep.subr.bf16.mxu1 %v1255_v52  ;;  %v549_v50 = vld [vmem:[%s1783_s3] sm:$0x3] }
  0x1f   :  { %468 = vmatpush1.bf16.msra.mxu0 %v1167_v24  ;;  %v1279_v24 = vld [vmem:[%s1780_s4 + $0xd4] ss:$8 sps:$4 sm:$0xff]  }
  0x20   :  { %469 = vmatprep.subr.bf16.mxu0 %v1168_v25  ;;  %v1216_v25 = vld [vmem:[%s1778_s1 + $0x180] ss:$8 sps:$4 sm:$0xff]  }
  0x21   :  { %770 = vmatpush1.bf16.msra.mxu1 %v1257_v57 }
  0x22   :  { %771 = vmatprep.subr.bf16.mxu1 %v1258_v58 }
  0x23   :  { %470 = vmatpush1.bf16.msra.mxu0 %v1170_v26  ;;  %v1221_v26 = vld [vmem:[%s1778_s1 + $0x194] ss:$8 sps:$4 sm:$0xff]  }
  0x24   :  { %471 = vmatprep.subr.bf16.mxu0 %v1171_v27  ;;  %v1281_v27 = vld [vmem:[%s1780_s4 + $0xd0] ss:$8 sps:$4 sm:$0xff]  }
  0x25   :  { %772 = vmatpush1.bf16.msra.mxu1 %v1260_v61 }
  0x26   :  { %773 = vmatprep.subr.bf16.mxu1 %v1261_v62 }
  0x27   :  { %472 = vmatpush1.bf16.msra.mxu0 %v1173_v28  ;;  %v1219_v28 = vld [vmem:[%s1778_s1 + $0x190] ss:$8 sps:$4 sm:$0xff]  }
  0x28   :  { %473 = vmatprep.subr.bf16.mxu0 %v1174_v29  ;;  %v1224_v29 = vld [vmem:[%s1778_s1 + $0x1a4] ss:$8 sps:$4 sm:$0xff]  }
  0x29   :  { %774 = vmatpush1.bf16.msra.mxu1 %v1263_v1  ;;  %v1288_v1 = vld [vmem:[%s1781_s8] ss:$8 sps:$4 sm:$0xff]  }
  0x2a   :  { %775 = vmatprep.subr.bf16.mxu1 %v1264_v2 }
  0x2b   :  { %474 = vmatpush1.bf16.msra.mxu0 %v1176_v30  ;;  %v1222_v30 = vld [vmem:[%s1778_s1 + $0x1a0] ss:$8 sps:$4 sm:$0xff]  }
  0x2c   :  { %475 = vmatprep.subr.bf16.mxu0 %v1177_v31  ;;  %v1227_v31 = vld [vmem:[%s1778_s1 + $0x1b4] ss:$8 sps:$4 sm:$0xff]  }
  0x2d   :  { %776 = vmatpush1.bf16.msra.mxu1 %v1266_v5  ;;  %v1313_v5 = vmov 0  }
  0x2e   :  { %777 = vmatprep.subr.bf16.mxu1 %v1267_v6  ;;  %v1296_v6 = vld [vmem:[%s1781_s8 + $0x24] ss:$8 sps:$4 sm:$0xff]  }
  0x2f   :  { %476 = vmatpush1.bf16.msra.mxu0 %v1179_v32  ;;  %v1225_v32 = vld [vmem:[%s1778_s1 + $0x1b0] ss:$8 sps:$4 sm:$0xff]  }
  0x30   :  { %477 = vmatprep.subr.bf16.mxu0 %v1180_v33  ;;  %v1230_v33 = vld [vmem:[%s1778_s1 + $0x1c4] ss:$8 sps:$4 sm:$0xff]  }
  0x31   :  { %778 = vmatpush1.bf16.msra.mxu1 %v1269_v9  ;;  %v1297_v9 = vld [vmem:[%s1781_s8 + $0x30] ss:$8 sps:$4 sm:$0xff]  }
  0x32   :  { %779 = vmatprep.subr.bf16.mxu1 %v1270_v10  ;;  %v1302_v10 = vld [vmem:[%s1781_s8 + $0x44] ss:$8 sps:$4 sm:$0xff]  }
  0x33   :  { %478 = vmatpush1.bf16.msra.mxu0 %v1182_v37  ;;  %v1236_v37 = vld [vmem:[%s1778_s1 + $0x1e4] ss:$8 sps:$4 sm:$0xff]  }
  0x34   :  { %479 = vmatprep.subr.bf16.mxu0 %v1183_v39  ;;  %v1239_v39 = vld [vmem:[%s1778_s1 + $0x1f4] ss:$8 sps:$4 sm:$0xff]  }
  0x35   :  { %780 = vmatpush1.bf16.msra.mxu1 %v1272_v13  ;;  %v1303_v13 = vld [vmem:[%s1781_s8 + $0x50] ss:$8 sps:$4 sm:$0xff]  }
  0x36   :  { %781 = vmatprep.subr.bf16.mxu1 %v1273_v14  ;;  %v1308_v14 = vld [vmem:[%s1781_s8 + $0x64] ss:$8 sps:$4 sm:$0xff]  }
  0x37   :  { %480 = vmatpush1.bf16.msra.mxu0 %v1185_v41  ;;  %v127_v41 = vcombine.high %v1524_v53, %v1524_v53 }
  0x38   :  { %481 = vmatprep.subr.bf16.mxu0 %v1186_v43  ;;  %v1284_v43 = vld [vmem:[%s1780_s4 + $0xe0] ss:$8 sps:$4 sm:$0xff]  }
  0x39   :  { %782 = vmatpush1.bf16.msra.mxu1 %v1275_v19  ;;  %v1309_v19 = vld [vmem:[%s1781_s8 + $0x70] ss:$8 sps:$4 sm:$0xff]  }
  0x3a   :  { %783 = vmatprep.subr.bf16.mxu1 %v1276_v20  ;;  %v828_v20 = vld [vmem:[%s1784_s7] sm:$0x1] }
  0x3b   :  { %482 = vmatpush1.bf16.msra.mxu0 %v1188_v45  ;;  %v1287_v45 = vld [vmem:[%s1780_s4 + $0xf0] ss:$8 sps:$4 sm:$0xff]  }
  0x3c   :  { %483 = vmatprep.subr.bf16.mxu0 %v1189_v47  ;;  %v1691_v47 = vsub.s32 0, %v1407_v15 }
  0x3d   :  { %784 = vmatpush1.bf16.msra.mxu1 %v1278_v23 }
  0x3e   :  { %785 = vmatprep.subr.bf16.mxu1 %v1279_v24 }
  0x3f   :  { %484 = vmatpush1.bf16.msra.mxu0 %v1191_v49  ;;  %v535_v49 = vld [vmem:[%s1782_s2] sm:$0x3] }
  0x40   :  { %494 = vmatprep.subr.bf16.mxu0 %v1194_v51  ;;  %v540_v51 = vrot.slane %v535_v49, %v1691_v47  ;;  %v544_v52 = vrot.slane %v535_v49, %v1694_v48 }
  0x41   :  { %786 = vmatpush1.bf16.msra.mxu1 %v1281_v27 }
  0x42   :  { %486 = vmatmul.mubr.bf16.vlgmr.msra.gmra.mrb[0].mxu0 %v1524_v53  ;;  %787 = vmatprep.subr.bf16.mxu1 %v1282_v42  ;;  %v554_v53 = vrot.slane %v549_v50, %v1691_v47 }
  0x43   :  { %495 = vmatpush1.bf16.msra.mxu0 %v1192_v55  ;;  %526 = vmatprep.mubr.bf16.mxu0 %v128_v54  ;;  %v558_v55 = vrot.slane %v549_v50, %v1694_v48 }
  0x44   :  { %496 = vmatprep.subr.bf16.mxu0 %v1197_v56 }
  0x45   :  { %788 = vmatpush1.bf16.msra.mxu1 %v1284_v43 }
  0x46   :  { %789 = vmatprep.subr.bf16.mxu1 %v1285_v44 }
  0x47   :  { %497 = vmatpush1.bf16.msra.mxu0 %v1195_v59 }
  0x48   :  { %498 = vmatprep.subr.bf16.mxu0 %v1200_v60 }
  0x49   :  { %790 = vmatpush1.bf16.msra.mxu1 %v1287_v45 }
  0x4a   :  { %925 = vmatprep.subr.bf16.mxu1 %v1290_v46 }
  0x4b   :  { %499 = vmatpush1.bf16.msra.mxu0 %v1198_v63 }
  0x4c   :  { %500 = vmatprep.subr.bf16.mxu0 %v1203_v0 }
  0x4f   :  { %501 = vmatpush1.bf16.msra.mxu0 %v1201_v3  ;;  %v1293_v3 = vld [vmem:[%s1781_s8 + $0x14] ss:$8 sps:$4 sm:$0xff]  }
  0x50   :  { %502 = vmatprep.subr.bf16.mxu0 %v1206_v4  ;;  %v1291_v4 = vld [vmem:[%s1781_s8 + $0x10] ss:$8 sps:$4 sm:$0xff]  }
  0x53   :  { %503 = vmatpush1.bf16.msra.mxu0 %v1204_v7  ;;  %v1294_v7 = vld [vmem:[%s1781_s8 + $0x20] ss:$8 sps:$4 sm:$0xff]  }
  0x54   :  { %504 = vmatprep.subr.bf16.mxu0 %v1209_v8  ;;  %v1299_v8 = vld [vmem:[%s1781_s8 + $0x34] ss:$8 sps:$4 sm:$0xff]  }
  0x57   :  { %505 = vmatpush1.bf16.msra.mxu0 %v1207_v11  ;;  %v1300_v11 = vld [vmem:[%s1781_s8 + $0x40] ss:$8 sps:$4 sm:$0xff]  }
  0x58   :  { %506 = vmatprep.subr.bf16.mxu0 %v1212_v12  ;;  %v1305_v12 = vld [vmem:[%s1781_s8 + $0x54] ss:$8 sps:$4 sm:$0xff]  }
  0x5b   :  { %507 = vmatpush1.bf16.msra.mxu0 %v1210_v16  ;;  %v1306_v16 = vld [vmem:[%s1781_s8 + $0x60] ss:$8 sps:$4 sm:$0xff]  }
  0x5c   :  { %508 = vmatprep.subr.bf16.mxu0 %v1215_v17  ;;  %v1311_v17 = vld [vmem:[%s1781_s8 + $0x74] ss:$8 sps:$4 sm:$0xff]  }
  0x5f   :  { %509 = vmatpush1.bf16.msra.mxu0 %v1213_v21 }
  0x60   :  { %510 = vmatprep.subr.bf16.mxu0 %v1218_v22 }
  0x63   :  { %511 = vmatpush1.bf16.msra.mxu0 %v1216_v25  ;;  %v800_v25 = vld [vmem:[%s1785_s5] sm:$0x3] }
  0x64   :  { %512 = vmatprep.subr.bf16.mxu0 %v1221_v26  ;;  %v966_v26 = vld [vmem:[%s1786_s9] sm:$0x3]  ;;  %v805_v27 = vrot.slane %v800_v25, %v1691_v47 }
  0x67   :  { %513 = vmatpush1.bf16.msra.mxu0 %v1219_v28  ;;  %v814_v28 = vld [vmem:[%s1787_s6] sm:$0x3] }
  0x68   :  { %514 = vmatprep.subr.bf16.mxu0 %v1224_v29  ;;  %v809_v29 = vrot.slane %v800_v25, %v1694_v48 }
  0x6b   :  { %515 = vmatpush1.bf16.msra.mxu0 %v1222_v30  ;;  %v980_v30 = vld [vmem:[%s1788_s10] sm:$0x3] }
  0x6c   :  { %516 = vmatprep.subr.bf16.mxu0 %v1227_v31  ;;  %v971_v31 = vrot.slane %v966_v26, %v1691_v47 }
  0x6f   :  { %517 = vmatpush1.bf16.msra.mxu0 %v1225_v32  ;;  %v975_v32 = vrot.slane %v966_v26, %v1694_v48 }
  0x70   :  { %518 = vmatprep.subr.bf16.mxu0 %v1230_v33 }
  0x73   :  { %519 = vmatpush1.bf16.msra.mxu0 %v1228_v34  ;;  %v819_v34 = vrot.slane %v814_v28, %v1691_v47 }
  0x74   :  { %520 = vmatprep.subr.bf16.mxu0 %v1233_v35  ;;  %v985_v35 = vrot.slane %v980_v30, %v1691_v47 }
  0x77   :  { %521 = vmatpush1.bf16.msra.mxu0 %v1231_v36 }
  0x78   :  { %522 = vmatprep.subr.bf16.mxu0 %v1236_v37  ;;  %v823_v37 = vrot.slane %v814_v28, %v1694_v48 }
  0x7b   :  { %523 = vmatpush1.bf16.msra.mxu0 %v1234_v38 }
  0x7c   :  { %524 = vmatprep.subr.bf16.mxu0 %v1239_v39  ;;  %v989_v39 = vrot.slane %v980_v30, %v1694_v48 }
  0x7f   :  { %525 = vmatpush1.bf16.msra.mxu0 %v1237_v40 }
  0x82   :  { %527 = vmatmul.mubr.bf16.vlgmr.msra.gmra.mrb[0].mxu0 %v127_v41 }
 0x155   :  { %v528_v54 = vpop.f32.mrb[0].mxu0 }
 0x156   :  { %v547_v56 = vmul.f32 %v540_v51, %v528_v54  ;;  %v530_v15 = vpop.f32.mrb[1].mxu0 }
 0x157   :  { %v548_v57 = vmul.f32 %v544_v52, %v530_v15  ;;  %v532_v58 = vpop.f32.mrb[2].mxu0 }
 0x158   :  { %v561_v59 = vadd.f32 %v554_v53, %v547_v56  ;;  %v533_v60 = vpop.f32.mrb[3].mxu0 }
 0x159   :  { %v562_v61 = vadd.f32 %v558_v55, %v548_v57 }
 0x15a   :  { %v563_v62 = vmax.f32 %v561_v59, 0.0 }
 0x15b   :  { %v564_v63 = vmax.f32 %v562_v61, 0.0 }
 0x15c   :  { %v565_v2 = vpack.c.bf16 %v563_v62, %v563_v62 }
 0x15d   :  { %v566_v0 = vpack.c.bf16 %v564_v63, %v564_v63 }
 0x15f   :  { %791 = vmatprep.mubr.bf16.mxu1 %v566_v0 }
 0x160   :  { %792 = vmatmul.mubr.bf16.vlgmr.msra.gmra.mrb[0].mxu1 %v565_v2 }
 0x161   :  { %926 = vmatpush1.bf16.msra.mxu1 %v1288_v1  ;;  %957 = vmatprep.mubr.bf16.mxu1 %v1313_v5 }
 0x162   :  { %927 = vmatprep.subr.bf16.mxu1 %v1293_v3 }
 0x165   :  { %928 = vmatpush1.bf16.msra.mxu1 %v1291_v4 }
 0x166   :  { %929 = vmatprep.subr.bf16.mxu1 %v1296_v6 }
 0x169   :  { %930 = vmatpush1.bf16.msra.mxu1 %v1294_v7 }
 0x16a   :  { %931 = vmatprep.subr.bf16.mxu1 %v1299_v8 }
 0x16d   :  { %932 = vmatpush1.bf16.msra.mxu1 %v1297_v9 }
 0x16e   :  { %933 = vmatprep.subr.bf16.mxu1 %v1302_v10 }
 0x171   :  { %934 = vmatpush1.bf16.msra.mxu1 %v1300_v11 }
 0x172   :  { %935 = vmatprep.subr.bf16.mxu1 %v1305_v12 }
 0x175   :  { %936 = vmatpush1.bf16.msra.mxu1 %v1303_v13 }
 0x176   :  { %937 = vmatprep.subr.bf16.mxu1 %v1308_v14 }
 0x179   :  { %938 = vmatpush1.bf16.msra.mxu1 %v1306_v16 }
 0x17a   :  { %939 = vmatprep.subr.bf16.mxu1 %v1311_v17 }
 0x17d   :  { %940 = vmatpush1.bf16.msra.mxu1 %v1309_v19 }
 0x180   :  { %958 = vmatmul.mubr.bf16.vlgmr.msra.gmra.mrb[4].mxu1 %v828_v20 }
 0x233   :  { %v793_v21 = vpop.f32.mrb[0].mxu1 }
 0x234   :  { %v795_v22 = vpop.f32.mrb[1].mxu1  ;;  %v812_v33 = vmul.f32 %v805_v27, %v793_v21 }
 0x235   :  { %v797_v23 = vpop.f32.mrb[2].mxu1  ;;  %v813_v36 = vmul.f32 %v809_v29, %v795_v22 }
 0x236   :  { %v798_v24 = vpop.f32.mrb[3].mxu1  ;;  %v826_v44 = vadd.f32 %v819_v34, %v812_v33 }
 0x237   :  { %v827_v49 = vadd.f32 %v823_v37, %v813_v36 }
 0x253   :  { %v959_v38 = vpop.f32.mrb[4].mxu1 }
 0x254   :  { %v978_v40 = vmul.f32 %v971_v31, %v959_v38  ;;  %v961_v41 = vpop.f32.mrb[5].mxu1 }
 0x255   :  { %v979_v42 = vmul.f32 %v975_v32, %v961_v41  ;;  %v963_v43 = vpop.f32.mrb[6].mxu1 }
 0x256   :  { %v992_v45 = vadd.f32 %v985_v35, %v978_v40  ;;  %v964_v46 = vpop.f32.mrb[7].mxu1 }
 0x257   :  { %v993_v50 = vadd.f32 %v989_v39, %v979_v42 }
 0x258   :  { %v994_v51 = vadd.f32 %v992_v45, %v826_v44 }
 0x259   :  { %v995_v52 = vadd.f32 %v993_v50, %v827_v49 }
 0x25a   :  { %v996_v53 = vmax.f32 %v994_v51, 0.0 }
 0x25b   :  { %v997_v54 = vmax.f32 %v995_v52, 0.0 }
 0x25d   :  { %v1136_v47 = vpack.c.bf16 %v997_v54, %v996_v53 }
 0x25f   :  { %v1009_v55 = vrot.slane %v1136_v47, %v1416_v18 }
 0x261   :  { %1137 = vst.sshfl [vmem:[%s1789_s11] sm:$0x5 pattern:$0x73625140] %v1009_v55 }

// kernel: torchvision_resnet18_forward.29
= control target key start
LH: loop header
LB: loop body
LE: loop exit
PB: predicated region body
PF: predicated region fallthrough
CT: control target
= control target key end

     0   :  { %v94_v51 = vlaneseq  ;;  %s696_s0 = inlined_call_operand.vmem [shape: bf16[2,1,512], index: 0, kind: input, shape index: {}]   ;;  %s697_s1 = inlined_call_operand.vmem [shape: f32[512,10], index: 1, kind: input, shape index: {}]   ;;  %s698_s2 = inlined_call_operand.vmem [shape: f32[1,10], index: 2, kind: input, shape index: {}]   ;;  %s699_s3 = inlined_call_operand.hbm [shape: f32[2,10], index: 3, kind: output, shape index: {}]  }
   0x1   :  { %v37_v0 = vld [vmem:[%s697_s1 + $0x80] sm:$0xff]  ;;  %v38_v1 = vld [vmem:[%s697_s1 + $0x88] sm:$0xff]  ;;  %v39_v11 = vld [vmem:[%s697_s1 + $0x90] sm:$0xff] }
   0x2   :  { %v21_v2 = vld [vmem:[%s697_s1] sm:$0xff]  ;;  %v366_v3 = vpack.c.bf16 %v38_v1, %v37_v0  ;;  %v22_v4 = vld [vmem:[%s697_s1 + $0x8] sm:$0xff]  ;;  %v40_v13 = vld [vmem:[%s697_s1 + $0x98] sm:$0xff]  ;;  %v608_v0 = vshrl.u32 %v94_v51, 7 }
   0x3   :  { %v69_v5 = vld [vmem:[%s697_s1 + $0x180] sm:$0xff]  ;;  %v70_v6 = vld [vmem:[%s697_s1 + $0x188] sm:$0xff]  ;;  %v368_v7 = vpack.c.bf16 %v22_v4, %v21_v2  ;;  %v23_v14 = vld [vmem:[%s697_s1 + $0x10] sm:$0xff]  ;;  %v370_v16 = vpack.c.bf16 %v40_v13, %v39_v11 }
   0x4   :  { %v398_v8 = vpack.c.bf16 %v70_v6, %v69_v5  ;;  %v53_v9 = vld [vmem:[%s697_s1 + $0x100] sm:$0xff]  ;;  %v54_v10 = vld [vmem:[%s697_s1 + $0x108] sm:$0xff]  ;;  %367 = vmatprep.subr.bf16.mxu0 %v366_v3  ;;  %v24_v15 = vld [vmem:[%s697_s1 + $0x18] sm:$0xff] }
   0x5   :  { %v400_v12 = vpack.c.bf16 %v54_v10, %v53_v9  ;;  %369 = vmatpush3.bf16.msra.mxu0 %v368_v7  ;;  %v372_v17 = vpack.c.bf16 %v24_v15, %v23_v14  ;;  %v71_v18 = vld [vmem:[%s697_s1 + $0x190] sm:$0xff]  ;;  %v72_v19 = vld [vmem:[%s697_s1 + $0x198] sm:$0xff]  ;;  %v41_v23 = vld [vmem:[%s697_s1 + $0xa0] sm:$0xff] }
   0x6   :  { %399 = vmatprep.subr.bf16.mxu1 %v398_v8  ;;  %v55_v20 = vld [vmem:[%s697_s1 + $0x110] sm:$0xff]  ;;  %v402_v21 = vpack.c.bf16 %v72_v19, %v71_v18  ;;  %v56_v22 = vld [vmem:[%s697_s1 + $0x118] sm:$0xff]  ;;  %v42_v24 = vld [vmem:[%s697_s1 + $0xa8] sm:$0xff]  ;;  %371 = vmatprep.subr.bf16.mxu0 %v370_v16  ;;  %v100_v16 = vsub.s32 2, %v608_v0 }
   0x7   :  { %401 = vmatpush3.bf16.msra.mxu1 %v400_v12  ;;  %v404_v25 = vpack.c.bf16 %v56_v22, %v55_v20  ;;  %v374_v26 = vpack.c.bf16 %v42_v24, %v41_v23  ;;  %v25_v27 = vld [vmem:[%s697_s1 + $0x20] sm:$0xff]  ;;  %v26_v28 = vld [vmem:[%s697_s1 + $0x28] sm:$0xff]  ;;  %v43_v35 = vld [vmem:[%s697_s1 + $0xb0] sm:$0xff] }
   0x8   :  { %v73_v29 = vld [vmem:[%s697_s1 + $0x1a0] sm:$0xff]  ;;  %403 = vmatprep.subr.bf16.mxu1 %v402_v21  ;;  %v74_v30 = vld [vmem:[%s697_s1 + $0x1a8] sm:$0xff]  ;;  %v376_v33 = vpack.c.bf16 %v26_v28, %v25_v27  ;;  %v44_v36 = vld [vmem:[%s697_s1 + $0xb8] sm:$0xff]  ;;  %v108_v21 = vsub.s32 6, %v608_v0 }
   0x9   :  { %v57_v31 = vld [vmem:[%s697_s1 + $0x120] sm:$0xff]  ;;  %v58_v32 = vld [vmem:[%s697_s1 + $0x128] sm:$0xff]  ;;  %373 = vmatpush3.bf16.msra.mxu0 %v372_v17  ;;  %v406_v34 = vpack.c.bf16 %v74_v30, %v73_v29  ;;  %v27_v37 = vld [vmem:[%s697_s1 + $0x30] sm:$0xff]  ;;  %v378_v39 = vpack.c.bf16 %v44_v36, %v43_v35 }
   0xa   :  { %375 = vmatprep.subr.bf16.mxu0 %v374_v26  ;;  %v408_v38 = vpack.c.bf16 %v58_v32, %v57_v31  ;;  %v28_v40 = vld [vmem:[%s697_s1 + $0x38] sm:$0xff]  ;;  %v75_v41 = vld [vmem:[%s697_s1 + $0x1b0] sm:$0xff]  ;;  %v45_v46 = vld [vmem:[%s697_s1 + $0xc0] sm:$0xff] }
   0xb   :  { %405 = vmatpush3.bf16.msra.mxu1 %v404_v25  ;;  %v76_v42 = vld [vmem:[%s697_s1 + $0x1b8] sm:$0xff]  ;;  %v59_v44 = vld [vmem:[%s697_s1 + $0x130] sm:$0xff]  ;;  %v46_v47 = vld [vmem:[%s697_s1 + $0xc8] sm:$0xff]  ;;  %v380_v48 = vpack.c.bf16 %v28_v40, %v27_v37 }
   0xc   :  { %407 = vmatprep.subr.bf16.mxu1 %v406_v34  ;;  %v410_v43 = vpack.c.bf16 %v76_v42, %v75_v41  ;;  %v60_v45 = vld [vmem:[%s697_s1 + $0x138] sm:$0xff]  ;;  %v77_v49 = vld [vmem:[%s697_s1 + $0x1c0] sm:$0xff]  ;;  %v78_v50 = vld [vmem:[%s697_s1 + $0x1c8] sm:$0xff]  ;;  %v382_v53 = vpack.c.bf16 %v46_v47, %v45_v46 }
   0xd   :  { %377 = vmatpush3.bf16.msra.mxu0 %v376_v33  ;;  %v412_v52 = vpack.c.bf16 %v60_v45, %v59_v44  ;;  %v29_v54 = vld [vmem:[%s697_s1 + $0x40] sm:$0xff]  ;;  %v30_v55 = vld [vmem:[%s697_s1 + $0x48] sm:$0xff]  ;;  %v414_v57 = vpack.c.bf16 %v78_v50, %v77_v49  ;;  %v47_v59 = vld [vmem:[%s697_s1 + $0xd0] sm:$0xff] }
   0xe   :  { %379 = vmatprep.subr.bf16.mxu0 %v378_v39  ;;  %v61_v56 = vld [vmem:[%s697_s1 + $0x140] sm:$0xff]  ;;  %v62_v58 = vld [vmem:[%s697_s1 + $0x148] sm:$0xff]  ;;  %v48_v60 = vld [vmem:[%s697_s1 + $0xd8] sm:$0xff]  ;;  %v384_v63 = vpack.c.bf16 %v30_v55, %v29_v54 }
   0xf   :  { %409 = vmatpush3.bf16.msra.mxu1 %v408_v38  ;;  %v79_v61 = vld [vmem:[%s697_s1 + $0x1d0] sm:$0xff]  ;;  %v80_v62 = vld [vmem:[%s697_s1 + $0x1d8] sm:$0xff]  ;;  %v416_v1 = vpack.c.bf16 %v62_v58, %v61_v56  ;;  %v386_v2 = vpack.c.bf16 %v48_v60, %v47_v59  ;;  %v49_v8 = vld [vmem:[%s697_s1 + $0xe0] sm:$0xff] }
  0x10   :  { %411 = vmatprep.subr.bf16.mxu1 %v410_v43  ;;  %v31_v3 = vld [vmem:[%s697_s1 + $0x50] sm:$0xff]  ;;  %v32_v4 = vld [vmem:[%s697_s1 + $0x58] sm:$0xff]  ;;  %v418_v6 = vpack.c.bf16 %v80_v62, %v79_v61  ;;  %v50_v9 = vld [vmem:[%s697_s1 + $0xe8] sm:$0xff] }
  0x11   :  { %381 = vmatpush3.bf16.msra.mxu0 %v380_v48  ;;  %v63_v5 = vld [vmem:[%s697_s1 + $0x150] sm:$0xff]  ;;  %v64_v7 = vld [vmem:[%s697_s1 + $0x158] sm:$0xff]  ;;  %v81_v10 = vld [vmem:[%s697_s1 + $0x1e0] sm:$0xff]  ;;  %v388_v12 = vpack.c.bf16 %v32_v4, %v31_v3  ;;  %v390_v18 = vpack.c.bf16 %v50_v9, %v49_v8 }
  0x12   :  { %383 = vmatprep.subr.bf16.mxu0 %v382_v53  ;;  %v82_v11 = vld [vmem:[%s697_s1 + $0x1e8] sm:$0xff]  ;;  %v33_v13 = vld [vmem:[%s697_s1 + $0x60] sm:$0xff]  ;;  %v420_v17 = vpack.c.bf16 %v64_v7, %v63_v5 }
  0x13   :  { %413 = vmatpush3.bf16.msra.mxu1 %v412_v52  ;;  %v34_v14 = vld [vmem:[%s697_s1 + $0x68] sm:$0xff]  ;;  %v65_v15 = vld [vmem:[%s697_s1 + $0x160] sm:$0xff] }
  0x14   :  { %415 = vmatprep.subr.bf16.mxu1 %v414_v57  ;;  %v66_v19 = vld [vmem:[%s697_s1 + $0x168] sm:$0xff]  ;;  %v293_v20 = vld [vmem:[%s696_s0] sm:$0xff]  }
  0x15   :  { %385 = vmatpush3.bf16.msra.mxu0 %v384_v63 }
  0x16   :  { %387 = vmatprep.subr.bf16.mxu0 %v386_v2 }
  0x17   :  { %417 = vmatpush3.bf16.msra.mxu1 %v416_v1 }
  0x18   :  { %8 = vsyncpa [#allocation3], 0  ;;  %419 = vmatprep.subr.bf16.mxu1 %v418_v6  ;;  %v422_v22 = vpack.c.bf16 %v82_v11, %v81_v10  ;;  %v51_v23 = vld [vmem:[%s697_s1 + $0xf0] sm:$0xff]  ;;  %v52_v24 = vld [vmem:[%s697_s1 + $0xf8] sm:$0xff]  ;;  %v294_v25 = vunpack.c.l.bf16 %v293_v20  ;;  %v295_v26 = vunpack.c.h.bf16 %v293_v20  ;;  %vm126_vm0 = vcmask 1041409   ;;  %s455_s7 = smov [#allocation2]  }
  0x19   :  { %v83_v27 = vld [vmem:[%s697_s1 + $0x1f0] sm:$0xff]  ;;  %v84_v28 = vld [vmem:[%s697_s1 + $0x1f8] sm:$0xff]  ;;  %v96_v29 = vsub.s32 0, %v608_v0  ;;  %389 = vmatpush3.bf16.msra.mxu0 %v388_v12  ;;  %v392_v30 = vpack.c.bf16 %v34_v14, %v33_v13  ;;  %v424_v31 = vpack.c.bf16 %v66_v19, %v65_v15  ;;  %v394_v34 = vpack.c.bf16 %v52_v24, %v51_v23  ;;  %v291_v54 = vld [vmem:[%s698_s2] ss:$0 sm:$0xff]  ;;  %s283_s8 = sshll.u32 %s455_s7, 4  ;;  %s284_s8 = int_to_ptr.vmem [resolvable:$true] %s283_s8 }
  0x1a   :  { %v101_v32 = vrot.slane %v294_v25, %v100_v16  ;;  %v117_v33 = vrot.slane %v295_v26, %v100_v16  ;;  %391 = vmatprep.subr.bf16.mxu0 %v390_v18  ;;  %v35_v35 = vld [vmem:[%s697_s1 + $0x70] sm:$0xff]  ;;  %v36_v36 = vld [vmem:[%s697_s1 + $0x78] sm:$0xff]  ;;  %v109_v37 = vrot.slane %v294_v25, %v108_v21  ;;  %v125_v38 = vrot.slane %v295_v26, %v108_v21  ;;  %s431_s9 = scalar_lea.vmem %s284_s8, 32  ;;  %p436_p1 = scmp.lt.s32.totalorder %s284_s8, %s284_s8 }
  0x1b   :  { %421 = vmatpush3.bf16.msra.mxu1 %v420_v17  ;;  %v104_v39 = vsub.s32 4, %v608_v0  ;;  %v426_v40 = vpack.c.bf16 %v84_v28, %v83_v27  ;;  %v67_v41 = vld [vmem:[%s697_s1 + $0x170] sm:$0xff]  ;;  %v68_v42 = vld [vmem:[%s697_s1 + $0x178] sm:$0xff]  ;;  %v396_v45 = vpack.c.bf16 %v36_v36, %v35_v35  ;;  %v97_v46 = vrot.slane %v294_v25, %v96_v29  ;;  %p432_p0 = scmp.ne.s32.totalorder %s284_s8, %s431_s9  ;;  %p437_p2 = scmp.lt.s32.totalorder %s431_s9, %s431_s9 }
  0x1c   :  { %423 = vmatprep.subr.bf16.mxu1 %v422_v22  ;;  %v128_v43 = vsel %vm126_vm0, %v117_v33, %v101_v32  ;;  %v130_v44 = vsel %vm126_vm0, %v125_v38, %v109_v37  ;;  %v113_v47 = vrot.slane %v295_v26, %v96_v29  ;;  %v428_v48 = vpack.c.bf16 %v68_v42, %v67_v41 }
  0x1d   :  { %199 = vmatprep.mubr.f32.mxu0 %v128_v43  ;;  %393 = vmatpush3.bf16.msra.mxu0 %v392_v30  ;;  %v105_v49 = vrot.slane %v294_v25, %v104_v39  ;;  %v121_v50 = vrot.slane %v295_v26, %v104_v39  ;;  %vm275_vm1 = vcmask 74752   ;;  %p438_p3 = por %p437_p2, %p436_p1 }
  0x1e   :  { %269 = vmatprep.mubr.f32.mxu1 %v130_v44  ;;  %395 = vmatprep.subr.bf16.mxu0 %v394_v34  ;;  %v127_v51 = vsel %vm126_vm0, %v113_v47, %v97_v46 }
  0x1f   :  { %425 = vmatpush3.bf16.msra.mxu1 %v424_v31  ;;  %v129_v52 = vsel %vm126_vm0, %v121_v50, %v105_v49  ;;  %p439_p4 = pnand %p438_p3, %p432_p0 }
  0x20   :  { %427 = vmatprep.subr.bf16.mxu1 %v426_v40 }
  0x21   :  { %397 = vmatpush3.bf16.msra.mxu0 %v396_v45 }
  0x23   :  { %429 = vmatpush3.bf16.msra.mxu1 %v428_v48 }
  0x24   :  { %200 = vmatmul.mubr.f32.vlgmr.msra.gmra.mrb[0].mxu0 %v127_v51 }
  0x26   :  { %270 = vmatmul.mubr.f32.vlgmr.msra.gmra.mrb[0].mxu1 %v129_v52 }
  0xf7   :  { %v328_v53 = vpop.f32.mrb[0].mxu0 }
  0xf8   :  { %v329_v55 = vpop.f32.mrb[1].mxu0 }
  0xf9   :  { %v363_v56 = vpop.f32.mrb[0].mxu1  ;;  %v330_v57 = vadd.f32 %v329_v55, %v328_v53 }
  0xfa   :  { %v364_v58 = vpop.f32.mrb[1].mxu1 }
  0xfb   :  { %v365_v59 = vadd.f32 %v364_v58, %v363_v56  ;;  %v202_v60 = vadd.f32 %v330_v57, %v291_v54 }
  0xfd   :  { %v272_v61 = vadd.f32 %v365_v59, %v202_v60 }
  0xff   :  { %276 = vst.msk [vmem:[#allocation2] sm:$0x3] %vm275_vm1, %v272_v61 }
 0x100   :  { %442 = shalt.err (!%p439_p4)
}
 0x101   :  { %s443_s11 = scalar_lea.hbm %s699_s3, 32 }
 0x102   :  { %p444_p5 = scmp.ne.s32.totalorder %s699_s3, %s443_s11  ;;  %p447_p6 = scmp.lt.u32.totalorder %s443_s11, %s699_s3 }
 0x104   :  { %p449_p7 = pnand %p447_p6, %p444_p5 }
 0x106   :  { %452 = shalt.err (!%p449_p7)
}
 0x107   :  { %286 = dma.vmem_to_hbm [thread:$0]  %s284_s8, 32, %s699_s3, [#allocation3]  }
 0x108   :  { %453 = dma.done.wait [#allocation3], 32  }
 0x109   :  { %454 = vsyncadd [#allocation3], 4294967264 }
 0x10a   :  { %290 = vsyncpa [#allocation3], 1 }

// kernel: torchvision_resnet18_forward.27
= control target key start
LH: loop header
LB: loop body
LE: loop exit
PB: predicated region body
PF: predicated region fallthrough
CT: control target
= control target key end

     0   :  { %v2818_v9 = vmov 1966171168   ;;  %v115_v11 = vlaneseq  ;;  %s3746_s1 = inlined_call_operand.vmem [shape: bf16[256,512], index: 1, kind: input, shape index: {}]   ;;  %s3747_s0 = inlined_call_operand.vmem [shape: bf16[2,256], index: 0, kind: input, shape index: {}, may-alias: {0,7}]   ;;  %s3748_s4 = inlined_call_operand.vmem [shape: bf16[512,512], index: 4, kind: input, shape index: {}]   ;;  %s3749_s8 = inlined_call_operand.vmem [shape: bf16[256,512], index: 8, kind: input, shape index: {}]   ;;  %s3750_s2 = inlined_call_operand.vmem [shape: f32[1,512], index: 2, kind: input, shape index: {}]   ;;  %s3751_s3 = inlined_call_operand.vmem [shape: f32[1,512], index: 3, kind: input, shape index: {}]   ;;  %s3752_s7 = inlined_call_operand.vmem [shape: bf16[2,256], index: 7, kind: input, shape index: {}, may-alias: {0,7}]   ;;  %s3753_s5 = inlined_call_operand.vmem [shape: f32[1,512], index: 5, kind: input, shape index: {}]   ;;  %s3754_s6 = inlined_call_operand.vmem [shape: f32[1,512], index: 6, kind: input, shape index: {}]   ;;  %s3755_s9 = inlined_call_operand.vmem [shape: f32[1,512], index: 9, kind: input, shape index: {}]   ;;  %s3756_s10 = inlined_call_operand.vmem [shape: f32[1,512], index: 10, kind: input, shape index: {}]   ;;  %s3757_s11 = inlined_call_operand.vmem [shape: bf16[2,512], index: 11, kind: output, shape index: {}]  }
   0x1   :  { %v2434_v0 = vld [vmem:[%s3746_s1 + $0x4] ss:$16 sps:$4 sm:$0xff]   ;;  %v2436_v1 = vld [vmem:[%s3746_s1] ss:$16 sps:$4 sm:$0xff]   ;;  %v113_v10 = vunpack.c.l.s4 %v2818_v9  ;;  %v2482_v19 = vld [vmem:[%s3746_s1 + $0xc] ss:$16 sps:$4 sm:$0xff]  }
   0x2   :  { %448 = vmatprep.subr.bf16.mxu0 %v2434_v0  ;;  %v2437_v2 = vld [vmem:[%s3746_s1 + $0x24] ss:$16 sps:$4 sm:$0xff]   ;;  %v2439_v3 = vld [vmem:[%s3746_s1 + $0x20] ss:$16 sps:$4 sm:$0xff]   ;;  %v2912_v15 = vshrl.u32 %v115_v11, 7  ;;  %489 = vmatprep.subr.bf16.mxu1 %v2482_v19 }
   0x3   :  { %449 = vmatpush1.bf16.msra.mxu0 %v2436_v1  ;;  %v2440_v4 = vld [vmem:[%s3746_s1 + $0x44] ss:$16 sps:$4 sm:$0xff]   ;;  %v2442_v5 = vld [vmem:[%s3746_s1 + $0x40] ss:$16 sps:$4 sm:$0xff]   ;;  %v114_v14 = vunpack.c.0.s8 %v113_v10  ;;  %v2484_v20 = vld [vmem:[%s3746_s1 + $0x8] ss:$16 sps:$4 sm:$0xff]  }
   0x4   :  { %450 = vmatprep.subr.bf16.mxu0 %v2437_v2  ;;  %v2443_v6 = vld [vmem:[%s3746_s1 + $0x64] ss:$16 sps:$4 sm:$0xff]   ;;  %v2445_v7 = vld [vmem:[%s3746_s1 + $0x60] ss:$16 sps:$4 sm:$0xff]   ;;  %v2485_v25 = vld [vmem:[%s3746_s1 + $0x2c] ss:$16 sps:$4 sm:$0xff]   ;;  %490 = vmatpush1.bf16.msra.mxu1 %v2484_v20 }
   0x5   :  { %v2446_v8 = vld [vmem:[%s3746_s1 + $0x84] ss:$16 sps:$4 sm:$0xff]   ;;  %v2448_v12 = vld [vmem:[%s3746_s1 + $0x80] ss:$16 sps:$4 sm:$0xff]   ;;  %v2930_v21 = vsub.s32 %v114_v14, %v2912_v15  ;;  %v2487_v26 = vld [vmem:[%s3746_s1 + $0x28] ss:$16 sps:$4 sm:$0xff]   ;;  %491 = vmatprep.subr.bf16.mxu1 %v2485_v25 }
   0x6   :  { %v2449_v13 = vld [vmem:[%s3746_s1 + $0xa4] ss:$16 sps:$4 sm:$0xff]   ;;  %v2451_v16 = vld [vmem:[%s3746_s1 + $0xa0] ss:$16 sps:$4 sm:$0xff]   ;;  %v2488_v28 = vld [vmem:[%s3746_s1 + $0x4c] ss:$16 sps:$4 sm:$0xff]  }
   0x7   :  { %451 = vmatpush1.bf16.msra.mxu0 %v2439_v3  ;;  %v2452_v17 = vld [vmem:[%s3746_s1 + $0xc4] ss:$16 sps:$4 sm:$0xff]   ;;  %v2454_v18 = vld [vmem:[%s3746_s1 + $0xc0] ss:$16 sps:$4 sm:$0xff]   ;;  %v2490_v31 = vld [vmem:[%s3746_s1 + $0x48] ss:$16 sps:$4 sm:$0xff]  }
   0x8   :  { %452 = vmatprep.subr.bf16.mxu0 %v2440_v4  ;;  %v2935_v22 = vld.sshfl [vmem:[%s3747_s0] sm:$0x11 pattern:$0x75316420]  ;;  %v2455_v23 = vld [vmem:[%s3746_s1 + $0xe4] ss:$16 sps:$4 sm:$0xff]   ;;  %492 = vmatpush1.bf16.msra.mxu1 %v2487_v26 }
   0x9   :  { %v111_v24 = vcombine.high %v2935_v22, %v2935_v22  ;;  %v2457_v29 = vld [vmem:[%s3746_s1 + $0xe0] ss:$16 sps:$4 sm:$0xff]   ;;  %v2458_v30 = vld [vmem:[%s3746_s1 + $0x104] ss:$16 sps:$4 sm:$0xff]   ;;  %493 = vmatprep.subr.bf16.mxu1 %v2488_v28  ;;  %v2491_v32 = vld [vmem:[%s3746_s1 + $0x6c] ss:$16 sps:$4 sm:$0xff]   ;;  %v118_v0 = vrot.slane %v2935_v22, %v2930_v21 }
   0xa   :  { %v2460_v33 = vld [vmem:[%s3746_s1 + $0x100] ss:$16 sps:$4 sm:$0xff]   ;;  %v2461_v34 = vld [vmem:[%s3746_s1 + $0x124] ss:$16 sps:$4 sm:$0xff]   ;;  %v2493_v35 = vld [vmem:[%s3746_s1 + $0x68] ss:$16 sps:$4 sm:$0xff]  }
   0xb   :  { %453 = vmatpush1.bf16.msra.mxu0 %v2442_v5  ;;  %v125_v27 = vrot.slane %v111_v24, %v2930_v21  ;;  %v2494_v36 = vld [vmem:[%s3746_s1 + $0x8c] ss:$16 sps:$4 sm:$0xff]   ;;  %v2463_v37 = vld [vmem:[%s3746_s1 + $0x120] ss:$16 sps:$4 sm:$0xff]   ;;  %v2464_v38 = vld [vmem:[%s3746_s1 + $0x144] ss:$16 sps:$4 sm:$0xff]  }
   0xc   :  { %454 = vmatprep.subr.bf16.mxu0 %v2443_v6  ;;  %494 = vmatpush1.bf16.msra.mxu1 %v2490_v31  ;;  %v2496_v39 = vld [vmem:[%s3746_s1 + $0x88] ss:$16 sps:$4 sm:$0xff]   ;;  %v2497_v40 = vld [vmem:[%s3746_s1 + $0xac] ss:$16 sps:$4 sm:$0xff]   ;;  %v2466_v41 = vld [vmem:[%s3746_s1 + $0x140] ss:$16 sps:$4 sm:$0xff]  }
   0xd   :  { %480 = vmatprep.mubr.bf16.mxu0 %v125_v27  ;;  %521 = vmatprep.mubr.bf16.mxu1 %v125_v27  ;;  %v2467_v42 = vld [vmem:[%s3746_s1 + $0x164] ss:$16 sps:$4 sm:$0xff]   ;;  %v2499_v43 = vld [vmem:[%s3746_s1 + $0xa8] ss:$16 sps:$4 sm:$0xff]   ;;  %v2500_v44 = vld [vmem:[%s3746_s1 + $0xcc] ss:$16 sps:$4 sm:$0xff]  }
   0xe   :  { %495 = vmatprep.subr.bf16.mxu1 %v2491_v32  ;;  %v2469_v45 = vld [vmem:[%s3746_s1 + $0x160] ss:$16 sps:$4 sm:$0xff]   ;;  %v2470_v46 = vld [vmem:[%s3746_s1 + $0x184] ss:$16 sps:$4 sm:$0xff]   ;;  %v2502_v47 = vld [vmem:[%s3746_s1 + $0xc8] ss:$16 sps:$4 sm:$0xff]  }
   0xf   :  { %455 = vmatpush1.bf16.msra.mxu0 %v2445_v7  ;;  %v2503_v48 = vld [vmem:[%s3746_s1 + $0xec] ss:$16 sps:$4 sm:$0xff]   ;;  %v2472_v49 = vld [vmem:[%s3746_s1 + $0x180] ss:$16 sps:$4 sm:$0xff]   ;;  %v2473_v50 = vld [vmem:[%s3746_s1 + $0x1a4] ss:$16 sps:$4 sm:$0xff]  }
  0x10   :  { %456 = vmatprep.subr.bf16.mxu0 %v2446_v8  ;;  %496 = vmatpush1.bf16.msra.mxu1 %v2493_v35  ;;  %v2505_v51 = vld [vmem:[%s3746_s1 + $0xe8] ss:$16 sps:$4 sm:$0xff]   ;;  %v2506_v52 = vld [vmem:[%s3746_s1 + $0x10c] ss:$16 sps:$4 sm:$0xff]   ;;  %v2475_v53 = vld [vmem:[%s3746_s1 + $0x1a0] ss:$16 sps:$4 sm:$0xff]  }
  0x11   :  { %497 = vmatprep.subr.bf16.mxu1 %v2494_v36  ;;  %v2476_v54 = vld [vmem:[%s3746_s1 + $0x1c4] ss:$16 sps:$4 sm:$0xff]   ;;  %v2508_v55 = vld [vmem:[%s3746_s1 + $0x108] ss:$16 sps:$4 sm:$0xff]   ;;  %v2509_v56 = vld [vmem:[%s3746_s1 + $0x12c] ss:$16 sps:$4 sm:$0xff]  }
  0x12   :  { %v2478_v57 = vld [vmem:[%s3746_s1 + $0x1c0] ss:$16 sps:$4 sm:$0xff]   ;;  %v2479_v58 = vld [vmem:[%s3746_s1 + $0x1e4] ss:$16 sps:$4 sm:$0xff]   ;;  %v2511_v59 = vld [vmem:[%s3746_s1 + $0x128] ss:$16 sps:$4 sm:$0xff]  }
  0x13   :  { %457 = vmatpush1.bf16.msra.mxu0 %v2448_v12  ;;  %v2512_v60 = vld [vmem:[%s3746_s1 + $0x14c] ss:$16 sps:$4 sm:$0xff]   ;;  %v2481_v61 = vld [vmem:[%s3746_s1 + $0x1e0] ss:$16 sps:$4 sm:$0xff]   ;;  %v2532_v62 = vld [vmem:[%s3748_s4 + $0x4] ss:$16 sps:$4 sm:$0xff]  }
  0x14   :  { %458 = vmatprep.subr.bf16.mxu0 %v2449_v13  ;;  %498 = vmatpush1.bf16.msra.mxu1 %v2496_v39  ;;  %v2514_v63 = vld [vmem:[%s3746_s1 + $0x148] ss:$16 sps:$4 sm:$0xff]   ;;  %v2515_v1 = vld [vmem:[%s3746_s1 + $0x16c] ss:$16 sps:$4 sm:$0xff]   ;;  %v2530_v2 = vld [vmem:[%s3748_s4] ss:$16 sps:$4 sm:$0xff]  }
  0x15   :  { %499 = vmatprep.subr.bf16.mxu1 %v2497_v40  ;;  %v2538_v3 = vld [vmem:[%s3748_s4 + $0x24] ss:$16 sps:$4 sm:$0xff]   ;;  %v2517_v4 = vld [vmem:[%s3746_s1 + $0x168] ss:$16 sps:$4 sm:$0xff]   ;;  %v2518_v5 = vld [vmem:[%s3746_s1 + $0x18c] ss:$16 sps:$4 sm:$0xff]  }
  0x16   :  { %v2536_v6 = vld [vmem:[%s3748_s4 + $0x20] ss:$16 sps:$4 sm:$0xff]   ;;  %v2544_v7 = vld [vmem:[%s3748_s4 + $0x44] ss:$16 sps:$4 sm:$0xff]   ;;  %v2520_v8 = vld [vmem:[%s3746_s1 + $0x188] ss:$16 sps:$4 sm:$0xff]  }
  0x17   :  { %459 = vmatpush1.bf16.msra.mxu0 %v2451_v16  ;;  %v2521_v9 = vld [vmem:[%s3746_s1 + $0x1ac] ss:$16 sps:$4 sm:$0xff]   ;;  %v2542_v10 = vld [vmem:[%s3748_s4 + $0x40] ss:$16 sps:$4 sm:$0xff]   ;;  %v2550_v11 = vld [vmem:[%s3748_s4 + $0x64] ss:$16 sps:$4 sm:$0xff]  }
  0x18   :  { %460 = vmatprep.subr.bf16.mxu0 %v2452_v17  ;;  %500 = vmatpush1.bf16.msra.mxu1 %v2499_v43  ;;  %v2523_v12 = vld [vmem:[%s3746_s1 + $0x1a8] ss:$16 sps:$4 sm:$0xff]   ;;  %v2524_v13 = vld [vmem:[%s3746_s1 + $0x1cc] ss:$16 sps:$4 sm:$0xff]   ;;  %v2548_v14 = vld [vmem:[%s3748_s4 + $0x60] ss:$16 sps:$4 sm:$0xff]  }
  0x19   :  { %501 = vmatprep.subr.bf16.mxu1 %v2500_v44  ;;  %v2556_v16 = vld [vmem:[%s3748_s4 + $0x84] ss:$16 sps:$4 sm:$0xff]   ;;  %v2526_v17 = vld [vmem:[%s3746_s1 + $0x1c8] ss:$16 sps:$4 sm:$0xff]   ;;  %v2554_v20 = vld [vmem:[%s3748_s4 + $0x80] ss:$16 sps:$4 sm:$0xff]  }
  0x1a   :  { %v2529_v19 = vld [vmem:[%s3746_s1 + $0x1e8] ss:$16 sps:$4 sm:$0xff]   ;;  %v2535_v22 = vld [vmem:[%s3748_s4 + $0xc] ss:$16 sps:$4 sm:$0xff]   ;;  %v2560_v24 = vld [vmem:[%s3748_s4 + $0xa0] ss:$16 sps:$4 sm:$0xff]  }
  0x1b   :  { %461 = vmatpush1.bf16.msra.mxu0 %v2454_v18  ;;  %v2527_v18 = vld [vmem:[%s3746_s1 + $0x1ec] ss:$16 sps:$4 sm:$0xff]   ;;  %v2568_v25 = vld [vmem:[%s3748_s4 + $0xc4] ss:$16 sps:$4 sm:$0xff]   ;;  %v2533_v26 = vld [vmem:[%s3748_s4 + $0x8] ss:$16 sps:$4 sm:$0xff]  }
  0x1c   :  { %462 = vmatprep.subr.bf16.mxu0 %v2455_v23  ;;  %502 = vmatpush1.bf16.msra.mxu1 %v2502_v47  ;;  %v2562_v23 = vld [vmem:[%s3748_s4 + $0xa4] ss:$16 sps:$4 sm:$0xff]   ;;  %v2541_v27 = vld [vmem:[%s3748_s4 + $0x2c] ss:$16 sps:$4 sm:$0xff]   ;;  %v2566_v28 = vld [vmem:[%s3748_s4 + $0xc0] ss:$16 sps:$4 sm:$0xff]  }
  0x1d   :  { %503 = vmatprep.subr.bf16.mxu1 %v2503_v48  ;;  %v2547_v31 = vld [vmem:[%s3748_s4 + $0x4c] ss:$16 sps:$4 sm:$0xff]   ;;  %v2572_v32 = vld [vmem:[%s3748_s4 + $0xe0] ss:$16 sps:$4 sm:$0xff]  }
  0x1e   :  { %v2553_v35 = vld [vmem:[%s3748_s4 + $0x6c] ss:$16 sps:$4 sm:$0xff]   ;;  %v2578_v36 = vld [vmem:[%s3748_s4 + $0x100] ss:$16 sps:$4 sm:$0xff]  }
  0x1f   :  { %463 = vmatpush1.bf16.msra.mxu0 %v2457_v29  ;;  %v2574_v29 = vld [vmem:[%s3748_s4 + $0xe4] ss:$16 sps:$4 sm:$0xff]   ;;  %v2559_v39 = vld [vmem:[%s3748_s4 + $0x8c] ss:$16 sps:$4 sm:$0xff]   ;;  %v2584_v40 = vld [vmem:[%s3748_s4 + $0x120] ss:$16 sps:$4 sm:$0xff]  }
  0x20   :  { %464 = vmatprep.subr.bf16.mxu0 %v2458_v30  ;;  %504 = vmatpush1.bf16.msra.mxu1 %v2505_v51  ;;  %v2539_v30 = vld [vmem:[%s3748_s4 + $0x28] ss:$16 sps:$4 sm:$0xff]   ;;  %v2565_v43 = vld [vmem:[%s3748_s4 + $0xac] ss:$16 sps:$4 sm:$0xff]   ;;  %v2590_v44 = vld [vmem:[%s3748_s4 + $0x140] ss:$16 sps:$4 sm:$0xff]  }
  0x21   :  { %505 = vmatprep.subr.bf16.mxu1 %v2506_v52  ;;  %v2571_v47 = vld [vmem:[%s3748_s4 + $0xcc] ss:$16 sps:$4 sm:$0xff]   ;;  %v2596_v48 = vld [vmem:[%s3748_s4 + $0x160] ss:$16 sps:$4 sm:$0xff]  }
  0x22   :  { %v2577_v51 = vld [vmem:[%s3748_s4 + $0xec] ss:$16 sps:$4 sm:$0xff]   ;;  %v2602_v52 = vld [vmem:[%s3748_s4 + $0x180] ss:$16 sps:$4 sm:$0xff]  }
  0x23   :  { %465 = vmatpush1.bf16.msra.mxu0 %v2460_v33  ;;  %v2580_v33 = vld [vmem:[%s3748_s4 + $0x104] ss:$16 sps:$4 sm:$0xff]  }
  0x24   :  { %466 = vmatprep.subr.bf16.mxu0 %v2461_v34  ;;  %506 = vmatpush1.bf16.msra.mxu1 %v2508_v55  ;;  %v2545_v34 = vld [vmem:[%s3748_s4 + $0x48] ss:$16 sps:$4 sm:$0xff]   ;;  %v2583_v55 = vld [vmem:[%s3748_s4 + $0x10c] ss:$16 sps:$4 sm:$0xff]  }
  0x25   :  { %507 = vmatprep.subr.bf16.mxu1 %v2509_v56  ;;  %v2608_v56 = vld [vmem:[%s3748_s4 + $0x1a0] ss:$16 sps:$4 sm:$0xff]  }
  0x27   :  { %467 = vmatpush1.bf16.msra.mxu0 %v2463_v37  ;;  %v2586_v37 = vld [vmem:[%s3748_s4 + $0x124] ss:$16 sps:$4 sm:$0xff]  }
  0x28   :  { %468 = vmatprep.subr.bf16.mxu0 %v2464_v38  ;;  %508 = vmatpush1.bf16.msra.mxu1 %v2511_v59  ;;  %v2551_v38 = vld [vmem:[%s3748_s4 + $0x68] ss:$16 sps:$4 sm:$0xff]  }
  0x29   :  { %509 = vmatprep.subr.bf16.mxu1 %v2512_v60  ;;  %v2587_v59 = vld [vmem:[%s3748_s4 + $0x128] ss:$16 sps:$4 sm:$0xff]   ;;  %v2595_v60 = vld [vmem:[%s3748_s4 + $0x14c] ss:$16 sps:$4 sm:$0xff]  }
  0x2b   :  { %469 = vmatpush1.bf16.msra.mxu0 %v2466_v41  ;;  %v2592_v41 = vld [vmem:[%s3748_s4 + $0x144] ss:$16 sps:$4 sm:$0xff]  }
  0x2c   :  { %470 = vmatprep.subr.bf16.mxu0 %v2467_v42  ;;  %510 = vmatpush1.bf16.msra.mxu1 %v2514_v63  ;;  %v2557_v42 = vld [vmem:[%s3748_s4 + $0x88] ss:$16 sps:$4 sm:$0xff]  }
  0x2d   :  { %511 = vmatprep.subr.bf16.mxu1 %v2515_v1  ;;  %v2599_v63 = vld [vmem:[%s3748_s4 + $0x168] ss:$16 sps:$4 sm:$0xff]  }
  0x2e   :  { %v2605_v1 = vld [vmem:[%s3748_s4 + $0x188] ss:$16 sps:$4 sm:$0xff]  }
  0x2f   :  { %471 = vmatpush1.bf16.msra.mxu0 %v2469_v45  ;;  %v2598_v45 = vld [vmem:[%s3748_s4 + $0x164] ss:$16 sps:$4 sm:$0xff]  }
  0x30   :  { %472 = vmatprep.subr.bf16.mxu0 %v2470_v46  ;;  %512 = vmatpush1.bf16.msra.mxu1 %v2517_v4  ;;  %v2563_v46 = vld [vmem:[%s3748_s4 + $0xa8] ss:$16 sps:$4 sm:$0xff]   ;;  %v2616_v4 = vld [vmem:[%s3748_s4 + $0x1c4] ss:$16 sps:$4 sm:$0xff]  }
  0x31   :  { %513 = vmatprep.subr.bf16.mxu1 %v2518_v5  ;;  %v2619_v5 = vld [vmem:[%s3748_s4 + $0x1cc] ss:$16 sps:$4 sm:$0xff]  }
  0x33   :  { %473 = vmatpush1.bf16.msra.mxu0 %v2472_v49  ;;  %v2604_v49 = vld [vmem:[%s3748_s4 + $0x184] ss:$16 sps:$4 sm:$0xff]  }
  0x34   :  { %474 = vmatprep.subr.bf16.mxu0 %v2473_v50  ;;  %514 = vmatpush1.bf16.msra.mxu1 %v2520_v8  ;;  %v2569_v50 = vld [vmem:[%s3748_s4 + $0xc8] ss:$16 sps:$4 sm:$0xff]   ;;  %v2622_v8 = vld [vmem:[%s3748_s4 + $0x1e4] ss:$16 sps:$4 sm:$0xff]  }
  0x35   :  { %515 = vmatprep.subr.bf16.mxu1 %v2521_v9  ;;  %v2625_v9 = vld [vmem:[%s3748_s4 + $0x1ec] ss:$16 sps:$4 sm:$0xff]  }
  0x37   :  { %475 = vmatpush1.bf16.msra.mxu0 %v2475_v53  ;;  %v2610_v53 = vld [vmem:[%s3748_s4 + $0x1a4] ss:$16 sps:$4 sm:$0xff]  }
  0x38   :  { %476 = vmatprep.subr.bf16.mxu0 %v2476_v54  ;;  %516 = vmatpush1.bf16.msra.mxu1 %v2523_v12  ;;  %v2575_v54 = vld [vmem:[%s3748_s4 + $0xe8] ss:$16 sps:$4 sm:$0xff]   ;;  %v2628_v12 = vld [vmem:[%s3748_s4 + $0x204] ss:$16 sps:$4 sm:$0xff]  }
  0x39   :  { %517 = vmatprep.subr.bf16.mxu1 %v2524_v13  ;;  %v2631_v13 = vld [vmem:[%s3748_s4 + $0x20c] ss:$16 sps:$4 sm:$0xff]  }
  0x3b   :  { %477 = vmatpush1.bf16.msra.mxu0 %v2478_v57  ;;  %v2581_v57 = vld [vmem:[%s3748_s4 + $0x108] ss:$16 sps:$4 sm:$0xff]  }
  0x3c   :  { %478 = vmatprep.subr.bf16.mxu0 %v2479_v58  ;;  %518 = vmatpush1.bf16.msra.mxu1 %v2526_v17  ;;  %v2589_v58 = vld [vmem:[%s3748_s4 + $0x12c] ss:$16 sps:$4 sm:$0xff]   ;;  %v3293_v17 = vsub.s32 1, %v2912_v15 }
  0x3d   :  { %519 = vmatprep.subr.bf16.mxu1 %v2527_v18  ;;  %v3298_v18 = vld [vmem:[%s3751_s3] sm:$0xf] }
  0x3f   :  { %479 = vmatpush1.bf16.msra.mxu0 %v2481_v61  ;;  %v2593_v61 = vld [vmem:[%s3748_s4 + $0x148] ss:$16 sps:$4 sm:$0xff]  }
  0x40   :  { %1358 = vmatprep.subr.bf16.mxu0 %v2532_v62  ;;  %520 = vmatpush1.bf16.msra.mxu1 %v2529_v19  ;;  %v2601_v62 = vld [vmem:[%s3748_s4 + $0x16c] ss:$16 sps:$4 sm:$0xff]  }
  0x41   :  { %1440 = vmatprep.subr.bf16.mxu1 %v2535_v22 }
  0x42   :  { %481 = vmatmul.mubr.bf16.vlgmr.msra.gmra.mrb[0].mxu0 %v118_v0 }
  0x43   :  { %1359 = vmatpush1.bf16.msra.mxu0 %v2530_v2  ;;  %522 = vmatmul.mubr.bf16.vlgmr.msra.gmra.mrb[0].mxu1 %v118_v0  ;;  %v2607_v0 = vld [vmem:[%s3748_s4 + $0x18c] ss:$16 sps:$4 sm:$0xff]  }
  0x44   :  { %1360 = vmatprep.subr.bf16.mxu0 %v2538_v3  ;;  %1441 = vmatpush1.bf16.msra.mxu1 %v2533_v26  ;;  %v2613_v2 = vld [vmem:[%s3748_s4 + $0x1ac] ss:$16 sps:$4 sm:$0xff]   ;;  %v2611_v3 = vld [vmem:[%s3748_s4 + $0x1a8] ss:$16 sps:$4 sm:$0xff]  }
  0x45   :  { %1442 = vmatprep.subr.bf16.mxu1 %v2541_v27 }
  0x47   :  { %1361 = vmatpush1.bf16.msra.mxu0 %v2536_v6  ;;  %v2614_v6 = vld [vmem:[%s3748_s4 + $0x1c0] ss:$16 sps:$4 sm:$0xff]  }
  0x48   :  { %1362 = vmatprep.subr.bf16.mxu0 %v2544_v7  ;;  %1443 = vmatpush1.bf16.msra.mxu1 %v2539_v30  ;;  %v2617_v7 = vld [vmem:[%s3748_s4 + $0x1c8] ss:$16 sps:$4 sm:$0xff]  }
  0x49   :  { %1444 = vmatprep.subr.bf16.mxu1 %v2547_v31 }
  0x4b   :  { %1363 = vmatpush1.bf16.msra.mxu0 %v2542_v10  ;;  %v2620_v10 = vld [vmem:[%s3748_s4 + $0x1e0] ss:$16 sps:$4 sm:$0xff]  }
  0x4c   :  { %1364 = vmatprep.subr.bf16.mxu0 %v2550_v11  ;;  %1445 = vmatpush1.bf16.msra.mxu1 %v2545_v34  ;;  %v2623_v11 = vld [vmem:[%s3748_s4 + $0x1e8] ss:$16 sps:$4 sm:$0xff]  }
  0x4d   :  { %1446 = vmatprep.subr.bf16.mxu1 %v2553_v35  ;;  %v2626_v35 = vld [vmem:[%s3748_s4 + $0x200] ss:$16 sps:$4 sm:$0xff]  }
  0x4f   :  { %1365 = vmatpush1.bf16.msra.mxu0 %v2548_v14  ;;  %v3285_v14 = vsub.s32 0, %v2912_v15 }
  0x50   :  { %1366 = vmatprep.subr.bf16.mxu0 %v2556_v16  ;;  %1447 = vmatpush1.bf16.msra.mxu1 %v2551_v38  ;;  %v3290_v16 = vld [vmem:[%s3750_s2] sm:$0xf]  ;;  %v2634_v38 = vld [vmem:[%s3748_s4 + $0x224] ss:$16 sps:$4 sm:$0xff]  }
  0x51   :  { %1448 = vmatprep.subr.bf16.mxu1 %v2559_v39  ;;  %v535_v19 = vrot.slane %v3290_v16, %v3285_v14  ;;  %v561_v22 = vrot.slane %v3298_v18, %v3285_v14  ;;  %v2637_v39 = vld [vmem:[%s3748_s4 + $0x22c] ss:$16 sps:$4 sm:$0xff]  }
  0x53   :  { %1367 = vmatpush1.bf16.msra.mxu0 %v2554_v20  ;;  %v539_v20 = vrot.slane %v3290_v16, %v3293_v17 }
  0x54   :  { %1368 = vmatprep.subr.bf16.mxu0 %v2562_v23  ;;  %1449 = vmatpush1.bf16.msra.mxu1 %v2557_v42  ;;  %v2640_v42 = vld [vmem:[%s3748_s4 + $0x244] ss:$16 sps:$4 sm:$0xff]  }
  0x55   :  { %1450 = vmatprep.subr.bf16.mxu1 %v2565_v43  ;;  %v2643_v43 = vld [vmem:[%s3748_s4 + $0x24c] ss:$16 sps:$4 sm:$0xff]  }
  0x57   :  { %1369 = vmatpush1.bf16.msra.mxu0 %v2560_v24  ;;  %v565_v24 = vrot.slane %v3298_v18, %v3293_v17 }
  0x58   :  { %1370 = vmatprep.subr.bf16.mxu0 %v2568_v25  ;;  %1451 = vmatpush1.bf16.msra.mxu1 %v2563_v46  ;;  %v2641_v46 = vld [vmem:[%s3748_s4 + $0x248] ss:$16 sps:$4 sm:$0xff]  }
  0x59   :  { %1452 = vmatprep.subr.bf16.mxu1 %v2571_v47  ;;  %v3342_v47 = vsub.s32 3, %v2912_v15 }
  0x5b   :  { %1371 = vmatpush1.bf16.msra.mxu0 %v2566_v28 }
  0x5c   :  { %1372 = vmatprep.subr.bf16.mxu0 %v2574_v29  ;;  %1453 = vmatpush1.bf16.msra.mxu1 %v2569_v50 }
  0x5d   :  { %1454 = vmatprep.subr.bf16.mxu1 %v2577_v51  ;;  %v2647_v51 = vld [vmem:[%s3748_s4 + $0x268] ss:$16 sps:$4 sm:$0xff]  }
  0x5f   :  { %1373 = vmatpush1.bf16.msra.mxu0 %v2572_v32 }
  0x60   :  { %1374 = vmatprep.subr.bf16.mxu0 %v2580_v33  ;;  %1455 = vmatpush1.bf16.msra.mxu1 %v2575_v54  ;;  %v2655_v54 = vld [vmem:[%s3748_s4 + $0x28c] ss:$16 sps:$4 sm:$0xff]  }
  0x61   :  { %1456 = vmatprep.subr.bf16.mxu1 %v2583_v55 }
  0x63   :  { %1375 = vmatpush1.bf16.msra.mxu0 %v2578_v36  ;;  %v2629_v36 = vld [vmem:[%s3748_s4 + $0x208] ss:$16 sps:$4 sm:$0xff]  }
  0x64   :  { %1376 = vmatprep.subr.bf16.mxu0 %v2586_v37  ;;  %1457 = vmatpush1.bf16.msra.mxu1 %v2581_v57  ;;  %v573_v57 = vrot.slane %v3298_v18, %v3342_v47 }
  0x65   :  { %1458 = vmatprep.subr.bf16.mxu1 %v2589_v58 }
  0x67   :  { %1377 = vmatpush1.bf16.msra.mxu0 %v2584_v40  ;;  %v2632_v40 = vld [vmem:[%s3748_s4 + $0x220] ss:$16 sps:$4 sm:$0xff]  }
  0x68   :  { %1378 = vmatprep.subr.bf16.mxu0 %v2592_v41  ;;  %1459 = vmatpush1.bf16.msra.mxu1 %v2587_v59  ;;  %v2635_v41 = vld [vmem:[%s3748_s4 + $0x228] ss:$16 sps:$4 sm:$0xff]  }
  0x69   :  { %1460 = vmatprep.subr.bf16.mxu1 %v2595_v60  ;;  %v2650_v60 = vld [vmem:[%s3748_s4 + $0x280] ss:$16 sps:$4 sm:$0xff]  }
  0x6b   :  { %1379 = vmatpush1.bf16.msra.mxu0 %v2590_v44  ;;  %v3333_v44 = vsub.s32 2, %v2912_v15  ;;  %v2644_v15 = vld [vmem:[%s3748_s4 + $0x260] ss:$16 sps:$4 sm:$0xff]  }
  0x6c   :  { %1380 = vmatprep.subr.bf16.mxu0 %v2598_v45  ;;  %1461 = vmatpush1.bf16.msra.mxu1 %v2593_v61  ;;  %v2638_v45 = vld [vmem:[%s3748_s4 + $0x240] ss:$16 sps:$4 sm:$0xff]   ;;  %v2653_v61 = vld [vmem:[%s3748_s4 + $0x288] ss:$16 sps:$4 sm:$0xff]  }
  0x6d   :  { %1462 = vmatprep.subr.bf16.mxu1 %v2601_v62  ;;  %v543_v50 = vrot.slane %v3290_v16, %v3333_v44  ;;  %v569_v55 = vrot.slane %v3298_v18, %v3333_v44  ;;  %v2668_v18 = vld [vmem:[%s3748_s4 + $0x2e0] ss:$16 sps:$4 sm:$0xff]  }
  0x6f   :  { %1381 = vmatpush1.bf16.msra.mxu0 %v2596_v48  ;;  %v2646_v48 = vld [vmem:[%s3748_s4 + $0x264] ss:$16 sps:$4 sm:$0xff]  }
  0x70   :  { %1382 = vmatprep.subr.bf16.mxu0 %v2604_v49  ;;  %1463 = vmatpush1.bf16.msra.mxu1 %v2599_v63  ;;  %v2649_v49 = vld [vmem:[%s3748_s4 + $0x26c] ss:$16 sps:$4 sm:$0xff]  }
  0x71   :  { %1464 = vmatprep.subr.bf16.mxu1 %v2607_v0  ;;  %v2658_v0 = vld [vmem:[%s3748_s4 + $0x2a4] ss:$16 sps:$4 sm:$0xff]  }
  0x73   :  { %1383 = vmatpush1.bf16.msra.mxu0 %v2602_v52  ;;  %v547_v52 = vrot.slane %v3290_v16, %v3342_v47  ;;  %v2673_v16 = vld [vmem:[%s3748_s4 + $0x2ec] ss:$16 sps:$4 sm:$0xff]  }
  0x74   :  { %1384 = vmatprep.subr.bf16.mxu0 %v2610_v53  ;;  %1465 = vmatpush1.bf16.msra.mxu1 %v2605_v1  ;;  %v2652_v53 = vld [vmem:[%s3748_s4 + $0x284] ss:$16 sps:$4 sm:$0xff]   ;;  %v2661_v1 = vld [vmem:[%s3748_s4 + $0x2ac] ss:$16 sps:$4 sm:$0xff]  }
  0x75   :  { %1466 = vmatprep.subr.bf16.mxu1 %v2613_v2 }
  0x77   :  { %1385 = vmatpush1.bf16.msra.mxu0 %v2608_v56 }
  0x78   :  { %1467 = vmatpush1.bf16.msra.mxu1 %v2611_v3  ;;  %1386 = vmatprep.subr.bf16.mxu0 %v2616_v4 }
  0x79   :  { %1468 = vmatprep.subr.bf16.mxu1 %v2619_v5  ;;  %v2656_v5 = vld [vmem:[%s3748_s4 + $0x2a0] ss:$16 sps:$4 sm:$0xff]  }
  0x7b   :  { %1387 = vmatpush1.bf16.msra.mxu0 %v2614_v6  ;;  %v2659_v6 = vld [vmem:[%s3748_s4 + $0x2a8] ss:$16 sps:$4 sm:$0xff]  }
  0x7c   :  { %1469 = vmatpush1.bf16.msra.mxu1 %v2617_v7  ;;  %1388 = vmatprep.subr.bf16.mxu0 %v2622_v8  ;;  %v2664_v8 = vld [vmem:[%s3748_s4 + $0x2c4] ss:$16 sps:$4 sm:$0xff]  }
  0x7d   :  { %1470 = vmatprep.subr.bf16.mxu1 %v2625_v9  ;;  %v2667_v9 = vld [vmem:[%s3748_s4 + $0x2cc] ss:$16 sps:$4 sm:$0xff]  }
  0x7f   :  { %1389 = vmatpush1.bf16.msra.mxu0 %v2620_v10 }
  0x80   :  { %1471 = vmatpush1.bf16.msra.mxu1 %v2623_v11  ;;  %1399 = vmatprep.subr.bf16.mxu0 %v2628_v12  ;;  %v2662_v11 = vld [vmem:[%s3748_s4 + $0x2c0] ss:$16 sps:$4 sm:$0xff]   ;;  %v2665_v12 = vld [vmem:[%s3748_s4 + $0x2c8] ss:$16 sps:$4 sm:$0xff]  }
  0x81   :  { %1481 = vmatprep.subr.bf16.mxu1 %v2631_v13  ;;  %v2670_v13 = vld [vmem:[%s3748_s4 + $0x2e4] ss:$16 sps:$4 sm:$0xff]  }
 0x115   :  { %v482_v23 = vpop.f32.mrb[0].mxu0 }
 0x116   :  { %v552_v25 = vmul.f32 %v535_v19, %v482_v23  ;;  %v484_v26 = vpop.f32.mrb[1].mxu0  ;;  %v523_v56 = vpop.f32.mrb[0].mxu1  ;;  %v2671_v19 = vld [vmem:[%s3748_s4 + $0x2e8] ss:$16 sps:$4 sm:$0xff]   ;;  %v2674_v23 = vld [vmem:[%s3748_s4 + $0x300] ss:$16 sps:$4 sm:$0xff]  }
 0x117   :  { %v553_v27 = vmul.f32 %v539_v20, %v484_v26  ;;  %v486_v28 = vpop.f32.mrb[2].mxu0  ;;  %v554_v58 = vmul.f32 %v543_v50, %v523_v56  ;;  %v525_v59 = vpop.f32.mrb[1].mxu1  ;;  %v2676_v20 = vld [vmem:[%s3748_s4 + $0x304] ss:$16 sps:$4 sm:$0xff]   ;;  %v2685_v26 = vld [vmem:[%s3748_s4 + $0x32c] ss:$16 sps:$4 sm:$0xff]  }
 0x118   :  { %v578_v29 = vadd.f32 %v561_v22, %v552_v25  ;;  %v487_v30 = vpop.f32.mrb[3].mxu0  ;;  %v555_v62 = vmul.f32 %v547_v52, %v525_v59  ;;  %v527_v63 = vpop.f32.mrb[2].mxu1  ;;  %v2679_v22 = vld [vmem:[%s3748_s4 + $0x30c] ss:$16 sps:$4 sm:$0xff]   ;;  %v2682_v25 = vld [vmem:[%s3748_s4 + $0x324] ss:$16 sps:$4 sm:$0xff]  }
 0x119   :  { %v579_v31 = vadd.f32 %v565_v24, %v553_v27  ;;  %v3382_v2 = vadd.f32 %v569_v55, %v554_v58  ;;  %v528_v3 = vpop.f32.mrb[3].mxu1  ;;  %v2677_v24 = vld [vmem:[%s3748_s4 + $0x308] ss:$16 sps:$4 sm:$0xff]   ;;  %v2680_v27 = vld [vmem:[%s3748_s4 + $0x320] ss:$16 sps:$4 sm:$0xff]  }
 0x11a   :  { %v582_v32 = vmax.f32 %v578_v29, 0.0  ;;  %v581_v4 = vadd.f32 %v573_v57, %v555_v62  ;;  %v2683_v28 = vld [vmem:[%s3748_s4 + $0x328] ss:$16 sps:$4 sm:$0xff]   ;;  %v2688_v29 = vld [vmem:[%s3748_s4 + $0x344] ss:$16 sps:$4 sm:$0xff]  }
 0x11b   :  { %v583_v33 = vmax.f32 %v579_v31, 0.0  ;;  %v2691_v30 = vld [vmem:[%s3748_s4 + $0x34c] ss:$16 sps:$4 sm:$0xff]   ;;  %v2686_v31 = vld [vmem:[%s3748_s4 + $0x340] ss:$16 sps:$4 sm:$0xff]   ;;  %v584_v52 = vmax.f32 %v3382_v2, 0.0 }
 0x11c   :  { %v586_v37 = vpack.c.bf16 %v582_v32, %v582_v32  ;;  %v585_v7 = vmax.f32 %v581_v4, 0.0  ;;  %v2689_v32 = vld [vmem:[%s3748_s4 + $0x348] ss:$16 sps:$4 sm:$0xff]   ;;  %v2724_v56 = vld [vmem:[%s3749_s8 + $0x4] ss:$16 sps:$4 sm:$0xff]  }
 0x11d   :  { %v587_v34 = vpack.c.bf16 %v583_v33, %v583_v33  ;;  %v2694_v33 = vld [vmem:[%s3748_s4 + $0x364] ss:$16 sps:$4 sm:$0xff]   ;;  %v2713_v50 = vld [vmem:[%s3748_s4 + $0x3c8] ss:$16 sps:$4 sm:$0xff]   ;;  %v2727_v57 = vld [vmem:[%s3749_s8 + $0xc] ss:$16 sps:$4 sm:$0xff]   ;;  %v588_v59 = vpack.c.bf16 %v584_v52, %v584_v52 }
 0x11e   :  { %v589_v10 = vpack.c.bf16 %v585_v7, %v585_v7  ;;  %v2719_v55 = vld [vmem:[%s3748_s4 + $0x3e8] ss:$16 sps:$4 sm:$0xff]   ;;  %v2730_v62 = vld [vmem:[%s3749_s8 + $0x24] ss:$16 sps:$4 sm:$0xff]   ;;  %v2733_v63 = vld [vmem:[%s3749_s8 + $0x2c] ss:$16 sps:$4 sm:$0xff]  }
 0x11f   :  { %1390 = vmatprep.mubr.bf16.mxu0 %v587_v34  ;;  %1472 = vmatprep.mubr.bf16.mxu1 %v587_v34  ;;  %v2697_v34 = vld [vmem:[%s3748_s4 + $0x36c] ss:$16 sps:$4 sm:$0xff]   ;;  %v2731_v2 = vld [vmem:[%s3749_s8 + $0x28] ss:$16 sps:$4 sm:$0xff]   ;;  %v2736_v3 = vld [vmem:[%s3749_s8 + $0x44] ss:$16 sps:$4 sm:$0xff]  }
 0x120   :  { %1391 = vmatmul.mubr.bf16.vlgmr.msra.gmra.mrb[4].mxu0 %v586_v37  ;;  %1473 = vmatmul.mubr.bf16.vlgmr.msra.gmra.mrb[4].mxu1 %v586_v37  ;;  %v2700_v37 = vld [vmem:[%s3748_s4 + $0x384] ss:$16 sps:$4 sm:$0xff]   ;;  %v2739_v4 = vld [vmem:[%s3749_s8 + $0x4c] ss:$16 sps:$4 sm:$0xff]  }
 0x121   :  { %1400 = vmatpush1.bf16.msra.mxu0 %v2626_v35  ;;  %1482 = vmatpush1.bf16.msra.mxu1 %v2629_v36  ;;  %v2692_v35 = vld [vmem:[%s3748_s4 + $0x360] ss:$16 sps:$4 sm:$0xff]   ;;  %v2695_v36 = vld [vmem:[%s3748_s4 + $0x368] ss:$16 sps:$4 sm:$0xff]   ;;  %v2742_v7 = vld [vmem:[%s3749_s8 + $0x64] ss:$16 sps:$4 sm:$0xff]  }
 0x122   :  { %1401 = vmatprep.subr.bf16.mxu0 %v2634_v38  ;;  %1483 = vmatprep.subr.bf16.mxu1 %v2637_v39  ;;  %v2703_v38 = vld [vmem:[%s3748_s4 + $0x38c] ss:$16 sps:$4 sm:$0xff]   ;;  %v2698_v39 = vld [vmem:[%s3748_s4 + $0x380] ss:$16 sps:$4 sm:$0xff]   ;;  %v2802_v52 = vld [vmem:[%s3749_s8 + $0x1a4] ss:$16 sps:$4 sm:$0xff]  }
 0x123   :  { %1431 = vmatprep.mubr.bf16.mxu0 %v589_v10  ;;  %1513 = vmatprep.mubr.bf16.mxu1 %v589_v10  ;;  %v2743_v10 = vld [vmem:[%s3749_s8 + $0x68] ss:$16 sps:$4 sm:$0xff]  }
 0x125   :  { %1402 = vmatpush1.bf16.msra.mxu0 %v2632_v40  ;;  %1484 = vmatpush1.bf16.msra.mxu1 %v2635_v41  ;;  %v2701_v40 = vld [vmem:[%s3748_s4 + $0x388] ss:$16 sps:$4 sm:$0xff]   ;;  %v2706_v41 = vld [vmem:[%s3748_s4 + $0x3a4] ss:$16 sps:$4 sm:$0xff]  }
 0x126   :  { %1403 = vmatprep.subr.bf16.mxu0 %v2640_v42  ;;  %1485 = vmatprep.subr.bf16.mxu1 %v2643_v43  ;;  %v2709_v42 = vld [vmem:[%s3748_s4 + $0x3ac] ss:$16 sps:$4 sm:$0xff]   ;;  %v2704_v43 = vld [vmem:[%s3748_s4 + $0x3a0] ss:$16 sps:$4 sm:$0xff]  }
 0x129   :  { %1404 = vmatpush1.bf16.msra.mxu0 %v2638_v45  ;;  %1486 = vmatpush1.bf16.msra.mxu1 %v2641_v46  ;;  %v2707_v45 = vld [vmem:[%s3748_s4 + $0x3a8] ss:$16 sps:$4 sm:$0xff]   ;;  %v2712_v46 = vld [vmem:[%s3748_s4 + $0x3c4] ss:$16 sps:$4 sm:$0xff]  }
 0x12a   :  { %1405 = vmatprep.subr.bf16.mxu0 %v2646_v48  ;;  %1487 = vmatprep.subr.bf16.mxu1 %v2649_v49  ;;  %v2715_v48 = vld [vmem:[%s3748_s4 + $0x3cc] ss:$16 sps:$4 sm:$0xff]   ;;  %v2710_v49 = vld [vmem:[%s3748_s4 + $0x3c0] ss:$16 sps:$4 sm:$0xff]  }
 0x12d   :  { %1406 = vmatpush1.bf16.msra.mxu0 %v2644_v15  ;;  %1488 = vmatpush1.bf16.msra.mxu1 %v2647_v51  ;;  %v2718_v15 = vld [vmem:[%s3748_s4 + $0x3e4] ss:$16 sps:$4 sm:$0xff]   ;;  %v2721_v51 = vld [vmem:[%s3748_s4 + $0x3ec] ss:$16 sps:$4 sm:$0xff]  }
 0x12e   :  { %1407 = vmatprep.subr.bf16.mxu0 %v2652_v53  ;;  %1489 = vmatprep.subr.bf16.mxu1 %v2655_v54  ;;  %v3508_v53 = vld.sshfl [vmem:[%s3752_s7] sm:$0x11 pattern:$0x75316420] }
 0x12f   :  { %v2716_v54 = vld [vmem:[%s3748_s4 + $0x3e0] ss:$16 sps:$4 sm:$0xff]   ;;  %v1647_v58 = vcombine.high %v3508_v53, %v3508_v53 }
 0x131   :  { %1408 = vmatpush1.bf16.msra.mxu0 %v2650_v60  ;;  %1490 = vmatpush1.bf16.msra.mxu1 %v2653_v61  ;;  %v2722_v60 = vld [vmem:[%s3749_s8] ss:$16 sps:$4 sm:$0xff]   ;;  %v2725_v61 = vld [vmem:[%s3749_s8 + $0x8] ss:$16 sps:$4 sm:$0xff]  }
 0x132   :  { %1409 = vmatprep.subr.bf16.mxu0 %v2658_v0  ;;  %1491 = vmatprep.subr.bf16.mxu1 %v2661_v1  ;;  %v1661_v0 = vrot.slane %v1647_v58, %v2930_v21  ;;  %v2728_v1 = vld [vmem:[%s3749_s8 + $0x20] ss:$16 sps:$4 sm:$0xff]   ;;  %v2811_v58 = vld [vmem:[%s3749_s8 + $0x1cc] ss:$16 sps:$4 sm:$0xff]  }
 0x135   :  { %1410 = vmatpush1.bf16.msra.mxu0 %v2656_v5  ;;  %1492 = vmatpush1.bf16.msra.mxu1 %v2659_v6  ;;  %v2734_v5 = vld [vmem:[%s3749_s8 + $0x40] ss:$16 sps:$4 sm:$0xff]   ;;  %v2737_v6 = vld [vmem:[%s3749_s8 + $0x48] ss:$16 sps:$4 sm:$0xff]  }
 0x136   :  { %1411 = vmatprep.subr.bf16.mxu0 %v2664_v8  ;;  %1493 = vmatprep.subr.bf16.mxu1 %v2667_v9  ;;  %v2745_v8 = vld [vmem:[%s3749_s8 + $0x6c] ss:$16 sps:$4 sm:$0xff]   ;;  %v2740_v9 = vld [vmem:[%s3749_s8 + $0x60] ss:$16 sps:$4 sm:$0xff]  }
 0x139   :  { %1412 = vmatpush1.bf16.msra.mxu0 %v2662_v11  ;;  %1494 = vmatpush1.bf16.msra.mxu1 %v2665_v12  ;;  %v2748_v11 = vld [vmem:[%s3749_s8 + $0x84] ss:$16 sps:$4 sm:$0xff]   ;;  %v2751_v12 = vld [vmem:[%s3749_s8 + $0x8c] ss:$16 sps:$4 sm:$0xff]  }
 0x13a   :  { %1413 = vmatprep.subr.bf16.mxu0 %v2670_v13  ;;  %1495 = vmatprep.subr.bf16.mxu1 %v2673_v16  ;;  %v2746_v13 = vld [vmem:[%s3749_s8 + $0x80] ss:$16 sps:$4 sm:$0xff]   ;;  %v2749_v16 = vld [vmem:[%s3749_s8 + $0x88] ss:$16 sps:$4 sm:$0xff]  }
 0x13d   :  { %1414 = vmatpush1.bf16.msra.mxu0 %v2668_v18  ;;  %1496 = vmatpush1.bf16.msra.mxu1 %v2671_v19  ;;  %v2754_v18 = vld [vmem:[%s3749_s8 + $0xa4] ss:$16 sps:$4 sm:$0xff]   ;;  %v2757_v19 = vld [vmem:[%s3749_s8 + $0xac] ss:$16 sps:$4 sm:$0xff]  }
 0x13e   :  { %1415 = vmatprep.subr.bf16.mxu0 %v2676_v20  ;;  %1497 = vmatprep.subr.bf16.mxu1 %v2679_v22  ;;  %v2752_v20 = vld [vmem:[%s3749_s8 + $0xa0] ss:$16 sps:$4 sm:$0xff]   ;;  %v2755_v22 = vld [vmem:[%s3749_s8 + $0xa8] ss:$16 sps:$4 sm:$0xff]  }
 0x141   :  { %1416 = vmatpush1.bf16.msra.mxu0 %v2674_v23  ;;  %1498 = vmatpush1.bf16.msra.mxu1 %v2677_v24  ;;  %v2760_v23 = vld [vmem:[%s3749_s8 + $0xc4] ss:$16 sps:$4 sm:$0xff]   ;;  %v2763_v24 = vld [vmem:[%s3749_s8 + $0xcc] ss:$16 sps:$4 sm:$0xff]  }
 0x142   :  { %1417 = vmatprep.subr.bf16.mxu0 %v2682_v25  ;;  %1499 = vmatprep.subr.bf16.mxu1 %v2685_v26  ;;  %v2758_v25 = vld [vmem:[%s3749_s8 + $0xc0] ss:$16 sps:$4 sm:$0xff]   ;;  %v2761_v26 = vld [vmem:[%s3749_s8 + $0xc8] ss:$16 sps:$4 sm:$0xff]  }
 0x145   :  { %1418 = vmatpush1.bf16.msra.mxu0 %v2680_v27  ;;  %1500 = vmatpush1.bf16.msra.mxu1 %v2683_v28  ;;  %v2766_v27 = vld [vmem:[%s3749_s8 + $0xe4] ss:$16 sps:$4 sm:$0xff]   ;;  %v2769_v28 = vld [vmem:[%s3749_s8 + $0xec] ss:$16 sps:$4 sm:$0xff]  }
 0x146   :  { %1419 = vmatprep.subr.bf16.mxu0 %v2688_v29  ;;  %1501 = vmatprep.subr.bf16.mxu1 %v2691_v30  ;;  %v2764_v29 = vld [vmem:[%s3749_s8 + $0xe0] ss:$16 sps:$4 sm:$0xff]   ;;  %v2767_v30 = vld [vmem:[%s3749_s8 + $0xe8] ss:$16 sps:$4 sm:$0xff]  }
 0x149   :  { %1420 = vmatpush1.bf16.msra.mxu0 %v2686_v31  ;;  %1502 = vmatpush1.bf16.msra.mxu1 %v2689_v32  ;;  %v2772_v31 = vld [vmem:[%s3749_s8 + $0x104] ss:$16 sps:$4 sm:$0xff]   ;;  %v2775_v32 = vld [vmem:[%s3749_s8 + $0x10c] ss:$16 sps:$4 sm:$0xff]  }
 0x14a   :  { %1421 = vmatprep.subr.bf16.mxu0 %v2694_v33  ;;  %1503 = vmatprep.subr.bf16.mxu1 %v2697_v34  ;;  %v2770_v33 = vld [vmem:[%s3749_s8 + $0x100] ss:$16 sps:$4 sm:$0xff]   ;;  %v2773_v34 = vld [vmem:[%s3749_s8 + $0x108] ss:$16 sps:$4 sm:$0xff]  }
 0x14d   :  { %1422 = vmatpush1.bf16.msra.mxu0 %v2692_v35  ;;  %1504 = vmatpush1.bf16.msra.mxu1 %v2695_v36  ;;  %v2778_v35 = vld [vmem:[%s3749_s8 + $0x124] ss:$16 sps:$4 sm:$0xff]   ;;  %v2781_v36 = vld [vmem:[%s3749_s8 + $0x12c] ss:$16 sps:$4 sm:$0xff]  }
 0x14e   :  { %1423 = vmatprep.subr.bf16.mxu0 %v2700_v37  ;;  %1505 = vmatprep.subr.bf16.mxu1 %v2703_v38  ;;  %v2776_v37 = vld [vmem:[%s3749_s8 + $0x120] ss:$16 sps:$4 sm:$0xff]   ;;  %v2779_v38 = vld [vmem:[%s3749_s8 + $0x128] ss:$16 sps:$4 sm:$0xff]  }
 0x151   :  { %1424 = vmatpush1.bf16.msra.mxu0 %v2698_v39  ;;  %1506 = vmatpush1.bf16.msra.mxu1 %v2701_v40  ;;  %v2784_v39 = vld [vmem:[%s3749_s8 + $0x144] ss:$16 sps:$4 sm:$0xff]   ;;  %v2787_v40 = vld [vmem:[%s3749_s8 + $0x14c] ss:$16 sps:$4 sm:$0xff]  }
 0x152   :  { %1425 = vmatprep.subr.bf16.mxu0 %v2706_v41  ;;  %1507 = vmatprep.subr.bf16.mxu1 %v2709_v42  ;;  %v2782_v41 = vld [vmem:[%s3749_s8 + $0x140] ss:$16 sps:$4 sm:$0xff]   ;;  %v2785_v42 = vld [vmem:[%s3749_s8 + $0x148] ss:$16 sps:$4 sm:$0xff]  }
 0x155   :  { %1426 = vmatpush1.bf16.msra.mxu0 %v2704_v43  ;;  %1508 = vmatpush1.bf16.msra.mxu1 %v2707_v45  ;;  %v2790_v43 = vld [vmem:[%s3749_s8 + $0x164] ss:$16 sps:$4 sm:$0xff]   ;;  %v2793_v45 = vld [vmem:[%s3749_s8 + $0x16c] ss:$16 sps:$4 sm:$0xff]  }
 0x156   :  { %1427 = vmatprep.subr.bf16.mxu0 %v2712_v46  ;;  %1509 = vmatprep.subr.bf16.mxu1 %v2715_v48  ;;  %v2788_v46 = vld [vmem:[%s3749_s8 + $0x160] ss:$16 sps:$4 sm:$0xff]   ;;  %v2791_v48 = vld [vmem:[%s3749_s8 + $0x168] ss:$16 sps:$4 sm:$0xff]  }
 0x159   :  { %1428 = vmatpush1.bf16.msra.mxu0 %v2710_v49  ;;  %1510 = vmatpush1.bf16.msra.mxu1 %v2713_v50  ;;  %v2796_v49 = vld [vmem:[%s3749_s8 + $0x184] ss:$16 sps:$4 sm:$0xff]   ;;  %v2799_v50 = vld [vmem:[%s3749_s8 + $0x18c] ss:$16 sps:$4 sm:$0xff]  }
 0x15a   :  { %1429 = vmatprep.subr.bf16.mxu0 %v2718_v15  ;;  %1511 = vmatprep.subr.bf16.mxu1 %v2721_v51  ;;  %v2794_v15 = vld [vmem:[%s3749_s8 + $0x180] ss:$16 sps:$4 sm:$0xff]   ;;  %v2797_v51 = vld [vmem:[%s3749_s8 + $0x188] ss:$16 sps:$4 sm:$0xff]  }
 0x15d   :  { %1430 = vmatpush1.bf16.msra.mxu0 %v2716_v54  ;;  %1512 = vmatpush1.bf16.msra.mxu1 %v2719_v55  ;;  %v2805_v54 = vld [vmem:[%s3749_s8 + $0x1ac] ss:$16 sps:$4 sm:$0xff]   ;;  %v2800_v55 = vld [vmem:[%s3749_s8 + $0x1a0] ss:$16 sps:$4 sm:$0xff]  }
 0x15e   :  { %1984 = vmatprep.subr.bf16.mxu0 %v2724_v56  ;;  %2025 = vmatprep.subr.bf16.mxu1 %v2727_v57  ;;  %v2803_v56 = vld [vmem:[%s3749_s8 + $0x1a8] ss:$16 sps:$4 sm:$0xff]   ;;  %v2808_v57 = vld [vmem:[%s3749_s8 + $0x1c4] ss:$16 sps:$4 sm:$0xff]  }
 0x160   :  { %1432 = vmatmul.mubr.bf16.vlgmr.msra.gmra.mrb[4].mxu0 %v588_v59  ;;  %1514 = vmatmul.mubr.bf16.vlgmr.msra.gmra.mrb[4].mxu1 %v588_v59  ;;  %v2806_v59 = vld [vmem:[%s3749_s8 + $0x1c0] ss:$16 sps:$4 sm:$0xff]  }
 0x161   :  { %1985 = vmatpush1.bf16.msra.mxu0 %v2722_v60  ;;  %2026 = vmatpush1.bf16.msra.mxu1 %v2725_v61  ;;  %v2809_v60 = vld [vmem:[%s3749_s8 + $0x1c8] ss:$16 sps:$4 sm:$0xff]   ;;  %v2814_v61 = vld [vmem:[%s3749_s8 + $0x1e4] ss:$16 sps:$4 sm:$0xff]  }
 0x162   :  { %1986 = vmatprep.subr.bf16.mxu0 %v2730_v62  ;;  %2027 = vmatprep.subr.bf16.mxu1 %v2733_v63  ;;  %v2817_v62 = vld [vmem:[%s3749_s8 + $0x1ec] ss:$16 sps:$4 sm:$0xff]   ;;  %v2812_v63 = vld [vmem:[%s3749_s8 + $0x1e0] ss:$16 sps:$4 sm:$0xff]  }
 0x163   :  { %2016 = vmatprep.mubr.bf16.mxu0 %v1661_v0  ;;  %2057 = vmatprep.mubr.bf16.mxu1 %v1661_v0  ;;  %v2815_v0 = vld [vmem:[%s3749_s8 + $0x1e8] ss:$16 sps:$4 sm:$0xff]  }
 0x165   :  { %1987 = vmatpush1.bf16.msra.mxu0 %v2728_v1  ;;  %2028 = vmatpush1.bf16.msra.mxu1 %v2731_v2  ;;  %v1654_v1 = vrot.slane %v3508_v53, %v2930_v21  ;;  %v1548_v53 = vld [vmem:[%s3754_s6] sm:$0xf] }
 0x166   :  { %1988 = vmatprep.subr.bf16.mxu0 %v2736_v3  ;;  %2029 = vmatprep.subr.bf16.mxu1 %v2739_v4 }
 0x169   :  { %1989 = vmatpush1.bf16.msra.mxu0 %v2734_v5  ;;  %2030 = vmatpush1.bf16.msra.mxu1 %v2737_v6 }
 0x16a   :  { %1990 = vmatprep.subr.bf16.mxu0 %v2742_v7  ;;  %2031 = vmatprep.subr.bf16.mxu1 %v2745_v8 }
 0x16d   :  { %1991 = vmatpush1.bf16.msra.mxu0 %v2740_v9  ;;  %2032 = vmatpush1.bf16.msra.mxu1 %v2743_v10  ;;  %v1522_v10 = vld [vmem:[%s3753_s5] sm:$0xf] }
 0x16e   :  { %1992 = vmatprep.subr.bf16.mxu0 %v2748_v11  ;;  %2033 = vmatprep.subr.bf16.mxu1 %v2751_v12  ;;  %v2066_v11 = vld [vmem:[%s3755_s9] sm:$0xf]  ;;  %v1527_v12 = vrot.slane %v1522_v10, %v3285_v14 }
 0x171   :  { %1993 = vmatpush1.bf16.msra.mxu0 %v2746_v13  ;;  %2034 = vmatpush1.bf16.msra.mxu1 %v2749_v16  ;;  %v1535_v13 = vrot.slane %v1522_v10, %v3333_v44  ;;  %v1531_v16 = vrot.slane %v1522_v10, %v3293_v17 }
 0x172   :  { %1994 = vmatprep.subr.bf16.mxu0 %v2754_v18  ;;  %2035 = vmatprep.subr.bf16.mxu1 %v2757_v19  ;;  %v1539_v18 = vrot.slane %v1522_v10, %v3342_v47  ;;  %v2092_v19 = vld [vmem:[%s3756_s10] sm:$0xf] }
 0x175   :  { %1995 = vmatpush1.bf16.msra.mxu0 %v2752_v20  ;;  %2036 = vmatpush1.bf16.msra.mxu1 %v2755_v22  ;;  %v1553_v20 = vrot.slane %v1548_v53, %v3285_v14  ;;  %v1561_v22 = vrot.slane %v1548_v53, %v3333_v44 }
 0x176   :  { %1996 = vmatprep.subr.bf16.mxu0 %v2760_v23  ;;  %2037 = vmatprep.subr.bf16.mxu1 %v2763_v24  ;;  %v2071_v23 = vrot.slane %v2066_v11, %v3285_v14  ;;  %v2079_v24 = vrot.slane %v2066_v11, %v3333_v44 }
 0x179   :  { %1997 = vmatpush1.bf16.msra.mxu0 %v2758_v25  ;;  %2038 = vmatpush1.bf16.msra.mxu1 %v2761_v26  ;;  %v1557_v25 = vrot.slane %v1548_v53, %v3293_v17  ;;  %v1565_v26 = vrot.slane %v1548_v53, %v3342_v47 }
 0x17a   :  { %1998 = vmatprep.subr.bf16.mxu0 %v2766_v27  ;;  %2039 = vmatprep.subr.bf16.mxu1 %v2769_v28  ;;  %v2075_v27 = vrot.slane %v2066_v11, %v3293_v17  ;;  %v2083_v28 = vrot.slane %v2066_v11, %v3342_v47 }
 0x17d   :  { %1999 = vmatpush1.bf16.msra.mxu0 %v2764_v29  ;;  %2040 = vmatpush1.bf16.msra.mxu1 %v2767_v30 }
 0x17e   :  { %2000 = vmatprep.subr.bf16.mxu0 %v2772_v31  ;;  %2041 = vmatprep.subr.bf16.mxu1 %v2775_v32  ;;  %v2097_v31 = vrot.slane %v2092_v19, %v3285_v14  ;;  %v2105_v32 = vrot.slane %v2092_v19, %v3333_v44 }
 0x181   :  { %2001 = vmatpush1.bf16.msra.mxu0 %v2770_v33  ;;  %2042 = vmatpush1.bf16.msra.mxu1 %v2773_v34 }
 0x182   :  { %2002 = vmatprep.subr.bf16.mxu0 %v2778_v35  ;;  %2043 = vmatprep.subr.bf16.mxu1 %v2781_v36 }
 0x185   :  { %2003 = vmatpush1.bf16.msra.mxu0 %v2776_v37  ;;  %2044 = vmatpush1.bf16.msra.mxu1 %v2779_v38  ;;  %v2101_v37 = vrot.slane %v2092_v19, %v3293_v17  ;;  %v2109_v38 = vrot.slane %v2092_v19, %v3342_v47 }
 0x186   :  { %2004 = vmatprep.subr.bf16.mxu0 %v2784_v39  ;;  %2045 = vmatprep.subr.bf16.mxu1 %v2787_v40 }
 0x189   :  { %2005 = vmatpush1.bf16.msra.mxu0 %v2782_v41  ;;  %2046 = vmatpush1.bf16.msra.mxu1 %v2785_v42 }
 0x18a   :  { %2006 = vmatprep.subr.bf16.mxu0 %v2790_v43  ;;  %2047 = vmatprep.subr.bf16.mxu1 %v2793_v45 }
 0x18d   :  { %2007 = vmatpush1.bf16.msra.mxu0 %v2788_v46  ;;  %2048 = vmatpush1.bf16.msra.mxu1 %v2791_v48 }
 0x18e   :  { %2008 = vmatprep.subr.bf16.mxu0 %v2796_v49  ;;  %2049 = vmatprep.subr.bf16.mxu1 %v2799_v50 }
 0x191   :  { %2009 = vmatpush1.bf16.msra.mxu0 %v2794_v15  ;;  %2050 = vmatpush1.bf16.msra.mxu1 %v2797_v51 }
 0x192   :  { %2010 = vmatprep.subr.bf16.mxu0 %v2802_v52  ;;  %2051 = vmatprep.subr.bf16.mxu1 %v2805_v54 }
 0x195   :  { %2011 = vmatpush1.bf16.msra.mxu0 %v2800_v55  ;;  %2052 = vmatpush1.bf16.msra.mxu1 %v2803_v56 }
 0x196   :  { %2012 = vmatprep.subr.bf16.mxu0 %v2808_v57  ;;  %2053 = vmatprep.subr.bf16.mxu1 %v2811_v58 }
 0x199   :  { %2013 = vmatpush1.bf16.msra.mxu0 %v2806_v59  ;;  %2054 = vmatpush1.bf16.msra.mxu1 %v2809_v60 }
 0x19a   :  { %2014 = vmatprep.subr.bf16.mxu0 %v2814_v61  ;;  %2055 = vmatprep.subr.bf16.mxu1 %v2817_v62 }
 0x19d   :  { %2015 = vmatpush1.bf16.msra.mxu0 %v2812_v63  ;;  %2056 = vmatpush1.bf16.msra.mxu1 %v2815_v0 }
 0x1a0   :  { %2017 = vmatmul.mubr.bf16.vlgmr.msra.gmra.mrb[8].mxu0 %v1654_v1  ;;  %2058 = vmatmul.mubr.bf16.vlgmr.msra.gmra.mrb[8].mxu1 %v1654_v1 }
 0x233   :  { %v1433_v2 = vpop.f32.mrb[4].mxu0  ;;  %v1515_v3 = vpop.f32.mrb[4].mxu1 }
 0x234   :  { %v1435_v4 = vpop.f32.mrb[5].mxu0  ;;  %v1517_v5 = vpop.f32.mrb[5].mxu1  ;;  %v1544_v29 = vmul.f32 %v1527_v12, %v1433_v2  ;;  %v1546_v30 = vmul.f32 %v1535_v13, %v1515_v3 }
 0x235   :  { %v1437_v6 = vpop.f32.mrb[6].mxu0  ;;  %v1519_v7 = vpop.f32.mrb[6].mxu1  ;;  %v1545_v33 = vmul.f32 %v1531_v16, %v1435_v4  ;;  %v1547_v34 = vmul.f32 %v1539_v18, %v1517_v5 }
 0x236   :  { %v1438_v8 = vpop.f32.mrb[7].mxu0  ;;  %v1520_v9 = vpop.f32.mrb[7].mxu1  ;;  %v1570_v49 = vadd.f32 %v1553_v20, %v1544_v29  ;;  %v1572_v14 = vadd.f32 %v1561_v22, %v1546_v30 }
 0x237   :  { %v1571_v52 = vadd.f32 %v1557_v25, %v1545_v33  ;;  %v1573_v54 = vadd.f32 %v1565_v26, %v1547_v34 }
 0x273   :  { %v2018_v35 = vpop.f32.mrb[8].mxu0  ;;  %v2059_v36 = vpop.f32.mrb[8].mxu1 }
 0x274   :  { %v2088_v39 = vmul.f32 %v2071_v23, %v2018_v35  ;;  %v2090_v40 = vmul.f32 %v2079_v24, %v2059_v36  ;;  %v2020_v41 = vpop.f32.mrb[9].mxu0  ;;  %v2061_v42 = vpop.f32.mrb[9].mxu1 }
 0x275   :  { %v2089_v43 = vmul.f32 %v2075_v27, %v2020_v41  ;;  %v2091_v45 = vmul.f32 %v2083_v28, %v2061_v42  ;;  %v2022_v46 = vpop.f32.mrb[10].mxu0  ;;  %v2063_v48 = vpop.f32.mrb[10].mxu1 }
 0x276   :  { %v2114_v50 = vadd.f32 %v2097_v31, %v2088_v39  ;;  %v2116_v44 = vadd.f32 %v2105_v32, %v2090_v40  ;;  %v2023_v15 = vpop.f32.mrb[11].mxu0  ;;  %v2064_v51 = vpop.f32.mrb[11].mxu1 }
 0x277   :  { %v2115_v55 = vadd.f32 %v2101_v37, %v2089_v43  ;;  %v2117_v17 = vadd.f32 %v2109_v38, %v2091_v45 }
 0x278   :  { %v2118_v56 = vadd.f32 %v2114_v50, %v1570_v49  ;;  %v2120_v47 = vadd.f32 %v2116_v44, %v1572_v14 }
 0x279   :  { %v2119_v57 = vadd.f32 %v2115_v55, %v1571_v52  ;;  %v2121_v58 = vadd.f32 %v2117_v17, %v1573_v54 }
 0x27a   :  { %v2122_v59 = vmax.f32 %v2118_v56, 0.0  ;;  %v2124_v60 = vmax.f32 %v2120_v47, 0.0 }
 0x27b   :  { %v2123_v61 = vmax.f32 %v2119_v57, 0.0  ;;  %v2125_v62 = vmax.f32 %v2121_v58, 0.0 }
 0x27d   :  { %v2422_v63 = vpack.c.bf16 %v2123_v61, %v2122_v59  ;;  %v2423_v0 = vpack.c.bf16 %v2125_v62, %v2124_v60 }
 0x27f   :  { %v2142_v1 = vrot.slane %v2422_v63, %v2930_v21  ;;  %v2149_v2 = vrot.slane %v2423_v0, %v2930_v21 }
 0x281   :  { %v2150_v3 = vcombine.low %v2142_v1, %v2149_v2 }
 0x283   :  { %2424 = vst.sshfl [vmem:[%s3757_s11] sm:$0x55 pattern:$0x73625140] %v2150_v3 }

// kernel: torchvision_resnet18_forward.28
= control target key start
LH: loop header
LB: loop body
LE: loop exit
PB: predicated region body
PF: predicated region fallthrough
CT: control target
= control target key end

     0   :  { %v2767_v38 = vmov 1966171168   ;;  %v170_v40 = vlaneseq  ;;  %s3650_s1 = inlined_call_operand.vmem [shape: bf16[512,512], index: 1, kind: input, shape index: {}]   ;;  %s3651_s0 = inlined_call_operand.vmem [shape: bf16[2,512], index: 0, kind: input, shape index: {}, may-alias: {0,7}]   ;;  %s3652_s4 = inlined_call_operand.vmem [shape: bf16[512,512], index: 4, kind: input, shape index: {}]   ;;  %s3653_s2 = inlined_call_operand.vmem [shape: f32[1,512], index: 2, kind: input, shape index: {}]   ;;  %s3654_s3 = inlined_call_operand.vmem [shape: f32[1,512], index: 3, kind: input, shape index: {}]   ;;  %s3655_s7 = inlined_call_operand.vmem [shape: bf16[2,512], index: 7, kind: input, shape index: {}, may-alias: {0,7}]   ;;  %s3656_s5 = inlined_call_operand.vmem [shape: f32[1,512], index: 5, kind: input, shape index: {}]   ;;  %s3657_s6 = inlined_call_operand.vmem [shape: f32[1,512], index: 6, kind: input, shape index: {}]   ;;  %s3658_s8 = inlined_call_operand.vmem [shape: bf16[2,512], index: 8, kind: output, shape index: {}]  }
   0x1   :  { %v2383_v0 = vld [vmem:[%s3650_s1 + $0x4] ss:$16 sps:$4 sm:$0xff]   ;;  %v2385_v1 = vld [vmem:[%s3650_s1 + $0xc] ss:$16 sps:$4 sm:$0xff]   ;;  %v2387_v2 = vld [vmem:[%s3650_s1] ss:$16 sps:$4 sm:$0xff]   ;;  %v168_v39 = vunpack.c.l.s4 %v2767_v38 }
   0x2   :  { %827 = vmatprep.subr.bf16.mxu0 %v2383_v0  ;;  %v2388_v3 = vld [vmem:[%s3650_s1 + $0x8] ss:$16 sps:$4 sm:$0xff]   ;;  %909 = vmatprep.subr.bf16.mxu1 %v2385_v1  ;;  %v2389_v4 = vld [vmem:[%s3650_s1 + $0x24] ss:$16 sps:$4 sm:$0xff]   ;;  %v2391_v5 = vld [vmem:[%s3650_s1 + $0x2c] ss:$16 sps:$4 sm:$0xff]  }
   0x3   :  { %828 = vmatpush1.bf16.msra.mxu0 %v2387_v2  ;;  %910 = vmatpush1.bf16.msra.mxu1 %v2388_v3  ;;  %v2393_v6 = vld [vmem:[%s3650_s1 + $0x20] ss:$16 sps:$4 sm:$0xff]   ;;  %v2394_v7 = vld [vmem:[%s3650_s1 + $0x28] ss:$16 sps:$4 sm:$0xff]   ;;  %v2395_v8 = vld [vmem:[%s3650_s1 + $0x44] ss:$16 sps:$4 sm:$0xff]   ;;  %v169_v45 = vunpack.c.0.s8 %v168_v39 }
   0x4   :  { %829 = vmatprep.subr.bf16.mxu0 %v2389_v4  ;;  %911 = vmatprep.subr.bf16.mxu1 %v2391_v5  ;;  %v2397_v9 = vld [vmem:[%s3650_s1 + $0x4c] ss:$16 sps:$4 sm:$0xff]   ;;  %v2399_v10 = vld [vmem:[%s3650_s1 + $0x40] ss:$16 sps:$4 sm:$0xff]   ;;  %v2400_v11 = vld [vmem:[%s3650_s1 + $0x48] ss:$16 sps:$4 sm:$0xff]  }
   0x5   :  { %v2401_v12 = vld [vmem:[%s3650_s1 + $0x64] ss:$16 sps:$4 sm:$0xff]   ;;  %v2403_v13 = vld [vmem:[%s3650_s1 + $0x6c] ss:$16 sps:$4 sm:$0xff]   ;;  %v2405_v14 = vld [vmem:[%s3650_s1 + $0x60] ss:$16 sps:$4 sm:$0xff]  }
   0x6   :  { %v2406_v15 = vld [vmem:[%s3650_s1 + $0x68] ss:$16 sps:$4 sm:$0xff]   ;;  %v2407_v16 = vld [vmem:[%s3650_s1 + $0x84] ss:$16 sps:$4 sm:$0xff]   ;;  %v2409_v17 = vld [vmem:[%s3650_s1 + $0x8c] ss:$16 sps:$4 sm:$0xff]  }
   0x7   :  { %830 = vmatpush1.bf16.msra.mxu0 %v2393_v6  ;;  %912 = vmatpush1.bf16.msra.mxu1 %v2394_v7  ;;  %v2411_v18 = vld [vmem:[%s3650_s1 + $0x80] ss:$16 sps:$4 sm:$0xff]   ;;  %v2412_v19 = vld [vmem:[%s3650_s1 + $0x88] ss:$16 sps:$4 sm:$0xff]   ;;  %v2413_v20 = vld [vmem:[%s3650_s1 + $0xa4] ss:$16 sps:$4 sm:$0xff]  }
   0x8   :  { %831 = vmatprep.subr.bf16.mxu0 %v2395_v8  ;;  %913 = vmatprep.subr.bf16.mxu1 %v2397_v9  ;;  %v2415_v21 = vld [vmem:[%s3650_s1 + $0xac] ss:$16 sps:$4 sm:$0xff]   ;;  %v2417_v22 = vld [vmem:[%s3650_s1 + $0xa0] ss:$16 sps:$4 sm:$0xff]   ;;  %v2418_v23 = vld [vmem:[%s3650_s1 + $0xa8] ss:$16 sps:$4 sm:$0xff]  }
   0x9   :  { %v2419_v24 = vld [vmem:[%s3650_s1 + $0xc4] ss:$16 sps:$4 sm:$0xff]   ;;  %v2421_v25 = vld [vmem:[%s3650_s1 + $0xcc] ss:$16 sps:$4 sm:$0xff]   ;;  %v2423_v26 = vld [vmem:[%s3650_s1 + $0xc0] ss:$16 sps:$4 sm:$0xff]  }
   0xa   :  { %v2424_v27 = vld [vmem:[%s3650_s1 + $0xc8] ss:$16 sps:$4 sm:$0xff]   ;;  %v2425_v28 = vld [vmem:[%s3650_s1 + $0xe4] ss:$16 sps:$4 sm:$0xff]   ;;  %v2427_v29 = vld [vmem:[%s3650_s1 + $0xec] ss:$16 sps:$4 sm:$0xff]  }
   0xb   :  { %832 = vmatpush1.bf16.msra.mxu0 %v2399_v10  ;;  %914 = vmatpush1.bf16.msra.mxu1 %v2400_v11  ;;  %v2429_v30 = vld [vmem:[%s3650_s1 + $0xe0] ss:$16 sps:$4 sm:$0xff]   ;;  %v2430_v31 = vld [vmem:[%s3650_s1 + $0xe8] ss:$16 sps:$4 sm:$0xff]   ;;  %v2431_v32 = vld [vmem:[%s3650_s1 + $0x104] ss:$16 sps:$4 sm:$0xff]  }
   0xc   :  { %833 = vmatprep.subr.bf16.mxu0 %v2401_v12  ;;  %915 = vmatprep.subr.bf16.mxu1 %v2403_v13  ;;  %v2433_v33 = vld [vmem:[%s3650_s1 + $0x10c] ss:$16 sps:$4 sm:$0xff]   ;;  %v2435_v34 = vld [vmem:[%s3650_s1 + $0x100] ss:$16 sps:$4 sm:$0xff]   ;;  %v2436_v35 = vld [vmem:[%s3650_s1 + $0x108] ss:$16 sps:$4 sm:$0xff]  }
   0xd   :  { %v2437_v36 = vld [vmem:[%s3650_s1 + $0x124] ss:$16 sps:$4 sm:$0xff]   ;;  %v2439_v37 = vld [vmem:[%s3650_s1 + $0x12c] ss:$16 sps:$4 sm:$0xff]   ;;  %v2441_v41 = vld [vmem:[%s3650_s1 + $0x120] ss:$16 sps:$4 sm:$0xff]  }
   0xe   :  { %v2442_v42 = vld [vmem:[%s3650_s1 + $0x128] ss:$16 sps:$4 sm:$0xff]   ;;  %v2443_v43 = vld [vmem:[%s3650_s1 + $0x144] ss:$16 sps:$4 sm:$0xff]   ;;  %v2445_v44 = vld [vmem:[%s3650_s1 + $0x14c] ss:$16 sps:$4 sm:$0xff]  }
   0xf   :  { %834 = vmatpush1.bf16.msra.mxu0 %v2405_v14  ;;  %916 = vmatpush1.bf16.msra.mxu1 %v2406_v15  ;;  %v2940_v46 = vshrl.u32 %v170_v40, 7  ;;  %v2447_v47 = vld [vmem:[%s3650_s1 + $0x140] ss:$16 sps:$4 sm:$0xff]   ;;  %v2448_v48 = vld [vmem:[%s3650_s1 + $0x148] ss:$16 sps:$4 sm:$0xff]  }
  0x10   :  { %835 = vmatprep.subr.bf16.mxu0 %v2407_v16  ;;  %917 = vmatprep.subr.bf16.mxu1 %v2409_v17  ;;  %v2449_v49 = vld [vmem:[%s3650_s1 + $0x164] ss:$16 sps:$4 sm:$0xff]   ;;  %v2451_v50 = vld [vmem:[%s3650_s1 + $0x16c] ss:$16 sps:$4 sm:$0xff]   ;;  %v2453_v53 = vld [vmem:[%s3650_s1 + $0x160] ss:$16 sps:$4 sm:$0xff]  }
  0x11   :  { %v2955_v51 = vsub.s32 %v169_v45, %v2940_v46  ;;  %v2105_v52 = vld.sshfl [vmem:[%s3651_s0] sm:$0x33 pattern:$0x75316420]  ;;  %v2454_v54 = vld [vmem:[%s3650_s1 + $0x168] ss:$16 sps:$4 sm:$0xff]  }
  0x12   :  { %v166_v55 = vcombine.high %v2105_v52, %v2105_v52  ;;  %v2455_v56 = vld [vmem:[%s3650_s1 + $0x184] ss:$16 sps:$4 sm:$0xff]   ;;  %v2457_v57 = vld [vmem:[%s3650_s1 + $0x18c] ss:$16 sps:$4 sm:$0xff]   ;;  %v2459_v59 = vld [vmem:[%s3650_s1 + $0x180] ss:$16 sps:$4 sm:$0xff]  }
  0x13   :  { %836 = vmatpush1.bf16.msra.mxu0 %v2411_v18  ;;  %918 = vmatpush1.bf16.msra.mxu1 %v2412_v19  ;;  %v2460_v60 = vld [vmem:[%s3650_s1 + $0x188] ss:$16 sps:$4 sm:$0xff]   ;;  %v2461_v61 = vld [vmem:[%s3650_s1 + $0x1a4] ss:$16 sps:$4 sm:$0xff]   ;;  %v2463_v62 = vld [vmem:[%s3650_s1 + $0x1ac] ss:$16 sps:$4 sm:$0xff]   ;;  %v3025_v12 = vrot.slane %v2105_v52, %v2955_v51 }
  0x14   :  { %837 = vmatprep.subr.bf16.mxu0 %v2413_v20  ;;  %919 = vmatprep.subr.bf16.mxu1 %v2415_v21  ;;  %v180_v58 = vrot.slane %v166_v55, %v2955_v51  ;;  %v2465_v63 = vld [vmem:[%s3650_s1 + $0x1a0] ss:$16 sps:$4 sm:$0xff]   ;;  %v2466_v0 = vld [vmem:[%s3650_s1 + $0x1a8] ss:$16 sps:$4 sm:$0xff]   ;;  %v2467_v1 = vld [vmem:[%s3650_s1 + $0x1c4] ss:$16 sps:$4 sm:$0xff]  }
  0x15   :  { %v2469_v2 = vld [vmem:[%s3650_s1 + $0x1cc] ss:$16 sps:$4 sm:$0xff]   ;;  %v2471_v3 = vld [vmem:[%s3650_s1 + $0x1c0] ss:$16 sps:$4 sm:$0xff]   ;;  %v2472_v4 = vld [vmem:[%s3650_s1 + $0x1c8] ss:$16 sps:$4 sm:$0xff]  }
  0x16   :  { %859 = vmatprep.mubr.bf16.mxu0 %v180_v58  ;;  %941 = vmatprep.mubr.bf16.mxu1 %v180_v58  ;;  %v2473_v5 = vld [vmem:[%s3650_s1 + $0x1e4] ss:$16 sps:$4 sm:$0xff]   ;;  %v2475_v6 = vld [vmem:[%s3650_s1 + $0x1ec] ss:$16 sps:$4 sm:$0xff]   ;;  %v2477_v7 = vld [vmem:[%s3650_s1 + $0x1e0] ss:$16 sps:$4 sm:$0xff]   ;;  %v182_v16 = vcombine.high %v180_v58, %v180_v58 }
  0x17   :  { %838 = vmatpush1.bf16.msra.mxu0 %v2417_v22  ;;  %920 = vmatpush1.bf16.msra.mxu1 %v2418_v23  ;;  %v2478_v8 = vld [vmem:[%s3650_s1 + $0x1e8] ss:$16 sps:$4 sm:$0xff]   ;;  %v2481_v9 = vld [vmem:[%s3650_s1 + $0x204] ss:$16 sps:$4 sm:$0xff]   ;;  %v2484_v10 = vld [vmem:[%s3650_s1 + $0x20c] ss:$16 sps:$4 sm:$0xff]  }
  0x18   :  { %839 = vmatprep.subr.bf16.mxu0 %v2419_v24  ;;  %921 = vmatprep.subr.bf16.mxu1 %v2421_v25  ;;  %v2479_v11 = vld [vmem:[%s3650_s1 + $0x200] ss:$16 sps:$4 sm:$0xff]   ;;  %v2482_v13 = vld [vmem:[%s3650_s1 + $0x208] ss:$16 sps:$4 sm:$0xff]   ;;  %v2487_v14 = vld [vmem:[%s3650_s1 + $0x224] ss:$16 sps:$4 sm:$0xff]  }
  0x19   :  { %v2490_v15 = vld [vmem:[%s3650_s1 + $0x22c] ss:$16 sps:$4 sm:$0xff]   ;;  %v2485_v17 = vld [vmem:[%s3650_s1 + $0x220] ss:$16 sps:$4 sm:$0xff]   ;;  %v2488_v18 = vld [vmem:[%s3650_s1 + $0x228] ss:$16 sps:$4 sm:$0xff]  }
  0x1a   :  { %v2493_v19 = vld [vmem:[%s3650_s1 + $0x244] ss:$16 sps:$4 sm:$0xff]   ;;  %v2496_v20 = vld [vmem:[%s3650_s1 + $0x24c] ss:$16 sps:$4 sm:$0xff]   ;;  %v2491_v21 = vld [vmem:[%s3650_s1 + $0x240] ss:$16 sps:$4 sm:$0xff]  }
  0x1b   :  { %840 = vmatpush1.bf16.msra.mxu0 %v2423_v26  ;;  %922 = vmatpush1.bf16.msra.mxu1 %v2424_v27  ;;  %v2494_v22 = vld [vmem:[%s3650_s1 + $0x248] ss:$16 sps:$4 sm:$0xff]   ;;  %v2499_v23 = vld [vmem:[%s3650_s1 + $0x264] ss:$16 sps:$4 sm:$0xff]   ;;  %v2502_v24 = vld [vmem:[%s3650_s1 + $0x26c] ss:$16 sps:$4 sm:$0xff]  }
  0x1c   :  { %841 = vmatprep.subr.bf16.mxu0 %v2425_v28  ;;  %923 = vmatprep.subr.bf16.mxu1 %v2427_v29  ;;  %v2497_v25 = vld [vmem:[%s3650_s1 + $0x260] ss:$16 sps:$4 sm:$0xff]   ;;  %v2500_v26 = vld [vmem:[%s3650_s1 + $0x268] ss:$16 sps:$4 sm:$0xff]   ;;  %v2505_v27 = vld [vmem:[%s3650_s1 + $0x284] ss:$16 sps:$4 sm:$0xff]  }
  0x1d   :  { %v2508_v28 = vld [vmem:[%s3650_s1 + $0x28c] ss:$16 sps:$4 sm:$0xff]   ;;  %v2503_v29 = vld [vmem:[%s3650_s1 + $0x280] ss:$16 sps:$4 sm:$0xff]   ;;  %v2518_v38 = vld [vmem:[%s3650_s1 + $0x2c8] ss:$16 sps:$4 sm:$0xff]  }
  0x1e   :  { %v2523_v39 = vld [vmem:[%s3650_s1 + $0x2e4] ss:$16 sps:$4 sm:$0xff]   ;;  %v2526_v40 = vld [vmem:[%s3650_s1 + $0x2ec] ss:$16 sps:$4 sm:$0xff]   ;;  %v2527_v45 = vld [vmem:[%s3650_s1 + $0x300] ss:$16 sps:$4 sm:$0xff]  }
  0x1f   :  { %842 = vmatpush1.bf16.msra.mxu0 %v2429_v30  ;;  %924 = vmatpush1.bf16.msra.mxu1 %v2430_v31  ;;  %v2506_v30 = vld [vmem:[%s3650_s1 + $0x288] ss:$16 sps:$4 sm:$0xff]   ;;  %v2511_v31 = vld [vmem:[%s3650_s1 + $0x2a4] ss:$16 sps:$4 sm:$0xff]   ;;  %v2539_v55 = vld [vmem:[%s3650_s1 + $0x340] ss:$16 sps:$4 sm:$0xff]  }
  0x20   :  { %843 = vmatprep.subr.bf16.mxu0 %v2431_v32  ;;  %925 = vmatprep.subr.bf16.mxu1 %v2433_v33  ;;  %v2514_v32 = vld [vmem:[%s3650_s1 + $0x2ac] ss:$16 sps:$4 sm:$0xff]   ;;  %v2509_v33 = vld [vmem:[%s3650_s1 + $0x2a0] ss:$16 sps:$4 sm:$0xff]   ;;  %v2536_v52 = vld [vmem:[%s3650_s1 + $0x328] ss:$16 sps:$4 sm:$0xff]  }
  0x21   :  { %v2550_v58 = vld [vmem:[%s3650_s1 + $0x36c] ss:$16 sps:$4 sm:$0xff]  }
  0x23   :  { %844 = vmatpush1.bf16.msra.mxu0 %v2435_v34  ;;  %926 = vmatpush1.bf16.msra.mxu1 %v2436_v35  ;;  %v2512_v34 = vld [vmem:[%s3650_s1 + $0x2a8] ss:$16 sps:$4 sm:$0xff]   ;;  %v2517_v35 = vld [vmem:[%s3650_s1 + $0x2c4] ss:$16 sps:$4 sm:$0xff]  }
  0x24   :  { %845 = vmatprep.subr.bf16.mxu0 %v2437_v36  ;;  %927 = vmatprep.subr.bf16.mxu1 %v2439_v37  ;;  %v2520_v36 = vld [vmem:[%s3650_s1 + $0x2cc] ss:$16 sps:$4 sm:$0xff]   ;;  %v2515_v37 = vld [vmem:[%s3650_s1 + $0x2c0] ss:$16 sps:$4 sm:$0xff]  }
  0x27   :  { %846 = vmatpush1.bf16.msra.mxu0 %v2441_v41  ;;  %928 = vmatpush1.bf16.msra.mxu1 %v2442_v42  ;;  %v2521_v41 = vld [vmem:[%s3650_s1 + $0x2e0] ss:$16 sps:$4 sm:$0xff]   ;;  %v2524_v42 = vld [vmem:[%s3650_s1 + $0x2e8] ss:$16 sps:$4 sm:$0xff]  }
  0x28   :  { %847 = vmatprep.subr.bf16.mxu0 %v2443_v43  ;;  %929 = vmatprep.subr.bf16.mxu1 %v2445_v44  ;;  %v2529_v43 = vld [vmem:[%s3650_s1 + $0x304] ss:$16 sps:$4 sm:$0xff]   ;;  %v2532_v44 = vld [vmem:[%s3650_s1 + $0x30c] ss:$16 sps:$4 sm:$0xff]  }
  0x2b   :  { %848 = vmatpush1.bf16.msra.mxu0 %v2447_v47  ;;  %930 = vmatpush1.bf16.msra.mxu1 %v2448_v48  ;;  %v2530_v47 = vld [vmem:[%s3650_s1 + $0x308] ss:$16 sps:$4 sm:$0xff]   ;;  %v2535_v48 = vld [vmem:[%s3650_s1 + $0x324] ss:$16 sps:$4 sm:$0xff]  }
  0x2c   :  { %849 = vmatprep.subr.bf16.mxu0 %v2449_v49  ;;  %931 = vmatprep.subr.bf16.mxu1 %v2451_v50  ;;  %v2538_v49 = vld [vmem:[%s3650_s1 + $0x32c] ss:$16 sps:$4 sm:$0xff]   ;;  %v2533_v50 = vld [vmem:[%s3650_s1 + $0x320] ss:$16 sps:$4 sm:$0xff]  }
  0x2f   :  { %850 = vmatpush1.bf16.msra.mxu0 %v2453_v53  ;;  %932 = vmatpush1.bf16.msra.mxu1 %v2454_v54  ;;  %v2541_v53 = vld [vmem:[%s3650_s1 + $0x344] ss:$16 sps:$4 sm:$0xff]   ;;  %v2544_v54 = vld [vmem:[%s3650_s1 + $0x34c] ss:$16 sps:$4 sm:$0xff]  }
  0x30   :  { %851 = vmatprep.subr.bf16.mxu0 %v2455_v56  ;;  %933 = vmatprep.subr.bf16.mxu1 %v2457_v57  ;;  %v2542_v56 = vld [vmem:[%s3650_s1 + $0x348] ss:$16 sps:$4 sm:$0xff]   ;;  %v2547_v57 = vld [vmem:[%s3650_s1 + $0x364] ss:$16 sps:$4 sm:$0xff]  }
  0x33   :  { %852 = vmatpush1.bf16.msra.mxu0 %v2459_v59  ;;  %934 = vmatpush1.bf16.msra.mxu1 %v2460_v60  ;;  %v2545_v59 = vld [vmem:[%s3650_s1 + $0x360] ss:$16 sps:$4 sm:$0xff]   ;;  %v2548_v60 = vld [vmem:[%s3650_s1 + $0x368] ss:$16 sps:$4 sm:$0xff]  }
  0x34   :  { %853 = vmatprep.subr.bf16.mxu0 %v2461_v61  ;;  %935 = vmatprep.subr.bf16.mxu1 %v2463_v62  ;;  %v2553_v61 = vld [vmem:[%s3650_s1 + $0x384] ss:$16 sps:$4 sm:$0xff]   ;;  %v2556_v62 = vld [vmem:[%s3650_s1 + $0x38c] ss:$16 sps:$4 sm:$0xff]  }
  0x37   :  { %854 = vmatpush1.bf16.msra.mxu0 %v2465_v63  ;;  %936 = vmatpush1.bf16.msra.mxu1 %v2466_v0  ;;  %v2551_v63 = vld [vmem:[%s3650_s1 + $0x380] ss:$16 sps:$4 sm:$0xff]   ;;  %v2554_v0 = vld [vmem:[%s3650_s1 + $0x388] ss:$16 sps:$4 sm:$0xff]  }
  0x38   :  { %855 = vmatprep.subr.bf16.mxu0 %v2467_v1  ;;  %937 = vmatprep.subr.bf16.mxu1 %v2469_v2  ;;  %v2559_v1 = vld [vmem:[%s3650_s1 + $0x3a4] ss:$16 sps:$4 sm:$0xff]   ;;  %v2562_v2 = vld [vmem:[%s3650_s1 + $0x3ac] ss:$16 sps:$4 sm:$0xff]  }
  0x3b   :  { %856 = vmatpush1.bf16.msra.mxu0 %v2471_v3  ;;  %938 = vmatpush1.bf16.msra.mxu1 %v2472_v4  ;;  %v2557_v3 = vld [vmem:[%s3650_s1 + $0x3a0] ss:$16 sps:$4 sm:$0xff]   ;;  %v2560_v4 = vld [vmem:[%s3650_s1 + $0x3a8] ss:$16 sps:$4 sm:$0xff]  }
  0x3c   :  { %857 = vmatprep.subr.bf16.mxu0 %v2473_v5  ;;  %939 = vmatprep.subr.bf16.mxu1 %v2475_v6  ;;  %v2565_v5 = vld [vmem:[%s3650_s1 + $0x3c4] ss:$16 sps:$4 sm:$0xff]   ;;  %v2568_v6 = vld [vmem:[%s3650_s1 + $0x3cc] ss:$16 sps:$4 sm:$0xff]  }
  0x3f   :  { %858 = vmatpush1.bf16.msra.mxu0 %v2477_v7  ;;  %940 = vmatpush1.bf16.msra.mxu1 %v2478_v8  ;;  %v2563_v7 = vld [vmem:[%s3650_s1 + $0x3c0] ss:$16 sps:$4 sm:$0xff]   ;;  %v2566_v8 = vld [vmem:[%s3650_s1 + $0x3c8] ss:$16 sps:$4 sm:$0xff]  }
  0x40   :  { %868 = vmatprep.subr.bf16.mxu0 %v2481_v9  ;;  %950 = vmatprep.subr.bf16.mxu1 %v2484_v10  ;;  %v2571_v9 = vld [vmem:[%s3650_s1 + $0x3e4] ss:$16 sps:$4 sm:$0xff]   ;;  %v2574_v10 = vld [vmem:[%s3650_s1 + $0x3ec] ss:$16 sps:$4 sm:$0xff]  }
  0x42   :  { %860 = vmatmul.mubr.bf16.vlgmr.msra.gmra.mrb[0].mxu0 %v3025_v12  ;;  %942 = vmatmul.mubr.bf16.vlgmr.msra.gmra.mrb[0].mxu1 %v3025_v12 }
  0x43   :  { %869 = vmatpush1.bf16.msra.mxu0 %v2479_v11  ;;  %951 = vmatpush1.bf16.msra.mxu1 %v2482_v13  ;;  %v2569_v11 = vld [vmem:[%s3650_s1 + $0x3e0] ss:$16 sps:$4 sm:$0xff]   ;;  %v2572_v13 = vld [vmem:[%s3650_s1 + $0x3e8] ss:$16 sps:$4 sm:$0xff]  }
  0x44   :  { %870 = vmatprep.subr.bf16.mxu0 %v2487_v14  ;;  %952 = vmatprep.subr.bf16.mxu1 %v2490_v15  ;;  %v2577_v14 = vld [vmem:[%s3652_s4 + $0x4] ss:$16 sps:$4 sm:$0xff]   ;;  %v2580_v15 = vld [vmem:[%s3652_s4 + $0xc] ss:$16 sps:$4 sm:$0xff]  }
  0x45   :  { %900 = vmatprep.mubr.bf16.mxu0 %v182_v16  ;;  %982 = vmatprep.mubr.bf16.mxu1 %v182_v16  ;;  %v2575_v16 = vld [vmem:[%s3652_s4] ss:$16 sps:$4 sm:$0xff]  }
  0x47   :  { %871 = vmatpush1.bf16.msra.mxu0 %v2485_v17  ;;  %953 = vmatpush1.bf16.msra.mxu1 %v2488_v18  ;;  %v2578_v17 = vld [vmem:[%s3652_s4 + $0x8] ss:$16 sps:$4 sm:$0xff]   ;;  %v181_v18 = vcombine.high %v3025_v12, %v3025_v12 }
  0x48   :  { %872 = vmatprep.subr.bf16.mxu0 %v2493_v19  ;;  %954 = vmatprep.subr.bf16.mxu1 %v2496_v20  ;;  %v2583_v19 = vld [vmem:[%s3652_s4 + $0x24] ss:$16 sps:$4 sm:$0xff]   ;;  %v2586_v20 = vld [vmem:[%s3652_s4 + $0x2c] ss:$16 sps:$4 sm:$0xff]   ;;  %v2584_v12 = vld [vmem:[%s3652_s4 + $0x28] ss:$16 sps:$4 sm:$0xff]  }
  0x4b   :  { %873 = vmatpush1.bf16.msra.mxu0 %v2491_v21  ;;  %955 = vmatpush1.bf16.msra.mxu1 %v2494_v22  ;;  %v2581_v21 = vld [vmem:[%s3652_s4 + $0x20] ss:$16 sps:$4 sm:$0xff]   ;;  %v2589_v22 = vld [vmem:[%s3652_s4 + $0x44] ss:$16 sps:$4 sm:$0xff]  }
  0x4c   :  { %874 = vmatprep.subr.bf16.mxu0 %v2499_v23  ;;  %956 = vmatprep.subr.bf16.mxu1 %v2502_v24  ;;  %v2592_v23 = vld [vmem:[%s3652_s4 + $0x4c] ss:$16 sps:$4 sm:$0xff]   ;;  %v2587_v24 = vld [vmem:[%s3652_s4 + $0x40] ss:$16 sps:$4 sm:$0xff]  }
  0x4f   :  { %875 = vmatpush1.bf16.msra.mxu0 %v2497_v25  ;;  %957 = vmatpush1.bf16.msra.mxu1 %v2500_v26  ;;  %v2590_v25 = vld [vmem:[%s3652_s4 + $0x48] ss:$16 sps:$4 sm:$0xff]   ;;  %v2595_v26 = vld [vmem:[%s3652_s4 + $0x64] ss:$16 sps:$4 sm:$0xff]  }
  0x50   :  { %876 = vmatprep.subr.bf16.mxu0 %v2505_v27  ;;  %958 = vmatprep.subr.bf16.mxu1 %v2508_v28  ;;  %v2598_v27 = vld [vmem:[%s3652_s4 + $0x6c] ss:$16 sps:$4 sm:$0xff]   ;;  %v2593_v28 = vld [vmem:[%s3652_s4 + $0x60] ss:$16 sps:$4 sm:$0xff]  }
  0x53   :  { %877 = vmatpush1.bf16.msra.mxu0 %v2503_v29  ;;  %959 = vmatpush1.bf16.msra.mxu1 %v2506_v30  ;;  %v2596_v29 = vld [vmem:[%s3652_s4 + $0x68] ss:$16 sps:$4 sm:$0xff]   ;;  %v2601_v30 = vld [vmem:[%s3652_s4 + $0x84] ss:$16 sps:$4 sm:$0xff]  }
  0x54   :  { %878 = vmatprep.subr.bf16.mxu0 %v2511_v31  ;;  %960 = vmatprep.subr.bf16.mxu1 %v2514_v32  ;;  %v2604_v31 = vld [vmem:[%s3652_s4 + $0x8c] ss:$16 sps:$4 sm:$0xff]   ;;  %v2599_v32 = vld [vmem:[%s3652_s4 + $0x80] ss:$16 sps:$4 sm:$0xff]  }
  0x57   :  { %879 = vmatpush1.bf16.msra.mxu0 %v2509_v33  ;;  %961 = vmatpush1.bf16.msra.mxu1 %v2512_v34  ;;  %v2602_v33 = vld [vmem:[%s3652_s4 + $0x88] ss:$16 sps:$4 sm:$0xff]   ;;  %v2607_v34 = vld [vmem:[%s3652_s4 + $0xa4] ss:$16 sps:$4 sm:$0xff]  }
  0x58   :  { %880 = vmatprep.subr.bf16.mxu0 %v2517_v35  ;;  %962 = vmatprep.subr.bf16.mxu1 %v2520_v36  ;;  %v2610_v35 = vld [vmem:[%s3652_s4 + $0xac] ss:$16 sps:$4 sm:$0xff]   ;;  %v2605_v36 = vld [vmem:[%s3652_s4 + $0xa0] ss:$16 sps:$4 sm:$0xff]  }
  0x5b   :  { %881 = vmatpush1.bf16.msra.mxu0 %v2515_v37  ;;  %963 = vmatpush1.bf16.msra.mxu1 %v2518_v38  ;;  %v2608_v37 = vld [vmem:[%s3652_s4 + $0xa8] ss:$16 sps:$4 sm:$0xff]   ;;  %v2613_v38 = vld [vmem:[%s3652_s4 + $0xc4] ss:$16 sps:$4 sm:$0xff]  }
  0x5c   :  { %882 = vmatprep.subr.bf16.mxu0 %v2523_v39  ;;  %964 = vmatprep.subr.bf16.mxu1 %v2526_v40  ;;  %v2616_v39 = vld [vmem:[%s3652_s4 + $0xcc] ss:$16 sps:$4 sm:$0xff]   ;;  %v2611_v40 = vld [vmem:[%s3652_s4 + $0xc0] ss:$16 sps:$4 sm:$0xff]  }
  0x5f   :  { %883 = vmatpush1.bf16.msra.mxu0 %v2521_v41  ;;  %965 = vmatpush1.bf16.msra.mxu1 %v2524_v42  ;;  %v2614_v41 = vld [vmem:[%s3652_s4 + $0xc8] ss:$16 sps:$4 sm:$0xff]   ;;  %v2619_v42 = vld [vmem:[%s3652_s4 + $0xe4] ss:$16 sps:$4 sm:$0xff]  }
  0x60   :  { %884 = vmatprep.subr.bf16.mxu0 %v2529_v43  ;;  %966 = vmatprep.subr.bf16.mxu1 %v2532_v44  ;;  %v2622_v43 = vld [vmem:[%s3652_s4 + $0xec] ss:$16 sps:$4 sm:$0xff]   ;;  %v2617_v44 = vld [vmem:[%s3652_s4 + $0xe0] ss:$16 sps:$4 sm:$0xff]  }
  0x63   :  { %885 = vmatpush1.bf16.msra.mxu0 %v2527_v45  ;;  %967 = vmatpush1.bf16.msra.mxu1 %v2530_v47  ;;  %v2620_v45 = vld [vmem:[%s3652_s4 + $0xe8] ss:$16 sps:$4 sm:$0xff]   ;;  %v2625_v47 = vld [vmem:[%s3652_s4 + $0x104] ss:$16 sps:$4 sm:$0xff]  }
  0x64   :  { %886 = vmatprep.subr.bf16.mxu0 %v2535_v48  ;;  %968 = vmatprep.subr.bf16.mxu1 %v2538_v49  ;;  %v2628_v48 = vld [vmem:[%s3652_s4 + $0x10c] ss:$16 sps:$4 sm:$0xff]   ;;  %v2623_v49 = vld [vmem:[%s3652_s4 + $0x100] ss:$16 sps:$4 sm:$0xff]  }
  0x67   :  { %887 = vmatpush1.bf16.msra.mxu0 %v2533_v50  ;;  %969 = vmatpush1.bf16.msra.mxu1 %v2536_v52  ;;  %v2626_v50 = vld [vmem:[%s3652_s4 + $0x108] ss:$16 sps:$4 sm:$0xff]   ;;  %v2631_v52 = vld [vmem:[%s3652_s4 + $0x124] ss:$16 sps:$4 sm:$0xff]  }
  0x68   :  { %888 = vmatprep.subr.bf16.mxu0 %v2541_v53  ;;  %970 = vmatprep.subr.bf16.mxu1 %v2544_v54  ;;  %v2634_v53 = vld [vmem:[%s3652_s4 + $0x12c] ss:$16 sps:$4 sm:$0xff]   ;;  %v2629_v54 = vld [vmem:[%s3652_s4 + $0x120] ss:$16 sps:$4 sm:$0xff]  }
  0x6b   :  { %889 = vmatpush1.bf16.msra.mxu0 %v2539_v55  ;;  %971 = vmatpush1.bf16.msra.mxu1 %v2542_v56  ;;  %v2632_v55 = vld [vmem:[%s3652_s4 + $0x128] ss:$16 sps:$4 sm:$0xff]   ;;  %v2637_v56 = vld [vmem:[%s3652_s4 + $0x144] ss:$16 sps:$4 sm:$0xff]  }
  0x6c   :  { %890 = vmatprep.subr.bf16.mxu0 %v2547_v57  ;;  %972 = vmatprep.subr.bf16.mxu1 %v2550_v58  ;;  %v2640_v57 = vld [vmem:[%s3652_s4 + $0x14c] ss:$16 sps:$4 sm:$0xff]   ;;  %v2635_v58 = vld [vmem:[%s3652_s4 + $0x140] ss:$16 sps:$4 sm:$0xff]  }
  0x6f   :  { %891 = vmatpush1.bf16.msra.mxu0 %v2545_v59  ;;  %973 = vmatpush1.bf16.msra.mxu1 %v2548_v60  ;;  %v2638_v59 = vld [vmem:[%s3652_s4 + $0x148] ss:$16 sps:$4 sm:$0xff]   ;;  %v2643_v60 = vld [vmem:[%s3652_s4 + $0x164] ss:$16 sps:$4 sm:$0xff]  }
  0x70   :  { %892 = vmatprep.subr.bf16.mxu0 %v2553_v61  ;;  %974 = vmatprep.subr.bf16.mxu1 %v2556_v62  ;;  %v2646_v61 = vld [vmem:[%s3652_s4 + $0x16c] ss:$16 sps:$4 sm:$0xff]   ;;  %v2641_v62 = vld [vmem:[%s3652_s4 + $0x160] ss:$16 sps:$4 sm:$0xff]  }
  0x73   :  { %893 = vmatpush1.bf16.msra.mxu0 %v2551_v63  ;;  %975 = vmatpush1.bf16.msra.mxu1 %v2554_v0  ;;  %v2644_v63 = vld [vmem:[%s3652_s4 + $0x168] ss:$16 sps:$4 sm:$0xff]   ;;  %v2649_v0 = vld [vmem:[%s3652_s4 + $0x184] ss:$16 sps:$4 sm:$0xff]  }
  0x74   :  { %894 = vmatprep.subr.bf16.mxu0 %v2559_v1  ;;  %976 = vmatprep.subr.bf16.mxu1 %v2562_v2  ;;  %v2652_v1 = vld [vmem:[%s3652_s4 + $0x18c] ss:$16 sps:$4 sm:$0xff]   ;;  %v2647_v2 = vld [vmem:[%s3652_s4 + $0x180] ss:$16 sps:$4 sm:$0xff]  }
  0x77   :  { %895 = vmatpush1.bf16.msra.mxu0 %v2557_v3  ;;  %977 = vmatpush1.bf16.msra.mxu1 %v2560_v4  ;;  %v2650_v3 = vld [vmem:[%s3652_s4 + $0x188] ss:$16 sps:$4 sm:$0xff]   ;;  %v2655_v4 = vld [vmem:[%s3652_s4 + $0x1a4] ss:$16 sps:$4 sm:$0xff]  }
  0x78   :  { %896 = vmatprep.subr.bf16.mxu0 %v2565_v5  ;;  %978 = vmatprep.subr.bf16.mxu1 %v2568_v6  ;;  %v2658_v5 = vld [vmem:[%s3652_s4 + $0x1ac] ss:$16 sps:$4 sm:$0xff]   ;;  %v2653_v6 = vld [vmem:[%s3652_s4 + $0x1a0] ss:$16 sps:$4 sm:$0xff]  }
  0x7b   :  { %897 = vmatpush1.bf16.msra.mxu0 %v2563_v7  ;;  %979 = vmatpush1.bf16.msra.mxu1 %v2566_v8  ;;  %v2656_v7 = vld [vmem:[%s3652_s4 + $0x1a8] ss:$16 sps:$4 sm:$0xff]   ;;  %v2661_v8 = vld [vmem:[%s3652_s4 + $0x1c4] ss:$16 sps:$4 sm:$0xff]  }
  0x7c   :  { %898 = vmatprep.subr.bf16.mxu0 %v2571_v9  ;;  %980 = vmatprep.subr.bf16.mxu1 %v2574_v10  ;;  %v2664_v9 = vld [vmem:[%s3652_s4 + $0x1cc] ss:$16 sps:$4 sm:$0xff]   ;;  %v2659_v10 = vld [vmem:[%s3652_s4 + $0x1c0] ss:$16 sps:$4 sm:$0xff]  }
  0x7f   :  { %899 = vmatpush1.bf16.msra.mxu0 %v2569_v11  ;;  %981 = vmatpush1.bf16.msra.mxu1 %v2572_v13  ;;  %v2662_v11 = vld [vmem:[%s3652_s4 + $0x1c8] ss:$16 sps:$4 sm:$0xff]   ;;  %v2667_v13 = vld [vmem:[%s3652_s4 + $0x1e4] ss:$16 sps:$4 sm:$0xff]  }
  0x80   :  { %1819 = vmatprep.subr.bf16.mxu0 %v2577_v14  ;;  %1901 = vmatprep.subr.bf16.mxu1 %v2580_v15  ;;  %v2670_v14 = vld [vmem:[%s3652_s4 + $0x1ec] ss:$16 sps:$4 sm:$0xff]   ;;  %v2665_v15 = vld [vmem:[%s3652_s4 + $0x1e0] ss:$16 sps:$4 sm:$0xff]  }
  0x82   :  { %901 = vmatmul.mubr.bf16.vlgmr.msra.gmra.mrb[0].mxu0 %v181_v18  ;;  %983 = vmatmul.mubr.bf16.vlgmr.msra.gmra.mrb[0].mxu1 %v181_v18  ;;  %v2676_v18 = vld [vmem:[%s3652_s4 + $0x20c] ss:$16 sps:$4 sm:$0xff]  }
  0x83   :  { %1820 = vmatpush1.bf16.msra.mxu0 %v2575_v16  ;;  %1902 = vmatpush1.bf16.msra.mxu1 %v2578_v17  ;;  %v2668_v16 = vld [vmem:[%s3652_s4 + $0x1e8] ss:$16 sps:$4 sm:$0xff]   ;;  %v2673_v17 = vld [vmem:[%s3652_s4 + $0x204] ss:$16 sps:$4 sm:$0xff]  }
  0x84   :  { %1821 = vmatprep.subr.bf16.mxu0 %v2583_v19  ;;  %1903 = vmatprep.subr.bf16.mxu1 %v2586_v20  ;;  %v3413_v19 = vsub.s32 0, %v2940_v46  ;;  %v3416_v20 = vsub.s32 2, %v2940_v46 }
  0x87   :  { %1822 = vmatpush1.bf16.msra.mxu0 %v2581_v21  ;;  %1904 = vmatpush1.bf16.msra.mxu1 %v2584_v12  ;;  %v991_v21 = vld [vmem:[%s3653_s2] sm:$0xf]  ;;  %v3422_v12 = vsub.s32 1, %v2940_v46 }
  0x88   :  { %1823 = vmatprep.subr.bf16.mxu0 %v2589_v22  ;;  %1905 = vmatprep.subr.bf16.mxu1 %v2592_v23  ;;  %v3425_v22 = vsub.s32 3, %v2940_v46  ;;  %v1017_v23 = vld [vmem:[%s3654_s3] sm:$0xf] }
  0x8b   :  { %1824 = vmatpush1.bf16.msra.mxu0 %v2587_v24  ;;  %1906 = vmatpush1.bf16.msra.mxu1 %v2590_v25  ;;  %v996_v24 = vrot.slane %v991_v21, %v3413_v19  ;;  %v1004_v25 = vrot.slane %v991_v21, %v3416_v20 }
  0x8c   :  { %1825 = vmatprep.subr.bf16.mxu0 %v2595_v26  ;;  %1907 = vmatprep.subr.bf16.mxu1 %v2598_v27  ;;  %v1000_v26 = vrot.slane %v991_v21, %v3422_v12  ;;  %v1008_v27 = vrot.slane %v991_v21, %v3425_v22  ;;  %v2715_v21 = vld [vmem:[%s3652_s4 + $0x2e4] ss:$16 sps:$4 sm:$0xff]  }
  0x8f   :  { %1826 = vmatpush1.bf16.msra.mxu0 %v2593_v28  ;;  %1908 = vmatpush1.bf16.msra.mxu1 %v2596_v29  ;;  %v1022_v28 = vrot.slane %v1017_v23, %v3413_v19  ;;  %v1030_v29 = vrot.slane %v1017_v23, %v3416_v20 }
  0x90   :  { %1827 = vmatprep.subr.bf16.mxu0 %v2601_v30  ;;  %1909 = vmatprep.subr.bf16.mxu1 %v2604_v31 }
  0x93   :  { %1828 = vmatpush1.bf16.msra.mxu0 %v2599_v32  ;;  %1910 = vmatpush1.bf16.msra.mxu1 %v2602_v33  ;;  %v1026_v32 = vrot.slane %v1017_v23, %v3422_v12  ;;  %v1034_v33 = vrot.slane %v1017_v23, %v3425_v22  ;;  %v2718_v23 = vld [vmem:[%s3652_s4 + $0x2ec] ss:$16 sps:$4 sm:$0xff]  }
  0x94   :  { %1829 = vmatprep.subr.bf16.mxu0 %v2607_v34  ;;  %1911 = vmatprep.subr.bf16.mxu1 %v2610_v35 }
  0x97   :  { %1830 = vmatpush1.bf16.msra.mxu0 %v2605_v36  ;;  %1912 = vmatpush1.bf16.msra.mxu1 %v2608_v37 }
  0x98   :  { %1831 = vmatprep.subr.bf16.mxu0 %v2613_v38  ;;  %1913 = vmatprep.subr.bf16.mxu1 %v2616_v39 }
  0x9b   :  { %1832 = vmatpush1.bf16.msra.mxu0 %v2611_v40  ;;  %1914 = vmatpush1.bf16.msra.mxu1 %v2614_v41 }
  0x9c   :  { %1833 = vmatprep.subr.bf16.mxu0 %v2619_v42  ;;  %1915 = vmatprep.subr.bf16.mxu1 %v2622_v43 }
  0x9f   :  { %1834 = vmatpush1.bf16.msra.mxu0 %v2617_v44  ;;  %1916 = vmatpush1.bf16.msra.mxu1 %v2620_v45 }
  0xa0   :  { %1835 = vmatprep.subr.bf16.mxu0 %v2625_v47  ;;  %1917 = vmatprep.subr.bf16.mxu1 %v2628_v48 }
  0xa3   :  { %1836 = vmatpush1.bf16.msra.mxu0 %v2623_v49  ;;  %1918 = vmatpush1.bf16.msra.mxu1 %v2626_v50 }
  0xa4   :  { %1837 = vmatprep.subr.bf16.mxu0 %v2631_v52  ;;  %1919 = vmatprep.subr.bf16.mxu1 %v2634_v53 }
  0xa7   :  { %1838 = vmatpush1.bf16.msra.mxu0 %v2629_v54  ;;  %1920 = vmatpush1.bf16.msra.mxu1 %v2632_v55  ;;  %v2671_v54 = vld [vmem:[%s3652_s4 + $0x200] ss:$16 sps:$4 sm:$0xff]   ;;  %v2674_v55 = vld [vmem:[%s3652_s4 + $0x208] ss:$16 sps:$4 sm:$0xff]  }
  0xa8   :  { %1839 = vmatprep.subr.bf16.mxu0 %v2637_v56  ;;  %1921 = vmatprep.subr.bf16.mxu1 %v2640_v57  ;;  %v2679_v57 = vld [vmem:[%s3652_s4 + $0x224] ss:$16 sps:$4 sm:$0xff]  }
  0xab   :  { %1840 = vmatpush1.bf16.msra.mxu0 %v2635_v58  ;;  %1922 = vmatpush1.bf16.msra.mxu1 %v2638_v59  ;;  %v2682_v58 = vld [vmem:[%s3652_s4 + $0x22c] ss:$16 sps:$4 sm:$0xff]  }
  0xac   :  { %1841 = vmatprep.subr.bf16.mxu0 %v2643_v60  ;;  %1923 = vmatprep.subr.bf16.mxu1 %v2646_v61  ;;  %v2677_v60 = vld [vmem:[%s3652_s4 + $0x220] ss:$16 sps:$4 sm:$0xff]   ;;  %v2680_v61 = vld [vmem:[%s3652_s4 + $0x228] ss:$16 sps:$4 sm:$0xff]  }
  0xaf   :  { %1842 = vmatpush1.bf16.msra.mxu0 %v2641_v62  ;;  %1924 = vmatpush1.bf16.msra.mxu1 %v2644_v63  ;;  %v2685_v62 = vld [vmem:[%s3652_s4 + $0x244] ss:$16 sps:$4 sm:$0xff]   ;;  %v2688_v63 = vld [vmem:[%s3652_s4 + $0x24c] ss:$16 sps:$4 sm:$0xff]  }
  0xb0   :  { %1843 = vmatprep.subr.bf16.mxu0 %v2649_v0  ;;  %1925 = vmatprep.subr.bf16.mxu1 %v2652_v1  ;;  %v2683_v0 = vld [vmem:[%s3652_s4 + $0x240] ss:$16 sps:$4 sm:$0xff]   ;;  %v2686_v1 = vld [vmem:[%s3652_s4 + $0x248] ss:$16 sps:$4 sm:$0xff]  }
  0xb3   :  { %1844 = vmatpush1.bf16.msra.mxu0 %v2647_v2  ;;  %1926 = vmatpush1.bf16.msra.mxu1 %v2650_v3  ;;  %v2691_v2 = vld [vmem:[%s3652_s4 + $0x264] ss:$16 sps:$4 sm:$0xff]   ;;  %v2694_v3 = vld [vmem:[%s3652_s4 + $0x26c] ss:$16 sps:$4 sm:$0xff]  }
  0xb4   :  { %1845 = vmatprep.subr.bf16.mxu0 %v2655_v4  ;;  %1927 = vmatprep.subr.bf16.mxu1 %v2658_v5  ;;  %v2689_v4 = vld [vmem:[%s3652_s4 + $0x260] ss:$16 sps:$4 sm:$0xff]   ;;  %v2692_v5 = vld [vmem:[%s3652_s4 + $0x268] ss:$16 sps:$4 sm:$0xff]  }
  0xb7   :  { %1846 = vmatpush1.bf16.msra.mxu0 %v2653_v6  ;;  %1928 = vmatpush1.bf16.msra.mxu1 %v2656_v7  ;;  %v2697_v6 = vld [vmem:[%s3652_s4 + $0x284] ss:$16 sps:$4 sm:$0xff]   ;;  %v2700_v7 = vld [vmem:[%s3652_s4 + $0x28c] ss:$16 sps:$4 sm:$0xff]  }
  0xb8   :  { %1847 = vmatprep.subr.bf16.mxu0 %v2661_v8  ;;  %1929 = vmatprep.subr.bf16.mxu1 %v2664_v9  ;;  %v2695_v8 = vld [vmem:[%s3652_s4 + $0x280] ss:$16 sps:$4 sm:$0xff]   ;;  %v2698_v9 = vld [vmem:[%s3652_s4 + $0x288] ss:$16 sps:$4 sm:$0xff]  }
  0xbb   :  { %1848 = vmatpush1.bf16.msra.mxu0 %v2659_v10  ;;  %1930 = vmatpush1.bf16.msra.mxu1 %v2662_v11  ;;  %v2703_v10 = vld [vmem:[%s3652_s4 + $0x2a4] ss:$16 sps:$4 sm:$0xff]   ;;  %v2706_v11 = vld [vmem:[%s3652_s4 + $0x2ac] ss:$16 sps:$4 sm:$0xff]  }
  0xbc   :  { %1849 = vmatprep.subr.bf16.mxu0 %v2667_v13  ;;  %1931 = vmatprep.subr.bf16.mxu1 %v2670_v14  ;;  %v2701_v13 = vld [vmem:[%s3652_s4 + $0x2a0] ss:$16 sps:$4 sm:$0xff]   ;;  %v2704_v14 = vld [vmem:[%s3652_s4 + $0x2a8] ss:$16 sps:$4 sm:$0xff]  }
  0xbf   :  { %1850 = vmatpush1.bf16.msra.mxu0 %v2665_v15  ;;  %1932 = vmatpush1.bf16.msra.mxu1 %v2668_v16  ;;  %v2709_v15 = vld [vmem:[%s3652_s4 + $0x2c4] ss:$16 sps:$4 sm:$0xff]   ;;  %v2712_v16 = vld [vmem:[%s3652_s4 + $0x2cc] ss:$16 sps:$4 sm:$0xff]  }
  0xc0   :  { %1860 = vmatprep.subr.bf16.mxu0 %v2673_v17  ;;  %1942 = vmatprep.subr.bf16.mxu1 %v2676_v18  ;;  %v2707_v17 = vld [vmem:[%s3652_s4 + $0x2c0] ss:$16 sps:$4 sm:$0xff]   ;;  %v2710_v18 = vld [vmem:[%s3652_s4 + $0x2c8] ss:$16 sps:$4 sm:$0xff]  }
 0x155   :  { %v902_v30 = vpop.f32.mrb[0].mxu0  ;;  %v984_v31 = vpop.f32.mrb[0].mxu1 }
 0x156   :  { %v1013_v34 = vmul.f32 %v996_v24, %v902_v30  ;;  %v1015_v35 = vmul.f32 %v1004_v25, %v984_v31  ;;  %v904_v36 = vpop.f32.mrb[1].mxu0  ;;  %v986_v37 = vpop.f32.mrb[1].mxu1  ;;  %v2713_v24 = vld [vmem:[%s3652_s4 + $0x2e0] ss:$16 sps:$4 sm:$0xff]   ;;  %v2716_v25 = vld [vmem:[%s3652_s4 + $0x2e8] ss:$16 sps:$4 sm:$0xff]  }
 0x157   :  { %v1014_v38 = vmul.f32 %v1000_v26, %v904_v36  ;;  %v1016_v39 = vmul.f32 %v1008_v27, %v986_v37  ;;  %v906_v40 = vpop.f32.mrb[2].mxu0  ;;  %v988_v41 = vpop.f32.mrb[2].mxu1  ;;  %v2721_v26 = vld [vmem:[%s3652_s4 + $0x304] ss:$16 sps:$4 sm:$0xff]   ;;  %v2724_v27 = vld [vmem:[%s3652_s4 + $0x30c] ss:$16 sps:$4 sm:$0xff]  }
 0x158   :  { %v1039_v42 = vadd.f32 %v1022_v28, %v1013_v34  ;;  %v3438_v43 = vadd.f32 %v1030_v29, %v1015_v35  ;;  %v907_v44 = vpop.f32.mrb[3].mxu0  ;;  %v989_v45 = vpop.f32.mrb[3].mxu1  ;;  %v2719_v28 = vld [vmem:[%s3652_s4 + $0x300] ss:$16 sps:$4 sm:$0xff]   ;;  %v2722_v29 = vld [vmem:[%s3652_s4 + $0x308] ss:$16 sps:$4 sm:$0xff]  }
 0x159   :  { %v1040_v47 = vadd.f32 %v1026_v32, %v1014_v38  ;;  %v1042_v48 = vadd.f32 %v1034_v33, %v1016_v39  ;;  %v2727_v30 = vld [vmem:[%s3652_s4 + $0x324] ss:$16 sps:$4 sm:$0xff]   ;;  %v2730_v31 = vld [vmem:[%s3652_s4 + $0x32c] ss:$16 sps:$4 sm:$0xff]   ;;  %v2725_v32 = vld [vmem:[%s3652_s4 + $0x320] ss:$16 sps:$4 sm:$0xff]  }
 0x15a   :  { %v1043_v49 = vmax.f32 %v1039_v42, 0.0  ;;  %v2728_v33 = vld [vmem:[%s3652_s4 + $0x328] ss:$16 sps:$4 sm:$0xff]   ;;  %v2733_v34 = vld [vmem:[%s3652_s4 + $0x344] ss:$16 sps:$4 sm:$0xff]  }
 0x15b   :  { %v1044_v50 = vmax.f32 %v1040_v47, 0.0  ;;  %v1046_v52 = vmax.f32 %v1042_v48, 0.0  ;;  %v2736_v35 = vld [vmem:[%s3652_s4 + $0x34c] ss:$16 sps:$4 sm:$0xff]   ;;  %v2731_v36 = vld [vmem:[%s3652_s4 + $0x340] ss:$16 sps:$4 sm:$0xff]  }
 0x15c   :  { %v1047_v56 = vpack.c.bf16 %v1043_v49, %v1043_v49  ;;  %v2734_v37 = vld [vmem:[%s3652_s4 + $0x348] ss:$16 sps:$4 sm:$0xff]   ;;  %v2739_v38 = vld [vmem:[%s3652_s4 + $0x364] ss:$16 sps:$4 sm:$0xff]   ;;  %v2742_v39 = vld [vmem:[%s3652_s4 + $0x36c] ss:$16 sps:$4 sm:$0xff]  }
 0x15d   :  { %v1048_v53 = vpack.c.bf16 %v1044_v50, %v1044_v50  ;;  %v1050_v59 = vpack.c.bf16 %v1046_v52, %v1046_v52  ;;  %v2737_v40 = vld [vmem:[%s3652_s4 + $0x360] ss:$16 sps:$4 sm:$0xff]   ;;  %v2740_v41 = vld [vmem:[%s3652_s4 + $0x368] ss:$16 sps:$4 sm:$0xff]   ;;  %v2745_v42 = vld [vmem:[%s3652_s4 + $0x384] ss:$16 sps:$4 sm:$0xff]  }
 0x15e   :  { %v2748_v44 = vld [vmem:[%s3652_s4 + $0x38c] ss:$16 sps:$4 sm:$0xff]   ;;  %v2743_v45 = vld [vmem:[%s3652_s4 + $0x380] ss:$16 sps:$4 sm:$0xff]   ;;  %v2746_v47 = vld [vmem:[%s3652_s4 + $0x388] ss:$16 sps:$4 sm:$0xff]  }
 0x15f   :  { %1851 = vmatprep.mubr.bf16.mxu0 %v1048_v53  ;;  %1933 = vmatprep.mubr.bf16.mxu1 %v1048_v53  ;;  %v2751_v48 = vld [vmem:[%s3652_s4 + $0x3a4] ss:$16 sps:$4 sm:$0xff]   ;;  %v2754_v49 = vld [vmem:[%s3652_s4 + $0x3ac] ss:$16 sps:$4 sm:$0xff]   ;;  %v2749_v50 = vld [vmem:[%s3652_s4 + $0x3a0] ss:$16 sps:$4 sm:$0xff]  }
 0x160   :  { %1852 = vmatmul.mubr.bf16.vlgmr.msra.gmra.mrb[4].mxu0 %v1047_v56  ;;  %1934 = vmatmul.mubr.bf16.vlgmr.msra.gmra.mrb[4].mxu1 %v1047_v56  ;;  %v2752_v52 = vld [vmem:[%s3652_s4 + $0x3a8] ss:$16 sps:$4 sm:$0xff]   ;;  %v2757_v53 = vld [vmem:[%s3652_s4 + $0x3c4] ss:$16 sps:$4 sm:$0xff]  }
 0x161   :  { %1861 = vmatpush1.bf16.msra.mxu0 %v2671_v54  ;;  %1943 = vmatpush1.bf16.msra.mxu1 %v2674_v55  ;;  %v2760_v54 = vld [vmem:[%s3652_s4 + $0x3cc] ss:$16 sps:$4 sm:$0xff]   ;;  %v2755_v55 = vld [vmem:[%s3652_s4 + $0x3c0] ss:$16 sps:$4 sm:$0xff]   ;;  %v2758_v56 = vld [vmem:[%s3652_s4 + $0x3c8] ss:$16 sps:$4 sm:$0xff]  }
 0x162   :  { %1892 = vmatprep.mubr.bf16.mxu0 %v1050_v59  ;;  %1974 = vmatprep.mubr.bf16.mxu1 %v1050_v59  ;;  %v2761_v59 = vld [vmem:[%s3652_s4 + $0x3e0] ss:$16 sps:$4 sm:$0xff]  }
 0x163   :  { %1862 = vmatprep.subr.bf16.mxu0 %v2679_v57  ;;  %1944 = vmatprep.subr.bf16.mxu1 %v2682_v58  ;;  %v2763_v57 = vld [vmem:[%s3652_s4 + $0x3e4] ss:$16 sps:$4 sm:$0xff]   ;;  %v2766_v58 = vld [vmem:[%s3652_s4 + $0x3ec] ss:$16 sps:$4 sm:$0xff]  }
 0x165   :  { %1863 = vmatpush1.bf16.msra.mxu0 %v2677_v60  ;;  %1945 = vmatpush1.bf16.msra.mxu1 %v2680_v61  ;;  %v2764_v60 = vld [vmem:[%s3652_s4 + $0x3e8] ss:$16 sps:$4 sm:$0xff]   ;;  %v1045_v61 = vmax.f32 %v3438_v43, 0.0 }
 0x166   :  { %1864 = vmatprep.subr.bf16.mxu0 %v2685_v62  ;;  %1946 = vmatprep.subr.bf16.mxu1 %v2688_v63  ;;  %v2768_v63 = vmov 1983009808  }
 0x167   :  { %v1049_v62 = vpack.c.bf16 %v1045_v61, %v1045_v61 }
 0x169   :  { %1865 = vmatpush1.bf16.msra.mxu0 %v2683_v0  ;;  %1947 = vmatpush1.bf16.msra.mxu1 %v2686_v1  ;;  %v2040_v0 = vunpack.c.l.s4 %v2768_v63  ;;  %v2035_v1 = vld [vmem:[%s3655_s7] sm:$0xf] }
 0x16a   :  { %1866 = vmatprep.subr.bf16.mxu0 %v2691_v2  ;;  %1948 = vmatprep.subr.bf16.mxu1 %v2694_v3  ;;  %v2036_v2 = vunpack.c.l.bf16 %v2035_v1 }
 0x16b   :  { %v2041_v3 = vunpack.c.0.s8 %v2040_v0 }
 0x16d   :  { %1867 = vmatpush1.bf16.msra.mxu0 %v2689_v4  ;;  %1949 = vmatpush1.bf16.msra.mxu1 %v2692_v5  ;;  %v1983_v4 = vld [vmem:[%s3656_s5] sm:$0xf]  ;;  %v2044_v43 = vsub.s32 %v2041_v3, %v2940_v46  ;;  %v2038_v5 = vcombine.high %v2036_v2, %v2036_v2 }
 0x16e   :  { %1868 = vmatprep.subr.bf16.mxu0 %v2697_v6  ;;  %1950 = vmatprep.subr.bf16.mxu1 %v2700_v7  ;;  %v2009_v6 = vld [vmem:[%s3657_s6] sm:$0xf]  ;;  %v1988_v7 = vrot.slane %v1983_v4, %v3413_v19 }
 0x171   :  { %1869 = vmatpush1.bf16.msra.mxu0 %v2695_v8  ;;  %1951 = vmatpush1.bf16.msra.mxu1 %v2698_v9  ;;  %v1996_v8 = vrot.slane %v1983_v4, %v3416_v20  ;;  %v2045_v9 = vrot.slane %v2036_v2, %v2044_v43 }
 0x172   :  { %1870 = vmatprep.subr.bf16.mxu0 %v2703_v10  ;;  %1952 = vmatprep.subr.bf16.mxu1 %v2706_v11  ;;  %v2052_v10 = vrot.slane %v2038_v5, %v2044_v43  ;;  %v1992_v11 = vrot.slane %v1983_v4, %v3422_v12 }
 0x175   :  { %1871 = vmatpush1.bf16.msra.mxu0 %v2701_v13  ;;  %1953 = vmatpush1.bf16.msra.mxu1 %v2704_v14  ;;  %v2000_v13 = vrot.slane %v1983_v4, %v3425_v22  ;;  %v2014_v14 = vrot.slane %v2009_v6, %v3413_v19 }
 0x176   :  { %1872 = vmatprep.subr.bf16.mxu0 %v2709_v15  ;;  %1954 = vmatprep.subr.bf16.mxu1 %v2712_v16  ;;  %v2022_v15 = vrot.slane %v2009_v6, %v3416_v20 }
 0x179   :  { %1873 = vmatpush1.bf16.msra.mxu0 %v2707_v17  ;;  %1955 = vmatpush1.bf16.msra.mxu1 %v2710_v18  ;;  %v2018_v17 = vrot.slane %v2009_v6, %v3422_v12  ;;  %v2026_v18 = vrot.slane %v2009_v6, %v3425_v22 }
 0x17a   :  { %1874 = vmatprep.subr.bf16.mxu0 %v2715_v21  ;;  %1956 = vmatprep.subr.bf16.mxu1 %v2718_v23 }
 0x17d   :  { %1875 = vmatpush1.bf16.msra.mxu0 %v2713_v24  ;;  %1957 = vmatpush1.bf16.msra.mxu1 %v2716_v25 }
 0x17e   :  { %1876 = vmatprep.subr.bf16.mxu0 %v2721_v26  ;;  %1958 = vmatprep.subr.bf16.mxu1 %v2724_v27  ;;  %v2053_v27 = vcombine.high %v2045_v9, %v2045_v9 }
 0x181   :  { %1877 = vmatpush1.bf16.msra.mxu0 %v2719_v28  ;;  %1959 = vmatpush1.bf16.msra.mxu1 %v2722_v29  ;;  %v2054_v29 = vcombine.high %v2052_v10, %v2052_v10 }
 0x182   :  { %1878 = vmatprep.subr.bf16.mxu0 %v2727_v30  ;;  %1960 = vmatprep.subr.bf16.mxu1 %v2730_v31 }
 0x185   :  { %1879 = vmatpush1.bf16.msra.mxu0 %v2725_v32  ;;  %1961 = vmatpush1.bf16.msra.mxu1 %v2728_v33 }
 0x186   :  { %1880 = vmatprep.subr.bf16.mxu0 %v2733_v34  ;;  %1962 = vmatprep.subr.bf16.mxu1 %v2736_v35 }
 0x189   :  { %1881 = vmatpush1.bf16.msra.mxu0 %v2731_v36  ;;  %1963 = vmatpush1.bf16.msra.mxu1 %v2734_v37 }
 0x18a   :  { %1882 = vmatprep.subr.bf16.mxu0 %v2739_v38  ;;  %1964 = vmatprep.subr.bf16.mxu1 %v2742_v39 }
 0x18d   :  { %1883 = vmatpush1.bf16.msra.mxu0 %v2737_v40  ;;  %1965 = vmatpush1.bf16.msra.mxu1 %v2740_v41 }
 0x18e   :  { %1884 = vmatprep.subr.bf16.mxu0 %v2745_v42  ;;  %1966 = vmatprep.subr.bf16.mxu1 %v2748_v44 }
 0x191   :  { %1885 = vmatpush1.bf16.msra.mxu0 %v2743_v45  ;;  %1967 = vmatpush1.bf16.msra.mxu1 %v2746_v47 }
 0x192   :  { %1886 = vmatprep.subr.bf16.mxu0 %v2751_v48  ;;  %1968 = vmatprep.subr.bf16.mxu1 %v2754_v49 }
 0x195   :  { %1887 = vmatpush1.bf16.msra.mxu0 %v2749_v50  ;;  %1969 = vmatpush1.bf16.msra.mxu1 %v2752_v52 }
 0x196   :  { %1888 = vmatprep.subr.bf16.mxu0 %v2757_v53  ;;  %1970 = vmatprep.subr.bf16.mxu1 %v2760_v54 }
 0x199   :  { %1889 = vmatpush1.bf16.msra.mxu0 %v2755_v55  ;;  %1971 = vmatpush1.bf16.msra.mxu1 %v2758_v56 }
 0x19a   :  { %1890 = vmatprep.subr.bf16.mxu0 %v2763_v57  ;;  %1972 = vmatprep.subr.bf16.mxu1 %v2766_v58 }
 0x19d   :  { %1891 = vmatpush1.bf16.msra.mxu0 %v2761_v59  ;;  %1973 = vmatpush1.bf16.msra.mxu1 %v2764_v60 }
 0x1a0   :  { %1893 = vmatmul.mubr.bf16.vlgmr.msra.gmra.mrb[4].mxu0 %v1049_v62  ;;  %1975 = vmatmul.mubr.bf16.vlgmr.msra.gmra.mrb[4].mxu1 %v1049_v62 }
 0x273   :  { %v1894_v46 = vpop.f32.mrb[4].mxu0  ;;  %v1976_v16 = vpop.f32.mrb[4].mxu1 }
 0x274   :  { %v2005_v21 = vmul.f32 %v1988_v7, %v1894_v46  ;;  %v2007_v23 = vmul.f32 %v1996_v8, %v1976_v16  ;;  %v1896_v24 = vpop.f32.mrb[5].mxu0  ;;  %v1978_v25 = vpop.f32.mrb[5].mxu1 }
 0x275   :  { %v2006_v26 = vmul.f32 %v1992_v11, %v1896_v24  ;;  %v2008_v28 = vmul.f32 %v2000_v13, %v1978_v25  ;;  %v1898_v30 = vpop.f32.mrb[6].mxu0  ;;  %v1980_v31 = vpop.f32.mrb[6].mxu1 }
 0x276   :  { %v2031_v32 = vadd.f32 %v2014_v14, %v2005_v21  ;;  %v2033_v19 = vadd.f32 %v2022_v15, %v2007_v23  ;;  %v1899_v33 = vpop.f32.mrb[7].mxu0  ;;  %v1981_v20 = vpop.f32.mrb[7].mxu1 }
 0x277   :  { %v2032_v34 = vadd.f32 %v2018_v17, %v2006_v26  ;;  %v2034_v35 = vadd.f32 %v2026_v18, %v2008_v28 }
 0x278   :  { %v2059_v36 = vadd.f32 %v2045_v9, %v2031_v32  ;;  %v2061_v12 = vadd.f32 %v2052_v10, %v2033_v19 }
 0x279   :  { %v2060_v37 = vadd.f32 %v2053_v27, %v2032_v34  ;;  %v2062_v22 = vadd.f32 %v2054_v29, %v2034_v35 }
 0x27a   :  { %v2063_v38 = vmax.f32 %v2059_v36, 0.0  ;;  %v2065_v39 = vmax.f32 %v2061_v12, 0.0 }
 0x27b   :  { %v2064_v40 = vmax.f32 %v2060_v37, 0.0  ;;  %v2066_v41 = vmax.f32 %v2062_v22, 0.0 }
 0x27d   :  { %v2362_v42 = vpack.c.bf16 %v2064_v40, %v2063_v38  ;;  %v2363_v44 = vpack.c.bf16 %v2066_v41, %v2065_v39 }
 0x27f   :  { %v2083_v45 = vrot.slane %v2362_v42, %v2955_v51  ;;  %v2090_v47 = vrot.slane %v2363_v44, %v2955_v51 }
 0x281   :  { %v2091_v48 = vcombine.low %v2083_v45, %v2090_v47 }
 0x283   :  { %2364 = vst.sshfl [vmem:[%s3658_s8] sm:$0x55 pattern:$0x73625140] %v2091_v48 }

</bundles_post_ra>
